<compile_context>
chip_gen: v6e
topology: v6e:2x2x1
jax: 0.10.0
libtpu: 0.0.40
codegen_flags: <defaults>
</compile_context>

<pallas_src>
import jax
import jax.numpy as jnp
from jax.experimental import pallas as pl
from jax.experimental.pallas import tpu as pltpu

# ---- module hyper-parameters ----
DIM = 32                                 # C
NUM_HEADS = 4
HEAD_DIM = DIM // NUM_HEADS              # 8
MLP_RATIO = 4.0
MLP_HIDDEN = int(MLP_RATIO * DIM)        # 128
QKV_DIM = 3 * DIM                        # 96
IN_PROJ_OUT = MLP_HIDDEN + QKV_DIM       # 224
LN_EPS = 1e-5
SCALE = HEAD_DIM ** -0.5


# --------------------------------------------------------------------------
# Kernel
# --------------------------------------------------------------------------
def _psb_kernel(x_ref, vec_ref, w_mlp_in_ref, w_q_ref, w_k_ref, w_v_ref,
                w_attn_ref, w_mlp_out_ref, o_ref):
    """One batch-block: (TB, N, C) tokens fully resident in VMEM."""
    TB, N, C = x_ref.shape
    R = TB * N

    x3 = x_ref[...].astype(jnp.float32)          # (TB, N, C)
    x2 = x3.reshape(R, C)                        # free: N % 8 == 0

    vec = vec_ref[...]                           # (8, 128) f32, packed rows
    ln_w    = vec[0:1, :C]
    ln_b    = vec[1:2, :C]
    b_out   = vec[2:3, :C]                       # attn_out_bias + mlp_out_bias
    b_mlp_i = vec[3:4, :]                        # (1, MLP_HIDDEN)
    b_q     = vec[4:5, :C]                       # SCALE already folded in
    b_k     = vec[5:6, :C]
    b_v     = vec[6:7, :C]

    # ---- in_norm: LayerNorm over channels (f32) ----
    mu = jnp.mean(x2, axis=-1, keepdims=True)
    xc = x2 - mu
    var = jnp.mean(xc * xc, axis=-1, keepdims=True)
    y = xc * jax.lax.rsqrt(var + LN_EPS) * ln_w + ln_b          # (R, C)
    y_bf = y.astype(jnp.bfloat16)

    # ---- fused in_proj, split into four lane-aligned matmuls ----
    z_mlp = jnp.dot(y_bf, w_mlp_in_ref[...],
                    preferred_element_type=jnp.float32) + b_mlp_i   # (R, 128)
    q2 = jnp.dot(y_bf, w_q_ref[...],
                 preferred_element_type=jnp.float32) + b_q          # (R, 32)
    k2 = jnp.dot(y_bf, w_k_ref[...],
                 preferred_element_type=jnp.float32) + b_k          # (R, 32)
    v2 = jnp.dot(y_bf, w_v_ref[...],
                 preferred_element_type=jnp.float32) + b_v          # (R, 32)

    q = q2.reshape(TB, N, C).astype(jnp.bfloat16)                   # pre-scaled
    k = k2.reshape(TB, N, C).astype(jnp.bfloat16)
    v = v2.reshape(TB, N, C).astype(jnp.bfloat16)

    # ---- multi-head attention, batched over TB.  Per-head loop is unrolled
    # at trace time; head outputs are lane-concatenated (offsets 0/8/16/24
    # within one 32-lane tile) and projected with ONE K=32 matmul.
    heads = []
    for h in range(NUM_HEADS):
        sl = slice(h * HEAD_DIM, (h + 1) * HEAD_DIM)
        s = jnp.einsum("bqd,bkd->bqk", q[:, :, sl], k[:, :, sl],
                       preferred_element_type=jnp.float32)          # (TB,N,N)
        s = s - jnp.max(s, axis=-1, keepdims=True)
        p = jnp.exp(s)
        p = p * pl.reciprocal(jnp.sum(p, axis=-1, keepdims=True), approx=True)
        oh = jnp.einsum("bqk,bkd->bqd", p.astype(jnp.bfloat16), v[:, :, sl],
                        preferred_element_type=jnp.float32)         # (TB,N,hd)
        heads.append(oh)
    o_heads = jnp.concatenate(heads, axis=-1).reshape(R, C)         # (R, C)
    x_attn = jnp.dot(o_heads.astype(jnp.bfloat16), w_attn_ref[...],
                     preferred_element_type=jnp.float32)

    # ---- MLP branch: tanh-GELU (f32, EUP) then output projection ----
    h_mlp = jax.nn.gelu(z_mlp, approximate=True)                    # (R, 128)
    x_mlp = jnp.dot(h_mlp.astype(jnp.bfloat16), w_mlp_out_ref[...],
                    preferred_element_type=jnp.float32)

    # ---- residual (LayerScale / DropPath are Identity under defaults) ----
    out = x2 + x_attn + x_mlp + b_out
    o_ref[...] = out.reshape(TB, N, C).astype(o_ref.dtype)


# --------------------------------------------------------------------------
# One-time parameter preparation (hoisted out of the per-call path)
# --------------------------------------------------------------------------
def prepare_params(raw):
    """raw uses torch layout: ln_weight/ln_bias (C,), in_proj_weight (224, C),
       qkv_bias (96,), mlp_bias (128,), attn_out_weight (C, C),
       attn_out_bias (C,), mlp_out_weight (C, 128), mlp_out_bias (C,)."""
    f32 = jnp.float32
    bf16 = jnp.bfloat16

    w_in_t = raw["in_proj_weight"].astype(f32).T                    # (C, 224)
    w_mlp_in = w_in_t[:, :MLP_HIDDEN].astype(bf16)                  # (C, 128)
    # SCALE folded into the q columns (and q bias) once, here.
    w_q = (w_in_t[:, MLP_HIDDEN:MLP_HIDDEN + DIM] * SCALE).astype(bf16)
    w_k = w_in_t[:, MLP_HIDDEN + DIM:MLP_HIDDEN + 2 * DIM].astype(bf16)
    w_v = w_in_t[:, MLP_HIDDEN + 2 * DIM:].astype(bf16)
    w_attn = raw["attn_out_weight"].astype(f32).T.astype(bf16)      # (C, C)
    w_mlp_out = raw["mlp_out_weight"].astype(f32).T.astype(bf16)    # (128, C)

    # Fused in_proj bias applied POSITIONALLY as cat(qkv_bias, mlp_bias) over
    # the [mlp(128) | q | k | v] split, mirroring the torch forward exactly.
    b_in = jnp.concatenate([raw["qkv_bias"], raw["mlp_bias"]]).astype(f32)
    b_mlp_i = b_in[:MLP_HIDDEN]
    b_q = b_in[MLP_HIDDEN:MLP_HIDDEN + DIM] * SCALE
    b_k = b_in[MLP_HIDDEN + DIM:MLP_HIDDEN + 2 * DIM]
    b_v = b_in[MLP_HIDDEN + 2 * DIM:]
    b_out = raw["attn_out_bias"].astype(f32) + raw["mlp_out_bias"].astype(f32)

    def row(vrow):
        vrow = vrow.astype(f32)
        return jnp.pad(vrow, (0, 128 - vrow.shape[0]))[None, :]

    vec = jnp.concatenate([
        row(raw["ln_weight"]), row(raw["ln_bias"]), row(b_out),
        row(b_mlp_i), row(b_q), row(b_k), row(b_v),
        jnp.zeros((1, 128), f32),
    ], axis=0)                                                      # (8, 128)

    return {"vec": vec, "w_mlp_in": w_mlp_in, "w_q": w_q, "w_k": w_k,
            "w_v": w_v, "w_attn": w_attn, "w_mlp_out": w_mlp_out}


# --------------------------------------------------------------------------
# Wrapper
# --------------------------------------------------------------------------
def _default_num_blocks(B: int) -> int:
    # v5e/v6e have 1 TensorCore: a multi-step grid is a serial loop that only
    # adds ~0.35 us/step and halves matmul rows -> grid=(1,).  v7x has 2 TCs:
    # split the batch 2-way so both cores are used (benchmarked separately).
    try:
        kind = jax.devices()[0].device_kind.lower()
    except Exception:
        kind = ""
    two_tc = ("v7" in kind) or ("tpu7" in kind) or ("7x" in kind)
    return 2 if (two_tc and B >= 2 and B % 2 == 0) else 1


def _cost_estimate(B: int, N: int) -> pl.CostEstimate:
    R = B * N
    flops = 2 * R * DIM * IN_PROJ_OUT                       # fused in_proj
    flops += 2 * 2 * B * NUM_HEADS * N * N * HEAD_DIM       # scores + P@V
    flops += 2 * R * DIM * DIM                              # attn out proj
    flops += 2 * R * MLP_HIDDEN * DIM                       # mlp out proj
    trans = B * NUM_HEADS * N * N + R * MLP_HIDDEN + B * NUM_HEADS * N
    bytes_acc = (2 * R * DIM * 4
                 + 2 * (DIM * IN_PROJ_OUT + DIM * DIM + MLP_HIDDEN * DIM)
                 + 8 * 128 * 4)
    return pl.CostEstimate(flops=int(flops), transcendentals=int(trans),
                           bytes_accessed=int(bytes_acc))


def parallel_scaling_block(x, params, *, num_blocks=None):
    """x: (B, N, C) float32; params: output of prepare_params."""
    B, N, C = x.shape
    assert C == DIM and N % 8 == 0
    if num_blocks is None:
        num_blocks = _default_num_blocks(B)
    assert B % num_blocks == 0
    TB = B // num_blocks

    const = lambda b: (0, 0)
    return pl.pallas_call(
        _psb_kernel,
        out_shape=jax.ShapeDtypeStruct((B, N, C), x.dtype),
        grid_spec=pltpu.PrefetchScalarGridSpec(
            num_scalar_prefetch=0,
            grid=(num_blocks,),
            in_specs=[
                pl.BlockSpec((TB, N, C), lambda b: (b, 0, 0)),   # x
                pl.BlockSpec((8, 128), const),                   # packed vecs
                pl.BlockSpec((C, MLP_HIDDEN), const),            # w_mlp_in
                pl.BlockSpec((C, DIM), const),                   # w_q (scaled)
                pl.BlockSpec((C, DIM), const),                   # w_k
                pl.BlockSpec((C, DIM), const),                   # w_v
                pl.BlockSpec((C, C), const),                     # w_attn
                pl.BlockSpec((MLP_HIDDEN, C), const),            # w_mlp_out
            ],
            out_specs=pl.BlockSpec((TB, N, C), lambda b: (b, 0, 0)),
        ),
        compiler_params=pltpu.CompilerParams(
            dimension_semantics=("parallel",)),
        cost_estimate=_cost_estimate(B, N),
    )(x, params["vec"], params["w_mlp_in"], params["w_q"], params["w_k"],
      params["w_v"], params["w_attn"], params["w_mlp_out"])


# ---------------- pure-JAX reference (mirrors the PyTorch forward) ----------
def reference(x, raw):
    B, N, C = x.shape
    hi = jax.lax.Precision.HIGHEST
    mu = jnp.mean(x, axis=-1, keepdims=True)
    var = jnp.mean((x - mu) ** 2, axis=-1, keepdims=True)
    y = (x - mu) / jnp.sqrt(var + LN_EPS) * raw["ln_weight"] + raw["ln_bias"]

    b_in = jnp.concatenate([raw["qkv_bias"], raw["mlp_bias"]])   # positional
    z = jnp.einsum("bnc,oc->bno", y, raw["in_proj_weight"], precision=hi) + b_in
    x_mlp = z[..., :MLP_HIDDEN]
    q = z[..., MLP_HIDDEN:MLP_HIDDEN + C]
    k = z[..., MLP_HIDDEN + C:MLP_HIDDEN + 2 * C]
    v = z[..., MLP_HIDDEN + 2 * C:]

    resh = lambda t: t.reshape(B, N, NUM_HEADS, HEAD_DIM).transpose(0, 2, 1, 3)
    q, k, v = resh(q), resh(k), resh(v)
    attn = jnp.einsum("bhqd,bhkd->bhqk", q * SCALE, k, precision=hi)
    attn = jax.nn.softmax(attn, axis=-1)
    x_attn = jnp.einsum("bhqk,bhkd->bhqd", attn, v, precision=hi)
    x_attn = x_attn.transpose(0, 2, 1, 3).reshape(B, N, C)
    x_attn = jnp.einsum("bnc,dc->bnd", x_attn, raw["attn_out_weight"],
                        precision=hi) + raw["attn_out_bias"]

    x_mlp = jax.nn.gelu(x_mlp, approximate=False)
    x_mlp = jnp.einsum("bnh,dh->bnd", x_mlp, raw["mlp_out_weight"],
                       precision=hi) + raw["mlp_out_bias"]
    return x + x_attn + x_mlp


if __name__ == "__main__":
    key = jax.random.PRNGKey(0)
    B, N, C = 16, 16, DIM
    keys = jax.random.split(key, 9)

    x = jax.random.normal(keys[0], (B, N, C), jnp.float32)

    # Deterministic synthetic parameters in module (torch) layout.
    raw_params = {
        "ln_weight": 1.0 + 0.1 * jax.random.normal(keys[1], (C,), jnp.float32),
        "ln_bias": 0.05 * jax.random.normal(keys[2], (C,), jnp.float32),
        "in_proj_weight": 0.05 * jax.random.normal(
            keys[3], (IN_PROJ_OUT, C), jnp.float32),
        "qkv_bias": jnp.zeros((QKV_DIM,), jnp.float32),       # buffer: zeros
        "mlp_bias": 0.02 * jax.random.normal(keys[4], (MLP_HIDDEN,), jnp.float32),
        "attn_out_weight": 0.05 * jax.random.normal(keys[5], (C, C), jnp.float32),
        "attn_out_bias": 0.05 * jax.random.normal(keys[6], (C,), jnp.float32),
        "mlp_out_weight": 0.05 * jax.random.normal(
            keys[7], (C, MLP_HIDDEN), jnp.float32),
        "mlp_out_bias": 0.05 * jax.random.normal(keys[8], (C,), jnp.float32),
    }

    # One-time parameter prep (hoisted out of the per-call path).
    params = jax.tree_util.tree_map(jnp.asarray, prepare_params(raw_params))

    fwd = jax.jit(parallel_scaling_block)
    out = jax.block_until_ready(fwd(x, params))

    ref = reference(x, raw_params)

    assert out.shape == (B, N, C) and out.dtype == jnp.float32
    max_err = float(jnp.max(jnp.abs(out - ref)))
    # Kernel uses bf16 MXU operands (f32 accumulation), tanh-approx GELU and
    # an approx softmax reciprocal; reference is f32 at Precision.HIGHEST with
    # exact GELU — hence the bf16-appropriate tolerance (load-bearing).
    assert jnp.allclose(out, ref, atol=1e-2, rtol=1e-2), max_err
    print("KERNEL_OK")
</pallas_src>

<mosaic_0001>
module attributes {stable_mosaic.version = 11 : i64} {
  func.func @_psb_kernel(%arg0: i32, %arg1: memref<16x16x32xf32, #tpu.memory_space<vmem>>, %arg2: memref<8x128xf32, #tpu.memory_space<vmem>>, %arg3: memref<32x128xbf16, #tpu.memory_space<vmem>>, %arg4: memref<32x32xbf16, #tpu.memory_space<vmem>>, %arg5: memref<32x32xbf16, #tpu.memory_space<vmem>>, %arg6: memref<32x32xbf16, #tpu.memory_space<vmem>>, %arg7: memref<32x32xbf16, #tpu.memory_space<vmem>>, %arg8: memref<128x32xbf16, #tpu.memory_space<vmem>>, %arg9: memref<16x16x32xf32, #tpu.memory_space<vmem>>) attributes {dimension_semantics = [#tpu.dimension_semantics<parallel>], iteration_bounds = array<i64: 1>, scalar_prefetch = 0 : i64, scratch_operands = 0 : i64, tpu.core_type = #tpu.core_type<tc>, window_params = [{transform_indices = @transform_0, window_bounds = array<i64: 16, 16, 32>}, {pipeline_mode = #tpu.pipeline_mode<synchronous>, transform_indices = @transform_1, window_bounds = array<i64: 8, 128>}, {pipeline_mode = #tpu.pipeline_mode<synchronous>, transform_indices = @transform_2, window_bounds = array<i64: 32, 128>}, {pipeline_mode = #tpu.pipeline_mode<synchronous>, transform_indices = @transform_3, window_bounds = array<i64: 32, 32>}, {pipeline_mode = #tpu.pipeline_mode<synchronous>, transform_indices = @transform_4, window_bounds = array<i64: 32, 32>}, {pipeline_mode = #tpu.pipeline_mode<synchronous>, transform_indices = @transform_5, window_bounds = array<i64: 32, 32>}, {pipeline_mode = #tpu.pipeline_mode<synchronous>, transform_indices = @transform_6, window_bounds = array<i64: 32, 32>}, {pipeline_mode = #tpu.pipeline_mode<synchronous>, transform_indices = @transform_7, window_bounds = array<i64: 128, 32>}, {transform_indices = @transform_8, window_bounds = array<i64: 16, 16, 32>}]} {
    %c0 = arith.constant 0 : index
    %c0_0 = arith.constant 0 : index
    %c0_1 = arith.constant 0 : index
    %0 = vector.load %arg1[%c0, %c0_0, %c0_1] : memref<16x16x32xf32, #tpu.memory_space<vmem>>, vector<16x16x32xf32>
    %1 = vector.shape_cast %0 : vector<16x16x32xf32> to vector<256x32xf32>
    %c0_2 = arith.constant 0 : index
    %c0_3 = arith.constant 0 : index
    %2 = vector.load %arg2[%c0_2, %c0_3] : memref<8x128xf32, #tpu.memory_space<vmem>>, vector<8x128xf32>
    %3 = vector.extract_strided_slice %2 {offsets = [0, 0], sizes = [1, 32], strides = [1, 1]} : vector<8x128xf32> to vector<1x32xf32>
    %4 = vector.extract_strided_slice %2 {offsets = [1, 0], sizes = [1, 32], strides = [1, 1]} : vector<8x128xf32> to vector<1x32xf32>
    %5 = vector.extract_strided_slice %2 {offsets = [2, 0], sizes = [1, 32], strides = [1, 1]} : vector<8x128xf32> to vector<1x32xf32>
    %6 = vector.extract_strided_slice %2 {offsets = [3, 0], sizes = [1, 128], strides = [1, 1]} : vector<8x128xf32> to vector<1x128xf32>
    %7 = vector.extract_strided_slice %2 {offsets = [4, 0], sizes = [1, 32], strides = [1, 1]} : vector<8x128xf32> to vector<1x32xf32>
    %8 = vector.extract_strided_slice %2 {offsets = [5, 0], sizes = [1, 32], strides = [1, 1]} : vector<8x128xf32> to vector<1x32xf32>
    %9 = vector.extract_strided_slice %2 {offsets = [6, 0], sizes = [1, 32], strides = [1, 1]} : vector<8x128xf32> to vector<1x32xf32>
    %cst = arith.constant dense<0.000000e+00> : vector<256xf32>
    %10 = vector.multi_reduction <add>, %1, %cst [1] : vector<256x32xf32> to vector<256xf32>
    %11 = vector.shape_cast %10 : vector<256xf32> to vector<256x1xf32>
    %cst_4 = arith.constant 3.200000e+01 : f32
    %12 = vector.broadcast %cst_4 : f32 to vector<256x1xf32>
    %13 = arith.divf %11, %12 : vector<256x1xf32>
    %14 = vector.broadcast %13 : vector<256x1xf32> to vector<256x32xf32>
    %15 = arith.subf %1, %14 : vector<256x32xf32>
    %16 = arith.mulf %15, %15 : vector<256x32xf32>
    %cst_5 = arith.constant dense<0.000000e+00> : vector<256xf32>
    %17 = vector.multi_reduction <add>, %16, %cst_5 [1] : vector<256x32xf32> to vector<256xf32>
    %18 = vector.shape_cast %17 : vector<256xf32> to vector<256x1xf32>
    %cst_6 = arith.constant 3.200000e+01 : f32
    %19 = vector.broadcast %cst_6 : f32 to vector<256x1xf32>
    %20 = arith.divf %18, %19 : vector<256x1xf32>
    %cst_7 = arith.constant 9.99999974E-6 : f32
    %21 = vector.broadcast %cst_7 : f32 to vector<256x1xf32>
    %22 = arith.addf %20, %21 : vector<256x1xf32>
    %23 = math.rsqrt %22 : vector<256x1xf32>
    %24 = vector.broadcast %23 : vector<256x1xf32> to vector<256x32xf32>
    %25 = arith.mulf %15, %24 : vector<256x32xf32>
    %26 = vector.broadcast %3 : vector<1x32xf32> to vector<256x32xf32>
    %27 = arith.mulf %25, %26 : vector<256x32xf32>
    %28 = vector.broadcast %4 : vector<1x32xf32> to vector<256x32xf32>
    %29 = arith.addf %27, %28 : vector<256x32xf32>
    %30 = arith.truncf %29 : vector<256x32xf32> to vector<256x32xbf16>
    %c0_8 = arith.constant 0 : index
    %c0_9 = arith.constant 0 : index
    %31 = vector.load %arg3[%c0_8, %c0_9] : memref<32x128xbf16, #tpu.memory_space<vmem>>, vector<32x128xbf16>
    %cst_10 = arith.constant dense<0.000000e+00> : vector<256x128xf32>
    %32 = tpu.matmul %30, %31, %cst_10 {dimension_numbers = #tpu.dot_dimension_numbers<[1], [0], [0], [1], [0, 0, 1, 1], [], []>} : vector<256x32xbf16>, vector<32x128xbf16>, vector<256x128xf32> -> vector<256x128xf32>
    %33 = vector.broadcast %6 : vector<1x128xf32> to vector<256x128xf32>
    %34 = arith.addf %32, %33 : vector<256x128xf32>
    %c0_11 = arith.constant 0 : index
    %c0_12 = arith.constant 0 : index
    %35 = vector.load %arg4[%c0_11, %c0_12] : memref<32x32xbf16, #tpu.memory_space<vmem>>, vector<32x32xbf16>
    %cst_13 = arith.constant dense<0.000000e+00> : vector<256x32xf32>
    %36 = tpu.matmul %30, %35, %cst_13 {dimension_numbers = #tpu.dot_dimension_numbers<[1], [0], [0], [1], [0, 0, 1, 1], [], []>} : vector<256x32xbf16>, vector<32x32xbf16>, vector<256x32xf32> -> vector<256x32xf32>
    %37 = vector.broadcast %7 : vector<1x32xf32> to vector<256x32xf32>
    %38 = arith.addf %36, %37 : vector<256x32xf32>
    %c0_14 = arith.constant 0 : index
    %c0_15 = arith.constant 0 : index
    %39 = vector.load %arg5[%c0_14, %c0_15] : memref<32x32xbf16, #tpu.memory_space<vmem>>, vector<32x32xbf16>
    %cst_16 = arith.constant dense<0.000000e+00> : vector<256x32xf32>
    %40 = tpu.matmul %30, %39, %cst_16 {dimension_numbers = #tpu.dot_dimension_numbers<[1], [0], [0], [1], [0, 0, 1, 1], [], []>} : vector<256x32xbf16>, vector<32x32xbf16>, vector<256x32xf32> -> vector<256x32xf32>
    %41 = vector.broadcast %8 : vector<1x32xf32> to vector<256x32xf32>
    %42 = arith.addf %40, %41 : vector<256x32xf32>
    %c0_17 = arith.constant 0 : index
    %c0_18 = arith.constant 0 : index
    %43 = vector.load %arg6[%c0_17, %c0_18] : memref<32x32xbf16, #tpu.memory_space<vmem>>, vector<32x32xbf16>
    %cst_19 = arith.constant dense<0.000000e+00> : vector<256x32xf32>
    %44 = tpu.matmul %30, %43, %cst_19 {dimension_numbers = #tpu.dot_dimension_numbers<[1], [0], [0], [1], [0, 0, 1, 1], [], []>} : vector<256x32xbf16>, vector<32x32xbf16>, vector<256x32xf32> -> vector<256x32xf32>
    %45 = vector.broadcast %9 : vector<1x32xf32> to vector<256x32xf32>
    %46 = arith.addf %44, %45 : vector<256x32xf32>
    %47 = vector.shape_cast %38 : vector<256x32xf32> to vector<16x16x32xf32>
    %48 = arith.truncf %47 : vector<16x16x32xf32> to vector<16x16x32xbf16>
    %49 = vector.shape_cast %42 : vector<256x32xf32> to vector<16x16x32xf32>
    %50 = arith.truncf %49 : vector<16x16x32xf32> to vector<16x16x32xbf16>
    %51 = vector.shape_cast %46 : vector<256x32xf32> to vector<16x16x32xf32>
    %52 = arith.truncf %51 : vector<16x16x32xf32> to vector<16x16x32xbf16>
    %53 = vector.extract_strided_slice %48 {offsets = [0, 0, 0], sizes = [16, 16, 8], strides = [1, 1, 1]} : vector<16x16x32xbf16> to vector<16x16x8xbf16>
    %54 = vector.extract_strided_slice %50 {offsets = [0, 0, 0], sizes = [16, 16, 8], strides = [1, 1, 1]} : vector<16x16x32xbf16> to vector<16x16x8xbf16>
    "tpu.trace_start"() <{level = 10 : i32, message = "bqd,bkd->bqk"}> : () -> ()
    %cst_20 = arith.constant dense<0.000000e+00> : vector<16x16x16xf32>
    %55 = tpu.matmul %53, %54, %cst_20 {dimension_numbers = #tpu.dot_dimension_numbers<[2], [2], [1], [1], [0, 0, 0, 1, 1, 1], [0], [0]>} : vector<16x16x8xbf16>, vector<16x16x8xbf16>, vector<16x16x16xf32> -> vector<16x16x16xf32>
    "tpu.trace_stop"() : () -> ()
    %cst_21 = arith.constant dense<0xFF800000> : vector<16x16xf32>
    %56 = vector.multi_reduction <maximumf>, %55, %cst_21 [2] : vector<16x16x16xf32> to vector<16x16xf32>
    %57 = vector.shape_cast %56 : vector<16x16xf32> to vector<16x16x1xf32>
    %58 = vector.broadcast %57 : vector<16x16x1xf32> to vector<16x16x16xf32>
    %59 = arith.subf %55, %58 : vector<16x16x16xf32>
    %60 = math.exp %59 : vector<16x16x16xf32>
    %cst_22 = arith.constant dense<0.000000e+00> : vector<16x16xf32>
    %61 = vector.multi_reduction <add>, %60, %cst_22 [2] : vector<16x16x16xf32> to vector<16x16xf32>
    %62 = vector.shape_cast %61 : vector<16x16xf32> to vector<16x16x1xf32>
    %63 = tpu.reciprocal %62 {approx = true} : vector<16x16x1xf32> -> vector<16x16x1xf32>
    %64 = vector.broadcast %63 : vector<16x16x1xf32> to vector<16x16x16xf32>
    %65 = arith.mulf %60, %64 : vector<16x16x16xf32>
    %66 = arith.truncf %65 : vector<16x16x16xf32> to vector<16x16x16xbf16>
    %67 = vector.extract_strided_slice %52 {offsets = [0, 0, 0], sizes = [16, 16, 8], strides = [1, 1, 1]} : vector<16x16x32xbf16> to vector<16x16x8xbf16>
    "tpu.trace_start"() <{level = 10 : i32, message = "bqk,bkd->bqd"}> : () -> ()
    %cst_23 = arith.constant dense<0.000000e+00> : vector<16x16x8xf32>
    %68 = tpu.matmul %66, %67, %cst_23 {dimension_numbers = #tpu.dot_dimension_numbers<[2], [1], [1], [2], [0, 0, 0, 1, 1, 2], [0], [0]>} : vector<16x16x16xbf16>, vector<16x16x8xbf16>, vector<16x16x8xf32> -> vector<16x16x8xf32>
    "tpu.trace_stop"() : () -> ()
    %69 = vector.extract_strided_slice %48 {offsets = [0, 0, 8], sizes = [16, 16, 8], strides = [1, 1, 1]} : vector<16x16x32xbf16> to vector<16x16x8xbf16>
    %70 = vector.extract_strided_slice %50 {offsets = [0, 0, 8], sizes = [16, 16, 8], strides = [1, 1, 1]} : vector<16x16x32xbf16> to vector<16x16x8xbf16>
    "tpu.trace_start"() <{level = 10 : i32, message = "bqd,bkd->bqk"}> : () -> ()
    %cst_24 = arith.constant dense<0.000000e+00> : vector<16x16x16xf32>
    %71 = tpu.matmul %69, %70, %cst_24 {dimension_numbers = #tpu.dot_dimension_numbers<[2], [2], [1], [1], [0, 0, 0, 1, 1, 1], [0], [0]>} : vector<16x16x8xbf16>, vector<16x16x8xbf16>, vector<16x16x16xf32> -> vector<16x16x16xf32>
    "tpu.trace_stop"() : () -> ()
    %cst_25 = arith.constant dense<0xFF800000> : vector<16x16xf32>
    %72 = vector.multi_reduction <maximumf>, %71, %cst_25 [2] : vector<16x16x16xf32> to vector<16x16xf32>
    %73 = vector.shape_cast %72 : vector<16x16xf32> to vector<16x16x1xf32>
    %74 = vector.broadcast %73 : vector<16x16x1xf32> to vector<16x16x16xf32>
    %75 = arith.subf %71, %74 : vector<16x16x16xf32>
    %76 = math.exp %75 : vector<16x16x16xf32>
    %cst_26 = arith.constant dense<0.000000e+00> : vector<16x16xf32>
    %77 = vector.multi_reduction <add>, %76, %cst_26 [2] : vector<16x16x16xf32> to vector<16x16xf32>
    %78 = vector.shape_cast %77 : vector<16x16xf32> to vector<16x16x1xf32>
    %79 = tpu.reciprocal %78 {approx = true} : vector<16x16x1xf32> -> vector<16x16x1xf32>
    %80 = vector.broadcast %79 : vector<16x16x1xf32> to vector<16x16x16xf32>
    %81 = arith.mulf %76, %80 : vector<16x16x16xf32>
    %82 = arith.truncf %81 : vector<16x16x16xf32> to vector<16x16x16xbf16>
    %83 = vector.extract_strided_slice %52 {offsets = [0, 0, 8], sizes = [16, 16, 8], strides = [1, 1, 1]} : vector<16x16x32xbf16> to vector<16x16x8xbf16>
    "tpu.trace_start"() <{level = 10 : i32, message = "bqk,bkd->bqd"}> : () -> ()
    %cst_27 = arith.constant dense<0.000000e+00> : vector<16x16x8xf32>
    %84 = tpu.matmul %82, %83, %cst_27 {dimension_numbers = #tpu.dot_dimension_numbers<[2], [1], [1], [2], [0, 0, 0, 1, 1, 2], [0], [0]>} : vector<16x16x16xbf16>, vector<16x16x8xbf16>, vector<16x16x8xf32> -> vector<16x16x8xf32>
    "tpu.trace_stop"() : () -> ()
    %85 = vector.extract_strided_slice %48 {offsets = [0, 0, 16], sizes = [16, 16, 8], strides = [1, 1, 1]} : vector<16x16x32xbf16> to vector<16x16x8xbf16>
    %86 = vector.extract_strided_slice %50 {offsets = [0, 0, 16], sizes = [16, 16, 8], strides = [1, 1, 1]} : vector<16x16x32xbf16> to vector<16x16x8xbf16>
    "tpu.trace_start"() <{level = 10 : i32, message = "bqd,bkd->bqk"}> : () -> ()
    %cst_28 = arith.constant dense<0.000000e+00> : vector<16x16x16xf32>
    %87 = tpu.matmul %85, %86, %cst_28 {dimension_numbers = #tpu.dot_dimension_numbers<[2], [2], [1], [1], [0, 0, 0, 1, 1, 1], [0], [0]>} : vector<16x16x8xbf16>, vector<16x16x8xbf16>, vector<16x16x16xf32> -> vector<16x16x16xf32>
    "tpu.trace_stop"() : () -> ()
    %cst_29 = arith.constant dense<0xFF800000> : vector<16x16xf32>
    %88 = vector.multi_reduction <maximumf>, %87, %cst_29 [2] : vector<16x16x16xf32> to vector<16x16xf32>
    %89 = vector.shape_cast %88 : vector<16x16xf32> to vector<16x16x1xf32>
    %90 = vector.broadcast %89 : vector<16x16x1xf32> to vector<16x16x16xf32>
    %91 = arith.subf %87, %90 : vector<16x16x16xf32>
    %92 = math.exp %91 : vector<16x16x16xf32>
    %cst_30 = arith.constant dense<0.000000e+00> : vector<16x16xf32>
    %93 = vector.multi_reduction <add>, %92, %cst_30 [2] : vector<16x16x16xf32> to vector<16x16xf32>
    %94 = vector.shape_cast %93 : vector<16x16xf32> to vector<16x16x1xf32>
    %95 = tpu.reciprocal %94 {approx = true} : vector<16x16x1xf32> -> vector<16x16x1xf32>
    %96 = vector.broadcast %95 : vector<16x16x1xf32> to vector<16x16x16xf32>
    %97 = arith.mulf %92, %96 : vector<16x16x16xf32>
    %98 = arith.truncf %97 : vector<16x16x16xf32> to vector<16x16x16xbf16>
    %99 = vector.extract_strided_slice %52 {offsets = [0, 0, 16], sizes = [16, 16, 8], strides = [1, 1, 1]} : vector<16x16x32xbf16> to vector<16x16x8xbf16>
    "tpu.trace_start"() <{level = 10 : i32, message = "bqk,bkd->bqd"}> : () -> ()
    %cst_31 = arith.constant dense<0.000000e+00> : vector<16x16x8xf32>
    %100 = tpu.matmul %98, %99, %cst_31 {dimension_numbers = #tpu.dot_dimension_numbers<[2], [1], [1], [2], [0, 0, 0, 1, 1, 2], [0], [0]>} : vector<16x16x16xbf16>, vector<16x16x8xbf16>, vector<16x16x8xf32> -> vector<16x16x8xf32>
    "tpu.trace_stop"() : () -> ()
    %101 = vector.extract_strided_slice %48 {offsets = [0, 0, 24], sizes = [16, 16, 8], strides = [1, 1, 1]} : vector<16x16x32xbf16> to vector<16x16x8xbf16>
    %102 = vector.extract_strided_slice %50 {offsets = [0, 0, 24], sizes = [16, 16, 8], strides = [1, 1, 1]} : vector<16x16x32xbf16> to vector<16x16x8xbf16>
    "tpu.trace_start"() <{level = 10 : i32, message = "bqd,bkd->bqk"}> : () -> ()
    %cst_32 = arith.constant dense<0.000000e+00> : vector<16x16x16xf32>
    %103 = tpu.matmul %101, %102, %cst_32 {dimension_numbers = #tpu.dot_dimension_numbers<[2], [2], [1], [1], [0, 0, 0, 1, 1, 1], [0], [0]>} : vector<16x16x8xbf16>, vector<16x16x8xbf16>, vector<16x16x16xf32> -> vector<16x16x16xf32>
    "tpu.trace_stop"() : () -> ()
    %cst_33 = arith.constant dense<0xFF800000> : vector<16x16xf32>
    %104 = vector.multi_reduction <maximumf>, %103, %cst_33 [2] : vector<16x16x16xf32> to vector<16x16xf32>
    %105 = vector.shape_cast %104 : vector<16x16xf32> to vector<16x16x1xf32>
    %106 = vector.broadcast %105 : vector<16x16x1xf32> to vector<16x16x16xf32>
    %107 = arith.subf %103, %106 : vector<16x16x16xf32>
    %108 = math.exp %107 : vector<16x16x16xf32>
    %cst_34 = arith.constant dense<0.000000e+00> : vector<16x16xf32>
    %109 = vector.multi_reduction <add>, %108, %cst_34 [2] : vector<16x16x16xf32> to vector<16x16xf32>
    %110 = vector.shape_cast %109 : vector<16x16xf32> to vector<16x16x1xf32>
    %111 = tpu.reciprocal %110 {approx = true} : vector<16x16x1xf32> -> vector<16x16x1xf32>
    %112 = vector.broadcast %111 : vector<16x16x1xf32> to vector<16x16x16xf32>
    %113 = arith.mulf %108, %112 : vector<16x16x16xf32>
    %114 = arith.truncf %113 : vector<16x16x16xf32> to vector<16x16x16xbf16>
    %115 = vector.extract_strided_slice %52 {offsets = [0, 0, 24], sizes = [16, 16, 8], strides = [1, 1, 1]} : vector<16x16x32xbf16> to vector<16x16x8xbf16>
    "tpu.trace_start"() <{level = 10 : i32, message = "bqk,bkd->bqd"}> : () -> ()
    %cst_35 = arith.constant dense<0.000000e+00> : vector<16x16x8xf32>
    %116 = tpu.matmul %114, %115, %cst_35 {dimension_numbers = #tpu.dot_dimension_numbers<[2], [1], [1], [2], [0, 0, 0, 1, 1, 2], [0], [0]>} : vector<16x16x16xbf16>, vector<16x16x8xbf16>, vector<16x16x8xf32> -> vector<16x16x8xf32>
    "tpu.trace_stop"() : () -> ()
    %117 = tpu.concatenate %68, %84, %100, %116 in 2 : vector<16x16x8xf32>, vector<16x16x8xf32>, vector<16x16x8xf32>, vector<16x16x8xf32> -> vector<16x16x32xf32>
    %118 = vector.shape_cast %117 : vector<16x16x32xf32> to vector<256x32xf32>
    %119 = arith.truncf %118 : vector<256x32xf32> to vector<256x32xbf16>
    %c0_36 = arith.constant 0 : index
    %c0_37 = arith.constant 0 : index
    %120 = vector.load %arg7[%c0_36, %c0_37] : memref<32x32xbf16, #tpu.memory_space<vmem>>, vector<32x32xbf16>
    %cst_38 = arith.constant dense<0.000000e+00> : vector<256x32xf32>
    %121 = tpu.matmul %119, %120, %cst_38 {dimension_numbers = #tpu.dot_dimension_numbers<[1], [0], [0], [1], [0, 0, 1, 1], [], []>} : vector<256x32xbf16>, vector<32x32xbf16>, vector<256x32xf32> -> vector<256x32xf32>
    %122 = arith.mulf %34, %34 : vector<256x128xf32>
    %123 = arith.mulf %34, %122 : vector<256x128xf32>
    %cst_39 = arith.constant 4.471500e-02 : f32
    %124 = vector.broadcast %cst_39 : f32 to vector<256x128xf32>
    %125 = arith.mulf %124, %123 : vector<256x128xf32>
    %126 = arith.addf %34, %125 : vector<256x128xf32>
    %cst_40 = arith.constant 0.797884583 : f32
    %127 = vector.broadcast %cst_40 : f32 to vector<256x128xf32>
    %128 = arith.mulf %127, %126 : vector<256x128xf32>
    %129 = math.tanh %128 : vector<256x128xf32>
    %cst_41 = arith.constant 1.000000e+00 : f32
    %130 = vector.broadcast %cst_41 : f32 to vector<256x128xf32>
    %131 = arith.addf %130, %129 : vector<256x128xf32>
    %cst_42 = arith.constant 5.000000e-01 : f32
    %132 = vector.broadcast %cst_42 : f32 to vector<256x128xf32>
    %133 = arith.mulf %132, %131 : vector<256x128xf32>
    %134 = arith.mulf %34, %133 : vector<256x128xf32>
    %135 = arith.truncf %134 : vector<256x128xf32> to vector<256x128xbf16>
    %c0_43 = arith.constant 0 : index
    %c0_44 = arith.constant 0 : index
    %136 = vector.load %arg8[%c0_43, %c0_44] : memref<128x32xbf16, #tpu.memory_space<vmem>>, vector<128x32xbf16>
    %cst_45 = arith.constant dense<0.000000e+00> : vector<256x32xf32>
    %137 = tpu.matmul %135, %136, %cst_45 {dimension_numbers = #tpu.dot_dimension_numbers<[1], [0], [0], [1], [0, 0, 1, 1], [], []>} : vector<256x128xbf16>, vector<128x32xbf16>, vector<256x32xf32> -> vector<256x32xf32>
    %138 = arith.addf %1, %121 : vector<256x32xf32>
    %139 = arith.addf %138, %137 : vector<256x32xf32>
    %140 = vector.broadcast %5 : vector<1x32xf32> to vector<256x32xf32>
    %141 = arith.addf %139, %140 : vector<256x32xf32>
    %142 = vector.shape_cast %141 : vector<256x32xf32> to vector<16x16x32xf32>
    %c0_46 = arith.constant 0 : index
    %c0_47 = arith.constant 0 : index
    %c0_48 = arith.constant 0 : index
    %143 = vector.load %arg9[%c0_46, %c0_47, %c0_48] : memref<16x16x32xf32, #tpu.memory_space<vmem>>, vector<16x16x32xf32>
    tpu.vector_store %arg9[%c0_46, %c0_47, %c0_48], %142 {strides = array<i32>} : memref<16x16x32xf32, #tpu.memory_space<vmem>>, vector<16x16x32xf32>,
    return
  }
  func.func @transform_0(%arg0: i32) -> (i32, i32, i32) {
    %c0_i32 = arith.constant 0 : i32
    %c0_i32_0 = arith.constant 0 : i32
    %c0_i32_1 = arith.constant 0 : i32
    return %arg0, %c0_i32, %c0_i32_0 : i32, i32, i32
  }
  func.func @transform_1(%arg0: i32) -> (i32, i32) {
    %c0_i32 = arith.constant 0 : i32
    %c0_i32_0 = arith.constant 0 : i32
    %c0_i32_1 = arith.constant 0 : i32
    return %c0_i32, %c0_i32_0 : i32, i32
  }
  func.func @transform_2(%arg0: i32) -> (i32, i32) {
    %c0_i32 = arith.constant 0 : i32
    %c0_i32_0 = arith.constant 0 : i32
    %c0_i32_1 = arith.constant 0 : i32
    return %c0_i32, %c0_i32_0 : i32, i32
  }
  func.func @transform_3(%arg0: i32) -> (i32, i32) {
    %c0_i32 = arith.constant 0 : i32
    %c0_i32_0 = arith.constant 0 : i32
    %c0_i32_1 = arith.constant 0 : i32
    return %c0_i32, %c0_i32_0 : i32, i32
  }
  func.func @transform_4(%arg0: i32) -> (i32, i32) {
    %c0_i32 = arith.constant 0 : i32
    %c0_i32_0 = arith.constant 0 : i32
    %c0_i32_1 = arith.constant 0 : i32
    return %c0_i32, %c0_i32_0 : i32, i32
  }
  func.func @transform_5(%arg0: i32) -> (i32, i32) {
    %c0_i32 = arith.constant 0 : i32
    %c0_i32_0 = arith.constant 0 : i32
    %c0_i32_1 = arith.constant 0 : i32
    return %c0_i32, %c0_i32_0 : i32, i32
  }
  func.func @transform_6(%arg0: i32) -> (i32, i32) {
    %c0_i32 = arith.constant 0 : i32
    %c0_i32_0 = arith.constant 0 : i32
    %c0_i32_1 = arith.constant 0 : i32
    return %c0_i32, %c0_i32_0 : i32, i32
  }
  func.func @transform_7(%arg0: i32) -> (i32, i32) {
    %c0_i32 = arith.constant 0 : i32
    %c0_i32_0 = arith.constant 0 : i32
    %c0_i32_1 = arith.constant 0 : i32
    return %c0_i32, %c0_i32_0 : i32, i32
  }
  func.func @transform_8(%arg0: i32) -> (i32, i32, i32) {
    %c0_i32 = arith.constant 0 : i32
    %c0_i32_0 = arith.constant 0 : i32
    %c0_i32_1 = arith.constant 0 : i32
    return %arg0, %c0_i32, %c0_i32_0 : i32, i32, i32
  }
}

</mosaic_0001>

<bundles_post_ra>
// kernel: parallel_scaling_block.1
= control target key start
LH: loop header
LB: loop body
LE: loop exit
PB: predicated region body
PF: predicated region fallthrough
CT: control target
= control target key end

     0   :  { %13 = vsyncpa [#allocation3], 0  ;;  %s17580_s0 = inlined_call_operand.hbm [shape: f32[16,16,32], index: 0, kind: input, shape index: {}]   ;;  %s17581_s1 = inlined_call_operand.hbm [shape: f32[8,128], index: 1, kind: input, shape index: {}]   ;;  %s17582_s2 = inlined_call_operand.vmem [shape: bf16[32,128], index: 2, kind: input, shape index: {}]   ;;  %s17583_s3 = inlined_call_operand.vmem [shape: bf16[32,32], index: 3, kind: input, shape index: {}]   ;;  %s17584_s4 = inlined_call_operand.vmem [shape: bf16[32,32], index: 4, kind: input, shape index: {}]   ;;  %s17585_s5 = inlined_call_operand.vmem [shape: bf16[32,32], index: 5, kind: input, shape index: {}]   ;;  %s17586_s6 = inlined_call_operand.vmem [shape: bf16[32,32], index: 6, kind: input, shape index: {}]   ;;  %s17587_s7 = inlined_call_operand.vmem [shape: bf16[128,32], index: 7, kind: input, shape index: {}]   ;;  %s17588_s8 = inlined_call_operand.hbm [shape: f32[16,16,32], index: 8, kind: output, shape index: {}]  }
   0x1   :  { %14 = vsyncpa [#allocation6], 0 }
   0x2   :  { %15 = vsyncpa [#allocation4], 0  ;;  %s13104_s27 = smov [#allocation2]  }
   0x3   :  { %s21_s28 = sshll.u32 %s13104_s27, 4  ;;  %s22_s28 = int_to_ptr.vmem [resolvable:$true] %s21_s28 }
   0x4   :  { %s13046_s29 = scalar_lea.vmem %s22_s28, 4096  ;;  %p13051_p1 = scmp.lt.s32.totalorder %s22_s28, %s22_s28 }
   0x5   :  { %p13047_p0 = scmp.ne.s32.totalorder %s22_s28, %s13046_s29  ;;  %p13052_p2 = scmp.lt.s32.totalorder %s13046_s29, %s13046_s29 }
   0x7   :  { %p13053_p3 = por %p13052_p2, %p13051_p1 }
   0x9   :  { %p13054_p4 = pnand %p13053_p3, %p13047_p0 }
   0xb   :  { %13057 = shalt.err (!%p13054_p4)
}
   0xc   :  { %s13105_s30 = smov 128   ;;  %s13106_s9 = smov 8  }
   0xd   :  { %27 = dma.hbm_to_vmem [thread:$0]  %s17580_s0, 4096, %s22_s28, [#allocation3], %s13105_s30, %s13105_s30, %s13106_s9  }
   0xe   :  { %s13107_s12 = smov [#allocation5]  }
   0xf   :  { %s34_s13 = sshll.u32 %s13107_s12, 4  ;;  %s35_s13 = int_to_ptr.vmem [resolvable:$true] %s34_s13 }
  0x10   :  { %s13066_s14 = scalar_lea.vmem %s35_s13, 128  ;;  %p13071_p6 = scmp.lt.s32.totalorder %s35_s13, %s35_s13 }
  0x11   :  { %p13067_p5 = scmp.ne.s32.totalorder %s35_s13, %s13066_s14  ;;  %p13072_p7 = scmp.lt.s32.totalorder %s13066_s14, %s13066_s14 }
  0x13   :  { %p13073_p8 = por %p13072_p7, %p13071_p6 }
  0x15   :  { %p13074_p9 = pnand %p13073_p8, %p13067_p5 }
  0x17   :  { %13077 = shalt.err (!%p13074_p9)
}
  0x18   :  { %37 = dma.hbm_to_vmem [thread:$0]  %s17581_s1, 128, %s35_s13, [#allocation6]  }
  0x19   :  { %13098 = dma.done.wait [#allocation3], 4096  }
  0x1a   :  { %13099 = vsyncadd [#allocation3], 4294963200 }
  0x1b   :  { %13100 = dma.done.wait [#allocation6], 128  }
  0x1c   :  { %13101 = vsyncadd [#allocation6], 4294967168  ;;  %vm90_vm0 = vcmask 261120   ;;  %v13170_v0 = vld [vmem:[#allocation2] sm:$0xff]  ;;  %v13172_v1 = vld [vmem:[#allocation2 + $0x10] sm:$0xff]  ;;  %vm13109_vm1 = vmmov 0  }
  0x1d   :  { %v13174_v2 = vld [vmem:[#allocation2 + $0x8] sm:$0xff]  ;;  %v91_v3 = vsel %vm90_vm0, %v13170_v0, 0.0  ;;  %v97_v4 = vsel %vm90_vm0, %v13172_v1, 0.0  ;;  %v13180_v5 = vld [vmem:[#allocation2 + $0x18] sm:$0xff]  ;;  %v13186_v8 = vld [vmem:[#allocation2 + $0x20] sm:$0xff]  ;;  %vm1416_vm2 = vcmask 64512  }
  0x1e   :  { %92 = vadd.xlane.f32.xlu0 %v91_v3  ;;  %98 = vadd.xlane.f32.xlu1 %v97_v4  ;;  %v94_v6 = vsel %vm90_vm0, %v13174_v2, 0.0  ;;  %v100_v7 = vsel %vm90_vm0, %v13180_v5, 0.0  ;;  %v13188_v9 = vld [vmem:[#allocation2 + $0x28] sm:$0xff]  ;;  %v13190_v10 = vld [vmem:[#allocation2 + $0x30] sm:$0xff]  ;;  %v103_v11 = vsel %vm90_vm0, %v13186_v8, 0.0  ;;  %v13196_v13 = vld [vmem:[#allocation2 + $0x38] sm:$0xff] }
  0x1f   :  { %v106_v12 = vsel %vm90_vm0, %v13188_v9, 0.0  ;;  %v13198_v14 = vld [vmem:[#allocation2 + $0x40] sm:$0xff]  ;;  %v13200_v15 = vld [vmem:[#allocation2 + $0x48] sm:$0xff]  ;;  %v13202_v16 = vld [vmem:[#allocation2 + $0x50] sm:$0xff]  ;;  %v109_v18 = vsel %vm90_vm0, %v13190_v10, 0.0  ;;  %v112_v19 = vsel %vm90_vm0, %v13196_v13, 0.0 }
  0x20   :  { %v13204_v17 = vld [vmem:[#allocation2 + $0x58] sm:$0xff]  ;;  %v115_v20 = vsel %vm90_vm0, %v13198_v14, 0.0  ;;  %v118_v21 = vsel %vm90_vm0, %v13200_v15, 0.0  ;;  %v121_v22 = vsel %vm90_vm0, %v13202_v16, 0.0  ;;  %v13218_v24 = vld [vmem:[#allocation2 + $0x60] sm:$0xff]  ;;  %v13220_v25 = vld [vmem:[#allocation2 + $0x68] sm:$0xff] }
  0x21   :  { %v124_v23 = vsel %vm90_vm0, %v13204_v17, 0.0  ;;  %v127_v26 = vsel %vm90_vm0, %v13218_v24, 0.0  ;;  %v130_v27 = vsel %vm90_vm0, %v13220_v25, 0.0  ;;  %v13226_v28 = vld [vmem:[#allocation2 + $0x70] sm:$0xff]  ;;  %v13228_v29 = vld [vmem:[#allocation2 + $0x78] sm:$0xff]  ;;  %v13234_v32 = vld [vmem:[#allocation2 + $0x80] sm:$0xff] }
  0x22   :  { %95 = vadd.xlane.f32.xlu0 %v94_v6  ;;  %101 = vadd.xlane.f32.xlu1 %v100_v7  ;;  %v133_v30 = vsel %vm90_vm0, %v13226_v28, 0.0  ;;  %v136_v31 = vsel %vm90_vm0, %v13228_v29, 0.0  ;;  %v13236_v33 = vld [vmem:[#allocation2 + $0x88] sm:$0xff]  ;;  %v139_v34 = vsel %vm90_vm0, %v13234_v32, 0.0  ;;  %v13242_v36 = vld [vmem:[#allocation2 + $0x90] sm:$0xff]  ;;  %v13244_v37 = vld [vmem:[#allocation2 + $0x98] sm:$0xff] }
  0x23   :  { %v142_v35 = vsel %vm90_vm0, %v13236_v33, 0.0  ;;  %v145_v38 = vsel %vm90_vm0, %v13242_v36, 0.0  ;;  %v148_v39 = vsel %vm90_vm0, %v13244_v37, 0.0  ;;  %v13250_v40 = vld [vmem:[#allocation2 + $0xa0] sm:$0xff]  ;;  %v13252_v41 = vld [vmem:[#allocation2 + $0xa8] sm:$0xff]  ;;  %v13258_v44 = vld [vmem:[#allocation2 + $0xb0] sm:$0xff] }
  0x24   :  { %v151_v42 = vsel %vm90_vm0, %v13250_v40, 0.0  ;;  %v154_v43 = vsel %vm90_vm0, %v13252_v41, 0.0  ;;  %v13260_v45 = vld [vmem:[#allocation2 + $0xb8] sm:$0xff]  ;;  %v157_v46 = vsel %vm90_vm0, %v13258_v44, 0.0  ;;  %v13266_v48 = vld [vmem:[#allocation2 + $0xc0] sm:$0xff]  ;;  %v13268_v49 = vld [vmem:[#allocation2 + $0xc8] sm:$0xff] }
  0x25   :  { %v160_v47 = vsel %vm90_vm0, %v13260_v45, 0.0  ;;  %v163_v50 = vsel %vm90_vm0, %v13266_v48, 0.0  ;;  %v166_v51 = vsel %vm90_vm0, %v13268_v49, 0.0  ;;  %v13274_v52 = vld [vmem:[#allocation2 + $0xd0] sm:$0xff]  ;;  %v13276_v53 = vld [vmem:[#allocation2 + $0xd8] sm:$0xff]  ;;  %v13282_v56 = vld [vmem:[#allocation2 + $0xe0] sm:$0xff] }
  0x26   :  { %104 = vadd.xlane.f32.xlu0 %v103_v11  ;;  %107 = vadd.xlane.f32.xlu1 %v106_v12  ;;  %v169_v54 = vsel %vm90_vm0, %v13274_v52, 0.0  ;;  %v172_v55 = vsel %vm90_vm0, %v13276_v53, 0.0  ;;  %v13284_v57 = vld [vmem:[#allocation2 + $0xe8] sm:$0xff]  ;;  %v175_v58 = vsel %vm90_vm0, %v13282_v56, 0.0  ;;  %v13290_v60 = vld [vmem:[#allocation2 + $0xf0] sm:$0xff]  ;;  %v13292_v61 = vld [vmem:[#allocation2 + $0xf8] sm:$0xff] }
  0x27   :  { %v178_v59 = vsel %vm90_vm0, %v13284_v57, 0.0  ;;  %v181_v62 = vsel %vm90_vm0, %v13290_v60, 0.0  ;;  %v184_v63 = vsel %vm90_vm0, %v13292_v61, 0.0  ;;  %vm2169_vm3 = vcmask 130048   ;;  %s13111_s28 = smov 112   ;;  %s13112_s29 = smov 104  }
  0x28   :  { %s13113_s10 = smov 16   ;;  %s13114_s26 = smov 24   ;;  %vm9546_vm4 = vcmask 195584  }
  0x2a   :  { %110 = vadd.xlane.f32.xlu0 %v109_v18  ;;  %113 = vadd.xlane.f32.xlu1 %v112_v19 }
  0x2e   :  { %116 = vadd.xlane.f32.xlu0 %v115_v20  ;;  %119 = vadd.xlane.f32.xlu1 %v118_v21 }
  0x32   :  { %122 = vadd.xlane.f32.xlu0 %v121_v22  ;;  %125 = vadd.xlane.f32.xlu1 %v124_v23 }
  0x36   :  { %128 = vadd.xlane.f32.xlu0 %v127_v26  ;;  %131 = vadd.xlane.f32.xlu1 %v130_v27 }
  0x3a   :  { %134 = vadd.xlane.f32.xlu0 %v133_v30  ;;  %137 = vadd.xlane.f32.xlu1 %v136_v31 }
  0x3e   :  { %140 = vadd.xlane.f32.xlu0 %v139_v34  ;;  %143 = vadd.xlane.f32.xlu1 %v142_v35 }
  0x42   :  { %146 = vadd.xlane.f32.xlu0 %v145_v38  ;;  %149 = vadd.xlane.f32.xlu1 %v148_v39 }
  0x46   :  { %152 = vadd.xlane.f32.xlu0 %v151_v42  ;;  %155 = vadd.xlane.f32.xlu1 %v154_v43 }
  0x4a   :  { %158 = vadd.xlane.f32.xlu0 %v157_v46  ;;  %161 = vadd.xlane.f32.xlu1 %v160_v47 }
  0x4e   :  { %164 = vadd.xlane.f32.xlu0 %v163_v50  ;;  %167 = vadd.xlane.f32.xlu1 %v166_v51 }
  0x52   :  { %170 = vadd.xlane.f32.xlu0 %v169_v54  ;;  %173 = vadd.xlane.f32.xlu1 %v172_v55 }
  0x56   :  { %176 = vadd.xlane.f32.xlu0 %v175_v58  ;;  %179 = vadd.xlane.f32.xlu1 %v178_v59 }
  0x5a   :  { %182 = vadd.xlane.f32.xlu0 %v181_v62  ;;  %185 = vadd.xlane.f32.xlu1 %v184_v63 }
  0xa7   :  { %v93_v3 = vpop.xlane.xlu0 %92  ;;  %v99_v4 = vpop.xlane.xlu1 %98 }
  0xa8   :  { %v188_v6 = vmul.f32 0.03125, %v93_v3  ;;  %v190_v7 = vmul.f32 0.03125, %v99_v4 }
  0xaa   :  { %v13299_v11 = vsub.f32 %v13170_v0, %v188_v6  ;;  %v13302_v12 = vsub.f32 %v13172_v1, %v190_v7 }
  0xab   :  { %v96_v18 = vpop.xlane.xlu0 %95  ;;  %v102_v19 = vpop.xlane.xlu1 %101 }
  0xac   :  { %v189_v20 = vmul.f32 0.03125, %v96_v18  ;;  %v191_v21 = vmul.f32 0.03125, %v102_v19  ;;  %v252_v22 = vmul.f32 %v13299_v11, %v13299_v11  ;;  %v254_v23 = vmul.f32 %v13302_v12, %v13302_v12 }
  0xae   :  { %v13309_v26 = vsub.f32 %v13174_v2, %v189_v20  ;;  %v13312_v27 = vsub.f32 %v13180_v5, %v191_v21  ;;  %v284_v0 = vsel %vm90_vm0, %v252_v22, 0.0  ;;  %v290_v31 = vsel %vm90_vm0, %v254_v23, 0.0 }
  0xaf   :  { %285 = vadd.xlane.f32.xlu0 %v284_v0  ;;  %v105_v1 = vpop.xlane.xlu0 %104  ;;  %v108_v30 = vpop.xlane.xlu1 %107 }
  0xb0   :  { %v192_v34 = vmul.f32 0.03125, %v105_v1  ;;  %v193_v35 = vmul.f32 0.03125, %v108_v30  ;;  %v253_v38 = vmul.f32 %v13309_v26, %v13309_v26  ;;  %v255_v39 = vmul.f32 %v13312_v27, %v13312_v27 }
  0xb2   :  { %v13321_v2 = vsub.f32 %v13186_v8, %v192_v34  ;;  %v13324_v5 = vsub.f32 %v13188_v9, %v193_v35  ;;  %v287_v42 = vsel %vm90_vm0, %v253_v38, 0.0  ;;  %v293_v47 = vsel %vm90_vm0, %v255_v39, 0.0 }
  0xb3   :  { %291 = vadd.xlane.f32.xlu0 %v290_v31  ;;  %288 = vadd.xlane.f32.xlu1 %v287_v42  ;;  %v111_v43 = vpop.xlane.xlu0 %110  ;;  %v114_v46 = vpop.xlane.xlu1 %113 }
  0xb4   :  { %v194_v50 = vmul.f32 0.03125, %v111_v43  ;;  %v195_v51 = vmul.f32 0.03125, %v114_v46  ;;  %v256_v54 = vmul.f32 %v13321_v2, %v13321_v2  ;;  %v257_v8 = vmul.f32 %v13324_v5, %v13324_v5 }
  0xb6   :  { %v13333_v55 = vsub.f32 %v13190_v10, %v194_v50  ;;  %v13336_v9 = vsub.f32 %v13196_v13, %v195_v51  ;;  %v296_v58 = vsel %vm90_vm0, %v256_v54, 0.0  ;;  %v299_v63 = vsel %vm90_vm0, %v257_v8, 0.0 }
  0xb7   :  { %294 = vadd.xlane.f32.xlu1 %v293_v47  ;;  %297 = vadd.xlane.f32.xlu0 %v296_v58  ;;  %v117_v59 = vpop.xlane.xlu0 %116  ;;  %v120_v62 = vpop.xlane.xlu1 %119 }
  0xb8   :  { %v196_v3 = vmul.f32 0.03125, %v117_v59  ;;  %v197_v4 = vmul.f32 0.03125, %v120_v62  ;;  %v258_v6 = vmul.f32 %v13333_v55, %v13333_v55  ;;  %v259_v10 = vmul.f32 %v13336_v9, %v13336_v9 }
  0xba   :  { %v13345_v7 = vsub.f32 %v13198_v14, %v196_v3  ;;  %v13348_v13 = vsub.f32 %v13200_v15, %v197_v4  ;;  %v302_v18 = vsel %vm90_vm0, %v258_v6, 0.0  ;;  %v305_v21 = vsel %vm90_vm0, %v259_v10, 0.0 }
  0xbb   :  { %300 = vadd.xlane.f32.xlu1 %v299_v63  ;;  %303 = vadd.xlane.f32.xlu0 %v302_v18  ;;  %v123_v19 = vpop.xlane.xlu0 %122  ;;  %v126_v20 = vpop.xlane.xlu1 %125 }
  0xbc   :  { %v198_v22 = vmul.f32 0.03125, %v123_v19  ;;  %v199_v23 = vmul.f32 0.03125, %v126_v20  ;;  %v260_v0 = vmul.f32 %v13345_v7, %v13345_v7  ;;  %v261_v14 = vmul.f32 %v13348_v13, %v13348_v13 }
  0xbe   :  { %v13357_v1 = vsub.f32 %v13202_v16, %v198_v22  ;;  %v13360_v15 = vsub.f32 %v13204_v17, %v199_v23  ;;  %v308_v30 = vsel %vm90_vm0, %v260_v0, 0.0  ;;  %v311_v35 = vsel %vm90_vm0, %v261_v14, 0.0 }
  0xbf   :  { %306 = vadd.xlane.f32.xlu1 %v305_v21  ;;  %309 = vadd.xlane.f32.xlu0 %v308_v30  ;;  %v129_v31 = vpop.xlane.xlu0 %128  ;;  %v132_v34 = vpop.xlane.xlu1 %131 }
  0xc0   :  { %v200_v38 = vmul.f32 0.03125, %v129_v31  ;;  %v201_v39 = vmul.f32 0.03125, %v132_v34  ;;  %v262_v42 = vmul.f32 %v13357_v1, %v13357_v1  ;;  %v263_v16 = vmul.f32 %v13360_v15, %v13360_v15 }
  0xc2   :  { %v13369_v43 = vsub.f32 %v13218_v24, %v200_v38  ;;  %v13372_v17 = vsub.f32 %v13220_v25, %v201_v39  ;;  %v314_v46 = vsel %vm90_vm0, %v262_v42, 0.0  ;;  %v317_v51 = vsel %vm90_vm0, %v263_v16, 0.0 }
  0xc3   :  { %312 = vadd.xlane.f32.xlu1 %v311_v35  ;;  %315 = vadd.xlane.f32.xlu0 %v314_v46  ;;  %v135_v47 = vpop.xlane.xlu0 %134  ;;  %v138_v50 = vpop.xlane.xlu1 %137 }
  0xc4   :  { %v202_v54 = vmul.f32 0.03125, %v135_v47  ;;  %v203_v8 = vmul.f32 0.03125, %v138_v50  ;;  %v264_v58 = vmul.f32 %v13369_v43, %v13369_v43  ;;  %v265_v24 = vmul.f32 %v13372_v17, %v13372_v17 }
  0xc6   :  { %v13381_v59 = vsub.f32 %v13226_v28, %v202_v54  ;;  %v13384_v25 = vsub.f32 %v13228_v29, %v203_v8  ;;  %v320_v62 = vsel %vm90_vm0, %v264_v58, 0.0  ;;  %v323_v4 = vsel %vm90_vm0, %v265_v24, 0.0 }
  0xc7   :  { %318 = vadd.xlane.f32.xlu1 %v317_v51  ;;  %321 = vadd.xlane.f32.xlu0 %v320_v62  ;;  %v141_v63 = vpop.xlane.xlu0 %140  ;;  %v144_v3 = vpop.xlane.xlu1 %143  ;;  %v12347_v51 = vld [vmem:[%s17582_s2 + $0x8] sm:$0xff]  }
  0xc8   :  { %v204_v6 = vmul.f32 0.03125, %v141_v63  ;;  %v205_v10 = vmul.f32 0.03125, %v144_v3  ;;  %v266_v18 = vmul.f32 %v13381_v59, %v13381_v59  ;;  %v267_v28 = vmul.f32 %v13384_v25, %v13384_v25  ;;  %11095 = vmatprep.subr.bf16.mxu0 %v12347_v51 }
  0xc9   :  { %11096 = vmatpush3.bf16.msra.mxu0 %v12347_v51 }
  0xca   :  { %v13393_v19 = vsub.f32 %v13234_v32, %v204_v6  ;;  %v13396_v29 = vsub.f32 %v13236_v33, %v205_v10  ;;  %v326_v20 = vsel %vm90_vm0, %v266_v18, 0.0  ;;  %v329_v23 = vsel %vm90_vm0, %v267_v28, 0.0  ;;  %v12348_v6 = vld [vmem:[%s17582_s2] sm:$0xff]  }
  0xcb   :  { %324 = vadd.xlane.f32.xlu1 %v323_v4  ;;  %327 = vadd.xlane.f32.xlu0 %v326_v20  ;;  %v147_v21 = vpop.xlane.xlu0 %146  ;;  %v150_v22 = vpop.xlane.xlu1 %149 }
  0xcc   :  { %v206_v0 = vmul.f32 0.03125, %v147_v21  ;;  %v207_v14 = vmul.f32 0.03125, %v150_v22  ;;  %v268_v30 = vmul.f32 %v13393_v19, %v13393_v19  ;;  %v269_v32 = vmul.f32 %v13396_v29, %v13396_v29  ;;  %11097 = vmatprep.subr.bf16.mxu0 %v12348_v6 }
  0xcd   :  { %11098 = vmatpush3.bf16.msra.mxu0 %v12348_v6 }
  0xce   :  { %v13405_v31 = vsub.f32 %v13242_v36, %v206_v0  ;;  %v13408_v33 = vsub.f32 %v13244_v37, %v207_v14  ;;  %v332_v34 = vsel %vm90_vm0, %v268_v30, 0.0  ;;  %v335_v39 = vsel %vm90_vm0, %v269_v32, 0.0  ;;  %v13456_v14 = vld [vmem:[%s17583_s3 + $0x8] sm:$0xff]  }
  0xcf   :  { %330 = vadd.xlane.f32.xlu1 %v329_v23  ;;  %333 = vadd.xlane.f32.xlu0 %v332_v34  ;;  %v153_v35 = vpop.xlane.xlu0 %152  ;;  %v156_v38 = vpop.xlane.xlu1 %155 }
  0xd0   :  { %v208_v42 = vmul.f32 0.03125, %v153_v35  ;;  %v209_v16 = vmul.f32 0.03125, %v156_v38  ;;  %v270_v46 = vmul.f32 %v13405_v31, %v13405_v31  ;;  %v271_v36 = vmul.f32 %v13408_v33, %v13408_v33  ;;  %12091 = vmatprep.subr.bf16.mxu1 %v13456_v14  ;;  %11131 = vmatprep.subr.bf16.mxu0 %v13456_v14 }
  0xd1   :  { %12093 = vmatpush3.bf16.msra.mxu1 %v13456_v14 }
  0xd2   :  { %v13417_v47 = vsub.f32 %v13250_v40, %v208_v42  ;;  %v13420_v37 = vsub.f32 %v13252_v41, %v209_v16  ;;  %v338_v50 = vsel %vm90_vm0, %v270_v46, 0.0  ;;  %v341_v58 = vsel %vm90_vm0, %v271_v36, 0.0  ;;  %v13476_v46 = vld [vmem:[%s17583_s3] sm:$0xff]  }
  0xd3   :  { %336 = vadd.xlane.f32.xlu1 %v335_v39  ;;  %339 = vadd.xlane.f32.xlu0 %v338_v50  ;;  %v159_v54 = vpop.xlane.xlu0 %158  ;;  %v162_v8 = vpop.xlane.xlu1 %161 }
  0xd4   :  { %v210_v24 = vmul.f32 0.03125, %v159_v54  ;;  %v211_v62 = vmul.f32 0.03125, %v162_v8  ;;  %v272_v40 = vmul.f32 %v13417_v47, %v13417_v47  ;;  %v273_v41 = vmul.f32 %v13420_v37, %v13420_v37  ;;  %12092 = vmatprep.subr.bf16.mxu1 %v13476_v46 }
  0xd5   :  { %12094 = vmatpush3.bf16.msra.mxu1 %v13476_v46 }
  0xd6   :  { %v13432_v63 = vsub.f32 %v13258_v44, %v210_v24  ;;  %v13435_v3 = vsub.f32 %v13260_v45, %v211_v62  ;;  %v344_v4 = vsel %vm90_vm0, %v272_v40, 0.0  ;;  %v347_v28 = vsel %vm90_vm0, %v273_v41, 0.0 }
  0xd7   :  { %342 = vadd.xlane.f32.xlu1 %v341_v58  ;;  %345 = vadd.xlane.f32.xlu0 %v344_v4  ;;  %v165_v10 = vpop.xlane.xlu0 %164  ;;  %v168_v18 = vpop.xlane.xlu1 %167 }
  0xd8   :  { %v212_v20 = vmul.f32 0.03125, %v165_v10  ;;  %v213_v21 = vmul.f32 0.03125, %v168_v18  ;;  %v274_v44 = vmul.f32 %v13432_v63, %v13432_v63  ;;  %v275_v45 = vmul.f32 %v13435_v3, %v13435_v3 }
  0xda   :  { %v13447_v22 = vsub.f32 %v13266_v48, %v212_v20  ;;  %v13450_v23 = vsub.f32 %v13268_v49, %v213_v21  ;;  %v350_v0 = vsel %vm90_vm0, %v274_v44, 0.0  ;;  %v353_v34 = vsel %vm90_vm0, %v275_v45, 0.0 }
  0xdb   :  { %348 = vadd.xlane.f32.xlu1 %v347_v28  ;;  %351 = vadd.xlane.f32.xlu0 %v350_v0  ;;  %v171_v30 = vpop.xlane.xlu0 %170  ;;  %v174_v32 = vpop.xlane.xlu1 %173 }
  0xdc   :  { %v214_v35 = vmul.f32 0.03125, %v171_v30  ;;  %v215_v38 = vmul.f32 0.03125, %v174_v32  ;;  %v276_v48 = vmul.f32 %v13447_v22, %v13447_v22  ;;  %v277_v49 = vmul.f32 %v13450_v23, %v13450_v23 }
  0xde   :  { %v13467_v39 = vsub.f32 %v13274_v52, %v214_v35  ;;  %v13470_v42 = vsub.f32 %v13276_v53, %v215_v38  ;;  %v356_v16 = vsel %vm90_vm0, %v276_v48, 0.0  ;;  %v359_v51 = vsel %vm90_vm0, %v277_v49, 0.0 }
  0xdf   :  { %354 = vadd.xlane.f32.xlu1 %v353_v34  ;;  %357 = vadd.xlane.f32.xlu0 %v356_v16  ;;  %v177_v36 = vpop.xlane.xlu0 %176  ;;  %v180_v50 = vpop.xlane.xlu1 %179  ;;  %v508_v16 = vlaneseq }
  0xe0   :  { %v216_v54 = vmul.f32 0.03125, %v177_v36  ;;  %v217_v8 = vmul.f32 0.03125, %v180_v50  ;;  %v278_v52 = vmul.f32 %v13467_v39, %v13467_v39  ;;  %v279_v53 = vmul.f32 %v13470_v42, %v13470_v42 }
  0xe2   :  { %v13486_v58 = vsub.f32 %v13282_v56, %v216_v54  ;;  %v13489_v24 = vsub.f32 %v13284_v57, %v217_v8  ;;  %v362_v62 = vsel %vm90_vm0, %v278_v52, 0.0  ;;  %v365_v4 = vsel %vm90_vm0, %v279_v53, 0.0 }
  0xe3   :  { %360 = vadd.xlane.f32.xlu1 %v359_v51  ;;  %363 = vadd.xlane.f32.xlu0 %v362_v62  ;;  %v183_v40 = vpop.xlane.xlu0 %182  ;;  %v186_v41 = vpop.xlane.xlu1 %185  ;;  %v13517_v53 = vshrl.u32 %v508_v16, 7 }
  0xe4   :  { %v218_v6 = vmul.f32 0.03125, %v183_v40  ;;  %v219_v10 = vmul.f32 0.03125, %v186_v41  ;;  %v280_v18 = vmul.f32 %v13486_v58, %v13486_v58  ;;  %v281_v56 = vmul.f32 %v13489_v24, %v13489_v24 }
  0xe5   :  { %17738 = vst [vmem:[#allocation11_spill] sm:$0xff] %v13517_v53 }
  0xe6   :  { %v13498_v28 = vsub.f32 %v13290_v60, %v218_v6  ;;  %v13501_v57 = vsub.f32 %v13292_v61, %v219_v10  ;;  %v368_v20 = vsel %vm90_vm0, %v280_v18, 0.0  ;;  %v371_v21 = vsel %vm90_vm0, %v281_v56, 0.0  ;;  %v13514_v61 = vld [vmem:[%s17585_s5 + $0x8] sm:$0xff]  }
  0xe7   :  { %366 = vadd.xlane.f32.xlu1 %v365_v4  ;;  %369 = vadd.xlane.f32.xlu0 %v368_v20  ;;  %v510_v18 = vsub.s32 0, %v13517_v53 }
  0xe8   :  { %v282_v44 = vmul.f32 %v13498_v28, %v13498_v28  ;;  %v283_v45 = vmul.f32 %v13501_v57, %v13501_v57  ;;  %11203 = vmatprep.subr.bf16.mxu1 %v13514_v61 }
  0xea   :  { %v374_v0 = vsel %vm90_vm0, %v282_v44, 0.0  ;;  %v377_v60 = vsel %vm90_vm0, %v283_v45, 0.0 }
  0xeb   :  { %372 = vadd.xlane.f32.xlu1 %v371_v21  ;;  %375 = vadd.xlane.f32.xlu0 %v374_v0  ;;  %v13520_v21 = vld [vmem:[#allocation5] sm:$0xff] }
  0xef   :  { %378 = vadd.xlane.f32.xlu1 %v377_v60 }
 0x138   :  { %v286_v30 = vpop.xlane.xlu0 %285 }
 0x139   :  { %v380_v32 = vmul.f32 0.03125, %v286_v30 }
 0x13b   :  { %v412_v34 = vadd.f32 1e-05, %v380_v32  ;;  %v13523_v32 = vrot.slane %v13520_v21, %v510_v18 }
 0x13c   :  { %v289_v35 = vpop.xlane.xlu1 %288  ;;  %v292_v38 = vpop.xlane.xlu0 %291 }
 0x13d   :  { %12365 = vrsqrt.f32 %v412_v34  ;;  %v381_v48 = vmul.f32 0.03125, %v289_v35  ;;  %v382_v49 = vmul.f32 0.03125, %v292_v38  ;;  %v546_v34 = vsub.s32 1, %v13517_v53 }
 0x13f   :  { %v413_v36 = vadd.f32 1e-05, %v381_v48  ;;  %v414_v50 = vadd.f32 1e-05, %v382_v49 }
 0x140   :  { %v295_v51 = vpop.xlane.xlu1 %294  ;;  %v298_v54 = vpop.xlane.xlu0 %297 }
 0x141   :  { %12367 = vrsqrt.f32 %v413_v36  ;;  %v383_v8 = vmul.f32 0.03125, %v295_v51  ;;  %v384_v52 = vmul.f32 0.03125, %v298_v54 }
 0x142   :  { %12369 = vrsqrt.f32 %v414_v50 }
 0x143   :  { %v415_v62 = vadd.f32 1e-05, %v383_v8  ;;  %v416_v40 = vadd.f32 1e-05, %v384_v52  ;;  %v13529_v8 = vrot.slane %v13520_v21, %v546_v34 }
 0x144   :  { %v301_v41 = vpop.xlane.xlu1 %300  ;;  %v304_v4 = vpop.xlane.xlu0 %303 }
 0x145   :  { %12371 = vrsqrt.f32 %v415_v62  ;;  %v385_v6 = vmul.f32 0.03125, %v301_v41  ;;  %v386_v10 = vmul.f32 0.03125, %v304_v4 }
 0x146   :  { %12373 = vrsqrt.f32 %v416_v40 }
 0x147   :  { %v417_v56 = vadd.f32 1e-05, %v385_v6  ;;  %v418_v20 = vadd.f32 1e-05, %v386_v10 }
 0x148   :  { %v307_v44 = vpop.xlane.xlu1 %306  ;;  %v310_v45 = vpop.xlane.xlu0 %309 }
 0x149   :  { %12375 = vrsqrt.f32 %v417_v56  ;;  %v387_v0 = vmul.f32 0.03125, %v307_v44  ;;  %v388_v60 = vmul.f32 0.03125, %v310_v45 }
 0x14a   :  { %v12366_v30 = vpop.eup %12365  ;;  %12377 = vrsqrt.f32 %v418_v20 }
 0x14b   :  { %v419_v35 = vadd.f32 1e-05, %v387_v0  ;;  %v420_v38 = vadd.f32 1e-05, %v388_v60  ;;  %v476_v48 = vmul.f32 %v12366_v30, %v13299_v11 }
 0x14c   :  { %v313_v49 = vpop.xlane.xlu1 %312  ;;  %v316_v16 = vpop.xlane.xlu0 %315 }
 0x14d   :  { %12379 = vrsqrt.f32 %v419_v35  ;;  %v389_v36 = vmul.f32 0.03125, %v313_v49  ;;  %v390_v50 = vmul.f32 0.03125, %v316_v16  ;;  %v512_v54 = vmul.f32 %v13523_v32, %v476_v48 }
 0x14e   :  { %v12368_v51 = vpop.eup %12367  ;;  %12381 = vrsqrt.f32 %v420_v38 }
 0x14f   :  { %v12370_v52 = vpop.eup %12369  ;;  %v421_v62 = vadd.f32 1e-05, %v389_v36  ;;  %v422_v40 = vadd.f32 1e-05, %v390_v50  ;;  %v477_v41 = vmul.f32 %v12368_v51, %v13309_v26  ;;  %v548_v44 = vadd.f32 %v13529_v8, %v512_v54 }
 0x150   :  { %v319_v4 = vpop.xlane.xlu1 %318  ;;  %v322_v6 = vpop.xlane.xlu0 %321  ;;  %v478_v11 = vmul.f32 %v12370_v52, %v13302_v12 }
 0x151   :  { %12383 = vrsqrt.f32 %v421_v62  ;;  %v391_v10 = vmul.f32 0.03125, %v319_v4  ;;  %v392_v18 = vmul.f32 0.03125, %v322_v6  ;;  %v513_v56 = vmul.f32 %v13523_v32, %v477_v41 }
 0x152   :  { %v12372_v20 = vpop.eup %12371  ;;  %12385 = vrsqrt.f32 %v422_v40  ;;  %v514_v12 = vmul.f32 %v13523_v32, %v478_v11 }
 0x153   :  { %v12374_v45 = vpop.eup %12373  ;;  %v423_v0 = vadd.f32 1e-05, %v391_v10  ;;  %v424_v60 = vadd.f32 1e-05, %v392_v18  ;;  %v549_v30 = vadd.f32 %v13529_v8, %v513_v56  ;;  %v479_v26 = vmul.f32 %v12372_v20, %v13312_v27 }
 0x154   :  { %v325_v34 = vpop.xlane.xlu1 %324  ;;  %v328_v35 = vpop.xlane.xlu0 %327  ;;  %v480_v38 = vmul.f32 %v12374_v45, %v13321_v2  ;;  %v550_v41 = vadd.f32 %v13529_v8, %v514_v12 }
 0x155   :  { %12387 = vrsqrt.f32 %v423_v0  ;;  %v393_v48 = vmul.f32 0.03125, %v325_v34  ;;  %v394_v49 = vmul.f32 0.03125, %v328_v35  ;;  %v13539_v16 = vpack.c.bf16 %v549_v30, %v548_v44 }
 0x156   :  { %v12376_v36 = vpop.eup %12375  ;;  %12389 = vrsqrt.f32 %v424_v60  ;;  %v515_v50 = vmul.f32 %v13523_v32, %v479_v26  ;;  %v516_v51 = vmul.f32 %v13523_v32, %v480_v38 }
 0x157   :  { %v12378_v54 = vpop.eup %12377  ;;  %v425_v52 = vadd.f32 1e-05, %v393_v48  ;;  %v426_v27 = vadd.f32 1e-05, %v394_v49  ;;  %11099 = vmatprep.mubr.msk.bf16.mxu0 %vm90_vm0, %v13539_v16  ;;  %v481_v62 = vmul.f32 %v12376_v36, %v13324_v5 }
 0x158   :  { %v331_v2 = vpop.xlane.xlu1 %330  ;;  %v334_v40 = vpop.xlane.xlu0 %333  ;;  %v551_v4 = vadd.f32 %v13529_v8, %v515_v50  ;;  %v482_v6 = vmul.f32 %v12378_v54, %v13333_v55  ;;  %v552_v44 = vadd.f32 %v13529_v8, %v516_v51  ;;  %v13568_v50 = vld [vmem:[%s17584_s4 + $0x8] sm:$0xff]  }
 0x159   :  { %12391 = vrsqrt.f32 %v425_v52  ;;  %v395_v11 = vmul.f32 0.03125, %v331_v2  ;;  %v396_v10 = vmul.f32 0.03125, %v334_v40  ;;  %v517_v18 = vmul.f32 %v13523_v32, %v481_v62 }
 0x15a   :  { %v12380_v56 = vpop.eup %12379  ;;  %12393 = vrsqrt.f32 %v426_v27  ;;  %v13550_v20 = vpack.c.bf16 %v551_v4, %v550_v41  ;;  %v518_v34 = vmul.f32 %v13523_v32, %v482_v6 }
 0x15b   :  { %v12382_v5 = vpop.eup %12381  ;;  %v427_v45 = vadd.f32 1e-05, %v395_v11  ;;  %v428_v0 = vadd.f32 1e-05, %v396_v10  ;;  %v553_v60 = vadd.f32 %v13529_v8, %v517_v18  ;;  %v483_v30 = vmul.f32 %v12380_v56, %v13336_v9  ;;  %v12352_v18 = vld [vmem:[%s17585_s5] sm:$0xff]  }
 0x15c   :  { %11100 = vmatmul.mubr.msk.bf16.vlgmr.msra.gmra.mxu0 %vm90_vm0, %v13550_v20  ;;  %v337_v55 = vpop.xlane.xlu1 %336  ;;  %v340_v26 = vpop.xlane.xlu0 %339  ;;  %v484_v35 = vmul.f32 %v12382_v5, %v13345_v7  ;;  %v554_v62 = vadd.f32 %v13529_v8, %v518_v34 }
 0x15d   :  { %12395 = vrsqrt.f32 %v427_v45  ;;  %v397_v12 = vmul.f32 0.03125, %v337_v55  ;;  %v398_v38 = vmul.f32 0.03125, %v340_v26  ;;  %v13559_v48 = vpack.c.bf16 %v553_v60, %v552_v44  ;;  %11132 = vmatpush3.bf16.msra.mxu0 %v13456_v14 }
 0x15e   :  { %v12384_v49 = vpop.eup %12383  ;;  %12397 = vrsqrt.f32 %v428_v0  ;;  %v519_v9 = vmul.f32 %v13523_v32, %v483_v30  ;;  %v520_v36 = vmul.f32 %v13523_v32, %v484_v35  ;;  %11133 = vmatprep.subr.bf16.mxu0 %v13476_v46 }
 0x15f   :  { %v12386_v7 = vpop.eup %12385  ;;  %v429_v51 = vadd.f32 1e-05, %v397_v12  ;;  %v430_v54 = vadd.f32 1e-05, %v398_v38  ;;  %11103 = vmatprep.mubr.msk.bf16.mxu0 %vm90_vm0, %v13559_v48  ;;  %11139 = vmatprep.mubr.msk.bf16.mxu1 %vm90_vm0, %v13559_v48  ;;  %v485_v14 = vmul.f32 %v12384_v49, %v13348_v13 }
 0x160   :  { %v343_v52 = vpop.xlane.xlu1 %342  ;;  %v346_v27 = vpop.xlane.xlu0 %345  ;;  %v555_v2 = vadd.f32 %v13529_v8, %v519_v9  ;;  %v486_v40 = vmul.f32 %v12386_v7, %v13357_v1  ;;  %v556_v13 = vadd.f32 %v13529_v8, %v520_v36 }
 0x161   :  { %12399 = vrsqrt.f32 %v429_v51  ;;  %v399_v41 = vmul.f32 0.03125, %v343_v52  ;;  %v400_v4 = vmul.f32 0.03125, %v346_v27  ;;  %v521_v6 = vmul.f32 %v13523_v32, %v485_v14  ;;  %11134 = vmatpush3.bf16.msra.mxu0 %v13476_v46 }
 0x162   :  { %v12388_v11 = vpop.eup %12387  ;;  %12401 = vrsqrt.f32 %v430_v54  ;;  %v13580_v10 = vpack.c.bf16 %v555_v2, %v554_v62  ;;  %11167 = vmatprep.subr.bf16.mxu0 %v13568_v50  ;;  %v522_v60 = vmul.f32 %v13523_v32, %v486_v40 }
 0x163   :  { %v12390_v1 = vpop.eup %12389  ;;  %v431_v56 = vadd.f32 1e-05, %v399_v41  ;;  %v432_v44 = vadd.f32 1e-05, %v400_v4  ;;  %v557_v5 = vadd.f32 %v13529_v8, %v521_v6  ;;  %v487_v45 = vmul.f32 %v12388_v11, %v13360_v15 }
 0x164   :  { %11104 = vmatmul.mubr.msk.bf16.gmra.mxu0 %vm90_vm0, %v13580_v10  ;;  %11140 = vmatmul.mubr.msk.bf16.vlgmr.msra.gmra.mxu1 %vm90_vm0, %v13580_v10  ;;  %v349_v46 = vpop.xlane.xlu1 %348  ;;  %v352_v0 = vpop.xlane.xlu0 %351  ;;  %v488_v30 = vmul.f32 %v12390_v1, %v13369_v43  ;;  %v558_v7 = vadd.f32 %v13529_v8, %v522_v60 }
 0x165   :  { %12403 = vrsqrt.f32 %v431_v56  ;;  %v401_v55 = vmul.f32 0.03125, %v349_v46  ;;  %v402_v26 = vmul.f32 0.03125, %v352_v0  ;;  %v13595_v34 = vpack.c.bf16 %v557_v5, %v556_v13  ;;  %11204 = vmatpush3.bf16.msra.mxu1 %v13514_v61 }
 0x166   :  { %v12392_v15 = vpop.eup %12391  ;;  %12405 = vrsqrt.f32 %v432_v44  ;;  %v523_v35 = vmul.f32 %v13523_v32, %v487_v45  ;;  %v524_v12 = vmul.f32 %v13523_v32, %v488_v30  ;;  %11205 = vmatprep.subr.bf16.mxu1 %v12352_v18 }
 0x167   :  { %v12394_v38 = vpop.eup %12393  ;;  %v433_v49 = vadd.f32 1e-05, %v401_v55  ;;  %v434_v9 = vadd.f32 1e-05, %v402_v26  ;;  %11107 = vmatprep.mubr.msk.bf16.mxu0 %vm90_vm0, %v13595_v34  ;;  %11143 = vmatprep.mubr.msk.bf16.mxu1 %vm90_vm0, %v13595_v34  ;;  %v489_v43 = vmul.f32 %v12392_v15, %v13372_v17 }
 0x168   :  { %v355_v36 = vpop.xlane.xlu1 %354  ;;  %v358_v61 = vpop.xlane.xlu0 %357  ;;  %v559_v51 = vadd.f32 %v13529_v8, %v523_v35  ;;  %v490_v54 = vmul.f32 %v12394_v38, %v13381_v59  ;;  %v560_v17 = vadd.f32 %v13529_v8, %v524_v12 }
 0x169   :  { %12407 = vrsqrt.f32 %v433_v49  ;;  %v403_v14 = vmul.f32 0.03125, %v355_v36  ;;  %v404_v52 = vmul.f32 0.03125, %v358_v61  ;;  %v525_v27 = vmul.f32 %v13523_v32, %v489_v43  ;;  %11206 = vmatpush3.bf16.msra.mxu1 %v12352_v18 }
 0x16a   :  { %v12396_v62 = vpop.eup %12395  ;;  %12409 = vrsqrt.f32 %v434_v9  ;;  %v13609_v2 = vpack.c.bf16 %v559_v51, %v558_v7  ;;  %v526_v18 = vmul.f32 %v13523_v32, %v490_v54 }
 0x16b   :  { %v12398_v40 = vpop.eup %12397  ;;  %v435_v41 = vadd.f32 1e-05, %v403_v14  ;;  %v436_v4 = vadd.f32 1e-05, %v404_v52  ;;  %v561_v6 = vadd.f32 %v13529_v8, %v525_v27  ;;  %v491_v11 = vmul.f32 %v12396_v62, %v13384_v25 }
 0x16c   :  { %11108 = vmatmul.mubr.msk.bf16.gmra.mxu0 %vm90_vm0, %v13609_v2  ;;  %11144 = vmatmul.mubr.msk.bf16.gmra.mxu1 %vm90_vm0, %v13609_v2  ;;  %v361_v59 = vpop.xlane.xlu1 %360  ;;  %v364_v13 = vpop.xlane.xlu0 %363  ;;  %v492_v1 = vmul.f32 %v12398_v40, %v13393_v19  ;;  %v562_v15 = vadd.f32 %v13529_v8, %v526_v18 }
 0x16d   :  { %12411 = vrsqrt.f32 %v435_v41  ;;  %v405_v56 = vmul.f32 0.03125, %v361_v59  ;;  %v406_v44 = vmul.f32 0.03125, %v364_v13  ;;  %v13620_v5 = vpack.c.bf16 %v561_v6, %v560_v17 }
 0x16e   :  { %v12400_v45 = vpop.eup %12399  ;;  %12413 = vrsqrt.f32 %v436_v4  ;;  %v527_v25 = vmul.f32 %v13523_v32, %v491_v11  ;;  %v528_v46 = vmul.f32 %v13523_v32, %v492_v1 }
 0x16f   :  { %v12402_v0 = vpop.eup %12401  ;;  %v437_v60 = vadd.f32 1e-05, %v405_v56  ;;  %v438_v30 = vadd.f32 1e-05, %v406_v44  ;;  %11111 = vmatprep.mubr.msk.bf16.mxu0 %vm90_vm0, %v13620_v5  ;;  %11147 = vmatprep.mubr.msk.bf16.mxu1 %vm90_vm0, %v13620_v5  ;;  %v493_v19 = vmul.f32 %v12400_v45, %v13396_v29 }
 0x170   :  { %v367_v55 = vpop.xlane.xlu1 %366  ;;  %v370_v26 = vpop.xlane.xlu0 %369  ;;  %v563_v35 = vadd.f32 %v13529_v8, %v527_v25  ;;  %v494_v12 = vmul.f32 %v12402_v0, %v13405_v31  ;;  %v564_v61 = vadd.f32 %v13529_v8, %v528_v46 }
 0x171   :  { %12415 = vrsqrt.f32 %v437_v60  ;;  %v407_v38 = vmul.f32 0.03125, %v367_v55  ;;  %v408_v49 = vmul.f32 0.03125, %v370_v26  ;;  %v529_v9 = vmul.f32 %v13523_v32, %v493_v19 }
 0x172   :  { %v12404_v43 = vpop.eup %12403  ;;  %12417 = vrsqrt.f32 %v438_v30  ;;  %v13633_v36 = vpack.c.bf16 %v563_v35, %v562_v15  ;;  %v530_v27 = vmul.f32 %v13523_v32, %v494_v12 }
 0x173   :  { %v12406_v29 = vpop.eup %12405  ;;  %v439_v7 = vadd.f32 1e-05, %v407_v38  ;;  %v440_v51 = vadd.f32 1e-05, %v408_v49  ;;  %v565_v54 = vadd.f32 %v13529_v8, %v529_v9  ;;  %v495_v14 = vmul.f32 %v12404_v43, %v13408_v33 }
 0x174   :  { %11112 = vmatmul.mubr.msk.bf16.gmra.mxu0 %vm90_vm0, %v13633_v36  ;;  %11148 = vmatmul.mubr.msk.bf16.gmra.mxu1 %vm90_vm0, %v13633_v36  ;;  %v373_v31 = vpop.xlane.xlu1 %372  ;;  %v376_v52 = vpop.xlane.xlu0 %375  ;;  %v496_v62 = vmul.f32 %v12406_v29, %v13417_v47  ;;  %v566_v1 = vadd.f32 %v13529_v8, %v530_v27 }
 0x175   :  { %12419 = vrsqrt.f32 %v439_v7  ;;  %v409_v17 = vmul.f32 0.03125, %v373_v31  ;;  %v410_v40 = vmul.f32 0.03125, %v376_v52  ;;  %v13644_v41 = vpack.c.bf16 %v565_v54, %v564_v61 }
 0x176   :  { %v12408_v4 = vpop.eup %12407  ;;  %12421 = vrsqrt.f32 %v440_v51  ;;  %v531_v33 = vmul.f32 %v13523_v32, %v495_v14  ;;  %v532_v13 = vmul.f32 %v13523_v32, %v496_v62 }
 0x177   :  { %v12410_v6 = vpop.eup %12409  ;;  %v441_v11 = vadd.f32 1e-05, %v409_v17  ;;  %v442_v59 = vadd.f32 1e-05, %v410_v40  ;;  %11115 = vmatprep.mubr.msk.bf16.mxu0 %vm90_vm0, %v13644_v41  ;;  %11151 = vmatprep.mubr.msk.bf16.mxu1 %vm90_vm0, %v13644_v41  ;;  %v497_v47 = vmul.f32 %v12408_v4, %v13420_v37 }
 0x178   :  { %v379_v18 = vpop.xlane.xlu1 %378  ;;  %v567_v56 = vadd.f32 %v13529_v8, %v531_v33  ;;  %v498_v44 = vmul.f32 %v12410_v6, %v13432_v63  ;;  %v568_v19 = vadd.f32 %v13529_v8, %v532_v13 }
 0x179   :  { %12423 = vrsqrt.f32 %v441_v11  ;;  %v411_v45 = vmul.f32 0.03125, %v379_v18  ;;  %v533_v25 = vmul.f32 %v13523_v32, %v497_v47 }
 0x17a   :  { %v12412_v46 = vpop.eup %12411  ;;  %12425 = vrsqrt.f32 %v442_v59  ;;  %v13657_v0 = vpack.c.bf16 %v567_v56, %v566_v1  ;;  %v534_v60 = vmul.f32 %v13523_v32, %v498_v44 }
 0x17b   :  { %v12414_v37 = vpop.eup %12413  ;;  %v443_v30 = vadd.f32 1e-05, %v411_v45  ;;  %v569_v55 = vadd.f32 %v13529_v8, %v533_v25  ;;  %v499_v26 = vmul.f32 %v12412_v46, %v13435_v3 }
 0x17c   :  { %11116 = vmatmul.mubr.msk.bf16.gmra.mxu0 %vm90_vm0, %v13657_v0  ;;  %11152 = vmatmul.mubr.msk.bf16.gmra.mxu1 %vm90_vm0, %v13657_v0  ;;  %v500_v63 = vmul.f32 %v12414_v37, %v13447_v22  ;;  %v570_v38 = vadd.f32 %v13529_v8, %v534_v60 }
 0x17d   :  { %12427 = vrsqrt.f32 %v443_v30  ;;  %v13668_v15 = vpack.c.bf16 %v569_v55, %v568_v19  ;;  %v535_v35 = vmul.f32 %v13523_v32, %v499_v26 }
 0x17e   :  { %v12416_v12 = vpop.eup %12415  ;;  %v536_v22 = vmul.f32 %v13523_v32, %v500_v63 }
 0x17f   :  { %v12418_v49 = vpop.eup %12417  ;;  %11119 = vmatprep.mubr.msk.bf16.mxu0 %vm90_vm0, %v13668_v15  ;;  %11155 = vmatprep.mubr.msk.bf16.mxu1 %vm90_vm0, %v13668_v15  ;;  %v571_v3 = vadd.f32 %v13529_v8, %v535_v35  ;;  %v501_v9 = vmul.f32 %v12416_v12, %v13450_v23 }
 0x180   :  { %v502_v43 = vmul.f32 %v12418_v49, %v13467_v39  ;;  %v572_v14 = vadd.f32 %v13529_v8, %v536_v22 }
 0x181   :  { %v13680_v61 = vpack.c.bf16 %v571_v3, %v570_v38  ;;  %v537_v29 = vmul.f32 %v13523_v32, %v501_v9 }
 0x182   :  { %v12420_v7 = vpop.eup %12419  ;;  %v538_v51 = vmul.f32 %v13523_v32, %v502_v43 }
 0x183   :  { %v12422_v54 = vpop.eup %12421  ;;  %v573_v31 = vadd.f32 %v13529_v8, %v537_v29  ;;  %v503_v52 = vmul.f32 %v12420_v7, %v13470_v42 }
 0x184   :  { %11120 = vmatmul.mubr.msk.bf16.gmra.mxu0 %vm90_vm0, %v13680_v61  ;;  %11156 = vmatmul.mubr.msk.bf16.gmra.mxu1 %vm90_vm0, %v13680_v61  ;;  %v504_v23 = vmul.f32 %v12422_v54, %v13486_v58  ;;  %v574_v17 = vadd.f32 %v13529_v8, %v538_v51 }
 0x185   :  { %v592_v39 = vpack.c.bf16 %v573_v31, %v572_v14  ;;  %v539_v27 = vmul.f32 %v13523_v32, %v503_v52 }
 0x186   :  { %v12424_v62 = vpop.eup %12423  ;;  %v540_v33 = vmul.f32 %v13523_v32, %v504_v23 }
 0x187   :  { %v12426_v40 = vpop.eup %12425  ;;  %11123 = vmatprep.mubr.msk.bf16.mxu0 %vm90_vm0, %v592_v39  ;;  %11159 = vmatprep.mubr.msk.bf16.mxu1 %vm90_vm0, %v592_v39  ;;  %v575_v42 = vadd.f32 %v13529_v8, %v539_v27  ;;  %v505_v4 = vmul.f32 %v12424_v62, %v13489_v24 }
 0x188   :  { %v506_v6 = vmul.f32 %v12426_v40, %v13498_v28  ;;  %v576_v47 = vadd.f32 %v13529_v8, %v540_v33 }
 0x189   :  { %v593_v58 = vpack.c.bf16 %v575_v42, %v574_v17  ;;  %v541_v11 = vmul.f32 %v13523_v32, %v505_v4 }
 0x18a   :  { %v12428_v59 = vpop.eup %12427  ;;  %v542_v1 = vmul.f32 %v13523_v32, %v506_v6 }
 0x18b   :  { %v577_v13 = vadd.f32 %v13529_v8, %v541_v11  ;;  %v507_v18 = vmul.f32 %v12428_v59, %v13501_v57  ;;  %v12354_v57 = vld [vmem:[%s17584_s4] sm:$0xff]   ;;  %s13110_s4 = smov 120  }
 0x18c   :  { %11124 = vmatmul.mubr.msk.bf16.gmra.mxu0 %vm90_vm0, %v593_v58  ;;  %11160 = vmatmul.mubr.msk.bf16.gmra.mxu1 %vm90_vm0, %v593_v58  ;;  %v578_v28 = vadd.f32 %v13529_v8, %v542_v1 }
 0x18d   :  { %v594_v24 = vpack.c.bf16 %v577_v13, %v576_v47  ;;  %v543_v56 = vmul.f32 %v13523_v32, %v507_v18  ;;  %v17589_v32 = vmov 0.0  }
 0x18e   :  { %11245 = vmatprep.subr.bf16.mxu1 %v17589_v32 }
 0x18f   :  { %11127 = vmatprep.mubr.msk.bf16.mxu0 %vm90_vm0, %v594_v24  ;;  %11163 = vmatprep.mubr.msk.bf16.mxu1 %vm90_vm0, %v594_v24  ;;  %v579_v44 = vadd.f32 %v13529_v8, %v543_v56  ;;  %v602_v8 = vsub.s32 3, %v13517_v53 }
 0x191   :  { %v595_v45 = vpack.c.bf16 %v579_v44, %v578_v28 }
 0x194   :  { %11128 = vmatmul.mubr.msk.bf16.gmra.mxu0 %vm90_vm0, %v595_v45  ;;  %11164 = vmatmul.mubr.msk.bf16.gmra.mxu1 %vm90_vm0, %v595_v45 }
 0x195   :  { %11135 = vmatprep.mubr.msk.bf16.mxu0 %vm90_vm0, %v13539_v16  ;;  %11207 = vmatprep.mubr.msk.bf16.mxu1 %vm90_vm0, %v13539_v16 }
 0x19c   :  { %11136 = vmatmul.mubr.msk.bf16.vlgmr.msra.gmra.mxu0 %vm90_vm0, %v13550_v20  ;;  %11208 = vmatmul.mubr.msk.bf16.vlgmr.msra.gmra.mxu1 %vm90_vm0, %v13550_v20 }
 0x19d   :  { %11168 = vmatpush3.bf16.msra.mxu0 %v13568_v50  ;;  %11171 = vmatprep.mubr.msk.bf16.mxu0 %vm90_vm0, %v13539_v16  ;;  %v13786_v16 = vrot.slane %v13520_v21, %v602_v8 }
 0x19e   :  { %11211 = vmatprep.mubr.msk.bf16.mxu1 %vm90_vm0, %v13559_v48  ;;  %11169 = vmatprep.subr.bf16.mxu0 %v12354_v57 }
 0x19f   :  { %17739 = vst [vmem:[#allocation12_spill] sm:$0xff] %v13786_v16 }
 0x1a1   :  { %11170 = vmatpush3.bf16.msra.mxu0 %v12354_v57 }
 0x1a2   :  { %11239 = vmatprep.subr.bf16.mxu0 %v17589_v32 }
 0x1a4   :  { %11172 = vmatmul.mubr.msk.bf16.vlgmr.msra.gmra.mxu0 %vm90_vm0, %v13550_v20  ;;  %11212 = vmatmul.mubr.msk.bf16.gmra.mxu1 %vm90_vm0, %v13580_v10 }
 0x1a5   :  { %11175 = vmatprep.mubr.msk.bf16.mxu0 %vm90_vm0, %v13559_v48  ;;  %11215 = vmatprep.mubr.msk.bf16.mxu1 %vm90_vm0, %v13595_v34 }
 0x1ac   :  { %11176 = vmatmul.mubr.msk.bf16.gmra.mxu0 %vm90_vm0, %v13580_v10  ;;  %11216 = vmatmul.mubr.msk.bf16.gmra.mxu1 %vm90_vm0, %v13609_v2 }
 0x1ad   :  { %11179 = vmatprep.mubr.msk.bf16.mxu0 %vm90_vm0, %v13595_v34  ;;  %11219 = vmatprep.mubr.msk.bf16.mxu1 %vm90_vm0, %v13620_v5 }
 0x1b4   :  { %11180 = vmatmul.mubr.msk.bf16.gmra.mxu0 %vm90_vm0, %v13609_v2  ;;  %11220 = vmatmul.mubr.msk.bf16.gmra.mxu1 %vm90_vm0, %v13633_v36 }
 0x1b5   :  { %11183 = vmatprep.mubr.msk.bf16.mxu0 %vm90_vm0, %v13620_v5  ;;  %11223 = vmatprep.mubr.msk.bf16.mxu1 %vm90_vm0, %v13644_v41 }
 0x1bc   :  { %11184 = vmatmul.mubr.msk.bf16.gmra.mxu0 %vm90_vm0, %v13633_v36  ;;  %11224 = vmatmul.mubr.msk.bf16.gmra.mxu1 %vm90_vm0, %v13657_v0 }
 0x1bd   :  { %11187 = vmatprep.mubr.msk.bf16.mxu0 %vm90_vm0, %v13644_v41  ;;  %11227 = vmatprep.mubr.msk.bf16.mxu1 %vm90_vm0, %v13668_v15 }
 0x1c4   :  { %11188 = vmatmul.mubr.msk.bf16.gmra.mxu0 %vm90_vm0, %v13657_v0  ;;  %11228 = vmatmul.mubr.msk.bf16.gmra.mxu1 %vm90_vm0, %v13680_v61 }
 0x1c5   :  { %11191 = vmatprep.mubr.msk.bf16.mxu0 %vm90_vm0, %v13668_v15  ;;  %11231 = vmatprep.mubr.msk.bf16.mxu1 %vm90_vm0, %v592_v39 }
 0x1cc   :  { %11192 = vmatmul.mubr.msk.bf16.gmra.mxu0 %vm90_vm0, %v13680_v61  ;;  %11232 = vmatmul.mubr.msk.bf16.gmra.mxu1 %vm90_vm0, %v593_v58 }
 0x1cd   :  { %11195 = vmatprep.mubr.msk.bf16.mxu0 %vm90_vm0, %v592_v39  ;;  %11235 = vmatprep.mubr.msk.bf16.mxu1 %vm90_vm0, %v594_v24 }
 0x1d4   :  { %11196 = vmatmul.mubr.msk.bf16.gmra.mxu0 %vm90_vm0, %v593_v58  ;;  %11236 = vmatmul.mubr.msk.bf16.gmra.mxu1 %vm90_vm0, %v595_v45 }
 0x1d5   :  { %11199 = vmatprep.mubr.msk.bf16.mxu0 %vm90_vm0, %v594_v24  ;;  %11247 = vmatprep.mubr.msk.bf16.mxu1 %vm13109_vm1, %v17589_v32 }
 0x1dc   :  { %11200 = vmatmul.mubr.msk.bf16.gmra.mxu0 %vm90_vm0, %v595_v45 }
 0x1dd   :  { %11241 = vmatprep.mubr.msk.bf16.mxu0 %vm13109_vm1, %v17589_v32 }
 0x21c   :  { %v11101_v20 = vpop.f32.mrf.mxu0 }
 0x21d   :  { %v707_v48 = vadd.f32 %v11101_v20, %v13786_v16 }
 0x21e   :  { %v13789_v50 = vpop.f32.mrf.mxu0 }
 0x21f   :  { %17740 = vst [vmem:[#allocation13_spill] sm:$0xff] %v13789_v50  ;;  %v9822_v10 = vmul.f32 %v707_v48, %v707_v48 }
 0x220   :  { %v11102_v34 = vpop.f32.mrf.mxu0 }
 0x221   :  { %v9854_v2 = vmul.f32 %v9822_v10, %v707_v48  ;;  %v710_v5 = vadd.f32 %v11102_v34, %v13786_v16 }
 0x222   :  { %v13792_v36 = vpop.f32.mrf.mxu0 }
 0x223   :  { %17741 = vst [vmem:[#allocation14_spill] sm:$0xff] %v13792_v36  ;;  %v9886_v41 = vmul.f32 0.044715, %v9854_v2  ;;  %v9823_v25 = vmul.f32 %v710_v5, %v710_v5 }
 0x224   :  { %v11105_v46 = vpop.f32.mrf.mxu0  ;;  %v13794_v0 = vpop.f32.mrf.mxu1 }
 0x225   :  { %v9918_v60 = vadd.f32 %v9886_v41, %v707_v48  ;;  %v9855_v37 = vmul.f32 %v9823_v25, %v710_v5  ;;  %v13854_v57 = vadd.f32 %v11105_v46, %v13786_v16 }
 0x226   :  { %v13796_v30 = vpop.f32.mrf.mxu0  ;;  %v13798_v19 = vpop.f32.mrf.mxu1 }
 0x227   :  { %17742 = vst [vmem:[#allocation15_spill] sm:$0xff] %v13796_v30  ;;  %v9950_v55 = vmul.f32 0.7978846, %v9918_v60  ;;  %v9887_v26 = vmul.f32 0.044715, %v9855_v37 }
 0x228   :  { %v11106_v63 = vpop.f32.mrf.mxu0  ;;  %v13800_v15 = vpop.f32.mrf.mxu1 }
 0x229   :  { %12429 = vtanh.f32 %v9950_v55  ;;  %v9919_v35 = vadd.f32 %v9887_v26, %v710_v5  ;;  %v13847_v28 = vadd.f32 %v11106_v63, %v13786_v16 }
 0x22a   :  { %v13802_v12 = vpop.f32.mrf.mxu0  ;;  %v13804_v38 = vpop.f32.mrf.mxu1 }
 0x22b   :  { %17743 = vst [vmem:[#allocation16_spill] sm:$0xff] %v13802_v12  ;;  %v9951_v49 = vmul.f32 0.7978846, %v9919_v35 }
 0x22c   :  { %v11109_v3 = vpop.f32.mrf.mxu0  ;;  %v13806_v9 = vpop.f32.mrf.mxu1 }
 0x22d   :  { %12431 = vtanh.f32 %v9951_v49  ;;  %v13861_v10 = vadd.f32 %v11109_v3, %v13786_v16 }
 0x22e   :  { %v13808_v22 = vpop.f32.mrf.mxu0  ;;  %v13810_v43 = vpop.f32.mrf.mxu1 }
 0x22f   :  { %17744 = vst [vmem:[#allocation17_spill] sm:$0xff] %v13808_v22  ;;  %v9830_v60 = vmul.f32 %v13861_v10, %v13861_v10 }
 0x230   :  { %v11110_v61 = vpop.f32.mrf.mxu0  ;;  %v13812_v29 = vpop.f32.mrf.mxu1 }
 0x231   :  { %v13875_v37 = vadd.f32 %v11110_v61, %v13786_v16 }
 0x232   :  { %v13814_v7 = vpop.f32.mrf.mxu0  ;;  %v13816_v51 = vpop.f32.mrf.mxu1 }
 0x233   :  { %17745 = vst [vmem:[#allocation18_spill] sm:$0xff] %v13814_v7 }
 0x234   :  { %v13818_v54 = vpop.f32.mrf.mxu0  ;;  %v13820_v14 = vpop.f32.mrf.mxu1 }
 0x235   :  { %17746 = vst [vmem:[#allocation19_spill] sm:$0xff] %v13820_v14 }
 0x236   :  { %v12430_v31 = vpop.eup %12429  ;;  %v13822_v52 = vpop.f32.mrf.mxu0 }
 0x237   :  { %17747 = vst [vmem:[#allocation20_spill] sm:$0xff] %v13822_v52  ;;  %v13824_v23 = vpop.f32.mrf.mxu1  ;;  %v10014_v39 = vadd.f32 1.0, %v12430_v31  ;;  %v9862_v31 = vmul.f32 %v9830_v60, %v13861_v10 }
 0x238   :  { %17748 = vst [vmem:[#allocation21_spill] sm:$0xff] %v13824_v23  ;;  %v11114_v27 = vpop.f32.mrf.mxu0 }
 0x239   :  { %v13826_v62 = vpop.f32.mrf.mxu1  ;;  %v10046_v4 = vmul.f32 0.5, %v10014_v39  ;;  %v9831_v39 = vmul.f32 %v13875_v37, %v13875_v37 }
 0x23a   :  { %v12432_v17 = vpop.eup %12431  ;;  %v13828_v40 = vpop.f32.mrf.mxu0 }
 0x23b   :  { %17749 = vst [vmem:[#allocation22_spill] sm:$0xff] %v13828_v40  ;;  %v13830_v42 = vpop.f32.mrf.mxu1  ;;  %v10015_v33 = vadd.f32 1.0, %v12432_v17  ;;  %v13838_v13 = vmul.f32 %v10046_v4, %v707_v48  ;;  %v9827_v48 = vmul.f32 %v13847_v28, %v13847_v28  ;;  %v9863_v56 = vmul.f32 %v9831_v39, %v13875_v37 }
 0x23c   :  { %17750 = vst [vmem:[#allocation23_spill] sm:$0xff] %v13830_v42  ;;  %v11117_v6 = vpop.f32.mrf.mxu0 }
 0x23d   :  { %v13832_v58 = vpop.f32.mrf.mxu1  ;;  %v10047_v11 = vmul.f32 0.5, %v10015_v33  ;;  %17754 = vst [vmem:[#allocation27_spill] sm:$0xff] %v13838_v13  ;;  %v9859_v46 = vmul.f32 %v9827_v48, %v13847_v28  ;;  %v13901_v13 = vadd.f32 %v11114_v27, %v13786_v16  ;;  %v13911_v39 = vadd.f32 %v11117_v6, %v13786_v16 }
 0x23e   :  { %17751 = vst [vmem:[#allocation24_spill] sm:$0xff] %v13832_v58  ;;  %v13834_v59 = vpop.f32.mrf.mxu0 }
 0x23f   :  { %17752 = vst [vmem:[#allocation25_spill] sm:$0xff] %v13834_v59  ;;  %v13836_v47 = vpop.f32.mrf.mxu1  ;;  %v13840_v18 = vmul.f32 %v10047_v11, %v710_v5  ;;  %v9826_v5 = vmul.f32 %v13854_v57, %v13854_v57  ;;  %v9891_v3 = vmul.f32 0.044715, %v9859_v46 }
 0x240   :  { %17753 = vst [vmem:[#allocation26_spill] sm:$0xff] %v13836_v47  ;;  %v11118_v1 = vpop.f32.mrf.mxu0 }
 0x241   :  { %17755 = vst [vmem:[#allocation28_spill] sm:$0xff] %v13840_v18  ;;  %v13842_v24 = vpop.f32.mrf.mxu1  ;;  %v9858_v63 = vmul.f32 %v9826_v5, %v13854_v57  ;;  %v9923_v48 = vadd.f32 %v9891_v3, %v13847_v28  ;;  %v9894_v5 = vmul.f32 0.044715, %v9862_v31  ;;  %v13908_v3 = vadd.f32 %v13818_v54, %v13786_v16 }
 0x242   :  { %17756 = vst [vmem:[#allocation29_spill] sm:$0xff] %v13842_v24  ;;  %v13849_v44 = vpop.f32.mrf.mxu0  ;;  %v9895_v31 = vmul.f32 0.044715, %v9863_v56  ;;  %v13918_v27 = vadd.f32 %v11118_v1, %v13786_v16 }
 0x243   :  { %17757 = vst [vmem:[#allocation30_spill] sm:$0xff] %v13849_v44  ;;  %v13851_v45 = vpop.f32.mrf.mxu1  ;;  %v9890_v61 = vmul.f32 0.044715, %v9858_v63  ;;  %v9955_v63 = vmul.f32 0.7978846, %v9923_v48  ;;  %v9835_v48 = vmul.f32 %v13901_v13, %v13901_v13  ;;  %v9834_v56 = vmul.f32 %v13908_v3, %v13908_v3 }
 0x244   :  { %17758 = vst [vmem:[#allocation31_spill] sm:$0xff] %v13851_v45  ;;  %v11121_v8 = vpop.f32.mrf.mxu0  ;;  %v9927_v1 = vadd.f32 %v9895_v31, %v13875_v37 }
 0x245   :  { %v13856_v20 = vpop.f32.mrf.mxu1  ;;  %v9922_v60 = vadd.f32 %v9890_v61, %v13854_v57  ;;  %12433 = vtanh.f32 %v9955_v63  ;;  %v9867_v63 = vmul.f32 %v9835_v48, %v13901_v13 }
 0x246   :  { %17759 = vst [vmem:[#allocation32_spill] sm:$0xff] %v13856_v20  ;;  %v13863_v34 = vpop.f32.mrf.mxu0  ;;  %v9959_v22 = vmul.f32 0.7978846, %v9927_v1 }
 0x247   :  { %17760 = vst [vmem:[#allocation33_spill] sm:$0xff] %v13863_v34  ;;  %v13865_v2 = vpop.f32.mrf.mxu1  ;;  %v9926_v34 = vadd.f32 %v9894_v5, %v13861_v10  ;;  %v13923_v5 = vadd.f32 %v11121_v8, %v13786_v16 }
 0x248   :  { %17761 = vst [vmem:[#allocation34_spill] sm:$0xff] %v13865_v2  ;;  %v11122_v41 = vpop.f32.mrf.mxu0 }
 0x249   :  { %v13869_v25 = vpop.f32.mrf.mxu1  ;;  %v9958_v6 = vmul.f32 0.7978846, %v9926_v34  ;;  %v9839_v34 = vmul.f32 %v13918_v27, %v13918_v27 }
 0x24a   :  { %17762 = vst [vmem:[#allocation35_spill] sm:$0xff] %v13869_v25  ;;  %v13877_v55 = vpop.f32.mrf.mxu0 }
 0x24b   :  { %17763 = vst [vmem:[#allocation36_spill] sm:$0xff] %v13877_v55  ;;  %v13879_v26 = vpop.f32.mrf.mxu1  ;;  %v9954_v55 = vmul.f32 0.7978846, %v9922_v60  ;;  %v9838_v60 = vmul.f32 %v13911_v39, %v13911_v39  ;;  %v9871_v12 = vmul.f32 %v9839_v34, %v13918_v27 }
 0x24c   :  { %17764 = vst [vmem:[#allocation37_spill] sm:$0xff] %v13879_v26  ;;  %v11125_v35 = vpop.f32.mrf.mxu0 }
 0x24d   :  { %v13882_v49 = vpop.f32.mrf.mxu1  ;;  %v13936_v44 = vadd.f32 %v11125_v35, %v13786_v16  ;;  %12435 = vtanh.f32 %v9954_v55  ;;  %v9866_v35 = vmul.f32 %v9834_v56, %v13908_v3  ;;  %v9870_v7 = vmul.f32 %v9838_v60, %v13911_v39 }
 0x24e   :  { %17765 = vst [vmem:[#allocation38_spill] sm:$0xff] %v13882_v49  ;;  %v13887_v17 = vpop.f32.mrf.mxu0  ;;  %12437 = vtanh.f32 %v9958_v6  ;;  %v9899_v6 = vmul.f32 0.044715, %v9867_v63  ;;  %v831_v60 = vsub.s32 4, %v13517_v53  ;;  %v9903_v63 = vmul.f32 0.044715, %v9871_v12 }
 0x24f   :  { %17766 = vst [vmem:[#allocation39_spill] sm:$0xff] %v13887_v17  ;;  %v13889_v4 = vpop.f32.mrf.mxu1  ;;  %17775 = vst [vmem:[#allocation48_spill] sm:$0xff] %v13936_v44  ;;  %v9846_v55 = vmul.f32 %v13936_v44, %v13936_v44  ;;  %12439 = vtanh.f32 %v9959_v22 }
 0x250   :  { %17767 = vst [vmem:[#allocation40_spill] sm:$0xff] %v13889_v4  ;;  %v11126_v33 = vpop.f32.mrf.mxu0 }
 0x251   :  { %v13891_v11 = vpop.f32.mrf.mxu1  ;;  %v13963_v50 = vadd.f32 %v11126_v33, %v13786_v16 }
 0x252   :  { %17768 = vst [vmem:[#allocation41_spill] sm:$0xff] %v13891_v11  ;;  %v13895_v32 = vpop.f32.mrf.mxu0 }
 0x253   :  { %17769 = vst [vmem:[#allocation42_spill] sm:$0xff] %v13895_v32  ;;  %v13897_v46 = vpop.f32.mrf.mxu1 }
 0x254   :  { %17770 = vst [vmem:[#allocation43_spill] sm:$0xff] %v13897_v46  ;;  %v11129_v18 = vpop.f32.mrf.mxu0  ;;  %v9935_v46 = vadd.f32 %v9903_v63, %v13918_v27 }
 0x255   :  { %v13903_v17 = vpop.f32.mrf.mxu1  ;;  %v13983_v22 = vadd.f32 %v11129_v18, %v13786_v16 }
 0x256   :  { %17771 = vst [vmem:[#allocation44_spill] sm:$0xff] %v13903_v17  ;;  %v13913_v32 = vpop.f32.mrf.mxu0  ;;  %v9902_v17 = vmul.f32 0.044715, %v9870_v7 }
 0x257   :  { %17772 = vst [vmem:[#allocation45_spill] sm:$0xff] %v13913_v32  ;;  %v13915_v61 = vpop.f32.mrf.mxu1  ;;  %v13930_v32 = vadd.f32 %v11122_v41, %v13786_v16  ;;  %v9842_v41 = vmul.f32 %v13923_v5, %v13923_v5 }
 0x258   :  { %17773 = vst [vmem:[#allocation46_spill] sm:$0xff] %v13915_v61  ;;  %v11130_v54 = vpop.f32.mrf.mxu0 }
 0x259   :  { %v13925_v59 = vpop.f32.mrf.mxu1  ;;  %v9874_v56 = vmul.f32 %v9842_v41, %v13923_v5  ;;  %v9847_v41 = vmul.f32 %v13963_v50, %v13963_v50  ;;  %v13994_v4 = vadd.f32 %v11130_v54, %v13786_v16 }
 0x25a   :  { %17774 = vst [vmem:[#allocation47_spill] sm:$0xff] %v13925_v59  ;;  %v13938_v8 = vpop.f32.mrf.mxu0 }
 0x25b   :  { %17776 = vst [vmem:[#allocation49_spill] sm:$0xff] %v13938_v8  ;;  %v13940_v52 = vpop.f32.mrf.mxu1  ;;  %v9843_v8 = vmul.f32 %v13930_v32, %v13930_v32  ;;  %v9906_v59 = vmul.f32 0.044715, %v9874_v56  ;;  %v9879_v11 = vmul.f32 %v9847_v41, %v13963_v50 }
 0x25c   :  { %17777 = vst [vmem:[#allocation50_spill] sm:$0xff] %v13940_v52  ;;  %v13947_v31 = vpop.f32.mrf.mxu0  ;;  %v1193_v52 = vsub.s32 6, %v13517_v53 }
 0x25d   :  { %v13949_v40 = vpop.f32.mrf.mxu1  ;;  %v9875_v61 = vmul.f32 %v9843_v8, %v13930_v32  ;;  %v9938_v54 = vadd.f32 %v9906_v59, %v13923_v5 }
 0x25e   :  { %17778 = vst [vmem:[#allocation51_spill] sm:$0xff] %v13949_v40  ;;  %v13957_v48 = vpop.f32.mrf.mxu0  ;;  %v9898_v40 = vmul.f32 0.044715, %v9866_v35  ;;  %v9931_v35 = vadd.f32 %v9899_v6, %v13901_v13  ;;  %v9934_v6 = vadd.f32 %v9902_v17, %v13911_v39  ;;  %v9850_v17 = vmul.f32 %v13983_v22, %v13983_v22 }
 0x25f   :  { %v13959_v30 = vpop.f32.mrf.mxu1  ;;  %v9970_v24 = vmul.f32 0.7978846, %v9938_v54 }
 0x260   :  { %17779 = vst [vmem:[#allocation52_spill] sm:$0xff] %v13959_v30  ;;  %v13966_v36 = vpop.f32.mrf.mxu0  ;;  %v9878_v30 = vmul.f32 %v9846_v55, %v13936_v44  ;;  %v13990_v55 = vrot.slane %v13520_v21, %v831_v60  ;;  %v9930_v12 = vadd.f32 %v9898_v40, %v13908_v3  ;;  %v14002_v60 = vrot.slane %v13520_v21, %v1193_v52 }
 0x261   :  { %v13968_v1 = vpop.f32.mrf.mxu1 }
 0x262   :  { %17780 = vst [vmem:[#allocation53_spill] sm:$0xff] %v13968_v1  ;;  %v13973_v34 = vpop.f32.mrf.mxu0  ;;  %v1012_v1 = vsub.s32 5, %v13517_v53  ;;  %v12434_v53 = vpop.eup %12433  ;;  %v9910_v56 = vmul.f32 0.044715, %v9878_v30  ;;  %v9851_v30 = vmul.f32 %v13994_v4, %v13994_v4  ;;  %v904_v41 = vadd.f32 %v13794_v0, %v13990_v55 }
 0x263   :  { %v13975_v33 = vpop.f32.mrf.mxu1  ;;  %v12436_v63 = vpop.eup %12435  ;;  %v10019_v52 = vadd.f32 1.0, %v12434_v53  ;;  %v9962_v20 = vmul.f32 0.7978846, %v9930_v12  ;;  %v907_v59 = vadd.f32 %v13800_v15, %v13990_v55  ;;  %v896_v45 = vadd.f32 %v13798_v19, %v13990_v55 }
 0x264   :  { %17781 = vst [vmem:[#allocation54_spill] sm:$0xff] %v13975_v33  ;;  %v13985_v7 = vpop.f32.mrf.mxu0  ;;  %v9907_v33 = vmul.f32 0.044715, %v9875_v61  ;;  %v14005_v40 = vrot.slane %v13520_v21, %v1012_v1  ;;  %v9963_v61 = vmul.f32 0.7978846, %v9931_v35  ;;  %v12438_v1 = vpop.eup %12437  ;;  %v9942_v26 = vadd.f32 %v9910_v56, %v13936_v44 }
 0x265   :  { %v13987_v8 = vpop.f32.mrf.mxu1  ;;  %v9966_v35 = vmul.f32 0.7978846, %v9934_v6  ;;  %v9883_v25 = vmul.f32 %v9851_v30, %v13994_v4  ;;  %v899_v53 = vadd.f32 %v13804_v38, %v13990_v55  ;;  %v9967_v0 = vmul.f32 0.7978846, %v9935_v46 }
 0x266   :  { %v13997_v49 = vpop.f32.mrf.mxu0  ;;  %v9939_v21 = vadd.f32 %v9907_v33, %v13930_v32  ;;  %v9911_v12 = vmul.f32 0.044715, %v9879_v11  ;;  %v10018_v33 = vadd.f32 1.0, %v12436_v63  ;;  %12441 = vtanh.f32 %v9963_v61  ;;  %v12440_v11 = vpop.eup %12439 }
 0x267   :  { %v1257_v18 = vpop.f32.mrf.mxu1  ;;  %v9882_v15 = vmul.f32 %v9850_v17, %v13983_v22  ;;  %v10051_v56 = vmul.f32 0.5, %v10019_v52  ;;  %v10022_v30 = vadd.f32 1.0, %v12438_v1  ;;  %12443 = vtanh.f32 %v9962_v20 }
 0x268   :  { %v11174_v16 = vpop.f32.mrf.mxu0  ;;  %v9971_v44 = vmul.f32 0.7978846, %v9939_v21  ;;  %v14024_v42 = vpack.c.bf16 %v907_v59, %v904_v41  ;;  %12445 = vtanh.f32 %v9966_v35  ;;  %v9974_v19 = vmul.f32 0.7978846, %v9942_v26 }
 0x269   :  { %v11214_v2 = vpop.f32.mrf.mxu1  ;;  %v9915_v14 = vmul.f32 0.044715, %v9883_v25  ;;  %v14026_v63 = vpack.c.bf16 %v899_v53, %v896_v45  ;;  %v14030_v61 = vadd.f32 %v13806_v9, %v13990_v55  ;;  %12447 = vtanh.f32 %v9967_v0 }
 0x26a   :  { %v1063_v47 = vpop.f32.mrf.mxu0  ;;  %v9943_v54 = vadd.f32 %v9911_v12, %v13963_v50  ;;  %v14033_v17 = vmul.f32 0.5, %v10018_v33  ;;  %v14037_v20 = vadd.f32 %v13810_v43, %v13990_v55  ;;  %12449 = vtanh.f32 %v9970_v24 }
 0x26b   :  { %v1260_v58 = vpop.f32.mrf.mxu1  ;;  %v9914_v25 = vmul.f32 0.044715, %v9882_v15  ;;  %v14040_v45 = vmul.f32 %v10051_v56, %v13847_v28  ;;  %v14042_v52 = vmul.f32 0.5, %v10022_v30  ;;  %12451 = vtanh.f32 %v9971_v44 }
 0x26c   :  { %v11177_v6 = vpop.f32.mrf.mxu0  ;;  %v1266_v9 = vadd.f32 %v13987_v8, %v14002_v60  ;;  %v14046_v21 = vadd.f32 1.0, %v12440_v11  ;;  %12453 = vtanh.f32 %v9974_v19  ;;  %v9947_v1 = vadd.f32 %v9915_v14, %v13994_v4 }
 0x26d   :  { %v11217_v23 = vpop.f32.mrf.mxu1  ;;  %17782 = vst [vmem:[#allocation55_spill] sm:$0xff] %v14040_v45  ;;  %v1258_v43 = vadd.f32 %v1257_v18, %v14002_v60  ;;  %v9975_v35 = vmul.f32 0.7978846, %v9943_v54  ;;  %v1069_v28 = vadd.f32 %v13985_v7, %v14005_v40  ;;  %v1072_v53 = vadd.f32 %v11174_v16, %v14005_v40 }
 0x26e   :  { %v1076_v38 = vpop.f32.mrf.mxu0  ;;  %v1269_v44 = vadd.f32 %v11214_v2, %v14002_v60  ;;  %v9946_v0 = vadd.f32 %v9914_v25, %v13983_v22  ;;  %v1061_v8 = vadd.f32 %v13997_v49, %v14005_v40  ;;  %v1064_v12 = vadd.f32 %v1063_v47, %v14005_v40 }
 0x26f   :  { %v1273_v46 = vpop.f32.mrf.mxu1  ;;  %v1261_v14 = vadd.f32 %v1260_v58, %v14002_v60  ;;  %v891_v15 = vadd.f32 %v13966_v36, %v13990_v55  ;;  %v14063_v7 = vpack.c.bf16 %v1072_v53, %v1069_v28  ;;  %v1282_v2 = vadd.f32 %v11217_v23, %v14002_v60 }
 0x270   :  { %v11178_v26 = vpop.f32.mrf.mxu0  ;;  %v14065_v16 = vpack.c.bf16 %v1269_v44, %v1266_v9  ;;  %v9979_v56 = vmul.f32 0.7978846, %v9947_v1  ;;  %v14068_v30 = vpack.c.bf16 %v1064_v12, %v1061_v8  ;;  %v1274_v47 = vadd.f32 %v1273_v46, %v14002_v60 }
 0x271   :  { %v11218_v41 = vpop.f32.mrf.mxu1  ;;  %v14070_v49 = vpack.c.bf16 %v1261_v14, %v1258_v43  ;;  %v1085_v11 = vadd.f32 %v11177_v6, %v14005_v40  ;;  %v1468_v36 = vsel %vm1416_vm2, %v14063_v7, 0  ;;  %v1088_v54 = vadd.f32 %v11178_v26, %v14005_v40 }
 0x272   :  { %v1079_v24 = vpop.f32.mrf.mxu0  ;;  %17783 = vst [vmem:[#allocation56_spill] sm:$0xff] %v14065_v16  ;;  %v1285_v25 = vadd.f32 %v11218_v41, %v14002_v60  ;;  %v1077_v23 = vadd.f32 %v1076_v38, %v14005_v40  ;;  %11246 = vmatpush3.bf16.xpose.msra.mxu1 %v1468_v36  ;;  %v1421_v9 = vsel %vm1416_vm2, %v14068_v30, 0  ;;  %v883_v53 = vadd.f32 %v13973_v34, %v13990_v55 }
 0x273   :  { %v1276_v59 = vpop.f32.mrf.mxu1  ;;  %17784 = vst [vmem:[#allocation57_spill] sm:$0xff] %v14070_v49  ;;  %v1080_v1 = vadd.f32 %v1079_v24, %v14005_v40  ;;  %v12442_v6 = vpop.eup %12441  ;;  %v14085_v44 = vpack.c.bf16 %v1088_v54, %v1085_v11  ;;  %11240 = vmatpush3.bf16.xpose.msra.mxu0 %v1421_v9  ;;  %v888_v8 = vadd.f32 %v13947_v31, %v13990_v55  ;;  %v17787_v12 = vmov 0.0  }
 0x274   :  { %v14059_v18 = vpop.f32.mrf.mxu0  ;;  %v1277_v46 = vadd.f32 %v1276_v59, %v14002_v60  ;;  %v14087_v26 = vpack.c.bf16 %v1285_v25, %v1282_v2  ;;  %v12444_v41 = vpop.eup %12443  ;;  %11257 = vmatprep.subr.bf16.mxu1 %v17787_v12  ;;  %12455 = vtanh.f32 %v9975_v35  ;;  %v9978_v2 = vmul.f32 0.7978846, %v9946_v0  ;;  %11251 = vmatprep.subr.bf16.mxu0 %v17787_v12 }
 0x275   :  { %v11221_v33 = vpop.f32.mrf.mxu1  ;;  %v14092_v24 = vpack.c.bf16 %v1080_v1, %v1077_v23  ;;  %v12446_v36 = vpop.eup %12445  ;;  %v10027_v25 = vadd.f32 1.0, %v12442_v6  ;;  %12457 = vtanh.f32 %v9979_v56 }
 0x276   :  { %v1092_v58 = vpop.f32.mrf.mxu0  ;;  %17785 = vst [vmem:[#allocation58_spill] sm:$0xff] %v14087_v26  ;;  %v1298_v38 = vadd.f32 %v11221_v33, %v14002_v60  ;;  %v14094_v59 = vpack.c.bf16 %v1277_v46, %v1274_v47  ;;  %v880_v33 = vadd.f32 %v13957_v48, %v13990_v55  ;;  %v12448_v54 = vpop.eup %12447  ;;  %v14102_v47 = vpack.c.bf16 %v891_v15, %v888_v8 }
 0x277   :  { %v1289_v19 = vpop.f32.mrf.mxu1  ;;  %v12450_v1 = vpop.eup %12449  ;;  %v1562_v48 = vsel %vm1416_vm2, %v14085_v44, 0  ;;  %v1515_v15 = vsel %vm1416_vm2, %v14092_v24, 0  ;;  %v10026_v26 = vadd.f32 1.0, %v12444_v41  ;;  %12459 = vtanh.f32 %v9978_v2 }
 0x278   :  { %v11182_v43 = vpop.f32.mrf.mxu0  ;;  %17786 = vst [vmem:[#allocation59_spill] sm:$0xff] %v14094_v59  ;;  %v1290_v14 = vadd.f32 %v1289_v19, %v14002_v60  ;;  %v14107_v35 = vpack.c.bf16 %v883_v53, %v880_v33  ;;  %v923_v2 = vadd.f32 %v13812_v29, %v13990_v55 }
 0x279   :  { %v11222_v28 = vpop.f32.mrf.mxu1  ;;  %v1104_v0 = vadd.f32 %v11182_v43, %v14005_v40  ;;  %v1101_v43 = vadd.f32 %v14059_v18, %v14005_v40  ;;  %11248 = vmatmul.mubr.msk.bf16.vlgmr.msra.gmra.mxu1 %vm1416_vm2, %v14102_v47 }
 0x27a   :  { %v1095_v34 = vpop.f32.mrf.mxu0  ;;  %v1301_v31 = vadd.f32 %v11222_v28, %v14002_v60  ;;  %v12452_v28 = vpop.eup %12451  ;;  %11258 = vmatpush3.bf16.xpose.msra.mxu1 %v1562_v48  ;;  %11242 = vmatmul.mubr.msk.bf16.vlgmr.msra.gmra.mxu0 %vm1416_vm2, %v14107_v35  ;;  %v14153_v48 = vmul.f32 %v14042_v52, %v13861_v10 }
 0x27b   :  { %v1292_v11 = vpop.f32.mrf.mxu1  ;;  %v1096_v56 = vadd.f32 %v1095_v34, %v14005_v40  ;;  %v14120_v33 = vpop.eup %12453  ;;  %v10055_v34 = vmul.f32 0.5, %v14046_v21  ;;  %11252 = vmatpush3.bf16.xpose.msra.mxu0 %v1515_v15  ;;  %11259 = vmatprep.mubr.msk.bf16.mxu1 %vm13109_vm1, %v17787_v12 }
 0x27c   :  { %v1293_v23 = vadd.f32 %v1292_v11, %v14002_v60  ;;  %v14105_v19 = vpop.f32.mrf.mxu0  ;;  %v14112_v46 = vpack.c.bf16 %v1301_v31, %v1298_v38  ;;  %v10059_v31 = vmul.f32 0.5, %v10027_v25  ;;  %11269 = vmatprep.subr.bf16.mxu1 %v17787_v12  ;;  %11253 = vmatprep.mubr.msk.bf16.mxu0 %vm13109_vm1, %v17787_v12  ;;  %17793 = vst [vmem:[#allocation65_spill] sm:$0xff] %v14153_v48 }
 0x27d   :  { %v11225_v9 = vpop.f32.mrf.mxu1  ;;  %11263 = vmatprep.subr.bf16.mxu0 %v17787_v12 }
 0x27e   :  { %17788 = vst [vmem:[#allocation60_spill] sm:$0xff] %v14112_v46  ;;  %v14117_v6 = vpack.c.bf16 %v1293_v23, %v1290_v14  ;;  %v1314_v8 = vadd.f32 %v11225_v9, %v14002_v60  ;;  %v1108_v11 = vpop.f32.mrf.mxu0  ;;  %v14129_v14 = vmul.f32 %v14033_v17, %v13854_v57  ;;  %v1093_v23 = vadd.f32 %v1092_v58, %v14005_v40 }
 0x27f   :  { %v1305_v53 = vpop.f32.mrf.mxu1  ;;  %v14137_v9 = vpack.c.bf16 %v1104_v0, %v1101_v43  ;;  %v915_v17 = vadd.f32 %v13816_v51, %v13990_v55  ;;  %v10058_v0 = vmul.f32 0.5, %v10026_v26  ;;  %v10030_v43 = vadd.f32 1.0, %v12446_v36 }
 0x280   :  { %17789 = vst [vmem:[#allocation61_spill] sm:$0xff] %v14117_v6  ;;  %v1306_v38 = vadd.f32 %v1305_v53, %v14002_v60  ;;  %17790 = vst [vmem:[#allocation62_spill] sm:$0xff] %v14129_v14  ;;  %v11186_v41 = vpop.f32.mrf.mxu0  ;;  %v14144_v21 = vpack.c.bf16 %v1096_v56, %v1093_v23  ;;  %v14160_v56 = vmul.f32 %v10055_v34, %v13875_v37  ;;  %v10031_v23 = vadd.f32 1.0, %v12448_v54 }
 0x281   :  { %v11226_v18 = vpop.f32.mrf.mxu1  ;;  %17791 = vst [vmem:[#allocation63_spill] sm:$0xff] %v14137_v9  ;;  %v14163_v53 = vmul.f32 %v10059_v31, %v13901_v13  ;;  %v1656_v10 = vsel %vm1416_vm2, %v14137_v9, 0  ;;  %v1120_v52 = vadd.f32 %v11186_v41, %v14005_v40  ;;  %v10035_v37 = vadd.f32 1.0, %v12452_v28  ;;  %11260 = vmatmul.mubr.msk.bf16.vlgmr.msra.gmra.mxu1 %vm1416_vm2, %v14024_v42  ;;  %v12456_v28 = vpop.eup %12455 }
 0x282   :  { %v1317_v57 = vadd.f32 %v11226_v18, %v14002_v60  ;;  %17792 = vst [vmem:[#allocation64_spill] sm:$0xff] %v14144_v21  ;;  %v1111_v58 = vpop.f32.mrf.mxu0  ;;  %17795 = vst [vmem:[#allocation67_spill] sm:$0xff] %v14160_v56  ;;  %v1609_v13 = vsel %vm1416_vm2, %v14144_v21, 0  ;;  %v14177_v31 = vpack.c.bf16 %v923_v2, %v14030_v61  ;;  %v10062_v41 = vmul.f32 0.5, %v10030_v43  ;;  %11270 = vmatpush3.bf16.xpose.msra.mxu1 %v1656_v10 }
 0x283   :  { %v1308_v29 = vpop.f32.mrf.mxu1  ;;  %17796 = vst [vmem:[#allocation68_spill] sm:$0xff] %v14163_v53  ;;  %v1112_v36 = vadd.f32 %v1111_v58, %v14005_v40  ;;  %v1109_v58 = vadd.f32 %v1108_v11, %v14005_v40  ;;  %11254 = vmatmul.mubr.msk.bf16.vlgmr.msra.gmra.mxu0 %vm1416_vm2, %v14026_v63  ;;  %11271 = vmatprep.mubr.msk.bf16.mxu1 %vm13109_vm1, %v17787_v12 }
 0x284   :  { %v14156_v51 = vpack.c.bf16 %v1317_v57, %v1314_v8  ;;  %v1309_v15 = vadd.f32 %v1308_v29, %v14002_v60  ;;  %v14165_v18 = vpop.f32.mrf.mxu0  ;;  %v10034_v57 = vadd.f32 1.0, %v12450_v1  ;;  %v14180_v29 = vmul.f32 %v10058_v0, %v13908_v3  ;;  %11264 = vmatpush3.bf16.xpose.msra.mxu0 %v1609_v13  ;;  %11281 = vmatprep.subr.bf16.mxu1 %v17787_v12 }
 0x285   :  { %v11229_v25 = vpop.f32.mrf.mxu1  ;;  %v14193_v0 = vpack.c.bf16 %v915_v17, %v14037_v20  ;;  %v14200_v10 = vpack.c.bf16 %v1112_v36, %v1109_v58  ;;  %11265 = vmatprep.mubr.msk.bf16.mxu0 %vm13109_vm1, %v17787_v12  ;;  %v10039_v13 = vadd.f32 1.0, %v12456_v28  ;;  %11275 = vmatprep.subr.bf16.mxu0 %v17787_v12 }
 0x286   :  { %17794 = vst [vmem:[#allocation66_spill] sm:$0xff] %v14156_v51  ;;  %v14170_v26 = vpack.c.bf16 %v1309_v15, %v1306_v38  ;;  %v1330_v8 = vadd.f32 %v11229_v25, %v14002_v60  ;;  %v1124_v54 = vpop.f32.mrf.mxu0  ;;  %17798 = vst [vmem:[#allocation70_spill] sm:$0xff] %v14180_v29  ;;  %v1117_v38 = vadd.f32 %v14105_v19, %v14005_v40  ;;  %v10063_v25 = vmul.f32 0.5, %v10031_v23  ;;  %v12458_v19 = vpop.eup %12457 }
 0x287   :  { %v1321_v34 = vpop.f32.mrf.mxu1  ;;  %v10066_v43 = vmul.f32 0.5, %v10034_v57  ;;  %v10067_v23 = vmul.f32 0.5, %v10035_v37  ;;  %17800 = vst [vmem:[#allocation72_spill] sm:$0xff] %v14200_v10  ;;  %v12460_v36 = vpop.eup %12459  ;;  %v10043_v17 = vadd.f32 1.0, %v12458_v19 }
 0x288   :  { %17797 = vst [vmem:[#allocation69_spill] sm:$0xff] %v14170_v26  ;;  %v1322_v1 = vadd.f32 %v1321_v34, %v14002_v60  ;;  %v11190_v61 = vpop.f32.mrf.mxu0  ;;  %v14195_v15 = vpack.c.bf16 %v1120_v52, %v1117_v38  ;;  %v939_v52 = vadd.f32 %v13826_v62, %v13990_v55  ;;  %v14214_v38 = vmul.f32 %v10062_v41, %v13911_v39 }
 0x289   :  { %v11230_v3 = vpop.f32.mrf.mxu1  ;;  %v14217_v58 = vmul.f32 %v10063_v25, %v13918_v27  ;;  %v14227_v39 = vmul.f32 %v10066_v43, %v13923_v5  ;;  %v14230_v27 = vmul.f32 %v10067_v23, %v13930_v32  ;;  %v10042_v53 = vadd.f32 1.0, %v12460_v36  ;;  %11272 = vmatmul.mubr.msk.bf16.vlgmr.msra.gmra.mxu1 %vm1416_vm2, %v14177_v31 }
 0x28a   :  { %17799 = vst [vmem:[#allocation71_spill] sm:$0xff] %v14195_v15  ;;  %v1333_v11 = vadd.f32 %v11230_v3, %v14002_v60  ;;  %v1127_v34 = vpop.f32.mrf.mxu0  ;;  %17802 = vst [vmem:[#allocation74_spill] sm:$0xff] %v14214_v38  ;;  %v10038_v3 = vadd.f32 1.0, %v14120_v33  ;;  %v1750_v62 = vsel %vm1416_vm2, %v14195_v15, 0  ;;  %v1703_v33 = vsel %vm1416_vm2, %v14200_v10, 0  ;;  %11283 = vmatprep.mubr.msk.bf16.mxu1 %vm13109_vm1, %v17787_v12 }
 0x28b   :  { %v1324_v20 = vpop.f32.mrf.mxu1  ;;  %17803 = vst [vmem:[#allocation75_spill] sm:$0xff] %v14217_v58  ;;  %17805 = vst [vmem:[#allocation77_spill] sm:$0xff] %v14227_v39  ;;  %v1128_v41 = vadd.f32 %v1127_v34, %v14005_v40  ;;  %v10075_v32 = vmul.f32 0.5, %v10043_v17  ;;  %11282 = vmatpush3.bf16.xpose.msra.mxu1 %v1750_v62  ;;  %11266 = vmatmul.mubr.msk.bf16.vlgmr.msra.gmra.mxu0 %vm1416_vm2, %v14193_v0  ;;  %v17809_v17 = vld [vmem:[#allocation23_spill] sm:$0xff]  ;;  %v17815_v34 = vld [vmem:[#allocation48_spill] sm:$0xff] }
 0x28c   :  { %v14210_v57 = vpack.c.bf16 %v1333_v11, %v1330_v8  ;;  %v1325_v37 = vadd.f32 %v1324_v20, %v14002_v60  ;;  %v11193_v2 = vpop.f32.mrf.mxu0  ;;  %v1136_v8 = vadd.f32 %v11190_v61, %v14005_v40  ;;  %17806 = vst [vmem:[#allocation78_spill] sm:$0xff] %v14230_v27  ;;  %v10071_v20 = vmul.f32 0.5, %v10039_v13  ;;  %11276 = vmatpush3.bf16.xpose.msra.mxu0 %v1703_v33  ;;  %v17854_v27 = vld [vmem:[#allocation52_spill] sm:$0xff] }
 0x28d   :  { %v11233_v29 = vpop.f32.mrf.mxu1  ;;  %v1125_v61 = vadd.f32 %v1124_v54, %v14005_v40  ;;  %v931_v36 = vadd.f32 %v17809_v17, %v13990_v55  ;;  %11293 = vmatprep.subr.bf16.mxu1 %v17787_v12  ;;  %11277 = vmatprep.mubr.msk.bf16.mxu0 %vm13109_vm1, %v17787_v12  ;;  %v1242_v58 = vadd.f32 %v17854_v27, %v14002_v60 }
 0x28e   :  { %17801 = vst [vmem:[#allocation73_spill] sm:$0xff] %v14210_v57  ;;  %v14223_v28 = vpack.c.bf16 %v1325_v37, %v1322_v1  ;;  %v1346_v11 = vadd.f32 %v11233_v29, %v14002_v60  ;;  %v1140_v25 = vpop.f32.mrf.mxu0  ;;  %v1133_v1 = vadd.f32 %v14165_v18, %v14005_v40  ;;  %v10070_v29 = vmul.f32 0.5, %v10038_v3  ;;  %v17807_v18 = vld [vmem:[#allocation19_spill] sm:$0xff]  ;;  %11287 = vmatprep.subr.bf16.mxu0 %v17787_v12 }
 0x28f   :  { %v1337_v19 = vpop.f32.mrf.mxu1  ;;  %v936_v13 = vadd.f32 %v17807_v18, %v13990_v55  ;;  %v14254_v3 = vpack.c.bf16 %v1128_v41, %v1125_v61  ;;  %v14262_v33 = vmul.f32 %v10071_v20, %v13963_v50  ;;  %v17813_v61 = vld [vmem:[#allocation21_spill] sm:$0xff] }
 0x290   :  { %17804 = vst [vmem:[#allocation76_spill] sm:$0xff] %v14223_v28  ;;  %v1338_v5 = vadd.f32 %v1337_v19, %v14002_v60  ;;  %v11194_v43 = vpop.f32.mrf.mxu0  ;;  %v14247_v37 = vpack.c.bf16 %v1136_v8, %v1133_v1  ;;  %v10074_v1 = vmul.f32 0.5, %v10042_v53  ;;  %v928_v18 = vadd.f32 %v17813_v61, %v13990_v55 }
 0x291   :  { %v11234_v23 = vpop.f32.mrf.mxu1  ;;  %17810 = vst [vmem:[#allocation23_spill] sm:$0xff] %v14254_v3  ;;  %17811 = vst [vmem:[#allocation79_spill] sm:$0xff] %v14262_v33  ;;  %v14270_v17 = vpack.c.bf16 %v939_v52, %v936_v13  ;;  %v14273_v38 = vmul.f32 %v10070_v29, %v17815_v34  ;;  %v14276_v8 = vmul.f32 %v10075_v32, %v13994_v4  ;;  %v1797_v52 = vsel %vm1416_vm2, %v14254_v3, 0 }
 0x292   :  { %17808 = vst [vmem:[#allocation19_spill] sm:$0xff] %v14247_v37  ;;  %v1349_v54 = vadd.f32 %v11234_v23, %v14002_v60  ;;  %v1143_v62 = vpop.f32.mrf.mxu0  ;;  %v1844_v53 = vsel %vm1416_vm2, %v14247_v37, 0  ;;  %v14284_v61 = vpack.c.bf16 %v931_v36, %v928_v18  ;;  %v14290_v34 = vmul.f32 %v10074_v1, %v13983_v22  ;;  %v17820_v36 = vld [vmem:[#allocation29_spill] sm:$0xff] }
 0x293   :  { %v1340_v19 = vpop.f32.mrf.mxu1  ;;  %17814 = vst [vmem:[#allocation21_spill] sm:$0xff] %v14270_v17  ;;  %17816 = vst [vmem:[#allocation48_spill] sm:$0xff] %v14273_v38  ;;  %v1144_v29 = vadd.f32 %v1143_v62, %v14005_v40  ;;  %v1149_v13 = vadd.f32 %v11193_v2, %v14005_v40  ;;  %11284 = vmatmul.mubr.msk.bf16.vlgmr.msra.gmra.mxu1 %vm1416_vm2, %v14270_v17  ;;  %v1141_v62 = vadd.f32 %v1140_v25, %v14005_v40 }
 0x294   :  { %v14265_v23 = vpack.c.bf16 %v1349_v54, %v1346_v11  ;;  %v1341_v41 = vadd.f32 %v1340_v19, %v14002_v60  ;;  %17817 = vst [vmem:[#allocation81_spill] sm:$0xff] %v14276_v8  ;;  %v11197_v50 = vpop.f32.mrf.mxu0  ;;  %v1152_v11 = vadd.f32 %v11194_v43, %v14005_v40  ;;  %17819 = vst [vmem:[#allocation83_spill] sm:$0xff] %v14290_v34  ;;  %11294 = vmatpush3.bf16.xpose.msra.mxu1 %v1844_v53 }
 0x295   :  { %v11237_v20 = vpop.f32.mrf.mxu1  ;;  %11278 = vmatmul.mubr.msk.bf16.vlgmr.msra.gmra.mxu0 %vm1416_vm2, %v14284_v61  ;;  %11295 = vmatprep.mubr.msk.bf16.mxu1 %vm13109_vm1, %v17787_v12  ;;  %v14312_v53 = vpack.c.bf16 %v1144_v29, %v1141_v62 }
 0x296   :  { %17812 = vst [vmem:[#allocation80_spill] sm:$0xff] %v14265_v23  ;;  %v14281_v54 = vpack.c.bf16 %v1341_v41, %v1338_v5  ;;  %v1362_v19 = vadd.f32 %v11237_v20, %v14002_v60  ;;  %v1156_v4 = vpop.f32.mrf.mxu0  ;;  %v955_v41 = vadd.f32 %v17820_v36, %v13990_v55  ;;  %v14303_v2 = vpack.c.bf16 %v1152_v11, %v1149_v13  ;;  %v17824_v13 = vld [vmem:[#allocation24_spill] sm:$0xff] }
 0x297   :  { %v1353_v32 = vpop.f32.mrf.mxu1  ;;  %11288 = vmatpush3.bf16.xpose.msra.mxu0 %v1797_v52  ;;  %11305 = vmatprep.subr.bf16.mxu1 %v17787_v12  ;;  %v952_v36 = vadd.f32 %v17824_v13, %v13990_v55 }
 0x298   :  { %17818 = vst [vmem:[#allocation82_spill] sm:$0xff] %v14281_v54  ;;  %v1354_v5 = vadd.f32 %v1353_v32, %v14002_v60  ;;  %v11198_v22 = vpop.f32.mrf.mxu0  ;;  %17821 = vst [vmem:[#allocation29_spill] sm:$0xff] %v14303_v2  ;;  %v17822_v32 = vld [vmem:[#allocation31_spill] sm:$0xff]  ;;  %11289 = vmatprep.mubr.msk.bf16.mxu0 %vm13109_vm1, %v17787_v12  ;;  %11299 = vmatprep.subr.bf16.mxu0 %v17787_v12  ;;  %v1938_v34 = vsel %vm1416_vm2, %v14303_v2, 0 }
 0x299   :  { %v11238_v1 = vpop.f32.mrf.mxu1  ;;  %v947_v25 = vadd.f32 %v17822_v32, %v13990_v55  ;;  %17823 = vst [vmem:[#allocation31_spill] sm:$0xff] %v14312_v53  ;;  %v17826_v32 = vld [vmem:[#allocation26_spill] sm:$0xff]  ;;  %v14325_v43 = vpack.c.bf16 %v955_v41, %v952_v36  ;;  %v1168_v8 = vadd.f32 %v11198_v22, %v14005_v40  ;;  %v1157_v41 = vadd.f32 %v1156_v4, %v14005_v40  ;;  %v17830_v22 = vld [vmem:[#allocation35_spill] sm:$0xff]  ;;  %v17834_v4 = vld [vmem:[#allocation32_spill] sm:$0xff] }
 0x29a   :  { %v1365_v18 = vadd.f32 %v11238_v1, %v14002_v60  ;;  %v1159_v11 = vpop.f32.mrf.mxu0  ;;  %v944_v29 = vadd.f32 %v17826_v32, %v13990_v55  ;;  %v1165_v32 = vadd.f32 %v11197_v50, %v14005_v40  ;;  %v17832_v50 = vld [vmem:[#allocation37_spill] sm:$0xff] }
 0x29b   :  { %v1356_v52 = vpop.f32.mrf.mxu1  ;;  %17827 = vst [vmem:[#allocation26_spill] sm:$0xff] %v14325_v43  ;;  %11296 = vmatmul.mubr.msk.bf16.vlgmr.msra.gmra.mxu1 %vm1416_vm2, %v14325_v43 }
 0x29c   :  { %v14320_v1 = vpack.c.bf16 %v1365_v18, %v1362_v19  ;;  %v1357_v20 = vadd.f32 %v1356_v52, %v14002_v60  ;;  %v11201_v62 = vpop.f32.mrf.mxu0  ;;  %v14332_v13 = vpack.c.bf16 %v947_v25, %v944_v29  ;;  %v1891_v19 = vsel %vm1416_vm2, %v14312_v53, 0  ;;  %11306 = vmatpush3.bf16.xpose.msra.mxu1 %v1938_v34  ;;  %11307 = vmatprep.mubr.msk.bf16.mxu1 %vm13109_vm1, %v17787_v12  ;;  %v17835_v29 = vld [vmem:[#allocation34_spill] sm:$0xff] }
 0x29d   :  { %v1160_v18 = vadd.f32 %v1159_v11, %v14005_v40  ;;  %v14345_v25 = vpack.c.bf16 %v1168_v8, %v1165_v32  ;;  %v963_v11 = vadd.f32 %v17832_v50, %v13990_v55  ;;  %11317 = vmatprep.subr.bf16.mxu1 %v17787_v12  ;;  %v968_v34 = vadd.f32 %v17834_v4, %v13990_v55 }
 0x29e   :  { %17825 = vst [vmem:[#allocation24_spill] sm:$0xff] %v14320_v1  ;;  %v14330_v38 = vpack.c.bf16 %v1357_v20, %v1354_v5  ;;  %17829 = vst [vmem:[#allocation85_spill] sm:$0xff] %v14332_v13  ;;  %v1172_v52 = vpop.f32.mrf.mxu0  ;;  %11290 = vmatmul.mubr.msk.bf16.vlgmr.msra.gmra.mxu0 %vm1416_vm2, %v14332_v13  ;;  %v971_v20 = vadd.f32 %v17830_v22, %v13990_v55  ;;  %v1181_v33 = vadd.f32 %v11201_v62, %v14005_v40  ;;  %v17840_v62 = vld [vmem:[#allocation43_spill] sm:$0xff] }
 0x29f   :  { %17831 = vst [vmem:[#allocation35_spill] sm:$0xff] %v14345_v25  ;;  %11300 = vmatpush3.bf16.xpose.msra.mxu0 %v1891_v19  ;;  %v14351_v36 = vpack.c.bf16 %v1160_v18, %v1157_v41  ;;  %11301 = vmatprep.mubr.msk.bf16.mxu0 %vm13109_vm1, %v17787_v12  ;;  %v960_v19 = vadd.f32 %v17835_v29, %v13990_v55  ;;  %v2032_v18 = vsel %vm1416_vm2, %v14345_v25, 0 }
 0x2a0   :  { %17828 = vst [vmem:[#allocation84_spill] sm:$0xff] %v14330_v38  ;;  %v11202_v5 = vpop.f32.mrf.mxu0  ;;  %11311 = vmatprep.subr.bf16.mxu0 %v17787_v12  ;;  %v14361_v32 = vpack.c.bf16 %v971_v20, %v968_v34  ;;  %v1173_v20 = vadd.f32 %v1172_v52, %v14005_v40 }
 0x2a1   :  { %17833 = vst [vmem:[#allocation37_spill] sm:$0xff] %v14351_v36  ;;  %v1184_v41 = vadd.f32 %v11202_v5, %v14005_v40  ;;  %v14366_v22 = vpack.c.bf16 %v963_v11, %v960_v19  ;;  %v1985_v50 = vsel %vm1416_vm2, %v14351_v36, 0  ;;  %v17838_v5 = vld [vmem:[#allocation41_spill] sm:$0xff] }
 0x2a2   :  { %v1175_v8 = vpop.f32.mrf.mxu0  ;;  %17836 = vst [vmem:[#allocation32_spill] sm:$0xff] %v14361_v32  ;;  %v987_v11 = vadd.f32 %v17838_v5, %v13990_v55 }
 0x2a3   :  { %17837 = vst [vmem:[#allocation34_spill] sm:$0xff] %v14366_v22  ;;  %v1176_v4 = vadd.f32 %v1175_v8, %v14005_v40  ;;  %11308 = vmatmul.mubr.msk.bf16.vlgmr.msra.gmra.mxu1 %vm1416_vm2, %v14361_v32  ;;  %v14379_v34 = vpack.c.bf16 %v1184_v41, %v1181_v33  ;;  %v979_v8 = vadd.f32 %v17840_v62, %v13990_v55  ;;  %v17842_v40 = vld [vmem:[#allocation38_spill] sm:$0xff]  ;;  %v17843_v33 = vld [vmem:[#allocation40_spill] sm:$0xff] }
 0x2a4   :  { %11318 = vmatpush3.bf16.xpose.msra.mxu1 %v2032_v18  ;;  %11319 = vmatprep.mubr.msk.bf16.mxu1 %vm13109_vm1, %v17787_v12  ;;  %v984_v52 = vadd.f32 %v17842_v40, %v13990_v55  ;;  %v976_v19 = vadd.f32 %v17843_v33, %v13990_v55 }
 0x2a5   :  { %17839 = vst [vmem:[#allocation41_spill] sm:$0xff] %v14379_v34  ;;  %v14385_v29 = vpack.c.bf16 %v1176_v4, %v1173_v20  ;;  %11329 = vmatprep.subr.bf16.mxu1 %v17787_v12  ;;  %v2126_v41 = vsel %vm1416_vm2, %v14379_v34, 0  ;;  %v17846_v20 = vld [vmem:[#allocation47_spill] sm:$0xff] }
 0x2a6   :  { %11302 = vmatmul.mubr.msk.bf16.vlgmr.msra.gmra.mxu0 %vm1416_vm2, %v14366_v22  ;;  %v14395_v18 = vpack.c.bf16 %v987_v11, %v984_v52  ;;  %v1003_v5 = vadd.f32 %v17846_v20, %v13990_v55  ;;  %v17847_v11 = vld [vmem:[#allocation50_spill] sm:$0xff]  ;;  %v17849_v52 = vld [vmem:[#allocation44_spill] sm:$0xff] }
 0x2a7   :  { %11312 = vmatpush3.bf16.xpose.msra.mxu0 %v1985_v50  ;;  %17841 = vst [vmem:[#allocation43_spill] sm:$0xff] %v14385_v29  ;;  %11313 = vmatprep.mubr.msk.bf16.mxu0 %vm13109_vm1, %v17787_v12  ;;  %v14399_v50 = vpack.c.bf16 %v979_v8, %v976_v19  ;;  %v2079_v4 = vsel %vm1416_vm2, %v14385_v29, 0  ;;  %v995_v62 = vadd.f32 %v17847_v11, %v13990_v55  ;;  %v17848_v8 = vld [vmem:[#allocation53_spill] sm:$0xff]  ;;  %v17850_v19 = vld [vmem:[#allocation54_spill] sm:$0xff]  ;;  %v17852_v11 = vld [vmem:[#allocation51_spill] sm:$0xff] }
 0x2a8   :  { %11323 = vmatprep.subr.bf16.mxu0 %v17787_v12  ;;  %17844 = vst [vmem:[#allocation38_spill] sm:$0xff] %v14395_v18  ;;  %v1253_v40 = vadd.f32 %v17848_v8, %v14002_v60  ;;  %v1000_v33 = vadd.f32 %v17849_v52, %v13990_v55  ;;  %v1250_v39 = vadd.f32 %v17852_v11, %v14002_v60 }
 0x2a9   :  { %17845 = vst [vmem:[#allocation40_spill] sm:$0xff] %v14399_v50 }
 0x2aa   :  { %v14427_v8 = vpack.c.bf16 %v1003_v5, %v1000_v33  ;;  %v14433_v56 = vpack.c.bf16 %v1253_v40, %v1250_v39 }
 0x2ab   :  { %11320 = vmatmul.mubr.msk.bf16.vlgmr.msra.gmra.mxu1 %vm1416_vm2, %v14395_v18 }
 0x2ac   :  { %11330 = vmatpush3.bf16.xpose.msra.mxu1 %v2126_v41  ;;  %11331 = vmatprep.mubr.msk.bf16.mxu1 %vm13109_vm1, %v17787_v12  ;;  %v1245_v41 = vadd.f32 %v17850_v19, %v14002_v60  ;;  %17853 = vst [vmem:[#allocation47_spill] sm:$0xff] %v14427_v8  ;;  %17856 = vst [vmem:[#allocation53_spill] sm:$0xff] %v14433_v56 }
 0x2ad   :  { %11341 = vmatprep.subr.bf16.mxu1 %v17787_v12 }
 0x2ae   :  { %11314 = vmatmul.mubr.msk.bf16.vlgmr.msra.gmra.mxu0 %vm1416_vm2, %v14399_v50  ;;  %v14435_v52 = vpack.c.bf16 %v1245_v41, %v1242_v58 }
 0x2af   :  { %11324 = vmatpush3.bf16.xpose.msra.mxu0 %v2079_v4  ;;  %11325 = vmatprep.mubr.msk.bf16.mxu0 %vm13109_vm1, %v17787_v12  ;;  %v17851_v4 = vld [vmem:[#allocation46_spill] sm:$0xff] }
 0x2b0   :  { %11335 = vmatprep.subr.bf16.mxu0 %v17787_v12  ;;  %v992_v20 = vadd.f32 %v17851_v4, %v13990_v55  ;;  %17857 = vst [vmem:[#allocation44_spill] sm:$0xff] %v14435_v52 }
 0x2b2   :  { %v14431_v48 = vpack.c.bf16 %v995_v62, %v992_v20 }
 0x2b3   :  { %11332 = vmatmul.mubr.msk.bf16.vlgmr.msra.gmra.mxu1 %vm1416_vm2, %v14427_v8 }
 0x2b4   :  { %17855 = vst [vmem:[#allocation50_spill] sm:$0xff] %v14431_v48  ;;  %11342 = vmatpush3.bf16.msra.mxu1 %v14433_v56  ;;  %11343 = vmatprep.mubr.msk.bf16.mxu1 %vm13109_vm1, %v17787_v12 }
 0x2b5   :  { %11353 = vmatprep.subr.bf16.mxu1 %v17787_v12 }
 0x2b6   :  { %11326 = vmatmul.mubr.msk.bf16.vlgmr.msra.gmra.mxu0 %vm1416_vm2, %v14431_v48 }
 0x2b7   :  { %11336 = vmatpush3.bf16.msra.mxu0 %v14435_v52  ;;  %11337 = vmatprep.mubr.msk.bf16.mxu0 %vm13109_vm1, %v17787_v12 }
 0x2b8   :  { %11347 = vmatprep.subr.bf16.mxu0 %v17787_v12 }
 0x339   :  { %v14449_v55 = vpop.f32.mrf.mxu1 }
 0x33a   :  { %v14451_v60 = vpop.f32.mrf.mxu0  ;;  %v2176_v19 = vsel %vm2169_vm3, %v14449_v55, -inf }
 0x33b   :  { %v11249_v58 = vpop.f32.mrf.mxu1  ;;  %v2170_v39 = vsel %vm2169_vm3, %v14451_v60, -inf }
 0x33c   :  { %2171 = vmax.xlane.f32.xlu0 %v2170_v39  ;;  %v11243_v27 = vpop.f32.mrf.mxu0 }
 0x33d   :  { %v14455_v5 = vpop.f32.mrf.mxu1 }
 0x33e   :  { %v2179_v62 = vsel %vm2169_vm3, %v14455_v5, -inf  ;;  %v14459_v40 = vpop.f32.mrf.mxu0 }
 0x33f   :  { %2180 = vmax.xlane.f32.xlu1 %v2179_v62  ;;  %v11250_v33 = vpop.f32.mrf.mxu1  ;;  %v2173_v20 = vsel %vm2169_vm3, %v14459_v40, -inf }
 0x340   :  { %2177 = vmax.xlane.f32.xlu0 %v2176_v19  ;;  %v11244_v41 = vpop.f32.mrf.mxu0 }
 0x341   :  { %v14463_v4 = vpop.f32.mrf.mxu1 }
 0x342   :  { %v2188_v14 = vsel %vm2169_vm3, %v14463_v4, -inf }
 0x343   :  { %v14467_v11 = vpop.f32.mrf.mxu0  ;;  %v11261_v58 = vpop.f32.mrf.mxu1  ;;  %2174 = vmax.xlane.f32.xlu1 %v2173_v20 }
 0x344   :  { %v2182_v39 = vsel %vm2169_vm3, %v14467_v11, -inf }
 0x345   :  { %2183 = vmax.xlane.f32.xlu0 %v2182_v39  ;;  %v11255_v27 = vpop.f32.mrf.mxu0  ;;  %v14471_v62 = vpop.f32.mrf.mxu1 }
 0x346   :  { %v2191_v33 = vsel %vm2169_vm3, %v14471_v62, -inf }
 0x347   :  { %v14475_v19 = vpop.f32.mrf.mxu0  ;;  %v11262_v41 = vpop.f32.mrf.mxu1  ;;  %2192 = vmax.xlane.f32.xlu1 %v2191_v33 }
 0x348   :  { %v2185_v39 = vsel %vm2169_vm3, %v14475_v19, -inf }
 0x349   :  { %2189 = vmax.xlane.f32.xlu0 %v2188_v14  ;;  %v11256_v58 = vpop.f32.mrf.mxu0  ;;  %v14479_v20 = vpop.f32.mrf.mxu1 }
 0x34a   :  { %v2200_v23 = vsel %vm2169_vm3, %v14479_v20, -inf }
 0x34b   :  { %v14483_v27 = vpop.f32.mrf.mxu0  ;;  %v11273_v45 = vpop.f32.mrf.mxu1  ;;  %2186 = vmax.xlane.f32.xlu1 %v2185_v39 }
 0x34c   :  { %v2194_v38 = vsel %vm2169_vm3, %v14483_v27, -inf }
 0x34d   :  { %2195 = vmax.xlane.f32.xlu0 %v2194_v38  ;;  %v11267_v41 = vpop.f32.mrf.mxu0  ;;  %v14487_v33 = vpop.f32.mrf.mxu1 }
 0x34e   :  { %v2203_v14 = vsel %vm2169_vm3, %v14487_v33, -inf }
 0x34f   :  { %v14491_v58 = vpop.f32.mrf.mxu0  ;;  %v11274_v1 = vpop.f32.mrf.mxu1  ;;  %2204 = vmax.xlane.f32.xlu1 %v2203_v14 }
 0x350   :  { %v2197_v38 = vsel %vm2169_vm3, %v14491_v58, -inf }
 0x351   :  { %2201 = vmax.xlane.f32.xlu0 %v2200_v23  ;;  %v11268_v45 = vpop.f32.mrf.mxu0 }
 0x353   :  { %v14495_v39 = vpop.f32.mrf.mxu1  ;;  %2198 = vmax.xlane.f32.xlu1 %v2197_v38 }
 0x354   :  { %v2212_v8 = vsel %vm2169_vm3, %v14495_v39, -inf }
 0x355   :  { %v14499_v41 = vpop.f32.mrf.mxu0  ;;  %v11285_v28 = vpop.f32.mrf.mxu1 }
 0x356   :  { %v2206_v57 = vsel %vm2169_vm3, %v14499_v41, -inf }
 0x357   :  { %2207 = vmax.xlane.f32.xlu0 %v2206_v57  ;;  %v11279_v1 = vpop.f32.mrf.mxu0  ;;  %v14503_v14 = vpop.f32.mrf.mxu1 }
 0x358   :  { %v2215_v23 = vsel %vm2169_vm3, %v14503_v14, -inf }
 0x359   :  { %v14507_v45 = vpop.f32.mrf.mxu0  ;;  %v11286_v56 = vpop.f32.mrf.mxu1  ;;  %2216 = vmax.xlane.f32.xlu1 %v2215_v23 }
 0x35a   :  { %v2209_v57 = vsel %vm2169_vm3, %v14507_v45, -inf }
 0x35b   :  { %2213 = vmax.xlane.f32.xlu0 %v2212_v8  ;;  %v11280_v28 = vpop.f32.mrf.mxu0  ;;  %v14511_v38 = vpop.f32.mrf.mxu1 }
 0x35c   :  { %v2224_v46 = vsel %vm2169_vm3, %v14511_v38, -inf }
 0x35d   :  { %v11297_v51 = vpop.f32.mrf.mxu1  ;;  %2210 = vmax.xlane.f32.xlu1 %v2209_v57 }
 0x35e   :  { %v14515_v1 = vpop.f32.mrf.mxu0 }
 0x35f   :  { %v2218_v34 = vsel %vm2169_vm3, %v14515_v1, -inf  ;;  %v14519_v23 = vpop.f32.mrf.mxu1 }
 0x360   :  { %2219 = vmax.xlane.f32.xlu0 %v2218_v34  ;;  %v11291_v56 = vpop.f32.mrf.mxu0  ;;  %v2227_v8 = vsel %vm2169_vm3, %v14519_v23, -inf }
 0x361   :  { %v11298_v29 = vpop.f32.mrf.mxu1  ;;  %2228 = vmax.xlane.f32.xlu1 %v2227_v8 }
 0x362   :  { %v14523_v28 = vpop.f32.mrf.mxu0 }
 0x363   :  { %v14527_v57 = vpop.f32.mrf.mxu1  ;;  %v2221_v34 = vsel %vm2169_vm3, %v14523_v28, -inf }
 0x364   :  { %2225 = vmax.xlane.f32.xlu0 %v2224_v46  ;;  %v11292_v51 = vpop.f32.mrf.mxu0  ;;  %v2236_v54 = vsel %vm2169_vm3, %v14527_v57, -inf }
 0x365   :  { %v11309_v25 = vpop.f32.mrf.mxu1  ;;  %2222 = vmax.xlane.f32.xlu1 %v2221_v34 }
 0x366   :  { %v14531_v56 = vpop.f32.mrf.mxu0 }
 0x367   :  { %v2230_v36 = vsel %vm2169_vm3, %v14531_v56, -inf  ;;  %v14535_v8 = vpop.f32.mrf.mxu1 }
 0x368   :  { %2231 = vmax.xlane.f32.xlu0 %v2230_v36  ;;  %v11303_v29 = vpop.f32.mrf.mxu0  ;;  %v2239_v46 = vsel %vm2169_vm3, %v14535_v8, -inf }
 0x369   :  { %v11310_v2 = vpop.f32.mrf.mxu1  ;;  %2240 = vmax.xlane.f32.xlu1 %v2239_v46 }
 0x36a   :  { %v14539_v51 = vpop.f32.mrf.mxu0 }
 0x36b   :  { %v14543_v34 = vpop.f32.mrf.mxu1  ;;  %v2233_v36 = vsel %vm2169_vm3, %v14539_v51, -inf }
 0x36c   :  { %2237 = vmax.xlane.f32.xlu0 %v2236_v54  ;;  %v11304_v25 = vpop.f32.mrf.mxu0  ;;  %v2248_v16 = vsel %vm2169_vm3, %v14543_v34, -inf }
 0x36d   :  { %v11321_v53 = vpop.f32.mrf.mxu1  ;;  %2234 = vmax.xlane.f32.xlu1 %v2233_v36 }
 0x36e   :  { %v14547_v29 = vpop.f32.mrf.mxu0 }
 0x36f   :  { %v2242_v12 = vsel %vm2169_vm3, %v14547_v29, -inf  ;;  %v14551_v46 = vpop.f32.mrf.mxu1 }
 0x370   :  { %2243 = vmax.xlane.f32.xlu0 %v2242_v12  ;;  %v11315_v2 = vpop.f32.mrf.mxu0  ;;  %v2251_v54 = vsel %vm2169_vm3, %v14551_v46, -inf }
 0x371   :  { %v11322_v26 = vpop.f32.mrf.mxu1  ;;  %2252 = vmax.xlane.f32.xlu1 %v2251_v54 }
 0x372   :  { %v14555_v25 = vpop.f32.mrf.mxu0 }
 0x373   :  { %v14559_v36 = vpop.f32.mrf.mxu1  ;;  %v2245_v12 = vsel %vm2169_vm3, %v14555_v25, -inf }
 0x374   :  { %2249 = vmax.xlane.f32.xlu0 %v2248_v16  ;;  %v11316_v53 = vpop.f32.mrf.mxu0  ;;  %v2260_v59 = vsel %vm2169_vm3, %v14559_v36, -inf }
 0x375   :  { %v11333_v37 = vpop.f32.mrf.mxu1  ;;  %2246 = vmax.xlane.f32.xlu1 %v2245_v12 }
 0x376   :  { %v14563_v2 = vpop.f32.mrf.mxu0 }
 0x377   :  { %v2254_v6 = vsel %vm2169_vm3, %v14563_v2, -inf  ;;  %v14567_v54 = vpop.f32.mrf.mxu1 }
 0x378   :  { %2255 = vmax.xlane.f32.xlu0 %v2254_v6  ;;  %v11327_v26 = vpop.f32.mrf.mxu0  ;;  %v2263_v16 = vsel %vm2169_vm3, %v14567_v54, -inf }
 0x379   :  { %v11334_v3 = vpop.f32.mrf.mxu1  ;;  %2264 = vmax.xlane.f32.xlu1 %v2263_v16 }
 0x37a   :  { %v14571_v53 = vpop.f32.mrf.mxu0 }
 0x37b   :  { %v2257_v12 = vsel %vm2169_vm3, %v14571_v53, -inf }
 0x37c   :  { %2261 = vmax.xlane.f32.xlu0 %v2260_v59  ;;  %v11328_v37 = vpop.f32.mrf.mxu0 }
 0x37d   :  { %2258 = vmax.xlane.f32.xlu1 %v2257_v12 }
 0x3c5   :  { %v2172_v6 = vpop.xlane.xlu0 %2171 }
 0x3c6   :  { %v2266_v26 = vsub.f32 %v14451_v60, %v2172_v6 }
 0x3c8   :  { %v2181_v15 = vpop.xlane.xlu1 %2180  ;;  %v2298_v16 = vmul.f32 1.442695, %v2266_v26 }
 0x3c9   :  { %v2269_v49 = vsub.f32 %v14455_v5, %v2181_v15  ;;  %v2178_v10 = vpop.xlane.xlu0 %2177 }
 0x3ca   :  { %v2268_v52 = vsub.f32 %v14449_v55, %v2178_v10 }
 0x3cb   :  { %v2304_v3 = vmul.f32 1.442695, %v2269_v49 }
 0x3cc   :  { %v2302_v9 = vmul.f32 1.442695, %v2268_v52  ;;  %v2175_v48 = vpop.xlane.xlu1 %2174 }
 0x3cd   :  { %12461 = vpow2.f32 %v2304_v3  ;;  %v2267_v59 = vsub.f32 %v14459_v40, %v2175_v48 }
 0x3ce   :  { %v2184_v37 = vpop.xlane.xlu0 %2183  ;;  %12463 = vpow2.f32 %v2302_v9 }
 0x3cf   :  { %v2300_v21 = vmul.f32 1.442695, %v2267_v59  ;;  %12465 = vpow2.f32 %v2298_v16  ;;  %v2270_v12 = vsub.f32 %v14467_v11, %v2184_v37 }
 0x3d0   :  { %v2193_v60 = vpop.xlane.xlu1 %2192 }
 0x3d1   :  { %12467 = vpow2.f32 %v2300_v21  ;;  %v2273_v15 = vsub.f32 %v14471_v62, %v2193_v60  ;;  %v2306_v55 = vmul.f32 1.442695, %v2270_v12 }
 0x3d2   :  { %v2190_v5 = vpop.xlane.xlu0 %2189 }
 0x3d3   :  { %v2272_v10 = vsub.f32 %v14463_v4, %v2190_v5  ;;  %v2312_v49 = vmul.f32 1.442695, %v2273_v15 }
 0x3d4   :  { %v2187_v6 = vpop.xlane.xlu1 %2186 }
 0x3d5   :  { %v2310_v52 = vmul.f32 1.442695, %v2272_v10  ;;  %12469 = vpow2.f32 %v2312_v49  ;;  %v2271_v48 = vsub.f32 %v14475_v19, %v2187_v6 }
 0x3d6   :  { %v2196_v40 = vpop.xlane.xlu0 %2195 }
 0x3d7   :  { %12471 = vpow2.f32 %v2310_v52  ;;  %v2308_v9 = vmul.f32 1.442695, %v2271_v48  ;;  %v2274_v11 = vsub.f32 %v14483_v27, %v2196_v40 }
 0x3d8   :  { %12473 = vpow2.f32 %v2306_v55  ;;  %v2205_v26 = vpop.xlane.xlu1 %2204 }
 0x3d9   :  { %12475 = vpow2.f32 %v2308_v9  ;;  %v2277_v21 = vsub.f32 %v14487_v33, %v2205_v26  ;;  %v2314_v37 = vmul.f32 1.442695, %v2274_v11 }
 0x3da   :  { %v2202_v62 = vpop.xlane.xlu0 %2201  ;;  %v14587_v3 = vpop.eup %12461 }
 0x3db   :  { %v2276_v4 = vsub.f32 %v14479_v20, %v2202_v62  ;;  %v14590_v16 = vpop.eup %12463  ;;  %v2320_v59 = vmul.f32 1.442695, %v2277_v21  ;;  %v2371_v19 = vsel %vm2169_vm3, %v14587_v3, 0.0 }
 0x3dc   :  { %v2199_v60 = vpop.xlane.xlu1 %2198  ;;  %2372 = vadd.xlane.f32.xlu1 %v2371_v19  ;;  %v2368_v27 = vsel %vm2169_vm3, %v14590_v16, 0.0  ;;  %v14596_v15 = vpop.eup %12465 }
 0x3dd   :  { %v2318_v12 = vmul.f32 1.442695, %v2276_v4  ;;  %12477 = vpow2.f32 %v2320_v59  ;;  %v2275_v33 = vsub.f32 %v14491_v58, %v2199_v60  ;;  %2369 = vadd.xlane.f32.xlu0 %v2368_v27  ;;  %v2362_v6 = vsel %vm2169_vm3, %v14596_v15, 0.0 }
 0x3de   :  { %v14599_v20 = vpop.eup %12467 }
 0x3df   :  { %12479 = vpow2.f32 %v2318_v12  ;;  %v2316_v10 = vmul.f32 1.442695, %v2275_v33  ;;  %v2365_v49 = vsel %vm2169_vm3, %v14599_v20, 0.0 }
 0x3e0   :  { %v2208_v5 = vpop.xlane.xlu0 %2207  ;;  %12481 = vpow2.f32 %v2314_v37  ;;  %2366 = vadd.xlane.f32.xlu1 %v2365_v49 }
 0x3e1   :  { %v2278_v55 = vsub.f32 %v14499_v41, %v2208_v5  ;;  %12483 = vpow2.f32 %v2316_v10  ;;  %2363 = vadd.xlane.f32.xlu0 %v2362_v6 }
 0x3e2   :  { %v2217_v52 = vpop.xlane.xlu1 %2216  ;;  %v14607_v40 = vpop.eup %12469 }
 0x3e3   :  { %v2281_v58 = vsub.f32 %v14503_v14, %v2217_v52  ;;  %v2383_v41 = vsel %vm2169_vm3, %v14607_v40, 0.0  ;;  %v2322_v21 = vmul.f32 1.442695, %v2278_v55 }
 0x3e4   :  { %v2214_v48 = vpop.xlane.xlu0 %2213  ;;  %v14610_v11 = vpop.eup %12471  ;;  %2384 = vadd.xlane.f32.xlu1 %v2383_v41 }
 0x3e5   :  { %v2280_v9 = vsub.f32 %v14495_v39, %v2214_v48  ;;  %v2328_v26 = vmul.f32 1.442695, %v2281_v58  ;;  %v2380_v59 = vsel %vm2169_vm3, %v14610_v11, 0.0  ;;  %v14616_v14 = vpop.eup %12473 }
 0x3e6   :  { %v2211_v4 = vpop.xlane.xlu1 %2210  ;;  %2381 = vadd.xlane.f32.xlu0 %v2380_v59  ;;  %v14619_v39 = vpop.eup %12475  ;;  %v2374_v5 = vsel %vm2169_vm3, %v14616_v14, 0.0 }
 0x3e7   :  { %v2326_v62 = vmul.f32 1.442695, %v2280_v9  ;;  %12485 = vpow2.f32 %v2328_v26  ;;  %v2279_v19 = vsub.f32 %v14507_v45, %v2211_v4  ;;  %v2377_v60 = vsel %vm2169_vm3, %v14619_v39, 0.0 }
 0x3e8   :  { %2378 = vadd.xlane.f32.xlu1 %v2377_v60 }
 0x3e9   :  { %v2220_v37 = vpop.xlane.xlu0 %2219  ;;  %12487 = vpow2.f32 %v2326_v62  ;;  %v2324_v12 = vmul.f32 1.442695, %v2279_v19 }
 0x3ea   :  { %12489 = vpow2.f32 %v2322_v21  ;;  %v2282_v27 = vsub.f32 %v14515_v1, %v2220_v37  ;;  %v2229_v33 = vpop.xlane.xlu1 %2228  ;;  %2375 = vadd.xlane.f32.xlu0 %v2374_v5  ;;  %v14627_v49 = vpop.eup %12477 }
 0x3eb   :  { %12491 = vpow2.f32 %v2324_v12  ;;  %v2285_v45 = vsub.f32 %v14519_v23, %v2229_v33  ;;  %v2395_v1 = vsel %vm2169_vm3, %v14627_v49, 0.0 }
 0x3ec   :  { %v14630_v52 = vpop.eup %12479  ;;  %v2330_v58 = vmul.f32 1.442695, %v2282_v27  ;;  %2396 = vadd.xlane.f32.xlu1 %v2395_v1 }
 0x3ed   :  { %v2226_v10 = vpop.xlane.xlu0 %2225  ;;  %v2336_v6 = vmul.f32 1.442695, %v2285_v45  ;;  %v2392_v26 = vsel %vm2169_vm3, %v14630_v52, 0.0  ;;  %v14636_v23 = vpop.eup %12481 }
 0x3ee   :  { %v2284_v55 = vsub.f32 %v14511_v38, %v2226_v10  ;;  %v2223_v9 = vpop.xlane.xlu1 %2222  ;;  %2393 = vadd.xlane.f32.xlu0 %v2392_v26  ;;  %v14639_v38 = vpop.eup %12483  ;;  %v2386_v37 = vsel %vm2169_vm3, %v14636_v23, 0.0 }
 0x3ef   :  { %12493 = vpow2.f32 %v2336_v6  ;;  %v2283_v41 = vsub.f32 %v14523_v28, %v2223_v9  ;;  %v2389_v4 = vsel %vm2169_vm3, %v14639_v38, 0.0 }
 0x3f0   :  { %v2334_v48 = vmul.f32 1.442695, %v2284_v55  ;;  %2390 = vadd.xlane.f32.xlu1 %v2389_v4 }
 0x3f1   :  { %v2232_v21 = vpop.xlane.xlu0 %2231  ;;  %v2332_v62 = vmul.f32 1.442695, %v2283_v41 }
 0x3f2   :  { %12495 = vpow2.f32 %v2334_v48  ;;  %v2286_v59 = vsub.f32 %v14531_v56, %v2232_v21  ;;  %v2241_v19 = vpop.xlane.xlu1 %2240  ;;  %2387 = vadd.xlane.f32.xlu0 %v2386_v37 }
 0x3f3   :  { %12497 = vpow2.f32 %v2330_v58  ;;  %v2289_v28 = vsub.f32 %v14535_v8, %v2241_v19 }
 0x3f4   :  { %12499 = vpow2.f32 %v2332_v62  ;;  %v14647_v60 = vpop.eup %12485  ;;  %v2338_v45 = vmul.f32 1.442695, %v2286_v59 }
 0x3f5   :  { %v2238_v12 = vpop.xlane.xlu0 %2237  ;;  %v2344_v5 = vmul.f32 1.442695, %v2289_v28  ;;  %v2407_v56 = vsel %vm2169_vm3, %v14647_v60, 0.0 }
 0x3f6   :  { %v2288_v27 = vsub.f32 %v14527_v57, %v2238_v12  ;;  %v14650_v33 = vpop.eup %12487  ;;  %v2235_v55 = vpop.xlane.xlu1 %2234  ;;  %2408 = vadd.xlane.f32.xlu1 %v2407_v56 }
 0x3f7   :  { %v2404_v6 = vsel %vm2169_vm3, %v14650_v33, 0.0  ;;  %v14656_v8 = vpop.eup %12489  ;;  %12501 = vpow2.f32 %v2344_v5  ;;  %v2287_v1 = vsub.f32 %v14539_v51, %v2235_v55 }
 0x3f8   :  { %v2342_v10 = vmul.f32 1.442695, %v2288_v27  ;;  %2405 = vadd.xlane.f32.xlu0 %v2404_v6  ;;  %v14659_v57 = vpop.eup %12491  ;;  %v2398_v21 = vsel %vm2169_vm3, %v14656_v8, 0.0 }
 0x3f9   :  { %v2244_v58 = vpop.xlane.xlu0 %2243  ;;  %v2340_v48 = vmul.f32 1.442695, %v2287_v1  ;;  %v2401_v9 = vsel %vm2169_vm3, %v14659_v57, 0.0 }
 0x3fa   :  { %12503 = vpow2.f32 %v2342_v10  ;;  %v2290_v26 = vsub.f32 %v14547_v29, %v2244_v58  ;;  %v2253_v41 = vpop.xlane.xlu1 %2252  ;;  %2402 = vadd.xlane.f32.xlu1 %v2401_v9 }
 0x3fb   :  { %12505 = vpow2.f32 %v2338_v45  ;;  %v2293_v51 = vsub.f32 %v14551_v46, %v2253_v41 }
 0x3fc   :  { %12507 = vpow2.f32 %v2340_v48  ;;  %2399 = vadd.xlane.f32.xlu0 %v2398_v21  ;;  %v14667_v4 = vpop.eup %12493  ;;  %v2346_v28 = vmul.f32 1.442695, %v2290_v26 }
 0x3fd   :  { %v2250_v62 = vpop.xlane.xlu0 %2249  ;;  %v2352_v37 = vmul.f32 1.442695, %v2293_v51  ;;  %v2419_v29 = vsel %vm2169_vm3, %v14667_v4, 0.0 }
 0x3fe   :  { %v2292_v59 = vsub.f32 %v14543_v34, %v2250_v62  ;;  %v2247_v27 = vpop.xlane.xlu1 %2246  ;;  %2420 = vadd.xlane.f32.xlu1 %v2419_v29 }
 0x3ff   :  { %v14670_v19 = vpop.eup %12495  ;;  %12509 = vpow2.f32 %v2352_v37  ;;  %v2291_v56 = vsub.f32 %v14555_v25, %v2247_v27 }
 0x400   :  { %v2350_v12 = vmul.f32 1.442695, %v2292_v59  ;;  %v2416_v5 = vsel %vm2169_vm3, %v14670_v19, 0.0  ;;  %v14676_v46 = vpop.eup %12497 }
 0x401   :  { %2417 = vadd.xlane.f32.xlu0 %v2416_v5  ;;  %v2256_v34 = vpop.xlane.xlu0 %2255  ;;  %v14679_v45 = vpop.eup %12499  ;;  %v2348_v10 = vmul.f32 1.442695, %v2291_v56  ;;  %v2410_v1 = vsel %vm2169_vm3, %v14676_v46, 0.0 }
 0x402   :  { %12511 = vpow2.f32 %v2350_v12  ;;  %v2413_v55 = vsel %vm2169_vm3, %v14679_v45, 0.0  ;;  %v2294_v6 = vsub.f32 %v14563_v2, %v2256_v34 }
 0x403   :  { %12513 = vpow2.f32 %v2346_v28  ;;  %2414 = vadd.xlane.f32.xlu1 %v2413_v55 }
 0x404   :  { %12515 = vpow2.f32 %v2348_v10  ;;  %v14686_v25 = vpop.eup %12501  ;;  %v2354_v41 = vmul.f32 1.442695, %v2294_v6 }
 0x405   :  { %2411 = vadd.xlane.f32.xlu0 %v2410_v1  ;;  %v2262_v58 = vpop.xlane.xlu0 %2261  ;;  %v2431_v26 = vsel %vm2169_vm3, %v14686_v25, 0.0 }
 0x406   :  { %v2296_v48 = vsub.f32 %v14559_v36, %v2262_v58  ;;  %v2265_v58 = vpop.xlane.xlu1 %2264 }
 0x407   :  { %v14689_v9 = vpop.eup %12503  ;;  %2432 = vadd.xlane.f32.xlu1 %v2431_v26 }
 0x408   :  { %v2358_v21 = vmul.f32 1.442695, %v2296_v48  ;;  %v2428_v2 = vsel %vm2169_vm3, %v14689_v9, 0.0  ;;  %v14695_v51 = vpop.eup %12505  ;;  %v2297_v48 = vsub.f32 %v14567_v54, %v2265_v58 }
 0x409   :  { %2429 = vadd.xlane.f32.xlu0 %v2428_v2  ;;  %v14697_v62 = vpop.eup %12507  ;;  %v2422_v59 = vsel %vm2169_vm3, %v14695_v51, 0.0 }
 0x40a   :  { %12517 = vpow2.f32 %v2358_v21  ;;  %v2425_v36 = vsel %vm2169_vm3, %v14697_v62, 0.0  ;;  %v2259_v26 = vpop.xlane.xlu1 %2258 }
 0x40b   :  { %12519 = vpow2.f32 %v2354_v41  ;;  %2426 = vadd.xlane.f32.xlu1 %v2425_v36  ;;  %v2360_v41 = vmul.f32 1.442695, %v2297_v48  ;;  %v2295_v21 = vsub.f32 %v14571_v53, %v2259_v26  ;;  %v17861_v48 = vld [vmem:[#allocation44_spill] sm:$0xff] }
 0x40c   :  { %v14703_v37 = vpop.eup %12509 }
 0x40d   :  { %2423 = vadd.xlane.f32.xlu0 %v2422_v59  ;;  %v2443_v28 = vsel %vm2169_vm3, %v14703_v37, 0.0  ;;  %12521 = vpow2.f32 %v2360_v41  ;;  %v2356_v2 = vmul.f32 1.442695, %v2295_v21  ;;  %v17862_v41 = vld [vmem:[#allocation72_spill] sm:$0xff] }
 0x40f   :  { %v14705_v29 = vpop.eup %12511  ;;  %2444 = vadd.xlane.f32.xlu1 %v2443_v28  ;;  %12523 = vpow2.f32 %v2356_v2  ;;  %v17863_v2 = vld [vmem:[#allocation57_spill] sm:$0xff] }
 0x410   :  { %v2440_v12 = vsel %vm2169_vm3, %v14705_v29, 0.0  ;;  %v14711_v27 = vpop.eup %12513 }
 0x411   :  { %2441 = vadd.xlane.f32.xlu0 %v2440_v12  ;;  %v14713_v5 = vpop.eup %12515  ;;  %v2434_v34 = vsel %vm2169_vm3, %v14711_v27, 0.0  ;;  %v17858_v12 = vld [vmem:[#allocation64_spill] sm:$0xff] }
 0x412   :  { %v2437_v56 = vsel %vm2169_vm3, %v14713_v5, 0.0 }
 0x413   :  { %2438 = vadd.xlane.f32.xlu1 %v2437_v56 }
 0x415   :  { %2435 = vadd.xlane.f32.xlu0 %v2434_v34  ;;  %v17859_v34 = vld [vmem:[#allocation50_spill] sm:$0xff] }
 0x417   :  { %v14719_v10 = vpop.eup %12517 }
 0x418   :  { %v2452_v55 = vsel %vm2169_vm3, %v14719_v10, 0.0  ;;  %v14723_v6 = vpop.eup %12519 }
 0x419   :  { %2453 = vadd.xlane.f32.xlu0 %v2452_v55  ;;  %v2446_v1 = vsel %vm2169_vm3, %v14723_v6, 0.0 }
 0x41a   :  { %v14745_v54 = vpop.eup %12521 }
 0x41b   :  { %v2455_v53 = vsel %vm2169_vm3, %v14745_v54, 0.0 }
 0x41c   :  { %v14751_v36 = vpop.eup %12523 }
 0x41d   :  { %2447 = vadd.xlane.f32.xlu0 %v2446_v1  ;;  %v2449_v59 = vsel %vm2169_vm3, %v14751_v36, 0.0  ;;  %v17860_v1 = vld [vmem:[#allocation63_spill] sm:$0xff] }
 0x424   :  { %3299 = vrot.lane.b32.xlu1 %v14063_v7, %s13110_s4 }
 0x428   :  { %3243 = vrot.lane.b32.xlu1 %v14107_v35, %s13110_s4 }
 0x433   :  { %3246 = vrot.lane.b32.xlu0 %v14068_v30, %s13110_s4 }
 0x437   :  { %3296 = vrot.lane.b32.xlu0 %v14102_v47, %s13110_s4 }
 0x43b   :  { %3349 = vrot.lane.b32.xlu0 %v14026_v63, %s13110_s4 }
 0x43f   :  { %3402 = vrot.lane.b32.xlu0 %v14024_v42, %s13110_s4 }
 0x443   :  { %3455 = vrot.lane.b32.xlu0 %v14193_v0, %s13110_s4 }
 0x447   :  { %3508 = vrot.lane.b32.xlu0 %v14177_v31, %s13110_s4 }
 0x44b   :  { %3561 = vrot.lane.b32.xlu0 %v14284_v61, %s13110_s4 }
 0x44c   :  { %2456 = vadd.xlane.f32.xlu1 %v2455_v53 }
 0x44f   :  { %3614 = vrot.lane.b32.xlu0 %v14270_v17, %s13110_s4 }
 0x450   :  { %2450 = vadd.xlane.f32.xlu1 %v2449_v59  ;;  %v17864_v59 = vld [vmem:[#allocation71_spill] sm:$0xff] }
 0x453   :  { %3667 = vrot.lane.b32.xlu0 %v14332_v13, %s13110_s4 }
 0x457   :  { %3720 = vrot.lane.b32.xlu0 %v14325_v43, %s13110_s4 }
 0x45b   :  { %3773 = vrot.lane.b32.xlu0 %v14366_v22, %s13110_s4 }
 0x45f   :  { %3826 = vrot.lane.b32.xlu0 %v14361_v32, %s13110_s4 }
 0x461   :  { %3352 = vrot.lane.b32.xlu1 %v14092_v24, %s13110_s4 }
 0x463   :  { %3879 = vrot.lane.b32.xlu0 %v14399_v50, %s13110_s4  ;;  %v17867_v50 = vld [vmem:[#allocation61_spill] sm:$0xff] }
 0x465   :  { %3405 = vrot.lane.b32.xlu1 %v14085_v44, %s13110_s4  ;;  %v2373_v28 = vpop.xlane.xlu1 %2372 }
 0x466   :  { %12525 = vrcp.f32 %v2373_v28  ;;  %v2370_v56 = vpop.xlane.xlu0 %2369 }
 0x467   :  { %3932 = vrot.lane.b32.xlu0 %v14395_v18, %s13110_s4  ;;  %12527 = vrcp.f32 %v2370_v56 }
 0x469   :  { %3458 = vrot.lane.b32.xlu1 %v17858_v12, %s13110_s4  ;;  %v2367_v55 = vpop.xlane.xlu1 %2366 }
 0x46a   :  { %12529 = vrcp.f32 %v2367_v55  ;;  %v2364_v58 = vpop.xlane.xlu0 %2363  ;;  %v17865_v55 = vld [vmem:[#allocation59_spill] sm:$0xff] }
 0x46b   :  { %3985 = vrot.lane.b32.xlu0 %v17859_v34, %s13110_s4  ;;  %12531 = vrcp.f32 %v2364_v58  ;;  %v17866_v34 = vld [vmem:[#allocation23_spill] sm:$0xff] }
 0x46d   :  { %3511 = vrot.lane.b32.xlu1 %v17860_v1, %s13110_s4  ;;  %v2385_v26 = vpop.xlane.xlu1 %2384 }
 0x46e   :  { %12533 = vrcp.f32 %v2385_v26 }
 0x46f   :  { %4459 = vrot.lane.b32.xlu0 %v17861_v48, %s13110_s4  ;;  %v2382_v21 = vpop.xlane.xlu0 %2381 }
 0x470   :  { %12535 = vrcp.f32 %v2382_v21 }
 0x471   :  { %3564 = vrot.lane.b32.xlu1 %v17862_v41, %s13110_s4  ;;  %v2379_v53 = vpop.xlane.xlu1 %2378 }
 0x472   :  { %12537 = vrcp.f32 %v2379_v53 }
 0x473   :  { %4555 = vrot.lane.b32.xlu0 %v17863_v2, %s13110_s4  ;;  %v2376_v28 = vpop.xlane.xlu0 %2375  ;;  %v12526_v56 = vpop.eup %12525 }
 0x474   :  { %12539 = vrcp.f32 %v2376_v28  ;;  %v12528_v58 = vpop.eup %12527  ;;  %v2493_v21 = vmul.f32 %v12526_v56, %v14587_v3  ;;  %v17868_v3 = vld [vmem:[#allocation19_spill] sm:$0xff]  ;;  %v17869_v56 = vld [vmem:[#allocation56_spill] sm:$0xff] }
 0x475   :  { %3617 = vrot.lane.b32.xlu1 %v17864_v59, %s13110_s4  ;;  %v2397_v26 = vpop.xlane.xlu1 %2396  ;;  %v2492_v48 = vmul.f32 %v12528_v58, %v14590_v16 }
 0x476   :  { %12541 = vrcp.f32 %v2397_v26 }
 0x477   :  { %4651 = vrot.lane.b32.xlu0 %v17865_v55, %s13110_s4  ;;  %v2394_v53 = vpop.xlane.xlu0 %2393  ;;  %v12530_v18 = vpop.eup %12529  ;;  %v2523_v28 = vpack.c.bf16 %v2493_v21, %v2492_v48  ;;  %v17871_v21 = vmov 0.0  }
 0x478   :  { %12543 = vrcp.f32 %v2394_v53  ;;  %v12532_v32 = vpop.eup %12531  ;;  %v2491_v16 = vmul.f32 %v12530_v18, %v14599_v20  ;;  %v17870_v53 = vld [vmem:[#allocation69_spill] sm:$0xff] }
 0x479   :  { %3670 = vrot.lane.b32.xlu1 %v17866_v34, %s13110_s4  ;;  %v2391_v22 = vpop.xlane.xlu1 %2390  ;;  %11344 = vmatmul.mubr.msk.bf16.vlgmr.msra.gmra.mxu1 %vm2169_vm3, %v2523_v28  ;;  %v2490_v43 = vmul.f32 %v12532_v32, %v14596_v15  ;;  %v17872_v15 = vld [vmem:[#allocation31_spill] sm:$0xff] }
 0x47a   :  { %12545 = vrcp.f32 %v2391_v22  ;;  %11354 = vmatpush3.bf16.msra.mxu1 %v17869_v56  ;;  %11355 = vmatprep.mubr.msk.bf16.mxu1 %vm13109_vm1, %v17871_v21 }
 0x47b   :  { %4747 = vrot.lane.b32.xlu0 %v17867_v50, %s13110_s4  ;;  %v2388_v58 = vpop.xlane.xlu0 %2387  ;;  %v12534_v26 = vpop.eup %12533  ;;  %v2522_v48 = vpack.c.bf16 %v2491_v16, %v2490_v43  ;;  %11365 = vmatprep.subr.bf16.mxu1 %v17871_v21  ;;  %v17873_v16 = vld [vmem:[#allocation82_spill] sm:$0xff] }
 0x47c   :  { %12547 = vrcp.f32 %v2388_v58  ;;  %v2497_v18 = vmul.f32 %v12534_v26, %v14607_v40 }
 0x47d   :  { %3723 = vrot.lane.b32.xlu1 %v17868_v3, %s13110_s4  ;;  %v12536_v28 = vpop.eup %12535  ;;  %11338 = vmatmul.mubr.msk.bf16.vlgmr.msra.gmra.mxu0 %vm2169_vm3, %v2522_v48 }
 0x47e   :  { %v2496_v22 = vmul.f32 %v12536_v28, %v14610_v11  ;;  %11348 = vmatpush3.bf16.msra.mxu0 %v17863_v2  ;;  %11349 = vmatprep.mubr.msk.bf16.mxu0 %vm13109_vm1, %v17871_v21  ;;  %v17874_v28 = vld [vmem:[#allocation29_spill] sm:$0xff] }
 0x47f   :  { %4843 = vrot.lane.b32.xlu0 %v17870_v53, %s13110_s4  ;;  %v2409_v32 = vpop.xlane.xlu1 %2408  ;;  %v12538_v20 = vpop.eup %12537  ;;  %11359 = vmatprep.subr.bf16.mxu0 %v17871_v21 }
 0x480   :  { %12549 = vrcp.f32 %v2409_v32  ;;  %v2525_v58 = vpack.c.bf16 %v2497_v18, %v2496_v22  ;;  %v2495_v26 = vmul.f32 %v12538_v20, %v14619_v39  ;;  %v17875_v32 = vld [vmem:[#allocation58_spill] sm:$0xff]  ;;  %v17876_v20 = vld [vmem:[#allocation37_spill] sm:$0xff] }
 0x481   :  { %3776 = vrot.lane.b32.xlu1 %v17872_v15, %s13110_s4  ;;  %v2406_v43 = vpop.xlane.xlu0 %2405  ;;  %v12540_v48 = vpop.eup %12539 }
 0x482   :  { %12551 = vrcp.f32 %v2406_v43  ;;  %11356 = vmatmul.mubr.msk.bf16.vlgmr.msra.gmra.mxu1 %vm2169_vm3, %v2525_v58  ;;  %v2494_v11 = vmul.f32 %v12540_v48, %v14616_v14 }
 0x483   :  { %5035 = vrot.lane.b32.xlu0 %v17873_v16, %s13110_s4  ;;  %v2403_v40 = vpop.xlane.xlu1 %2402  ;;  %11366 = vmatpush3.bf16.msra.mxu1 %v17875_v32  ;;  %v12542_v18 = vpop.eup %12541 }
 0x484   :  { %12553 = vrcp.f32 %v2403_v40  ;;  %v2524_v43 = vpack.c.bf16 %v2495_v26, %v2494_v11  ;;  %11367 = vmatprep.mubr.msk.bf16.mxu1 %vm13109_vm1, %v17871_v21  ;;  %11377 = vmatprep.subr.bf16.mxu1 %v17871_v21  ;;  %v2501_v39 = vmul.f32 %v12542_v18, %v14627_v49  ;;  %v17878_v18 = vld [vmem:[#allocation60_spill] sm:$0xff] }
 0x485   :  { %3829 = vrot.lane.b32.xlu1 %v17874_v28, %s13110_s4  ;;  %v2400_v22 = vpop.xlane.xlu0 %2399  ;;  %v12544_v58 = vpop.eup %12543 }
 0x486   :  { %12555 = vrcp.f32 %v2400_v22  ;;  %11350 = vmatmul.mubr.msk.bf16.vlgmr.msra.gmra.mxu0 %vm2169_vm3, %v2524_v43  ;;  %v2500_v14 = vmul.f32 %v12544_v58, %v14630_v52 }
 0x487   :  { %v2421_v2 = vpop.xlane.xlu1 %2420  ;;  %11360 = vmatpush3.bf16.msra.mxu0 %v17865_v55  ;;  %v12546_v40 = vpop.eup %12545  ;;  %11361 = vmatprep.mubr.msk.bf16.mxu0 %vm13109_vm1, %v17871_v21 }
 0x488   :  { %12557 = vrcp.f32 %v2421_v2  ;;  %v2527_v11 = vpack.c.bf16 %v2501_v39, %v2500_v14  ;;  %11371 = vmatprep.subr.bf16.mxu0 %v17871_v21  ;;  %v2499_v52 = vmul.f32 %v12546_v40, %v14639_v38  ;;  %v17877_v2 = vld [vmem:[#allocation35_spill] sm:$0xff] }
 0x489   :  { %3882 = vrot.lane.b32.xlu1 %v17876_v20, %s13110_s4  ;;  %v12548_v26 = vpop.eup %12547  ;;  %v17879_v40 = vld [vmem:[#allocation43_spill] sm:$0xff] }
 0x48a   :  { %v2418_v48 = vpop.xlane.xlu0 %2417  ;;  %11368 = vmatmul.mubr.msk.bf16.vlgmr.msra.gmra.mxu1 %vm2169_vm3, %v2527_v11  ;;  %v2498_v49 = vmul.f32 %v12548_v26, %v14636_v23 }
 0x48b   :  { %12559 = vrcp.f32 %v2418_v48  ;;  %11378 = vmatpush3.bf16.msra.mxu1 %v17878_v18  ;;  %11379 = vmatprep.mubr.msk.bf16.mxu1 %vm13109_vm1, %v17871_v21 }
 0x48c   :  { %v2415_v22 = vpop.xlane.xlu1 %2414  ;;  %v2526_v14 = vpack.c.bf16 %v2499_v52, %v2498_v49  ;;  %11389 = vmatprep.subr.bf16.mxu1 %v17871_v21 }
 0x48d   :  { %12561 = vrcp.f32 %v2415_v22  ;;  %3935 = vrot.lane.b32.xlu1 %v17877_v2, %s13110_s4  ;;  %v12550_v58 = vpop.eup %12549 }
 0x48e   :  { %v2412_v43 = vpop.xlane.xlu0 %2411  ;;  %11362 = vmatmul.mubr.msk.bf16.vlgmr.msra.gmra.mxu0 %vm2169_vm3, %v2526_v14  ;;  %v2505_v38 = vmul.f32 %v12550_v58, %v14647_v60  ;;  %v17881_v58 = vld [vmem:[#allocation66_spill] sm:$0xff] }
 0x48f   :  { %12563 = vrcp.f32 %v2412_v43  ;;  %v12552_v39 = vpop.eup %12551  ;;  %11372 = vmatpush3.bf16.msra.mxu0 %v17867_v50  ;;  %11373 = vmatprep.mubr.msk.bf16.mxu0 %vm13109_vm1, %v17871_v21  ;;  %v17880_v43 = vld [vmem:[#allocation41_spill] sm:$0xff] }
 0x490   :  { %v2433_v48 = vpop.xlane.xlu1 %2432  ;;  %v2504_v23 = vmul.f32 %v12552_v39, %v14650_v33  ;;  %11383 = vmatprep.subr.bf16.mxu0 %v17871_v21 }
 0x491   :  { %12565 = vrcp.f32 %v2433_v48  ;;  %3988 = vrot.lane.b32.xlu1 %v17879_v40, %s13110_s4  ;;  %v12554_v26 = vpop.eup %12553 }
 0x492   :  { %v2430_v11 = vpop.xlane.xlu0 %2429  ;;  %v2529_v22 = vpack.c.bf16 %v2505_v38, %v2504_v23  ;;  %v2503_v33 = vmul.f32 %v12554_v26, %v14659_v57 }
 0x493   :  { %12567 = vrcp.f32 %v2430_v11  ;;  %v12556_v49 = vpop.eup %12555  ;;  %v17882_v11 = vld [vmem:[#allocation47_spill] sm:$0xff] }
 0x494   :  { %v2502_v60 = vmul.f32 %v12556_v49, %v14656_v8  ;;  %v2427_v52 = vpop.xlane.xlu1 %2426  ;;  %11380 = vmatmul.mubr.msk.bf16.vlgmr.msra.gmra.mxu1 %vm2169_vm3, %v2529_v22 }
 0x495   :  { %12569 = vrcp.f32 %v2427_v52  ;;  %4041 = vrot.lane.b32.xlu1 %v17880_v43, %s13110_s4  ;;  %11390 = vmatpush3.bf16.msra.mxu1 %v17881_v58  ;;  %v12558_v39 = vpop.eup %12557  ;;  %v17883_v52 = vld [vmem:[#allocation53_spill] sm:$0xff] }
 0x496   :  { %v2424_v14 = vpop.xlane.xlu0 %2423  ;;  %v2528_v48 = vpack.c.bf16 %v2503_v33, %v2502_v60  ;;  %11391 = vmatprep.mubr.msk.bf16.mxu1 %vm13109_vm1, %v17871_v21  ;;  %11401 = vmatprep.subr.bf16.mxu1 %v17871_v21  ;;  %v2509_v38 = vmul.f32 %v12558_v39, %v14667_v4 }
 0x497   :  { %12571 = vrcp.f32 %v2424_v14  ;;  %v17884_v14 = vld [vmem:[#allocation73_spill] sm:$0xff] }
 0x498   :  { %v12560_v57 = vpop.eup %12559  ;;  %v2445_v8 = vpop.xlane.xlu1 %2444  ;;  %11374 = vmatmul.mubr.msk.bf16.vlgmr.msra.gmra.mxu0 %vm2169_vm3, %v2528_v48 }
 0x499   :  { %v2508_v23 = vmul.f32 %v12560_v57, %v14670_v19  ;;  %12573 = vrcp.f32 %v2445_v8  ;;  %4038 = vrot.lane.b32.xlu1 %v17882_v11, %s13110_s4  ;;  %11384 = vmatpush3.bf16.msra.mxu0 %v17870_v53 }
 0x49a   :  { %v2442_v26 = vpop.xlane.xlu0 %2441  ;;  %v12562_v22 = vpop.eup %12561  ;;  %11385 = vmatprep.mubr.msk.bf16.mxu0 %vm13109_vm1, %v17871_v21  ;;  %11395 = vmatprep.subr.bf16.mxu0 %v17871_v21 }
 0x49b   :  { %12575 = vrcp.f32 %v2442_v26  ;;  %v2531_v49 = vpack.c.bf16 %v2509_v38, %v2508_v23  ;;  %v2507_v19 = vmul.f32 %v12562_v22, %v14679_v45  ;;  %v17885_v23 = vld [vmem:[#allocation76_spill] sm:$0xff] }
 0x49c   :  { %v12564_v33 = vpop.eup %12563  ;;  %v2439_v60 = vpop.xlane.xlu1 %2438 }
 0x49d   :  { %v2506_v4 = vmul.f32 %v12564_v33, %v14676_v46  ;;  %11392 = vmatmul.mubr.msk.bf16.vlgmr.msra.gmra.mxu1 %vm2169_vm3, %v2531_v49  ;;  %12577 = vrcp.f32 %v2439_v60  ;;  %4507 = vrot.lane.b32.xlu1 %v17883_v52, %s13110_s4 }
 0x49e   :  { %11402 = vmatpush3.bf16.msra.mxu1 %v17884_v14  ;;  %v2436_v39 = vpop.xlane.xlu0 %2435  ;;  %v12566_v48 = vpop.eup %12565  ;;  %11403 = vmatprep.mubr.msk.bf16.mxu1 %vm13109_vm1, %v17871_v21 }
 0x49f   :  { %12579 = vrcp.f32 %v2436_v39  ;;  %v2530_v57 = vpack.c.bf16 %v2507_v19, %v2506_v4  ;;  %11413 = vmatprep.subr.bf16.mxu1 %v17871_v21  ;;  %v2513_v46 = vmul.f32 %v12566_v48, %v14686_v25 }
 0x4a0   :  { %v12568_v45 = vpop.eup %12567 }
 0x4a1   :  { %v2512_v8 = vmul.f32 %v12568_v45, %v14689_v9  ;;  %11386 = vmatmul.mubr.msk.bf16.vlgmr.msra.gmra.mxu0 %vm2169_vm3, %v2530_v57  ;;  %4603 = vrot.lane.b32.xlu1 %v17869_v56, %s13110_s4  ;;  %v17886_v9 = vld [vmem:[#allocation80_spill] sm:$0xff] }
 0x4a2   :  { %11396 = vmatpush3.bf16.msra.mxu0 %v17885_v23  ;;  %v12570_v38 = vpop.eup %12569  ;;  %11397 = vmatprep.mubr.msk.bf16.mxu0 %vm13109_vm1, %v17871_v21 }
 0x4a3   :  { %v2533_v26 = vpack.c.bf16 %v2513_v46, %v2512_v8  ;;  %11407 = vmatprep.subr.bf16.mxu0 %v17871_v21  ;;  %v2511_v49 = vmul.f32 %v12570_v38, %v14697_v62  ;;  %v3300_v46 = vpop.permute.xlu1 %3299 }
 0x4a4   :  { %v12572_v22 = vpop.eup %12571 }
 0x4a5   :  { %v2510_v25 = vmul.f32 %v12572_v22, %v14695_v51  ;;  %11404 = vmatmul.mubr.msk.bf16.vlgmr.msra.gmra.mxu1 %vm2169_vm3, %v2533_v26  ;;  %4699 = vrot.lane.b32.xlu1 %v17875_v32, %s13110_s4 }
 0x4a6   :  { %11414 = vmatpush3.bf16.msra.mxu1 %v17886_v9  ;;  %v12574_v33 = vpop.eup %12573  ;;  %11415 = vmatprep.mubr.msk.bf16.mxu1 %vm13109_vm1, %v17871_v21 }
 0x4a7   :  { %v2532_v19 = vpack.c.bf16 %v2511_v49, %v2510_v25  ;;  %11425 = vmatprep.subr.bf16.mxu1 %v17871_v21  ;;  %v2517_v60 = vmul.f32 %v12574_v33, %v14703_v37  ;;  %v3244_v38 = vpop.permute.xlu1 %3243 }
 0x4a8   :  { %v12576_v4 = vpop.eup %12575 }
 0x4a9   :  { %v2516_v62 = vmul.f32 %v12576_v4, %v14705_v29  ;;  %11398 = vmatmul.mubr.msk.bf16.vlgmr.msra.gmra.mxu0 %vm2169_vm3, %v2532_v19  ;;  %4795 = vrot.lane.b32.xlu1 %v17878_v18, %s13110_s4  ;;  %v17887_v29 = vld [vmem:[#allocation24_spill] sm:$0xff] }
 0x4aa   :  { %11408 = vmatpush3.bf16.msra.mxu0 %v17873_v16  ;;  %v12578_v51 = vpop.eup %12577  ;;  %11409 = vmatprep.mubr.msk.bf16.mxu0 %vm13109_vm1, %v17871_v21 }
 0x4ab   :  { %v2535_v39 = vpack.c.bf16 %v2517_v60, %v2516_v62  ;;  %11419 = vmatprep.subr.bf16.mxu0 %v17871_v21  ;;  %v2515_v57 = vmul.f32 %v12578_v51, %v14713_v5  ;;  %v17888_v5 = vld [vmem:[#allocation84_spill] sm:$0xff] }
 0x4ac   :  { %v12580_v48 = vpop.eup %12579 }
 0x4ad   :  { %v2514_v37 = vmul.f32 %v12580_v48, %v14711_v27  ;;  %11416 = vmatmul.mubr.msk.bf16.vlgmr.msra.gmra.mxu1 %vm2169_vm3, %v2535_v39  ;;  %4891 = vrot.lane.b32.xlu1 %v17881_v58, %s13110_s4  ;;  %v2454_v27 = vpop.xlane.xlu0 %2453 }
 0x4ae   :  { %11426 = vmatpush3.bf16.msra.mxu1 %v17887_v29  ;;  %11427 = vmatprep.mubr.msk.bf16.mxu1 %vm13109_vm1, %v17871_v21  ;;  %12581 = vrcp.f32 %v2454_v27 }
 0x4af   :  { %v2534_v45 = vpack.c.bf16 %v2515_v57, %v2514_v37  ;;  %11437 = vmatprep.subr.bf16.mxu1 %v17871_v21 }
 0x4b1   :  { %11410 = vmatmul.mubr.msk.bf16.vlgmr.msra.gmra.mxu0 %vm2169_vm3, %v2534_v45  ;;  %4939 = vrot.lane.b32.xlu1 %v17885_v23, %s13110_s4  ;;  %v2448_v8 = vpop.xlane.xlu0 %2447 }
 0x4b2   :  { %11420 = vmatpush3.bf16.msra.mxu0 %v17888_v5  ;;  %11421 = vmatprep.mubr.msk.bf16.mxu0 %vm13109_vm1, %v17871_v21 }
 0x4b3   :  { %11431 = vmatprep.subr.bf16.mxu0 %v17871_v21 }
 0x4b5   :  { %4987 = vrot.lane.b32.xlu1 %v17884_v14, %s13110_s4  ;;  %v3247_v26 = vpop.permute.xlu0 %3246 }
 0x4b9   :  { %5083 = vrot.lane.b32.xlu1 %v17886_v9, %s13110_s4  ;;  %v3297_v49 = vpop.permute.xlu0 %3296 }
 0x4bb   :  { %v12582_v4 = vpop.eup %12581 }
 0x4bc   :  { %v2520_v39 = vmul.f32 %v12582_v4, %v14719_v10 }
 0x4bd   :  { %v3350_v33 = vpop.permute.xlu0 %3349 }
 0x4c1   :  { %v3403_v51 = vpop.permute.xlu0 %3402 }
 0x4c5   :  { %v3456_v9 = vpop.permute.xlu0 %3455 }
 0x4d5   :  { %v2457_v22 = vpop.xlane.xlu1 %2456 }
 0x4d6   :  { %12583 = vrcp.f32 %v2457_v22  ;;  %v3305_v22 = vsel %vm1416_vm2, %v3300_v46, 0 }
 0x4d7   :  { %12585 = vrcp.f32 %v2448_v8 }
 0x4d9   :  { %v2451_v25 = vpop.xlane.xlu1 %2450 }
 0x4da   :  { %12587 = vrcp.f32 %v2451_v25 }
 0x4dd   :  { %v3353_v19 = vpop.permute.xlu1 %3352 }
 0x4e1   :  { %v3406_v60 = vpop.permute.xlu1 %3405 }
 0x4e3   :  { %v12584_v62 = vpop.eup %12583 }
 0x4e4   :  { %v2521_v48 = vmul.f32 %v12584_v62, %v14745_v54  ;;  %v12586_v57 = vpop.eup %12585  ;;  %v3252_v54 = vsel %vm1416_vm2, %v3247_v26, 0  ;;  %v3358_v26 = vsel %vm1416_vm2, %v3353_v19, 0 }
 0x4e5   :  { %v3459_v37 = vpop.permute.xlu1 %3458  ;;  %v2518_v8 = vmul.f32 %v12586_v57, %v14723_v6  ;;  %v3509_v6 = vpop.permute.xlu0 %3508 }
 0x4e6   :  { %v2537_v45 = vpack.c.bf16 %v2521_v48, %v2520_v39  ;;  %v3464_v19 = vsel %vm1416_vm2, %v3459_v37, 0 }
 0x4e7   :  { %v12588_v27 = vpop.eup %12587 }
 0x4e8   :  { %v2519_v25 = vmul.f32 %v12588_v27, %v14751_v36  ;;  %11428 = vmatmul.mubr.msk.bf16.vlgmr.msra.gmra.mxu1 %vm2169_vm3, %v2537_v45  ;;  %v3411_v36 = vsel %vm1416_vm2, %v3406_v60, 0 }
 0x4e9   :  { %11438 = vmatpush3.bf16.xpose.msra.mxu1 %v3305_v22  ;;  %v3512_v14 = vpop.permute.xlu1 %3511  ;;  %11439 = vmatprep.mubr.msk.bf16.mxu1 %vm13109_vm1, %v17871_v21  ;;  %v3562_v62 = vpop.permute.xlu0 %3561 }
 0x4ea   :  { %v2536_v10 = vpack.c.bf16 %v2519_v25, %v2518_v8  ;;  %11449 = vmatprep.subr.bf16.mxu1 %v17871_v21 }
 0x4ec   :  { %11422 = vmatmul.mubr.msk.bf16.vlgmr.msra.gmra.mxu0 %vm2169_vm3, %v2536_v10 }
 0x4ed   :  { %11432 = vmatpush3.bf16.xpose.msra.mxu0 %v3252_v54  ;;  %v3565_v46 = vpop.permute.xlu1 %3564  ;;  %11433 = vmatprep.mubr.msk.bf16.mxu0 %vm13109_vm1, %v17871_v21 }
 0x4ee   :  { %11443 = vmatprep.subr.bf16.mxu0 %v17871_v21 }
 0x4f0   :  { %11440 = vmatmul.mubr.msk.bf16.vlgmr.msra.gmra.mxu1 %vm1416_vm2, %v3297_v49  ;;  %v3517_v49 = vsel %vm1416_vm2, %v3512_v14, 0 }
 0x4f1   :  { %11450 = vmatpush3.bf16.xpose.msra.mxu1 %v3411_v36  ;;  %v3618_v4 = vpop.permute.xlu1 %3617  ;;  %11451 = vmatprep.mubr.msk.bf16.mxu1 %vm13109_vm1, %v17871_v21 }
 0x4f2   :  { %11461 = vmatprep.subr.bf16.mxu1 %v17871_v21  ;;  %v3623_v14 = vsel %vm1416_vm2, %v3618_v4, 0 }
 0x4f4   :  { %11434 = vmatmul.mubr.msk.bf16.vlgmr.msra.gmra.mxu0 %vm1416_vm2, %v3244_v38  ;;  %v3615_v38 = vpop.permute.xlu0 %3614 }
 0x4f5   :  { %11444 = vmatpush3.bf16.xpose.msra.mxu0 %v3358_v26  ;;  %v3671_v39 = vpop.permute.xlu1 %3670  ;;  %11445 = vmatprep.mubr.msk.bf16.mxu0 %vm13109_vm1, %v17871_v21 }
 0x4f6   :  { %11455 = vmatprep.subr.bf16.mxu0 %v17871_v21 }
 0x4f8   :  { %11452 = vmatmul.mubr.msk.bf16.vlgmr.msra.gmra.mxu1 %vm1416_vm2, %v3403_v51  ;;  %v3668_v51 = vpop.permute.xlu0 %3667 }
 0x4f9   :  { %11462 = vmatpush3.bf16.xpose.msra.mxu1 %v3517_v49  ;;  %v3724_v60 = vpop.permute.xlu1 %3723  ;;  %11463 = vmatprep.mubr.msk.bf16.mxu1 %vm13109_vm1, %v17871_v21 }
 0x4fa   :  { %11473 = vmatprep.subr.bf16.mxu1 %v17871_v21  ;;  %v3729_v45 = vsel %vm1416_vm2, %v3724_v60, 0 }
 0x4fc   :  { %11446 = vmatmul.mubr.msk.bf16.vlgmr.msra.gmra.mxu0 %vm1416_vm2, %v3350_v33  ;;  %v3570_v33 = vsel %vm1416_vm2, %v3565_v46, 0  ;;  %v3721_v37 = vpop.permute.xlu0 %3720 }
 0x4fd   :  { %11456 = vmatpush3.bf16.xpose.msra.mxu0 %v3464_v19  ;;  %11457 = vmatprep.mubr.msk.bf16.mxu0 %vm13109_vm1, %v17871_v21  ;;  %v3777_v48 = vpop.permute.xlu1 %3776 }
 0x4fe   :  { %11467 = vmatprep.subr.bf16.mxu0 %v17871_v21  ;;  %v3782_v54 = vsel %vm1416_vm2, %v3777_v48, 0 }
 0x500   :  { %11464 = vmatmul.mubr.msk.bf16.vlgmr.msra.gmra.mxu1 %vm1416_vm2, %v3509_v6  ;;  %v3774_v22 = vpop.permute.xlu0 %3773 }
 0x501   :  { %11474 = vmatpush3.bf16.xpose.msra.mxu1 %v3623_v14  ;;  %11475 = vmatprep.mubr.msk.bf16.mxu1 %vm13109_vm1, %v17871_v21  ;;  %v3830_v57 = vpop.permute.xlu1 %3829 }
 0x502   :  { %11485 = vmatprep.subr.bf16.mxu1 %v17871_v21  ;;  %v3835_v8 = vsel %vm1416_vm2, %v3830_v57, 0 }
 0x504   :  { %11458 = vmatmul.mubr.msk.bf16.vlgmr.msra.gmra.mxu0 %vm1416_vm2, %v3456_v9  ;;  %v3676_v9 = vsel %vm1416_vm2, %v3671_v39, 0  ;;  %v3827_v10 = vpop.permute.xlu0 %3826 }
 0x505   :  { %11468 = vmatpush3.bf16.xpose.msra.mxu0 %v3570_v33  ;;  %11469 = vmatprep.mubr.msk.bf16.mxu0 %vm13109_vm1, %v17871_v21  ;;  %v3883_v27 = vpop.permute.xlu1 %3882 }
 0x506   :  { %11479 = vmatprep.subr.bf16.mxu0 %v17871_v21  ;;  %v3888_v4 = vsel %vm1416_vm2, %v3883_v27, 0 }
 0x508   :  { %11476 = vmatmul.mubr.msk.bf16.vlgmr.msra.gmra.mxu1 %vm1416_vm2, %v3615_v38  ;;  %v3880_v36 = vpop.permute.xlu0 %3879 }
 0x509   :  { %11486 = vmatpush3.bf16.xpose.msra.mxu1 %v3729_v45  ;;  %11487 = vmatprep.mubr.msk.bf16.mxu1 %vm13109_vm1, %v17871_v21  ;;  %v3936_v25 = vpop.permute.xlu1 %3935 }
 0x50a   :  { %11497 = vmatprep.subr.bf16.mxu1 %v17871_v21  ;;  %v3941_v6 = vsel %vm1416_vm2, %v3936_v25, 0 }
 0x50c   :  { %11470 = vmatmul.mubr.msk.bf16.vlgmr.msra.gmra.mxu0 %vm1416_vm2, %v3562_v62  ;;  %v3933_v62 = vpop.permute.xlu0 %3932 }
 0x50d   :  { %11480 = vmatpush3.bf16.xpose.msra.mxu0 %v3676_v9  ;;  %11481 = vmatprep.mubr.msk.bf16.mxu0 %vm13109_vm1, %v17871_v21  ;;  %v3989_v46 = vpop.permute.xlu1 %3988 }
 0x50e   :  { %11491 = vmatprep.subr.bf16.mxu0 %v17871_v21  ;;  %v3994_v60 = vsel %vm1416_vm2, %v3989_v46, 0 }
 0x510   :  { %11488 = vmatmul.mubr.msk.bf16.vlgmr.msra.gmra.mxu1 %vm1416_vm2, %v3721_v37  ;;  %v3986_v38 = vpop.permute.xlu0 %3985 }
 0x511   :  { %11498 = vmatpush3.bf16.xpose.msra.mxu1 %v3835_v8  ;;  %11499 = vmatprep.mubr.msk.bf16.mxu1 %vm13109_vm1, %v17871_v21  ;;  %v4042_v26 = vpop.permute.xlu1 %4041 }
 0x512   :  { %11509 = vmatprep.subr.bf16.mxu1 %v17871_v21  ;;  %v4047_v39 = vsel %vm1416_vm2, %v4042_v26, 0 }
 0x514   :  { %11482 = vmatmul.mubr.msk.bf16.vlgmr.msra.gmra.mxu0 %vm1416_vm2, %v3668_v51  ;;  %v4460_v48 = vpop.permute.xlu0 %4459 }
 0x515   :  { %11492 = vmatpush3.bf16.xpose.msra.mxu0 %v3782_v54  ;;  %11493 = vmatprep.mubr.msk.bf16.mxu0 %vm13109_vm1, %v17871_v21  ;;  %v4039_v49 = vpop.permute.xlu1 %4038 }
 0x516   :  { %11503 = vmatprep.subr.bf16.mxu0 %v17871_v21 }
 0x518   :  { %11500 = vmatmul.mubr.msk.bf16.vlgmr.msra.gmra.mxu1 %vm1416_vm2, %v3827_v10 }
 0x519   :  { %11510 = vmatpush3.bf16.xpose.msra.mxu1 %v3941_v6  ;;  %11511 = vmatprep.mubr.msk.bf16.mxu1 %vm13109_vm1, %v17871_v21  ;;  %v4508_v19 = vpop.permute.xlu1 %4507 }
 0x51a   :  { %11521 = vmatprep.subr.bf16.mxu1 %v17871_v21 }
 0x51c   :  { %11494 = vmatmul.mubr.msk.bf16.vlgmr.msra.gmra.mxu0 %vm1416_vm2, %v3774_v22 }
 0x51d   :  { %11504 = vmatpush3.bf16.xpose.msra.mxu0 %v3888_v4  ;;  %11505 = vmatprep.mubr.msk.bf16.mxu0 %vm13109_vm1, %v17871_v21 }
 0x51e   :  { %11515 = vmatprep.subr.bf16.mxu0 %v17871_v21 }
 0x520   :  { %11512 = vmatmul.mubr.msk.bf16.vlgmr.msra.gmra.mxu1 %vm1416_vm2, %v3933_v62 }
 0x521   :  { %11522 = vmatpush3.bf16.xpose.msra.mxu1 %v4047_v39  ;;  %11523 = vmatprep.mubr.msk.bf16.mxu1 %vm13109_vm1, %v17871_v21 }
 0x522   :  { %11533 = vmatprep.subr.bf16.mxu1 %v17871_v21 }
 0x524   :  { %11506 = vmatmul.mubr.msk.bf16.vlgmr.msra.gmra.mxu0 %vm1416_vm2, %v3880_v36 }
 0x525   :  { %11516 = vmatpush3.bf16.xpose.msra.mxu0 %v3994_v60  ;;  %11517 = vmatprep.mubr.msk.bf16.mxu0 %vm13109_vm1, %v17871_v21 }
 0x526   :  { %11527 = vmatprep.subr.bf16.mxu0 %v17871_v21 }
 0x528   :  { %11524 = vmatmul.mubr.msk.bf16.vlgmr.msra.gmra.mxu1 %vm1416_vm2, %v4039_v49 }
 0x529   :  { %11534 = vmatpush3.bf16.msra.mxu1 %v4508_v19  ;;  %11535 = vmatprep.mubr.msk.bf16.mxu1 %vm13109_vm1, %v17871_v21 }
 0x52a   :  { %11545 = vmatprep.subr.bf16.mxu1 %v17871_v21 }
 0x52c   :  { %11518 = vmatmul.mubr.msk.bf16.vlgmr.msra.gmra.mxu0 %vm1416_vm2, %v3986_v38 }
 0x52d   :  { %11528 = vmatpush3.bf16.msra.mxu0 %v4460_v48  ;;  %11529 = vmatprep.mubr.msk.bf16.mxu0 %vm13109_vm1, %v17871_v21 }
 0x52e   :  { %11539 = vmatprep.subr.bf16.mxu0 %v17871_v21 }
 0x539   :  { %v15019_v14 = vpop.f32.mrf.mxu1 }
 0x53a   :  { %17889 = vst [vmem:[#allocation54_spill] sm:$0xff] %v15019_v14 }
 0x53b   :  { %v11345_v51 = vpop.f32.mrf.mxu1 }
 0x53d   :  { %v15021_v33 = vpop.f32.mrf.mxu0  ;;  %v15023_v57 = vpop.f32.mrf.mxu1 }
 0x53e   :  { %17890 = vst [vmem:[#allocation46_spill] sm:$0xff] %v15021_v33  ;;  %17891 = vst [vmem:[#allocation51_spill] sm:$0xff] %v15023_v57 }
 0x53f   :  { %v11339_v37 = vpop.f32.mrf.mxu0  ;;  %v11346_v45 = vpop.f32.mrf.mxu1 }
 0x541   :  { %v15025_v27 = vpop.f32.mrf.mxu0 }
 0x542   :  { %17892 = vst [vmem:[#allocation52_spill] sm:$0xff] %v15025_v27  ;;  %v15027_v9 = vpop.f32.mrf.mxu1 }
 0x543   :  { %17893 = vst [vmem:[#allocation64_spill] sm:$0xff] %v15027_v9  ;;  %v11340_v22 = vpop.f32.mrf.mxu0 }
 0x544   :  { %v11357_v8 = vpop.f32.mrf.mxu1 }
 0x546   :  { %v15029_v25 = vpop.f32.mrf.mxu0  ;;  %v15031_v10 = vpop.f32.mrf.mxu1 }
 0x547   :  { %17894 = vst [vmem:[#allocation63_spill] sm:$0xff] %v15029_v25  ;;  %17895 = vst [vmem:[#allocation72_spill] sm:$0xff] %v15031_v10 }
 0x548   :  { %v11351_v54 = vpop.f32.mrf.mxu0  ;;  %v11358_v46 = vpop.f32.mrf.mxu1 }
 0x54a   :  { %v15033_v6 = vpop.f32.mrf.mxu0  ;;  %v15035_v36 = vpop.f32.mrf.mxu1 }
 0x54b   :  { %17896 = vst [vmem:[#allocation71_spill] sm:$0xff] %v15033_v6  ;;  %17897 = vst [vmem:[#allocation23_spill] sm:$0xff] %v15035_v36 }
 0x54c   :  { %v11352_v4 = vpop.f32.mrf.mxu0  ;;  %v11369_v26 = vpop.f32.mrf.mxu1 }
 0x54e   :  { %v15037_v62 = vpop.f32.mrf.mxu0  ;;  %v15039_v39 = vpop.f32.mrf.mxu1 }
 0x54f   :  { %17898 = vst [vmem:[#allocation86_spill] sm:$0xff] %v15037_v62  ;;  %17899 = vst [vmem:[#allocation87_spill] sm:$0xff] %v15039_v39 }
 0x550   :  { %v11363_v49 = vpop.f32.mrf.mxu0  ;;  %v11370_v60 = vpop.f32.mrf.mxu1 }
 0x552   :  { %v15041_v38 = vpop.f32.mrf.mxu0 }
 0x553   :  { %17900 = vst [vmem:[#allocation88_spill] sm:$0xff] %v15041_v38 }
 0x554   :  { %v15043_v19 = vpop.f32.mrf.mxu1  ;;  %v11364_v48 = vpop.f32.mrf.mxu0 }
 0x555   :  { %17901 = vst [vmem:[#allocation89_spill] sm:$0xff] %v15043_v19 }
 0x556   :  { %v11381_v51 = vpop.f32.mrf.mxu1 }
 0x558   :  { %v15045_v37 = vpop.f32.mrf.mxu0  ;;  %v15047_v45 = vpop.f32.mrf.mxu1 }
 0x559   :  { %17902 = vst [vmem:[#allocation90_spill] sm:$0xff] %v15045_v37  ;;  %17903 = vst [vmem:[#allocation91_spill] sm:$0xff] %v15047_v45 }
 0x55a   :  { %v11375_v22 = vpop.f32.mrf.mxu0  ;;  %v11382_v8 = vpop.f32.mrf.mxu1 }
 0x55c   :  { %v15049_v54 = vpop.f32.mrf.mxu0 }
 0x55d   :  { %17904 = vst [vmem:[#allocation92_spill] sm:$0xff] %v15049_v54  ;;  %v15051_v46 = vpop.f32.mrf.mxu1 }
 0x55e   :  { %17905 = vst [vmem:[#allocation93_spill] sm:$0xff] %v15051_v46  ;;  %v11376_v4 = vpop.f32.mrf.mxu0 }
 0x55f   :  { %v11393_v26 = vpop.f32.mrf.mxu1 }
 0x561   :  { %v15053_v49 = vpop.f32.mrf.mxu0  ;;  %v15055_v60 = vpop.f32.mrf.mxu1 }
 0x562   :  { %17906 = vst [vmem:[#allocation94_spill] sm:$0xff] %v15053_v49  ;;  %17907 = vst [vmem:[#allocation95_spill] sm:$0xff] %v15055_v60 }
 0x563   :  { %v11387_v36 = vpop.f32.mrf.mxu0  ;;  %v11394_v19 = vpop.f32.mrf.mxu1 }
 0x565   :  { %v15057_v48 = vpop.f32.mrf.mxu0  ;;  %v15059_v51 = vpop.f32.mrf.mxu1 }
 0x566   :  { %17908 = vst [vmem:[#allocation96_spill] sm:$0xff] %v15057_v48  ;;  %17909 = vst [vmem:[#allocation97_spill] sm:$0xff] %v15059_v51 }
 0x567   :  { %v11388_v37 = vpop.f32.mrf.mxu0  ;;  %v11405_v45 = vpop.f32.mrf.mxu1 }
 0x569   :  { %v15061_v22 = vpop.f32.mrf.mxu0  ;;  %v15063_v8 = vpop.f32.mrf.mxu1 }
 0x56a   :  { %17910 = vst [vmem:[#allocation98_spill] sm:$0xff] %v15061_v22  ;;  %17911 = vst [vmem:[#allocation99_spill] sm:$0xff] %v15063_v8 }
 0x56b   :  { %v11399_v54 = vpop.f32.mrf.mxu0  ;;  %v11406_v46 = vpop.f32.mrf.mxu1 }
 0x56d   :  { %v15065_v4 = vpop.f32.mrf.mxu0  ;;  %v15067_v26 = vpop.f32.mrf.mxu1 }
 0x56e   :  { %17912 = vst [vmem:[#allocation100_spill] sm:$0xff] %v15065_v4  ;;  %17913 = vst [vmem:[#allocation101_spill] sm:$0xff] %v15067_v26 }
 0x56f   :  { %v11400_v49 = vpop.f32.mrf.mxu0  ;;  %v11417_v60 = vpop.f32.mrf.mxu1 }
 0x571   :  { %v15069_v36 = vpop.f32.mrf.mxu0  ;;  %v15071_v19 = vpop.f32.mrf.mxu1 }
 0x572   :  { %17914 = vst [vmem:[#allocation102_spill] sm:$0xff] %v15069_v36  ;;  %17915 = vst [vmem:[#allocation103_spill] sm:$0xff] %v15071_v19 }
 0x573   :  { %v11411_v48 = vpop.f32.mrf.mxu0  ;;  %v11418_v51 = vpop.f32.mrf.mxu1 }
 0x575   :  { %v15073_v37 = vpop.f32.mrf.mxu0 }
 0x576   :  { %17916 = vst [vmem:[#allocation104_spill] sm:$0xff] %v15073_v37 }
 0x577   :  { %v11412_v45 = vpop.f32.mrf.mxu0 }
 0x5a8   :  { %v15075_v22 = vpop.f32.mrf.mxu1 }
 0x5a9   :  { %17917 = vst [vmem:[#allocation105_spill] sm:$0xff] %v15075_v22 }
 0x5aa   :  { %v11429_v8 = vpop.f32.mrf.mxu1 }
 0x5ac   :  { %v15077_v54 = vpop.f32.mrf.mxu0  ;;  %v15079_v46 = vpop.f32.mrf.mxu1 }
 0x5ad   :  { %17918 = vst [vmem:[#allocation106_spill] sm:$0xff] %v15077_v54  ;;  %17919 = vst [vmem:[#allocation107_spill] sm:$0xff] %v15079_v46 }
 0x5ae   :  { %v11423_v4 = vpop.f32.mrf.mxu0  ;;  %v11430_v26 = vpop.f32.mrf.mxu1 }
 0x5b0   :  { %v15081_v49 = vpop.f32.mrf.mxu0  ;;  %v15083_v60 = vpop.f32.mrf.mxu1 }
 0x5b1   :  { %17920 = vst [vmem:[#allocation108_spill] sm:$0xff] %v15081_v49  ;;  %v4096_v48 = vsel %vm2169_vm3, %v15083_v60, -inf }
 0x5b2   :  { %4097 = vmax.xlane.f32.xlu0 %v4096_v48  ;;  %v11424_v51 = vpop.f32.mrf.mxu0  ;;  %v11441_v36 = vpop.f32.mrf.mxu1 }
 0x5b4   :  { %v15087_v45 = vpop.f32.mrf.mxu0  ;;  %v15089_v22 = vpop.f32.mrf.mxu1 }
 0x5b5   :  { %v4090_v8 = vsel %vm2169_vm3, %v15087_v45, -inf  ;;  %v4099_v46 = vsel %vm2169_vm3, %v15089_v22, -inf }
 0x5b6   :  { %v11442_v54 = vpop.f32.mrf.mxu1  ;;  %4091 = vmax.xlane.f32.xlu0 %v4090_v8  ;;  %v11435_v4 = vpop.f32.mrf.mxu0 }
 0x5b8   :  { %v15093_v26 = vpop.f32.mrf.mxu0  ;;  %v15095_v49 = vpop.f32.mrf.mxu1 }
 0x5b9   :  { %v4093_v36 = vsel %vm2169_vm3, %v15093_v26, -inf  ;;  %v4108_v54 = vsel %vm2169_vm3, %v15095_v49, -inf }
 0x5ba   :  { %v11453_v48 = vpop.f32.mrf.mxu1  ;;  %4100 = vmax.xlane.f32.xlu0 %v4099_v46  ;;  %4094 = vmax.xlane.f32.xlu1 %v4093_v36  ;;  %v11436_v51 = vpop.f32.mrf.mxu0 }
 0x5bc   :  { %v15101_v37 = vpop.f32.mrf.mxu0  ;;  %v15103_v19 = vpop.f32.mrf.mxu1 }
 0x5bd   :  { %v4111_v8 = vsel %vm2169_vm3, %v15103_v19, -inf  ;;  %v4102_v46 = vsel %vm2169_vm3, %v15101_v37, -inf }
 0x5be   :  { %v11454_v4 = vpop.f32.mrf.mxu1  ;;  %4109 = vmax.xlane.f32.xlu0 %v4108_v54  ;;  %4112 = vmax.xlane.f32.xlu1 %v4111_v8  ;;  %v11447_v39 = vpop.f32.mrf.mxu0 }
 0x5c0   :  { %v15109_v62 = vpop.f32.mrf.mxu0  ;;  %v15111_v48 = vpop.f32.mrf.mxu1 }
 0x5c1   :  { %v4105_v36 = vsel %vm2169_vm3, %v15109_v62, -inf  ;;  %v4120_v39 = vsel %vm2169_vm3, %v15111_v48, -inf }
 0x5c2   :  { %v11465_v51 = vpop.f32.mrf.mxu1  ;;  %4103 = vmax.xlane.f32.xlu0 %v4102_v46  ;;  %4106 = vmax.xlane.f32.xlu1 %v4105_v36  ;;  %v11448_v38 = vpop.f32.mrf.mxu0 }
 0x5c4   :  { %v15117_v9 = vpop.f32.mrf.mxu0  ;;  %v15119_v4 = vpop.f32.mrf.mxu1 }
 0x5c5   :  { %v4123_v54 = vsel %vm2169_vm3, %v15119_v4, -inf  ;;  %v4114_v38 = vsel %vm2169_vm3, %v15117_v9, -inf }
 0x5c6   :  { %v11466_v8 = vpop.f32.mrf.mxu1  ;;  %4121 = vmax.xlane.f32.xlu0 %v4120_v39  ;;  %4124 = vmax.xlane.f32.xlu1 %v4123_v54  ;;  %v11459_v10 = vpop.f32.mrf.mxu0 }
 0x5c8   :  { %v15125_v25 = vpop.f32.mrf.mxu0  ;;  %v15127_v51 = vpop.f32.mrf.mxu1 }
 0x5c9   :  { %v4117_v46 = vsel %vm2169_vm3, %v15125_v25, -inf  ;;  %v4132_v10 = vsel %vm2169_vm3, %v15127_v51, -inf }
 0x5ca   :  { %v11477_v36 = vpop.f32.mrf.mxu1  ;;  %4115 = vmax.xlane.f32.xlu0 %v4114_v38  ;;  %4118 = vmax.xlane.f32.xlu1 %v4117_v46  ;;  %v11460_v6 = vpop.f32.mrf.mxu0 }
 0x5cc   :  { %v15133_v14 = vpop.f32.mrf.mxu0  ;;  %v15135_v8 = vpop.f32.mrf.mxu1 }
 0x5cd   :  { %v4135_v39 = vsel %vm2169_vm3, %v15135_v8, -inf  ;;  %v4126_v6 = vsel %vm2169_vm3, %v15133_v14, -inf }
 0x5ce   :  { %v11478_v54 = vpop.f32.mrf.mxu1  ;;  %4133 = vmax.xlane.f32.xlu0 %v4132_v10  ;;  %4136 = vmax.xlane.f32.xlu1 %v4135_v39  ;;  %v11471_v57 = vpop.f32.mrf.mxu0 }
 0x5d0   :  { %v15141_v33 = vpop.f32.mrf.mxu0  ;;  %v15143_v36 = vpop.f32.mrf.mxu1 }
 0x5d1   :  { %v4129_v38 = vsel %vm2169_vm3, %v15141_v33, -inf  ;;  %v4144_v57 = vsel %vm2169_vm3, %v15143_v36, -inf }
 0x5d2   :  { %v11489_v46 = vpop.f32.mrf.mxu1  ;;  %4127 = vmax.xlane.f32.xlu0 %v4126_v6  ;;  %4130 = vmax.xlane.f32.xlu1 %v4129_v38  ;;  %v11472_v27 = vpop.f32.mrf.mxu0 }
 0x5d4   :  { %v15149_v16 = vpop.f32.mrf.mxu0  ;;  %v15151_v54 = vpop.f32.mrf.mxu1 }
 0x5d5   :  { %v4147_v10 = vsel %vm2169_vm3, %v15151_v54, -inf  ;;  %v4138_v27 = vsel %vm2169_vm3, %v15149_v16, -inf }
 0x5d6   :  { %v11490_v39 = vpop.f32.mrf.mxu1  ;;  %4145 = vmax.xlane.f32.xlu0 %v4144_v57  ;;  %4148 = vmax.xlane.f32.xlu1 %v4147_v10  ;;  %v11483_v23 = vpop.f32.mrf.mxu0 }
 0x5d8   :  { %v15157_v53 = vpop.f32.mrf.mxu0  ;;  %v15159_v46 = vpop.f32.mrf.mxu1 }
 0x5d9   :  { %v4141_v6 = vsel %vm2169_vm3, %v15157_v53, -inf  ;;  %v4156_v23 = vsel %vm2169_vm3, %v15159_v46, -inf }
 0x5da   :  { %v11501_v38 = vpop.f32.mrf.mxu1  ;;  %4139 = vmax.xlane.f32.xlu0 %v4138_v27  ;;  %4142 = vmax.xlane.f32.xlu1 %v4141_v6  ;;  %v11484_v21 = vpop.f32.mrf.mxu0 }
 0x5dc   :  { %v15165_v58 = vpop.f32.mrf.mxu0  ;;  %v15167_v39 = vpop.f32.mrf.mxu1 }
 0x5dd   :  { %v4159_v57 = vsel %vm2169_vm3, %v15167_v39, -inf  ;;  %v4150_v21 = vsel %vm2169_vm3, %v15165_v58, -inf }
 0x5de   :  { %v11502_v10 = vpop.f32.mrf.mxu1  ;;  %4157 = vmax.xlane.f32.xlu0 %v4156_v23  ;;  %4160 = vmax.xlane.f32.xlu1 %v4159_v57  ;;  %v11495_v50 = vpop.f32.mrf.mxu0 }
 0x5e0   :  { %v15173_v18 = vpop.f32.mrf.mxu0  ;;  %v15175_v38 = vpop.f32.mrf.mxu1 }
 0x5e1   :  { %v4153_v27 = vsel %vm2169_vm3, %v15173_v18, -inf  ;;  %v4168_v50 = vsel %vm2169_vm3, %v15175_v38, -inf }
 0x5e2   :  { %v11513_v6 = vpop.f32.mrf.mxu1  ;;  %4151 = vmax.xlane.f32.xlu0 %v4150_v21  ;;  %4154 = vmax.xlane.f32.xlu1 %v4153_v27  ;;  %v11496_v55 = vpop.f32.mrf.mxu0 }
 0x5e4   :  { %v15181_v32 = vpop.f32.mrf.mxu0  ;;  %v15183_v10 = vpop.f32.mrf.mxu1 }
 0x5e5   :  { %v4171_v23 = vsel %vm2169_vm3, %v15183_v10, -inf  ;;  %v4162_v55 = vsel %vm2169_vm3, %v15181_v32, -inf }
 0x5e6   :  { %v11514_v57 = vpop.f32.mrf.mxu1  ;;  %4169 = vmax.xlane.f32.xlu0 %v4168_v50  ;;  %4172 = vmax.xlane.f32.xlu1 %v4171_v23  ;;  %v11507_v56 = vpop.f32.mrf.mxu0 }
 0x5e8   :  { %v15189_v52 = vpop.f32.mrf.mxu0  ;;  %v15191_v6 = vpop.f32.mrf.mxu1 }
 0x5e9   :  { %v4165_v21 = vsel %vm2169_vm3, %v15189_v52, -inf  ;;  %v4180_v56 = vsel %vm2169_vm3, %v15191_v6, -inf }
 0x5ea   :  { %v11525_v27 = vpop.f32.mrf.mxu1  ;;  %4163 = vmax.xlane.f32.xlu0 %v4162_v55  ;;  %4166 = vmax.xlane.f32.xlu1 %v4165_v21  ;;  %v11508_v11 = vpop.f32.mrf.mxu0 }
 0x5eb   :  { %v15215_v27 = vpop.permute.xlu1 %4603 }
 0x5ec   :  { %v15197_v43 = vpop.f32.mrf.mxu0  ;;  %v15199_v57 = vpop.f32.mrf.mxu1  ;;  %17921 = vst [vmem:[#allocation109_spill] sm:$0xff] %v15215_v27 }
 0x5ed   :  { %v4183_v50 = vsel %vm2169_vm3, %v15199_v57, -inf  ;;  %v4174_v55 = vsel %vm2169_vm3, %v15197_v43, -inf }
 0x5ee   :  { %v11526_v23 = vpop.f32.mrf.mxu1  ;;  %4181 = vmax.xlane.f32.xlu0 %v4180_v56  ;;  %4184 = vmax.xlane.f32.xlu1 %v4183_v50  ;;  %v11519_v40 = vpop.f32.mrf.mxu0 }
 0x5ef   :  { %v15217_v40 = vpop.permute.xlu0 %4555  ;;  %v15219_v56 = vpop.permute.xlu1 %4699 }
 0x5f0   :  { %v15205_v2 = vpop.f32.mrf.mxu0  ;;  %17922 = vst [vmem:[#allocation110_spill] sm:$0xff] %v15217_v40  ;;  %17923 = vst [vmem:[#allocation111_spill] sm:$0xff] %v15219_v56 }
 0x5f1   :  { %v4177_v11 = vsel %vm2169_vm3, %v15205_v2, -inf }
 0x5f2   :  { %4175 = vmax.xlane.f32.xlu0 %v4174_v55  ;;  %4178 = vmax.xlane.f32.xlu1 %v4177_v11  ;;  %v11520_v21 = vpop.f32.mrf.mxu0 }
 0x5f3   :  { %v15221_v50 = vpop.permute.xlu0 %4651  ;;  %v15223_v23 = vpop.permute.xlu1 %4795 }
 0x5f4   :  { %17924 = vst [vmem:[#allocation112_spill] sm:$0xff] %v15221_v50  ;;  %17925 = vst [vmem:[#allocation113_spill] sm:$0xff] %v15223_v23 }
 0x5f7   :  { %v15225_v20 = vpop.permute.xlu0 %4747  ;;  %v15227_v55 = vpop.permute.xlu1 %4891 }
 0x5f8   :  { %17926 = vst [vmem:[#allocation114_spill] sm:$0xff] %v15225_v20  ;;  %17927 = vst [vmem:[#allocation115_spill] sm:$0xff] %v15227_v55 }
 0x5fb   :  { %v15229_v11 = vpop.permute.xlu0 %4843  ;;  %v15231_v21 = vpop.permute.xlu1 %4939 }
 0x5fc   :  { %17928 = vst [vmem:[#allocation116_spill] sm:$0xff] %v15229_v11  ;;  %17929 = vst [vmem:[#allocation117_spill] sm:$0xff] %v15231_v21 }
 0x603   :  { %5179 = vrot.lane.b32.xlu1 %v17887_v29, %s13110_s4  ;;  %v15233_v29 = vpop.permute.xlu0 %5035 }
 0x604   :  { %17930 = vst [vmem:[#allocation118_spill] sm:$0xff] %v15233_v29 }
 0x608   :  { %5131 = vrot.lane.b32.xlu0 %v17888_v5, %s13110_s4  ;;  %v15235_v5 = vpop.permute.xlu1 %4987 }
 0x609   :  { %17931 = vst [vmem:[#allocation119_spill] sm:$0xff] %v15235_v5 }
 0x60c   :  { %v15238_v28 = vpop.permute.xlu1 %5083 }
 0x63b   :  { %v4098_v27 = vpop.xlane.xlu0 %4097 }
 0x63c   :  { %v4188_v40 = vsub.f32 %v15083_v60, %v4098_v27 }
 0x63e   :  { %v4222_v56 = vmul.f32 1.442695, %v4188_v40 }
 0x63f   :  { %v4092_v50 = vpop.xlane.xlu0 %4091 }
 0x640   :  { %12589 = vpow2.f32 %v4222_v56  ;;  %v4186_v20 = vsub.f32 %v15087_v45, %v4092_v50 }
 0x642   :  { %v4218_v23 = vmul.f32 1.442695, %v4186_v20 }
 0x643   :  { %v4101_v55 = vpop.xlane.xlu0 %4100  ;;  %v4095_v13 = vpop.xlane.xlu1 %4094 }
 0x644   :  { %12591 = vpow2.f32 %v4218_v23  ;;  %v4189_v21 = vsub.f32 %v15089_v22, %v4101_v55  ;;  %v4187_v29 = vsub.f32 %v15093_v26, %v4095_v13 }
 0x646   :  { %v4224_v11 = vmul.f32 1.442695, %v4189_v21  ;;  %v4220_v5 = vmul.f32 1.442695, %v4187_v29 }
 0x647   :  { %v4110_v15 = vpop.xlane.xlu0 %4109  ;;  %v4113_v17 = vpop.xlane.xlu1 %4112 }
 0x648   :  { %12593 = vpow2.f32 %v4224_v11  ;;  %v4192_v60 = vsub.f32 %v15095_v49, %v4110_v15  ;;  %v4193_v27 = vsub.f32 %v15103_v19, %v4113_v17 }
 0x649   :  { %12595 = vpow2.f32 %v4220_v5 }
 0x64a   :  { %v4230_v40 = vmul.f32 1.442695, %v4192_v60  ;;  %v4232_v45 = vmul.f32 1.442695, %v4193_v27 }
 0x64b   :  { %v4104_v20 = vpop.xlane.xlu0 %4103  ;;  %v4107_v56 = vpop.xlane.xlu1 %4106 }
 0x64c   :  { %12597 = vpow2.f32 %v4230_v40  ;;  %v4190_v50 = vsub.f32 %v15101_v37, %v4104_v20  ;;  %v4191_v22 = vsub.f32 %v15109_v62, %v4107_v56 }
 0x64d   :  { %v15247_v13 = vpop.eup %12589  ;;  %12599 = vpow2.f32 %v4232_v45 }
 0x64e   :  { %v4226_v29 = vmul.f32 1.442695, %v4190_v50  ;;  %v4228_v26 = vmul.f32 1.442695, %v4191_v22  ;;  %v4288_v15 = vsel %vm2169_vm3, %v15247_v13, 0.0 }
 0x64f   :  { %v4122_v49 = vpop.xlane.xlu0 %4121  ;;  %v4125_v17 = vpop.xlane.xlu1 %4124  ;;  %4289 = vadd.xlane.f32.xlu0 %v4288_v15 }
 0x650   :  { %12601 = vpow2.f32 %v4226_v29  ;;  %v4196_v5 = vsub.f32 %v15111_v48, %v4122_v49  ;;  %v4197_v19 = vsub.f32 %v15119_v4, %v4125_v17 }
 0x651   :  { %v15253_v23 = vpop.eup %12591  ;;  %12603 = vpow2.f32 %v4228_v26 }
 0x652   :  { %v4238_v62 = vmul.f32 1.442695, %v4196_v5  ;;  %v4240_v37 = vmul.f32 1.442695, %v4197_v19  ;;  %v4282_v55 = vsel %vm2169_vm3, %v15253_v23, 0.0 }
 0x653   :  { %v4116_v11 = vpop.xlane.xlu0 %4115  ;;  %v4119_v21 = vpop.xlane.xlu1 %4118  ;;  %4283 = vadd.xlane.f32.xlu0 %v4282_v55 }
 0x654   :  { %12605 = vpow2.f32 %v4238_v62  ;;  %v4194_v60 = vsub.f32 %v15117_v9, %v4116_v11  ;;  %v4195_v27 = vsub.f32 %v15125_v25, %v4119_v21 }
 0x655   :  { %v15259_v40 = vpop.eup %12593  ;;  %12607 = vpow2.f32 %v4240_v37 }
 0x656   :  { %v15261_v48 = vpop.eup %12595  ;;  %v4234_v4 = vmul.f32 1.442695, %v4194_v60  ;;  %v4236_v45 = vmul.f32 1.442695, %v4195_v27  ;;  %v4291_v20 = vsel %vm2169_vm3, %v15259_v40, 0.0 }
 0x657   :  { %v4134_v56 = vpop.xlane.xlu0 %4133  ;;  %v4137_v50 = vpop.xlane.xlu1 %4136  ;;  %4292 = vadd.xlane.f32.xlu1 %v4291_v20  ;;  %v4285_v25 = vsel %vm2169_vm3, %v15261_v48, 0.0 }
 0x658   :  { %12609 = vpow2.f32 %v4234_v4  ;;  %v4200_v22 = vsub.f32 %v15127_v51, %v4134_v56  ;;  %v4201_v9 = vsub.f32 %v15135_v8, %v4137_v50 }
 0x659   :  { %v15267_v29 = vpop.eup %12597  ;;  %12611 = vpow2.f32 %v4236_v45 }
 0x65a   :  { %v15271_v26 = vpop.eup %12599  ;;  %v4246_v15 = vmul.f32 1.442695, %v4200_v22  ;;  %v4248_v49 = vmul.f32 1.442695, %v4201_v9  ;;  %v4300_v17 = vsel %vm2169_vm3, %v15267_v29, 0.0 }
 0x65b   :  { %v4128_v5 = vpop.xlane.xlu0 %4127  ;;  %v4131_v19 = vpop.xlane.xlu1 %4130  ;;  %4301 = vadd.xlane.f32.xlu0 %v4300_v17  ;;  %4286 = vadd.xlane.f32.xlu1 %v4285_v25  ;;  %v4303_v37 = vsel %vm2169_vm3, %v15271_v26, 0.0 }
 0x65c   :  { %12613 = vpow2.f32 %v4246_v15  ;;  %v4198_v51 = vsub.f32 %v15133_v14, %v4128_v5  ;;  %v4199_v8 = vsub.f32 %v15141_v33, %v4131_v19 }
 0x65d   :  { %v15277_v62 = vpop.eup %12601  ;;  %12615 = vpow2.f32 %v4248_v49 }
 0x65e   :  { %v4242_v55 = vmul.f32 1.442695, %v4198_v51  ;;  %v4244_v11 = vmul.f32 1.442695, %v4199_v8  ;;  %v4294_v21 = vsel %vm2169_vm3, %v15277_v62, 0.0  ;;  %v15283_v60 = vpop.eup %12603 }
 0x65f   :  { %v4146_v27 = vpop.xlane.xlu0 %4145  ;;  %v4149_v4 = vpop.xlane.xlu1 %4148  ;;  %4295 = vadd.xlane.f32.xlu0 %v4294_v21  ;;  %4304 = vadd.xlane.f32.xlu1 %v4303_v37  ;;  %v4297_v50 = vsel %vm2169_vm3, %v15283_v60, 0.0 }
 0x660   :  { %12617 = vpow2.f32 %v4242_v55  ;;  %v4204_v14 = vsub.f32 %v15143_v36, %v4146_v27  ;;  %v4205_v45 = vsub.f32 %v15151_v54, %v4149_v4 }
 0x661   :  { %v15286_v33 = vpop.eup %12605  ;;  %12619 = vpow2.f32 %v4244_v11 }
 0x662   :  { %v4254_v20 = vmul.f32 1.442695, %v4204_v14  ;;  %v4312_v56 = vsel %vm2169_vm3, %v15286_v33, 0.0  ;;  %v15293_v22 = vpop.eup %12607  ;;  %v4256_v49 = vmul.f32 1.442695, %v4205_v45 }
 0x663   :  { %v4140_v9 = vpop.xlane.xlu0 %4139  ;;  %v4143_v25 = vpop.xlane.xlu1 %4142  ;;  %4313 = vadd.xlane.f32.xlu0 %v4312_v56  ;;  %4298 = vadd.xlane.f32.xlu1 %v4297_v50  ;;  %v4315_v51 = vsel %vm2169_vm3, %v15293_v22, 0.0 }
 0x664   :  { %12621 = vpow2.f32 %v4254_v20  ;;  %v4202_v36 = vsub.f32 %v15149_v16, %v4140_v9  ;;  %v4203_v15 = vsub.f32 %v15157_v53, %v4143_v25 }
 0x665   :  { %v15297_v54 = vpop.eup %12609 }
 0x666   :  { %v4250_v17 = vmul.f32 1.442695, %v4202_v36  ;;  %v4252_v5 = vmul.f32 1.442695, %v4203_v15  ;;  %v4306_v19 = vsel %vm2169_vm3, %v15297_v54, 0.0  ;;  %v15303_v8 = vpop.eup %12611 }
 0x667   :  { %v4158_v37 = vpop.xlane.xlu0 %4157  ;;  %v4161_v55 = vpop.xlane.xlu1 %4160  ;;  %4307 = vadd.xlane.f32.xlu0 %v4306_v19  ;;  %4316 = vadd.xlane.f32.xlu1 %v4315_v51  ;;  %v4309_v4 = vsel %vm2169_vm3, %v15303_v8, 0.0 }
 0x668   :  { %12623 = vpow2.f32 %v4250_v17  ;;  %v4208_v53 = vsub.f32 %v15159_v46, %v4158_v37  ;;  %v4209_v11 = vsub.f32 %v15167_v39, %v4161_v55 }
 0x669   :  { %v15306_v16 = vpop.eup %12613  ;;  %12625 = vpow2.f32 %v4252_v5 }
 0x66a   :  { %12627 = vpow2.f32 %v4256_v49  ;;  %v4262_v21 = vmul.f32 1.442695, %v4208_v53  ;;  %v4324_v27 = vsel %vm2169_vm3, %v15306_v16, 0.0  ;;  %v15313_v14 = vpop.eup %12615  ;;  %v4264_v50 = vmul.f32 1.442695, %v4209_v11 }
 0x66b   :  { %v4152_v45 = vpop.xlane.xlu0 %4151  ;;  %v4155_v20 = vpop.xlane.xlu1 %4154  ;;  %4325 = vadd.xlane.f32.xlu0 %v4324_v27  ;;  %4310 = vadd.xlane.f32.xlu1 %v4309_v4  ;;  %v4327_v15 = vsel %vm2169_vm3, %v15313_v14, 0.0 }
 0x66c   :  { %12629 = vpow2.f32 %v4262_v21  ;;  %v4206_v46 = vsub.f32 %v15165_v58, %v4152_v45  ;;  %v4207_v56 = vsub.f32 %v15173_v18, %v4155_v20 }
 0x66d   :  { %v15317_v39 = vpop.eup %12617 }
 0x66e   :  { %v4258_v9 = vmul.f32 1.442695, %v4206_v46  ;;  %v4260_v25 = vmul.f32 1.442695, %v4207_v56  ;;  %v4318_v36 = vsel %vm2169_vm3, %v15317_v39, 0.0  ;;  %v15323_v49 = vpop.eup %12619 }
 0x66f   :  { %v4170_v17 = vpop.xlane.xlu0 %4169  ;;  %v4173_v5 = vpop.xlane.xlu1 %4172  ;;  %4319 = vadd.xlane.f32.xlu0 %v4318_v36  ;;  %4328 = vadd.xlane.f32.xlu1 %v4327_v15  ;;  %v4321_v55 = vsel %vm2169_vm3, %v15323_v49, 0.0 }
 0x670   :  { %12631 = vpow2.f32 %v4258_v9  ;;  %v4212_v18 = vsub.f32 %v15175_v38, %v4170_v17  ;;  %v4213_v19 = vsub.f32 %v15183_v10, %v4173_v5 }
 0x671   :  { %v15326_v58 = vpop.eup %12621  ;;  %12633 = vpow2.f32 %v4260_v25 }
 0x672   :  { %12635 = vpow2.f32 %v4264_v50  ;;  %v4270_v51 = vmul.f32 1.442695, %v4212_v18  ;;  %v4336_v37 = vsel %vm2169_vm3, %v15326_v58, 0.0  ;;  %v4272_v10 = vmul.f32 1.442695, %v4213_v19 }
 0x673   :  { %v4164_v53 = vpop.xlane.xlu0 %4163  ;;  %v4167_v11 = vpop.xlane.xlu1 %4166  ;;  %4337 = vadd.xlane.f32.xlu0 %v4336_v37  ;;  %4322 = vadd.xlane.f32.xlu1 %v4321_v55 }
 0x674   :  { %12637 = vpow2.f32 %v4270_v51  ;;  %v4210_v38 = vsub.f32 %v15181_v32, %v4164_v53  ;;  %v4211_v21 = vsub.f32 %v15189_v52, %v4167_v11 }
 0x675   :  { %v15335_v27 = vpop.eup %12623 }
 0x676   :  { %v15337_v4 = vpop.eup %12625  ;;  %v4266_v45 = vmul.f32 1.442695, %v4210_v38  ;;  %v4268_v20 = vmul.f32 1.442695, %v4211_v21  ;;  %v4330_v46 = vsel %vm2169_vm3, %v15335_v27, 0.0 }
 0x677   :  { %v15341_v56 = vpop.eup %12627  ;;  %v4182_v50 = vpop.xlane.xlu0 %4181  ;;  %v4333_v25 = vsel %vm2169_vm3, %v15337_v4, 0.0  ;;  %4331 = vadd.xlane.f32.xlu1 %v4330_v46 }
 0x678   :  { %v4185_v9 = vpop.xlane.xlu1 %4184  ;;  %12639 = vpow2.f32 %v4266_v45  ;;  %v4216_v32 = vsub.f32 %v15191_v6, %v4182_v50  ;;  %4334 = vadd.xlane.f32.xlu0 %v4333_v25  ;;  %v4339_v5 = vsel %vm2169_vm3, %v15341_v56, 0.0 }
 0x679   :  { %v15346_v52 = vpop.eup %12629  ;;  %12641 = vpow2.f32 %v4268_v20  ;;  %v4217_v36 = vsub.f32 %v15199_v57, %v4185_v9 }
 0x67a   :  { %12643 = vpow2.f32 %v4272_v10  ;;  %v4278_v15 = vmul.f32 1.442695, %v4216_v32  ;;  %v4348_v17 = vsel %vm2169_vm3, %v15346_v52, 0.0 }
 0x67b   :  { %v4176_v18 = vpop.xlane.xlu0 %4175  ;;  %4340 = vadd.xlane.f32.xlu1 %v4339_v5  ;;  %v4280_v57 = vmul.f32 1.442695, %v4217_v36 }
 0x67c   :  { %v4179_v19 = vpop.xlane.xlu1 %4178  ;;  %12645 = vpow2.f32 %v4278_v15  ;;  %4349 = vadd.xlane.f32.xlu0 %v4348_v17  ;;  %v4214_v6 = vsub.f32 %v15197_v43, %v4176_v18 }
 0x67d   :  { %v4215_v51 = vsub.f32 %v15205_v2, %v4179_v19  ;;  %v15355_v37 = vpop.eup %12631 }
 0x67e   :  { %v15357_v55 = vpop.eup %12633  ;;  %v4274_v53 = vmul.f32 1.442695, %v4214_v6  ;;  %v4342_v38 = vsel %vm2169_vm3, %v15355_v37, 0.0 }
 0x67f   :  { %v4276_v11 = vmul.f32 1.442695, %v4215_v51  ;;  %v15361_v21 = vpop.eup %12635  ;;  %v4345_v10 = vsel %vm2169_vm3, %v15357_v55, 0.0  ;;  %4343 = vadd.xlane.f32.xlu1 %v4342_v38  ;;  %v17935_v38 = vld [vmem:[#allocation29_spill] sm:$0xff] }
 0x680   :  { %12647 = vpow2.f32 %v4274_v53  ;;  %4346 = vadd.xlane.f32.xlu0 %v4345_v10  ;;  %v4351_v45 = vsel %vm2169_vm3, %v15361_v21, 0.0  ;;  %v17933_v53 = vld [vmem:[#allocation31_spill] sm:$0xff]  ;;  %v17936_v10 = vld [vmem:[#allocation26_spill] sm:$0xff] }
 0x681   :  { %v15365_v43 = vpop.eup %12637  ;;  %12649 = vpow2.f32 %v4276_v11  ;;  %v17934_v11 = vld [vmem:[#allocation85_spill] sm:$0xff] }
 0x682   :  { %12651 = vpow2.f32 %v4280_v57  ;;  %v4360_v2 = vsel %vm2169_vm3, %v15365_v43, 0.0  ;;  %v17932_v57 = vld [vmem:[#allocation21_spill] sm:$0xff] }
 0x683   :  { %4352 = vadd.xlane.f32.xlu1 %v4351_v45  ;;  %v17938_v45 = vld [vmem:[#allocation34_spill] sm:$0xff] }
 0x684   :  { %4361 = vadd.xlane.f32.xlu0 %v4360_v2  ;;  %v17937_v2 = vld [vmem:[#allocation37_spill] sm:$0xff] }
 0x685   :  { %v15371_v20 = vpop.eup %12639 }
 0x686   :  { %v15373_v46 = vpop.eup %12641  ;;  %v4354_v50 = vsel %vm2169_vm3, %v15371_v20, 0.0 }
 0x687   :  { %v15377_v9 = vpop.eup %12643  ;;  %v4357_v25 = vsel %vm2169_vm3, %v15373_v46, 0.0  ;;  %4355 = vadd.xlane.f32.xlu1 %v4354_v50  ;;  %v17939_v50 = vld [vmem:[#allocation35_spill] sm:$0xff] }
 0x688   :  { %4358 = vadd.xlane.f32.xlu0 %v4357_v25  ;;  %v4363_v15 = vsel %vm2169_vm3, %v15377_v9, 0.0  ;;  %v15449_v25 = vpop.permute.xlu0 %5131 }
 0x689   :  { %v15381_v32 = vpop.eup %12645 }
 0x68a   :  { %v4372_v36 = vsel %vm2169_vm3, %v15381_v32, 0.0 }
 0x68b   :  { %4364 = vadd.xlane.f32.xlu1 %v4363_v15  ;;  %v17941_v15 = vld [vmem:[#allocation43_spill] sm:$0xff] }
 0x68c   :  { %4373 = vadd.xlane.f32.xlu0 %v4372_v36  ;;  %v17940_v36 = vld [vmem:[#allocation32_spill] sm:$0xff] }
 0x68d   :  { %v15387_v17 = vpop.eup %12647 }
 0x68e   :  { %v15389_v5 = vpop.eup %12649  ;;  %v4366_v18 = vsel %vm2169_vm3, %v15387_v17, 0.0 }
 0x68f   :  { %v15393_v19 = vpop.eup %12651  ;;  %4367 = vadd.xlane.f32.xlu1 %v4366_v18  ;;  %v4369_v6 = vsel %vm2169_vm3, %v15389_v5, 0.0 }
 0x690   :  { %4370 = vadd.xlane.f32.xlu0 %v4369_v6  ;;  %v4375_v51 = vsel %vm2169_vm3, %v15393_v19, 0.0  ;;  %v17942_v6 = vld [vmem:[#allocation40_spill] sm:$0xff] }
 0x693   :  { %4376 = vadd.xlane.f32.xlu1 %v4375_v51  ;;  %v15457_v51 = vpop.permute.xlu1 %5179 }
 0x6a4   :  { %5279 = vrot.lane.b32.xlu1 %v14063_v7, %s13111_s28 }
 0x6a6   :  { %5228 = vrot.lane.b32.xlu0 %v14068_v30, %s13111_s28 }
 0x6a8   :  { %5330 = vrot.lane.b32.xlu1 %v14092_v24, %s13111_s28 }
 0x6aa   :  { %5226 = vrot.lane.b32.xlu0 %v14107_v35, %s13111_s28 }
 0x6ac   :  { %5381 = vrot.lane.b32.xlu1 %v14085_v44, %s13111_s28 }
 0x6ae   :  { %5277 = vrot.lane.b32.xlu0 %v14102_v47, %s13111_s28 }
 0x6b0   :  { %5432 = vrot.lane.b32.xlu1 %v17858_v12, %s13111_s28 }
 0x6b2   :  { %5328 = vrot.lane.b32.xlu0 %v14026_v63, %s13111_s28 }
 0x6b4   :  { %5483 = vrot.lane.b32.xlu1 %v17860_v1, %s13111_s28 }
 0x6b6   :  { %5379 = vrot.lane.b32.xlu0 %v14024_v42, %s13111_s28 }
 0x6b8   :  { %5534 = vrot.lane.b32.xlu1 %v17862_v41, %s13111_s28 }
 0x6ba   :  { %5430 = vrot.lane.b32.xlu0 %v14193_v0, %s13111_s28 }
 0x6bc   :  { %5585 = vrot.lane.b32.xlu1 %v17864_v59, %s13111_s28 }
 0x6be   :  { %5481 = vrot.lane.b32.xlu0 %v14177_v31, %s13111_s28 }
 0x6c0   :  { %5636 = vrot.lane.b32.xlu1 %v17866_v34, %s13111_s28 }
 0x6c2   :  { %5532 = vrot.lane.b32.xlu0 %v14284_v61, %s13111_s28 }
 0x6c4   :  { %5687 = vrot.lane.b32.xlu1 %v17868_v3, %s13111_s28 }
 0x6c6   :  { %5583 = vrot.lane.b32.xlu0 %v17932_v57, %s13111_s28 }
 0x6c8   :  { %5738 = vrot.lane.b32.xlu1 %v17933_v53, %s13111_s28 }
 0x6ca   :  { %5634 = vrot.lane.b32.xlu0 %v17934_v11, %s13111_s28 }
 0x6cc   :  { %5789 = vrot.lane.b32.xlu1 %v17935_v38, %s13111_s28  ;;  %v17947_v38 = vld [vmem:[#allocation53_spill] sm:$0xff] }
 0x6ce   :  { %5685 = vrot.lane.b32.xlu0 %v17936_v10, %s13111_s28  ;;  %v17945_v10 = vld [vmem:[#allocation47_spill] sm:$0xff] }
 0x6d0   :  { %5840 = vrot.lane.b32.xlu1 %v17937_v2, %s13111_s28  ;;  %v17943_v2 = vld [vmem:[#allocation41_spill] sm:$0xff] }
 0x6d2   :  { %5736 = vrot.lane.b32.xlu0 %v17938_v45, %s13111_s28  ;;  %v17944_v45 = vld [vmem:[#allocation38_spill] sm:$0xff] }
 0x6d4   :  { %5891 = vrot.lane.b32.xlu1 %v17939_v50, %s13111_s28 }
 0x6d6   :  { %5787 = vrot.lane.b32.xlu0 %v17940_v36, %s13111_s28 }
 0x6d8   :  { %5942 = vrot.lane.b32.xlu1 %v17941_v15, %s13111_s28  ;;  %v4290_v18 = vpop.xlane.xlu0 %4289  ;;  %v17946_v15 = vld [vmem:[#allocation50_spill] sm:$0xff] }
 0x6d9   :  { %12653 = vrcp.f32 %v4290_v18 }
 0x6da   :  { %5838 = vrot.lane.b32.xlu0 %v17942_v6, %s13111_s28 }
 0x6dc   :  { %5993 = vrot.lane.b32.xlu1 %v17943_v2, %s13111_s28  ;;  %v4284_v50 = vpop.xlane.xlu0 %4283  ;;  %v17948_v2 = vld [vmem:[#allocation44_spill] sm:$0xff] }
 0x6de   :  { %5889 = vrot.lane.b32.xlu0 %v17944_v45, %s13111_s28  ;;  %v17949_v45 = vld [vmem:[#allocation56_spill] sm:$0xff] }
 0x6e0   :  { %5991 = vrot.lane.b32.xlu1 %v17945_v10, %s13111_s28  ;;  %v4293_v36 = vpop.xlane.xlu1 %4292 }
 0x6e1   :  { %12655 = vrcp.f32 %v4293_v36  ;;  %v17950_v36 = vld [vmem:[#allocation57_spill] sm:$0xff] }
 0x6e2   :  { %5940 = vrot.lane.b32.xlu0 %v17946_v15, %s13111_s28  ;;  %12657 = vrcp.f32 %v4284_v50 }
 0x6e4   :  { %v4302_v6 = vpop.xlane.xlu0 %4301  ;;  %6457 = vrot.lane.b32.xlu1 %v17947_v38, %s13111_s28  ;;  %v4287_v11 = vpop.xlane.xlu1 %4286  ;;  %v17951_v38 = vld [vmem:[#allocation58_spill] sm:$0xff] }
 0x6e5   :  { %12659 = vrcp.f32 %v4287_v11 }
 0x6e6   :  { %6410 = vrot.lane.b32.xlu0 %v17948_v2, %s13111_s28  ;;  %12661 = vrcp.f32 %v4302_v6  ;;  %v12654_v50 = vpop.eup %12653  ;;  %v17952_v6 = vld [vmem:[#allocation59_spill] sm:$0xff] }
 0x6e7   :  { %v4412_v2 = vmul.f32 %v12654_v50, %v15247_v13 }
 0x6e8   :  { %v4296_v18 = vpop.xlane.xlu0 %4295  ;;  %6551 = vrot.lane.b32.xlu1 %v17949_v45, %s13111_s28  ;;  %v4305_v10 = vpop.xlane.xlu1 %4304 }
 0x6e9   :  { %12663 = vrcp.f32 %v4305_v10 }
 0x6ea   :  { %6504 = vrot.lane.b32.xlu0 %v17950_v36, %s13111_s28  ;;  %12665 = vrcp.f32 %v4296_v18  ;;  %v17953_v36 = vld [vmem:[#allocation60_spill] sm:$0xff] }
 0x6ec   :  { %v4314_v15 = vpop.xlane.xlu0 %4313  ;;  %6645 = vrot.lane.b32.xlu1 %v17951_v38, %s13111_s28  ;;  %v4299_v11 = vpop.xlane.xlu1 %4298  ;;  %v17954_v38 = vld [vmem:[#allocation61_spill] sm:$0xff] }
 0x6ed   :  { %12667 = vrcp.f32 %v4299_v11 }
 0x6ee   :  { %v12656_v53 = vpop.eup %12655  ;;  %6598 = vrot.lane.b32.xlu0 %v17952_v6, %s13111_s28  ;;  %12669 = vrcp.f32 %v4314_v15  ;;  %v17956_v15 = vld [vmem:[#allocation66_spill] sm:$0xff] }
 0x6ef   :  { %v4413_v45 = vmul.f32 %v12656_v53, %v15259_v40  ;;  %v12658_v57 = vpop.eup %12657  ;;  %v17955_v40 = vld [vmem:[#allocation109_spill] sm:$0xff] }
 0x6f0   :  { %v4308_v10 = vpop.xlane.xlu0 %4307  ;;  %6739 = vrot.lane.b32.xlu1 %v17953_v36, %s13111_s28  ;;  %v4317_v18 = vpop.xlane.xlu1 %4316  ;;  %v4410_v6 = vmul.f32 %v12658_v57, %v15253_v23 }
 0x6f1   :  { %v4443_v3 = vpack.c.bf16 %v4413_v45, %v4412_v2  ;;  %12671 = vrcp.f32 %v4317_v18  ;;  %v17957_v45 = vmov 0.0  }
 0x6f2   :  { %6692 = vrot.lane.b32.xlu0 %v17954_v38, %s13111_s28  ;;  %v12660_v11 = vpop.eup %12659  ;;  %12673 = vrcp.f32 %v4308_v10  ;;  %v17960_v38 = vld [vmem:[#allocation110_spill] sm:$0xff] }
 0x6f3   :  { %11536 = vmatmul.mubr.msk.bf16.vlgmr.msra.gmra.mxu1 %vm2169_vm3, %v4443_v3  ;;  %v4411_v13 = vmul.f32 %v12660_v11, %v15261_v48  ;;  %v12662_v2 = vpop.eup %12661  ;;  %v17958_v3 = vld [vmem:[#allocation69_spill] sm:$0xff]  ;;  %v17959_v11 = vld [vmem:[#allocation76_spill] sm:$0xff] }
 0x6f4   :  { %11546 = vmatpush3.bf16.msra.mxu1 %v17955_v40  ;;  %v4326_v53 = vpop.xlane.xlu0 %4325  ;;  %6833 = vrot.lane.b32.xlu1 %v17956_v15, %s13111_s28  ;;  %v4311_v50 = vpop.xlane.xlu1 %4310  ;;  %v4416_v57 = vmul.f32 %v12662_v2, %v15267_v29 }
 0x6f5   :  { %11547 = vmatprep.mubr.msk.bf16.mxu1 %vm13109_vm1, %v17957_v45  ;;  %11557 = vmatprep.subr.bf16.mxu1 %v17957_v45  ;;  %12675 = vrcp.f32 %v4311_v50  ;;  %v4442_v23 = vpack.c.bf16 %v4411_v13, %v4410_v6  ;;  %v17961_v6 = vld [vmem:[#allocation82_spill] sm:$0xff] }
 0x6f6   :  { %6786 = vrot.lane.b32.xlu0 %v17958_v3, %s13111_s28  ;;  %v12664_v48 = vpop.eup %12663  ;;  %12677 = vrcp.f32 %v4326_v53 }
 0x6f7   :  { %v4417_v10 = vmul.f32 %v12664_v48, %v15271_v26  ;;  %11530 = vmatmul.mubr.msk.bf16.vlgmr.msra.gmra.mxu0 %vm2169_vm3, %v4442_v23  ;;  %v12666_v15 = vpop.eup %12665  ;;  %v17963_v48 = vld [vmem:[#allocation111_spill] sm:$0xff] }
 0x6f8   :  { %v4320_v18 = vpop.xlane.xlu0 %4319  ;;  %6880 = vrot.lane.b32.xlu1 %v17959_v11, %s13111_s28  ;;  %v4329_v40 = vpop.xlane.xlu1 %4328  ;;  %11540 = vmatpush3.bf16.msra.mxu0 %v17960_v38  ;;  %v4414_v13 = vmul.f32 %v12666_v15, %v15277_v62  ;;  %v17962_v38 = vld [vmem:[#allocation73_spill] sm:$0xff] }
 0x6f9   :  { %11541 = vmatprep.mubr.msk.bf16.mxu0 %vm13109_vm1, %v17957_v45  ;;  %12679 = vrcp.f32 %v4329_v40  ;;  %v4445_v29 = vpack.c.bf16 %v4417_v10, %v4416_v57  ;;  %11551 = vmatprep.subr.bf16.mxu0 %v17957_v45  ;;  %v17964_v10 = vld [vmem:[#allocation80_spill] sm:$0xff] }
 0x6fa   :  { %6974 = vrot.lane.b32.xlu0 %v17961_v6, %s13111_s28  ;;  %v12668_v26 = vpop.eup %12667  ;;  %12681 = vrcp.f32 %v4320_v18 }
 0x6fb   :  { %v4415_v53 = vmul.f32 %v12668_v26, %v15283_v60  ;;  %11548 = vmatmul.mubr.msk.bf16.vlgmr.msra.gmra.mxu1 %vm2169_vm3, %v4445_v29  ;;  %v12670_v23 = vpop.eup %12669  ;;  %v17965_v29 = vld [vmem:[#allocation112_spill] sm:$0xff] }
 0x6fc   :  { %v4338_v50 = vpop.xlane.xlu0 %4337  ;;  %6927 = vrot.lane.b32.xlu1 %v17962_v38, %s13111_s28  ;;  %v4323_v2 = vpop.xlane.xlu1 %4322  ;;  %11558 = vmatpush3.bf16.msra.mxu1 %v17963_v48  ;;  %v4420_v60 = vmul.f32 %v12670_v23, %v15286_v33  ;;  %v17966_v48 = vld [vmem:[#allocation113_spill] sm:$0xff] }
 0x6fd   :  { %11559 = vmatprep.mubr.msk.bf16.mxu1 %vm13109_vm1, %v17957_v45  ;;  %12683 = vrcp.f32 %v4323_v2  ;;  %v4444_v57 = vpack.c.bf16 %v4415_v53, %v4414_v13  ;;  %11569 = vmatprep.subr.bf16.mxu1 %v17957_v45 }
 0x6fe   :  { %v12672_v62 = vpop.eup %12671 }
 0x6ff   :  { %v4421_v15 = vmul.f32 %v12672_v62, %v15293_v22  ;;  %11542 = vmatmul.mubr.msk.bf16.vlgmr.msra.gmra.mxu0 %vm2169_vm3, %v4444_v57  ;;  %v12674_v40 = vpop.eup %12673 }
 0x700   :  { %7021 = vrot.lane.b32.xlu1 %v17964_v10, %s13111_s28  ;;  %v4332_v18 = vpop.xlane.xlu1 %4331  ;;  %11552 = vmatpush3.bf16.msra.mxu0 %v17965_v29  ;;  %v4418_v22 = vmul.f32 %v12674_v40, %v15297_v54 }
 0x701   :  { %v4335_v26 = vpop.xlane.xlu0 %4334  ;;  %12685 = vrcp.f32 %v4332_v18  ;;  %11553 = vmatprep.mubr.msk.bf16.mxu0 %vm13109_vm1, %v17957_v45  ;;  %v4447_v13 = vpack.c.bf16 %v4421_v15, %v4420_v60  ;;  %11563 = vmatprep.subr.bf16.mxu0 %v17957_v45  ;;  %v17967_v18 = vld [vmem:[#allocation114_spill] sm:$0xff] }
 0x702   :  { %12687 = vrcp.f32 %v4335_v26  ;;  %v12676_v33 = vpop.eup %12675 }
 0x703   :  { %12689 = vrcp.f32 %v4338_v50  ;;  %v4419_v53 = vmul.f32 %v12676_v33, %v15303_v8  ;;  %11560 = vmatmul.mubr.msk.bf16.vlgmr.msra.gmra.mxu1 %vm2169_vm3, %v4447_v13  ;;  %v12678_v23 = vpop.eup %12677  ;;  %v17968_v33 = vld [vmem:[#allocation115_spill] sm:$0xff] }
 0x704   :  { %v4341_v2 = vpop.xlane.xlu1 %4340  ;;  %11570 = vmatpush3.bf16.msra.mxu1 %v17966_v48  ;;  %11571 = vmatprep.mubr.msk.bf16.mxu1 %vm13109_vm1, %v17957_v45  ;;  %v4424_v50 = vmul.f32 %v12678_v23, %v15306_v16 }
 0x705   :  { %v4350_v57 = vpop.xlane.xlu0 %4349  ;;  %12691 = vrcp.f32 %v4341_v2  ;;  %v4446_v62 = vpack.c.bf16 %v4419_v53, %v4418_v22  ;;  %11581 = vmatprep.subr.bf16.mxu1 %v17957_v45 }
 0x706   :  { %v12680_v60 = vpop.eup %12679 }
 0x707   :  { %v4425_v54 = vmul.f32 %v12680_v60, %v15313_v14  ;;  %11554 = vmatmul.mubr.msk.bf16.vlgmr.msra.gmra.mxu0 %vm2169_vm3, %v4446_v62  ;;  %v12682_v15 = vpop.eup %12681 }
 0x708   :  { %v4344_v8 = vpop.xlane.xlu1 %4343  ;;  %11564 = vmatpush3.bf16.msra.mxu0 %v17967_v18  ;;  %11565 = vmatprep.mubr.msk.bf16.mxu0 %vm13109_vm1, %v17957_v45  ;;  %v4422_v16 = vmul.f32 %v12682_v15, %v15317_v39 }
 0x709   :  { %v4347_v40 = vpop.xlane.xlu0 %4346  ;;  %12693 = vrcp.f32 %v4344_v8  ;;  %v4449_v29 = vpack.c.bf16 %v4425_v54, %v4424_v50  ;;  %11575 = vmatprep.subr.bf16.mxu0 %v17957_v45 }
 0x70a   :  { %12695 = vrcp.f32 %v4347_v40  ;;  %v12684_v26 = vpop.eup %12683 }
 0x70b   :  { %12697 = vrcp.f32 %v4350_v57  ;;  %v4423_v14 = vmul.f32 %v12684_v26, %v15323_v49  ;;  %11572 = vmatmul.mubr.msk.bf16.vlgmr.msra.gmra.mxu1 %vm2169_vm3, %v4449_v29  ;;  %v17969_v49 = vld [vmem:[#allocation116_spill] sm:$0xff] }
 0x70c   :  { %v4353_v13 = vpop.xlane.xlu1 %4352  ;;  %11582 = vmatpush3.bf16.msra.mxu1 %v17968_v33  ;;  %11583 = vmatprep.mubr.msk.bf16.mxu1 %vm13109_vm1, %v17957_v45 }
 0x70d   :  { %v4362_v22 = vpop.xlane.xlu0 %4361  ;;  %12699 = vrcp.f32 %v4353_v13  ;;  %v4448_v2 = vpack.c.bf16 %v4423_v14, %v4422_v16  ;;  %11593 = vmatprep.subr.bf16.mxu1 %v17957_v45  ;;  %v17971_v13 = vld [vmem:[#allocation117_spill] sm:$0xff] }
 0x70e   :  { %v12686_v53 = vpop.eup %12685 }
 0x70f   :  { %v12688_v23 = vpop.eup %12687  ;;  %11566 = vmatmul.mubr.msk.bf16.vlgmr.msra.gmra.mxu0 %vm2169_vm3, %v4448_v2  ;;  %v4426_v50 = vmul.f32 %v12686_v53, %v15335_v27  ;;  %v17970_v27 = vld [vmem:[#allocation119_spill] sm:$0xff] }
 0x710   :  { %v12690_v48 = vpop.eup %12689  ;;  %v4356_v39 = vpop.xlane.xlu1 %4355  ;;  %11576 = vmatpush3.bf16.msra.mxu0 %v17969_v49  ;;  %11577 = vmatprep.mubr.msk.bf16.mxu0 %vm13109_vm1, %v17957_v45  ;;  %v4427_v60 = vmul.f32 %v12688_v23, %v15337_v4 }
 0x711   :  { %v4359_v57 = vpop.xlane.xlu0 %4358  ;;  %12701 = vrcp.f32 %v4356_v39  ;;  %11587 = vmatprep.subr.bf16.mxu0 %v17957_v45  ;;  %v4428_v54 = vmul.f32 %v12690_v48, %v15326_v58 }
 0x712   :  { %v12692_v62 = vpop.eup %12691  ;;  %12703 = vrcp.f32 %v4359_v57  ;;  %v4450_v26 = vpack.c.bf16 %v4427_v60, %v4426_v50 }
 0x713   :  { %v4429_v8 = vmul.f32 %v12692_v62, %v15341_v56  ;;  %12705 = vrcp.f32 %v4362_v22  ;;  %v17972_v62 = vld [vmem:[#allocation118_spill] sm:$0xff] }
 0x714   :  { %v4365_v15 = vpop.xlane.xlu1 %4364 }
 0x715   :  { %v4374_v18 = vpop.xlane.xlu0 %4373  ;;  %12707 = vrcp.f32 %v4365_v15  ;;  %v4451_v40 = vpack.c.bf16 %v4429_v8, %v4428_v54 }
 0x716   :  { %v12694_v29 = vpop.eup %12693 }
 0x717   :  { %v12696_v16 = vpop.eup %12695  ;;  %11584 = vmatmul.mubr.msk.bf16.vlgmr.msra.gmra.mxu1 %vm2169_vm3, %v4451_v40  ;;  %11578 = vmatmul.mubr.msk.bf16.vlgmr.msra.gmra.mxu0 %vm2169_vm3, %v4450_v26  ;;  %v4430_v22 = vmul.f32 %v12694_v29, %v15355_v37 }
 0x718   :  { %v12698_v4 = vpop.eup %12697  ;;  %11594 = vmatpush3.bf16.msra.mxu1 %v17970_v27  ;;  %v4368_v14 = vpop.xlane.xlu1 %4367  ;;  %11588 = vmatpush3.bf16.msra.mxu0 %v17971_v13  ;;  %v4431_v33 = vmul.f32 %v12696_v16, %v15357_v55 }
 0x719   :  { %v4371_v58 = vpop.xlane.xlu0 %4370  ;;  %12709 = vrcp.f32 %v4368_v14  ;;  %11589 = vmatprep.mubr.msk.bf16.mxu0 %vm13109_vm1, %v17957_v45  ;;  %11595 = vmatprep.mubr.msk.bf16.mxu1 %vm13109_vm1, %v17957_v45  ;;  %v4432_v53 = vmul.f32 %v12698_v4, %v15346_v52 }
 0x71a   :  { %v12700_v56 = vpop.eup %12699  ;;  %12711 = vrcp.f32 %v4371_v58  ;;  %11599 = vmatprep.subr.bf16.mxu0 %v17957_v45  ;;  %11605 = vmatprep.subr.bf16.mxu1 %v17957_v45  ;;  %v4452_v49 = vpack.c.bf16 %v4431_v33, %v4430_v22 }
 0x71b   :  { %v4433_v2 = vmul.f32 %v12700_v56, %v15361_v21  ;;  %12713 = vrcp.f32 %v4374_v18 }
 0x71c   :  { %v4377_v23 = vpop.xlane.xlu1 %4376 }
 0x71d   :  { %v5229_v48 = vpop.permute.xlu0 %5228  ;;  %12715 = vrcp.f32 %v4377_v23  ;;  %v4453_v39 = vpack.c.bf16 %v4433_v2, %v4432_v53 }
 0x71e   :  { %v12702_v55 = vpop.eup %12701 }
 0x71f   :  { %v12704_v37 = vpop.eup %12703  ;;  %11596 = vmatmul.mubr.msk.bf16.vlgmr.msra.gmra.mxu1 %vm2169_vm3, %v4453_v39  ;;  %11590 = vmatmul.mubr.msk.bf16.vlgmr.msra.gmra.mxu0 %vm2169_vm3, %v4452_v49  ;;  %v4434_v54 = vmul.f32 %v12702_v55, %v15371_v20 }
 0x720   :  { %v12706_v57 = vpop.eup %12705  ;;  %11606 = vmatpush3.bf16.msra.mxu1 %v15238_v28  ;;  %v5280_v52 = vpop.permute.xlu1 %5279  ;;  %11600 = vmatpush3.bf16.msra.mxu0 %v17972_v62  ;;  %v4435_v50 = vmul.f32 %v12704_v37, %v15373_v46 }
 0x721   :  { %v5227_v21 = vpop.permute.xlu0 %5226  ;;  %11601 = vmatprep.mubr.msk.bf16.mxu0 %vm13109_vm1, %v17957_v45  ;;  %11607 = vmatprep.mubr.msk.bf16.mxu1 %vm13109_vm1, %v17957_v45  ;;  %v4436_v8 = vmul.f32 %v12706_v57, %v15365_v43  ;;  %v5285_v33 = vsel %vm1416_vm2, %v5280_v52, 0 }
 0x722   :  { %v12708_v60 = vpop.eup %12707  ;;  %11611 = vmatprep.subr.bf16.mxu0 %v17957_v45  ;;  %11617 = vmatprep.subr.bf16.mxu1 %v17957_v45  ;;  %v4454_v26 = vpack.c.bf16 %v4435_v50, %v4434_v54 }
 0x723   :  { %v4437_v28 = vmul.f32 %v12708_v60, %v15377_v9 }
 0x724   :  { %v5331_v15 = vpop.permute.xlu1 %5330 }
 0x725   :  { %v5278_v18 = vpop.permute.xlu0 %5277  ;;  %v4455_v40 = vpack.c.bf16 %v4437_v28, %v4436_v8  ;;  %v5336_v2 = vsel %vm1416_vm2, %v5331_v15, 0 }
 0x726   :  { %v12710_v29 = vpop.eup %12709 }
 0x727   :  { %v12712_v16 = vpop.eup %12711  ;;  %11608 = vmatmul.mubr.msk.bf16.vlgmr.msra.gmra.mxu1 %vm2169_vm3, %v4455_v40  ;;  %11602 = vmatmul.mubr.msk.bf16.vlgmr.msra.gmra.mxu0 %vm2169_vm3, %v4454_v26  ;;  %v4438_v27 = vmul.f32 %v12710_v29, %v15387_v17  ;;  %v5234_v17 = vsel %vm1416_vm2, %v5229_v48, 0 }
 0x728   :  { %v12714_v20 = vpop.eup %12713  ;;  %11618 = vmatpush3.bf16.msra.mxu1 %v15457_v51  ;;  %v5382_v46 = vpop.permute.xlu1 %5381  ;;  %11612 = vmatpush3.bf16.msra.mxu0 %v15449_v25  ;;  %v4439_v4 = vmul.f32 %v12712_v16, %v15389_v5 }
 0x729   :  { %v5329_v43 = vpop.permute.xlu0 %5328  ;;  %11613 = vmatprep.mubr.msk.bf16.mxu0 %vm13109_vm1, %v17957_v45  ;;  %11619 = vmatprep.mubr.msk.bf16.mxu1 %vm13109_vm1, %v17957_v45  ;;  %v4440_v14 = vmul.f32 %v12714_v20, %v15381_v32  ;;  %v5387_v53 = vsel %vm1416_vm2, %v5382_v46, 0 }
 0x72a   :  { %v12716_v9 = vpop.eup %12715  ;;  %11623 = vmatprep.subr.bf16.mxu0 %v17957_v45  ;;  %11629 = vmatprep.subr.bf16.mxu1 %v17957_v45  ;;  %v4456_v56 = vpack.c.bf16 %v4439_v4, %v4438_v27 }
 0x72b   :  { %v4441_v51 = vmul.f32 %v12716_v9, %v15393_v19 }
 0x72c   :  { %v5433_v25 = vpop.permute.xlu1 %5432 }
 0x72d   :  { %v5380_v13 = vpop.permute.xlu0 %5379  ;;  %v4457_v58 = vpack.c.bf16 %v4441_v51, %v4440_v14  ;;  %v5438_v49 = vsel %vm1416_vm2, %v5433_v25, 0 }
 0x72f   :  { %11620 = vmatmul.mubr.msk.bf16.vlgmr.msra.gmra.mxu1 %vm2169_vm3, %v4457_v58  ;;  %11614 = vmatmul.mubr.msk.bf16.vlgmr.msra.gmra.mxu0 %vm2169_vm3, %v4456_v56 }
 0x730   :  { %11630 = vmatpush3.bf16.xpose.msra.mxu1 %v5285_v33  ;;  %v5484_v5 = vpop.permute.xlu1 %5483  ;;  %11624 = vmatpush3.bf16.xpose.msra.mxu0 %v5234_v17 }
 0x731   :  { %v5431_v32 = vpop.permute.xlu0 %5430  ;;  %11625 = vmatprep.mubr.msk.bf16.mxu0 %vm13109_vm1, %v17957_v45  ;;  %11631 = vmatprep.mubr.msk.bf16.mxu1 %vm13109_vm1, %v17957_v45  ;;  %v5489_v55 = vsel %vm1416_vm2, %v5484_v5, 0 }
 0x732   :  { %11635 = vmatprep.subr.bf16.mxu0 %v17957_v45  ;;  %11641 = vmatprep.subr.bf16.mxu1 %v17957_v45 }
 0x734   :  { %v5535_v19 = vpop.permute.xlu1 %5534 }
 0x735   :  { %v5482_v22 = vpop.permute.xlu0 %5481  ;;  %v5540_v60 = vsel %vm1416_vm2, %v5535_v19, 0 }
 0x737   :  { %11632 = vmatmul.mubr.msk.bf16.vlgmr.msra.gmra.mxu1 %vm1416_vm2, %v5278_v18  ;;  %11626 = vmatmul.mubr.msk.bf16.vlgmr.msra.gmra.mxu0 %vm1416_vm2, %v5227_v21 }
 0x738   :  { %11642 = vmatpush3.bf16.xpose.msra.mxu1 %v5387_v53  ;;  %v5586_v23 = vpop.permute.xlu1 %5585  ;;  %11636 = vmatpush3.bf16.xpose.msra.mxu0 %v5336_v2 }
 0x739   :  { %11637 = vmatprep.mubr.msk.bf16.mxu0 %vm13109_vm1, %v17957_v45  ;;  %v5533_v48 = vpop.permute.xlu0 %5532  ;;  %11643 = vmatprep.mubr.msk.bf16.mxu1 %vm13109_vm1, %v17957_v45  ;;  %v5591_v21 = vsel %vm1416_vm2, %v5586_v23, 0 }
 0x73a   :  { %11647 = vmatprep.subr.bf16.mxu0 %v17957_v45  ;;  %11653 = vmatprep.subr.bf16.mxu1 %v17957_v45 }
 0x73c   :  { %v5637_v39 = vpop.permute.xlu1 %5636 }
 0x73d   :  { %v5584_v37 = vpop.permute.xlu0 %5583  ;;  %v5642_v28 = vsel %vm1416_vm2, %v5637_v39, 0 }
 0x73f   :  { %11644 = vmatmul.mubr.msk.bf16.vlgmr.msra.gmra.mxu1 %vm1416_vm2, %v5380_v13  ;;  %11638 = vmatmul.mubr.msk.bf16.vlgmr.msra.gmra.mxu0 %vm1416_vm2, %v5329_v43 }
 0x740   :  { %11654 = vmatpush3.bf16.xpose.msra.mxu1 %v5489_v55  ;;  %v5688_v57 = vpop.permute.xlu1 %5687  ;;  %11648 = vmatpush3.bf16.xpose.msra.mxu0 %v5438_v49 }
 0x741   :  { %11649 = vmatprep.mubr.msk.bf16.mxu0 %vm13109_vm1, %v17957_v45  ;;  %11655 = vmatprep.mubr.msk.bf16.mxu1 %vm13109_vm1, %v17957_v45  ;;  %v5635_v62 = vpop.permute.xlu0 %5634  ;;  %v5693_v8 = vsel %vm1416_vm2, %v5688_v57, 0 }
 0x742   :  { %11659 = vmatprep.subr.bf16.mxu0 %v17957_v45  ;;  %11665 = vmatprep.subr.bf16.mxu1 %v17957_v45 }
 0x744   :  { %v5739_v52 = vpop.permute.xlu1 %5738 }
 0x745   :  { %v5686_v54 = vpop.permute.xlu0 %5685  ;;  %v5744_v26 = vsel %vm1416_vm2, %v5739_v52, 0 }
 0x747   :  { %11656 = vmatmul.mubr.msk.bf16.vlgmr.msra.gmra.mxu1 %vm1416_vm2, %v5482_v22  ;;  %11650 = vmatmul.mubr.msk.bf16.vlgmr.msra.gmra.mxu0 %vm1416_vm2, %v5431_v32 }
 0x748   :  { %11666 = vmatpush3.bf16.xpose.msra.mxu1 %v5591_v21  ;;  %11660 = vmatpush3.bf16.xpose.msra.mxu0 %v5540_v60  ;;  %v5790_v50 = vpop.permute.xlu1 %5789 }
 0x749   :  { %11661 = vmatprep.mubr.msk.bf16.mxu0 %vm13109_vm1, %v17957_v45  ;;  %11667 = vmatprep.mubr.msk.bf16.mxu1 %vm13109_vm1, %v17957_v45  ;;  %v5737_v18 = vpop.permute.xlu0 %5736  ;;  %v5795_v40 = vsel %vm1416_vm2, %v5790_v50, 0 }
 0x74a   :  { %11671 = vmatprep.subr.bf16.mxu0 %v17957_v45  ;;  %11677 = vmatprep.subr.bf16.mxu1 %v17957_v45 }
 0x74c   :  { %v5841_v15 = vpop.permute.xlu1 %5840 }
 0x74d   :  { %v5788_v16 = vpop.permute.xlu0 %5787  ;;  %v5846_v9 = vsel %vm1416_vm2, %v5841_v15, 0 }
 0x74f   :  { %11668 = vmatmul.mubr.msk.bf16.vlgmr.msra.gmra.mxu1 %vm1416_vm2, %v5584_v37  ;;  %11662 = vmatmul.mubr.msk.bf16.vlgmr.msra.gmra.mxu0 %vm1416_vm2, %v5533_v48 }
 0x750   :  { %11678 = vmatpush3.bf16.xpose.msra.mxu1 %v5693_v8  ;;  %11672 = vmatpush3.bf16.xpose.msra.mxu0 %v5642_v28  ;;  %v5892_v29 = vpop.permute.xlu1 %5891 }
 0x751   :  { %11673 = vmatprep.mubr.msk.bf16.mxu0 %vm13109_vm1, %v17957_v45  ;;  %11679 = vmatprep.mubr.msk.bf16.mxu1 %vm13109_vm1, %v17957_v45  ;;  %v5839_v46 = vpop.permute.xlu0 %5838  ;;  %v5897_v43 = vsel %vm1416_vm2, %v5892_v29, 0 }
 0x752   :  { %11683 = vmatprep.subr.bf16.mxu0 %v17957_v45  ;;  %11689 = vmatprep.subr.bf16.mxu1 %v17957_v45 }
 0x754   :  { %v5943_v20 = vpop.permute.xlu1 %5942 }
 0x755   :  { %v5890_v27 = vpop.permute.xlu0 %5889  ;;  %v5948_v51 = vsel %vm1416_vm2, %v5943_v20, 0 }
 0x757   :  { %11680 = vmatmul.mubr.msk.bf16.vlgmr.msra.gmra.mxu1 %vm1416_vm2, %v5686_v54  ;;  %11674 = vmatmul.mubr.msk.bf16.vlgmr.msra.gmra.mxu0 %vm1416_vm2, %v5635_v62 }
 0x758   :  { %11690 = vmatpush3.bf16.xpose.msra.mxu1 %v5795_v40  ;;  %11684 = vmatpush3.bf16.xpose.msra.mxu0 %v5744_v26  ;;  %v5994_v4 = vpop.permute.xlu1 %5993 }
 0x759   :  { %11685 = vmatprep.mubr.msk.bf16.mxu0 %vm13109_vm1, %v17957_v45  ;;  %11691 = vmatprep.mubr.msk.bf16.mxu1 %vm13109_vm1, %v17957_v45  ;;  %v5999_v14 = vsel %vm1416_vm2, %v5994_v4, 0  ;;  %v5941_v13 = vpop.permute.xlu0 %5940 }
 0x75a   :  { %11695 = vmatprep.subr.bf16.mxu0 %v17957_v45  ;;  %11701 = vmatprep.subr.bf16.mxu1 %v17957_v45 }
 0x75c   :  { %v5992_v25 = vpop.permute.xlu1 %5991 }
 0x75d   :  { %v6411_v56 = vpop.permute.xlu0 %6410 }
 0x75f   :  { %11692 = vmatmul.mubr.msk.bf16.vlgmr.msra.gmra.mxu1 %vm1416_vm2, %v5788_v16  ;;  %11686 = vmatmul.mubr.msk.bf16.vlgmr.msra.gmra.mxu0 %vm1416_vm2, %v5737_v18 }
 0x760   :  { %11702 = vmatpush3.bf16.xpose.msra.mxu1 %v5897_v43  ;;  %11696 = vmatpush3.bf16.xpose.msra.mxu0 %v5846_v9  ;;  %v6458_v58 = vpop.permute.xlu1 %6457 }
 0x761   :  { %11697 = vmatprep.mubr.msk.bf16.mxu0 %vm13109_vm1, %v17957_v45  ;;  %11703 = vmatprep.mubr.msk.bf16.mxu1 %vm13109_vm1, %v17957_v45 }
 0x762   :  { %11707 = vmatprep.subr.bf16.mxu0 %v17957_v45  ;;  %11713 = vmatprep.subr.bf16.mxu1 %v17957_v45 }
 0x767   :  { %11704 = vmatmul.mubr.msk.bf16.vlgmr.msra.gmra.mxu1 %vm1416_vm2, %v5890_v27  ;;  %11698 = vmatmul.mubr.msk.bf16.vlgmr.msra.gmra.mxu0 %vm1416_vm2, %v5839_v46 }
 0x768   :  { %11714 = vmatpush3.bf16.xpose.msra.mxu1 %v5999_v14  ;;  %11708 = vmatpush3.bf16.xpose.msra.mxu0 %v5948_v51 }
 0x769   :  { %11709 = vmatprep.mubr.msk.bf16.mxu0 %vm13109_vm1, %v17957_v45  ;;  %11715 = vmatprep.mubr.msk.bf16.mxu1 %vm13109_vm1, %v17957_v45 }
 0x76a   :  { %11719 = vmatprep.subr.bf16.mxu0 %v17957_v45  ;;  %11725 = vmatprep.subr.bf16.mxu1 %v17957_v45 }
 0x76f   :  { %11716 = vmatmul.mubr.msk.bf16.vlgmr.msra.gmra.mxu1 %vm1416_vm2, %v5992_v25  ;;  %11710 = vmatmul.mubr.msk.bf16.vlgmr.msra.gmra.mxu0 %vm1416_vm2, %v5941_v13 }
 0x770   :  { %11726 = vmatpush3.bf16.msra.mxu1 %v6458_v58  ;;  %11720 = vmatpush3.bf16.msra.mxu0 %v6411_v56 }
 0x771   :  { %11727 = vmatprep.mubr.msk.bf16.mxu1 %vm13109_vm1, %v17957_v45  ;;  %11737 = vmatprep.subr.bf16.mxu1 %v17957_v45 }
 0x772   :  { %11721 = vmatprep.mubr.msk.bf16.mxu0 %vm13109_vm1, %v17957_v45  ;;  %11731 = vmatprep.subr.bf16.mxu0 %v17957_v45 }
 0x7b3   :  { %v15685_v33 = vpop.f32.mrf.mxu1 }
 0x7b4   :  { %17973 = vst [vmem:[#allocation60_spill] sm:$0xff] %v15685_v33 }
 0x7b5   :  { %v11537_v17 = vpop.f32.mrf.mxu1 }
 0x7b7   :  { %v15687_v5 = vpop.f32.mrf.mxu1  ;;  %v15689_v32 = vpop.f32.mrf.mxu0 }
 0x7b8   :  { %17974 = vst [vmem:[#allocation109_spill] sm:$0xff] %v15687_v5  ;;  %17975 = vst [vmem:[#allocation110_spill] sm:$0xff] %v15689_v32  ;;  %v15913_v5 = vpop.permute.xlu1 %6551 }
 0x7b9   :  { %v11538_v22 = vpop.f32.mrf.mxu1  ;;  %v11531_v53 = vpop.f32.mrf.mxu0  ;;  %18007 = vst [vmem:[#allocation140_spill] sm:$0xff] %v15913_v5 }
 0x7bb   :  { %v15693_v2 = vpop.f32.mrf.mxu0  ;;  %v15695_v23 = vpop.f32.mrf.mxu1 }
 0x7bc   :  { %17976 = vst [vmem:[#allocation111_spill] sm:$0xff] %v15693_v2  ;;  %17977 = vst [vmem:[#allocation112_spill] sm:$0xff] %v15695_v23 }
 0x7bd   :  { %v11532_v39 = vpop.f32.mrf.mxu0  ;;  %v11549_v55 = vpop.f32.mrf.mxu1 }
 0x7bf   :  { %v15699_v49 = vpop.f32.mrf.mxu0  ;;  %v15701_v37 = vpop.f32.mrf.mxu1 }
 0x7c0   :  { %17978 = vst [vmem:[#allocation113_spill] sm:$0xff] %v15699_v49  ;;  %17979 = vst [vmem:[#allocation114_spill] sm:$0xff] %v15701_v37 }
 0x7c1   :  { %v11543_v52 = vpop.f32.mrf.mxu0  ;;  %v11550_v62 = vpop.f32.mrf.mxu1 }
 0x7c3   :  { %v15705_v21 = vpop.f32.mrf.mxu0  ;;  %v15707_v60 = vpop.f32.mrf.mxu1 }
 0x7c4   :  { %17980 = vst [vmem:[#allocation115_spill] sm:$0xff] %v15705_v21  ;;  %17981 = vst [vmem:[#allocation116_spill] sm:$0xff] %v15707_v60 }
 0x7c5   :  { %v11544_v54 = vpop.f32.mrf.mxu0  ;;  %v11561_v8 = vpop.f32.mrf.mxu1 }
 0x7c7   :  { %v15711_v28 = vpop.f32.mrf.mxu0  ;;  %v15713_v15 = vpop.f32.mrf.mxu1 }
 0x7c8   :  { %17982 = vst [vmem:[#allocation119_spill] sm:$0xff] %v15711_v28  ;;  %17983 = vst [vmem:[#allocation117_spill] sm:$0xff] %v15713_v15 }
 0x7c9   :  { %v11555_v40 = vpop.f32.mrf.mxu0  ;;  %v11562_v29 = vpop.f32.mrf.mxu1 }
 0x7cb   :  { %v15717_v26 = vpop.f32.mrf.mxu0  ;;  %v15719_v16 = vpop.f32.mrf.mxu1 }
 0x7cc   :  { %17984 = vst [vmem:[#allocation118_spill] sm:$0xff] %v15717_v26  ;;  %17985 = vst [vmem:[#allocation120_spill] sm:$0xff] %v15719_v16 }
 0x7cd   :  { %v11556_v46 = vpop.f32.mrf.mxu0  ;;  %v11573_v43 = vpop.f32.mrf.mxu1 }
 0x7cf   :  { %v15723_v9 = vpop.f32.mrf.mxu0  ;;  %v15725_v4 = vpop.f32.mrf.mxu1 }
 0x7d0   :  { %17986 = vst [vmem:[#allocation121_spill] sm:$0xff] %v15723_v9  ;;  %17987 = vst [vmem:[#allocation122_spill] sm:$0xff] %v15725_v4 }
 0x7d1   :  { %v11567_v14 = vpop.f32.mrf.mxu0  ;;  %v11574_v51 = vpop.f32.mrf.mxu1 }
 0x7d3   :  { %v15729_v25 = vpop.f32.mrf.mxu0 }
 0x7d4   :  { %17988 = vst [vmem:[#allocation123_spill] sm:$0xff] %v15729_v25 }
 0x7d5   :  { %v11568_v58 = vpop.f32.mrf.mxu0 }
 0x7d7   :  { %v15733_v56 = vpop.f32.mrf.mxu1  ;;  %v15735_v17 = vpop.f32.mrf.mxu0 }
 0x7d8   :  { %17989 = vst [vmem:[#allocation124_spill] sm:$0xff] %v15733_v56  ;;  %17990 = vst [vmem:[#allocation125_spill] sm:$0xff] %v15735_v17 }
 0x7d9   :  { %v11585_v22 = vpop.f32.mrf.mxu1  ;;  %v11579_v53 = vpop.f32.mrf.mxu0 }
 0x7db   :  { %v15737_v39 = vpop.f32.mrf.mxu1  ;;  %v15739_v55 = vpop.f32.mrf.mxu0 }
 0x7dc   :  { %17991 = vst [vmem:[#allocation126_spill] sm:$0xff] %v15737_v39  ;;  %17992 = vst [vmem:[#allocation127_spill] sm:$0xff] %v15739_v55 }
 0x7dd   :  { %v11586_v54 = vpop.f32.mrf.mxu1  ;;  %v11580_v8 = vpop.f32.mrf.mxu0 }
 0x7df   :  { %v15745_v40 = vpop.f32.mrf.mxu1  ;;  %v15747_v29 = vpop.f32.mrf.mxu0 }
 0x7e0   :  { %17993 = vst [vmem:[#allocation128_spill] sm:$0xff] %v15745_v40  ;;  %17994 = vst [vmem:[#allocation129_spill] sm:$0xff] %v15747_v29 }
 0x7e1   :  { %v11597_v46 = vpop.f32.mrf.mxu1  ;;  %v11591_v43 = vpop.f32.mrf.mxu0 }
 0x7e3   :  { %v15749_v14 = vpop.f32.mrf.mxu1  ;;  %v15751_v51 = vpop.f32.mrf.mxu0 }
 0x7e4   :  { %17995 = vst [vmem:[#allocation130_spill] sm:$0xff] %v15749_v14  ;;  %17996 = vst [vmem:[#allocation131_spill] sm:$0xff] %v15751_v51 }
 0x7e5   :  { %v11598_v53 = vpop.f32.mrf.mxu1  ;;  %v11592_v62 = vpop.f32.mrf.mxu0 }
 0x7e7   :  { %v15757_v54 = vpop.f32.mrf.mxu1  ;;  %v15759_v8 = vpop.f32.mrf.mxu0 }
 0x7e8   :  { %17997 = vst [vmem:[#allocation132_spill] sm:$0xff] %v15757_v54  ;;  %17998 = vst [vmem:[#allocation133_spill] sm:$0xff] %v15759_v8 }
 0x7e9   :  { %v11609_v52 = vpop.f32.mrf.mxu1  ;;  %v11603_v13 = vpop.f32.mrf.mxu0 }
 0x7eb   :  { %v15761_v46 = vpop.f32.mrf.mxu1  ;;  %v15763_v43 = vpop.f32.mrf.mxu0 }
 0x7ec   :  { %17999 = vst [vmem:[#allocation134_spill] sm:$0xff] %v15761_v46  ;;  %18000 = vst [vmem:[#allocation135_spill] sm:$0xff] %v15763_v43 }
 0x7ed   :  { %v11610_v20 = vpop.f32.mrf.mxu1  ;;  %v11604_v22 = vpop.f32.mrf.mxu0 }
 0x7ef   :  { %v15769_v53 = vpop.f32.mrf.mxu1  ;;  %v15771_v62 = vpop.f32.mrf.mxu0 }
 0x7f0   :  { %18001 = vst [vmem:[#allocation136_spill] sm:$0xff] %v15769_v53  ;;  %18002 = vst [vmem:[#allocation137_spill] sm:$0xff] %v15771_v62 }
 0x7f1   :  { %v11621_v18 = vpop.f32.mrf.mxu1  ;;  %v11615_v50 = vpop.f32.mrf.mxu0 }
 0x7f3   :  { %v15773_v52 = vpop.f32.mrf.mxu1  ;;  %v15775_v13 = vpop.f32.mrf.mxu0 }
 0x7f4   :  { %18003 = vst [vmem:[#allocation138_spill] sm:$0xff] %v15773_v52  ;;  %18004 = vst [vmem:[#allocation139_spill] sm:$0xff] %v15775_v13 }
 0x7f5   :  { %v11622_v48 = vpop.f32.mrf.mxu1  ;;  %v11616_v58 = vpop.f32.mrf.mxu0 }
 0x7f7   :  { %v15781_v20 = vpop.f32.mrf.mxu1  ;;  %v15783_v22 = vpop.f32.mrf.mxu0 }
 0x7f8   :  { %v6048_v18 = vsel %vm2169_vm3, %v15781_v20, -inf  ;;  %v6042_v57 = vsel %vm2169_vm3, %v15783_v22, -inf }
 0x7f9   :  { %6049 = vmax.xlane.f32.xlu0 %v6048_v18  ;;  %v11633_v50 = vpop.f32.mrf.mxu1  ;;  %v11627_v19 = vpop.f32.mrf.mxu0 }
 0x7fb   :  { %v15787_v8 = vpop.f32.mrf.mxu1  ;;  %v15789_v43 = vpop.f32.mrf.mxu0 }
 0x7fc   :  { %v6045_v48 = vsel %vm2169_vm3, %v15789_v43, -inf  ;;  %v6051_v19 = vsel %vm2169_vm3, %v15787_v8, -inf }
 0x7fd   :  { %v11634_v27 = vpop.f32.mrf.mxu1  ;;  %6043 = vmax.xlane.f32.xlu0 %v6042_v57  ;;  %6046 = vmax.xlane.f32.xlu1 %v6045_v48  ;;  %v11628_v58 = vpop.f32.mrf.mxu0 }
 0x7ff   :  { %v15795_v62 = vpop.f32.mrf.mxu1  ;;  %v15797_v13 = vpop.f32.mrf.mxu0 }
 0x800   :  { %v6060_v57 = vsel %vm2169_vm3, %v15795_v62, -inf }
 0x801   :  { %v11645_v18 = vpop.f32.mrf.mxu1  ;;  %6052 = vmax.xlane.f32.xlu0 %v6051_v19  ;;  %v11639_v50 = vpop.f32.mrf.mxu0  ;;  %v6054_v19 = vsel %vm2169_vm3, %v15797_v13, -inf }
 0x803   :  { %v15801_v53 = vpop.f32.mrf.mxu1  ;;  %v15803_v52 = vpop.f32.mrf.mxu0 }
 0x804   :  { %v6063_v27 = vsel %vm2169_vm3, %v15801_v53, -inf  ;;  %v6057_v18 = vsel %vm2169_vm3, %v15803_v52, -inf }
 0x805   :  { %v11646_v48 = vpop.f32.mrf.mxu1  ;;  %6061 = vmax.xlane.f32.xlu0 %v6060_v57  ;;  %6064 = vmax.xlane.f32.xlu1 %v6063_v27  ;;  %v11640_v58 = vpop.f32.mrf.mxu0 }
 0x807   :  { %v15809_v54 = vpop.f32.mrf.mxu1  ;;  %v15811_v46 = vpop.f32.mrf.mxu0 }
 0x808   :  { %v6072_v57 = vsel %vm2169_vm3, %v15809_v54, -inf }
 0x809   :  { %v11657_v50 = vpop.f32.mrf.mxu1  ;;  %6055 = vmax.xlane.f32.xlu0 %v6054_v19  ;;  %6058 = vmax.xlane.f32.xlu1 %v6057_v18  ;;  %v11651_v29 = vpop.f32.mrf.mxu0 }
 0x80a   :  { %v6066_v29 = vsel %vm2169_vm3, %v15811_v46, -inf }
 0x80b   :  { %v15817_v51 = vpop.f32.mrf.mxu1  ;;  %v15819_v48 = vpop.f32.mrf.mxu0 }
 0x80c   :  { %v6075_v27 = vsel %vm2169_vm3, %v15817_v51, -inf  ;;  %v6069_v19 = vsel %vm2169_vm3, %v15819_v48, -inf }
 0x80d   :  { %v11658_v58 = vpop.f32.mrf.mxu1  ;;  %6073 = vmax.xlane.f32.xlu0 %v6072_v57  ;;  %6076 = vmax.xlane.f32.xlu1 %v6075_v27  ;;  %v11652_v40 = vpop.f32.mrf.mxu0 }
 0x80f   :  { %v15825_v14 = vpop.f32.mrf.mxu1  ;;  %v15827_v50 = vpop.f32.mrf.mxu0 }
 0x810   :  { %v6084_v40 = vsel %vm2169_vm3, %v15825_v14, -inf }
 0x811   :  { %v11669_v18 = vpop.f32.mrf.mxu1  ;;  %6067 = vmax.xlane.f32.xlu0 %v6066_v29  ;;  %6070 = vmax.xlane.f32.xlu1 %v6069_v19  ;;  %v11663_v17 = vpop.f32.mrf.mxu0 }
 0x812   :  { %v6078_v17 = vsel %vm2169_vm3, %v15827_v50, -inf }
 0x813   :  { %v15833_v55 = vpop.f32.mrf.mxu1  ;;  %v15835_v58 = vpop.f32.mrf.mxu0 }
 0x814   :  { %v6087_v57 = vsel %vm2169_vm3, %v15833_v55, -inf  ;;  %v6081_v29 = vsel %vm2169_vm3, %v15835_v58, -inf }
 0x815   :  { %v11670_v27 = vpop.f32.mrf.mxu1  ;;  %6085 = vmax.xlane.f32.xlu0 %v6084_v40  ;;  %6088 = vmax.xlane.f32.xlu1 %v6087_v57  ;;  %v11664_v56 = vpop.f32.mrf.mxu0 }
 0x817   :  { %v15841_v39 = vpop.f32.mrf.mxu1  ;;  %v15843_v18 = vpop.f32.mrf.mxu0 }
 0x818   :  { %v6096_v56 = vsel %vm2169_vm3, %v15841_v39, -inf }
 0x819   :  { %v11681_v19 = vpop.f32.mrf.mxu1  ;;  %6079 = vmax.xlane.f32.xlu0 %v6078_v17  ;;  %6082 = vmax.xlane.f32.xlu1 %v6081_v29  ;;  %v11675_v9 = vpop.f32.mrf.mxu0 }
 0x81a   :  { %v6090_v9 = vsel %vm2169_vm3, %v15843_v18, -inf }
 0x81b   :  { %v15849_v25 = vpop.f32.mrf.mxu1  ;;  %v15851_v27 = vpop.f32.mrf.mxu0 }
 0x81c   :  { %v6099_v40 = vsel %vm2169_vm3, %v15849_v25, -inf  ;;  %v6093_v17 = vsel %vm2169_vm3, %v15851_v27, -inf }
 0x81d   :  { %v11682_v57 = vpop.f32.mrf.mxu1  ;;  %6097 = vmax.xlane.f32.xlu0 %v6096_v56  ;;  %6100 = vmax.xlane.f32.xlu1 %v6099_v40  ;;  %v11676_v16 = vpop.f32.mrf.mxu0 }
 0x81f   :  { %v15857_v4 = vpop.f32.mrf.mxu1  ;;  %v15859_v19 = vpop.f32.mrf.mxu0 }
 0x820   :  { %v6108_v16 = vsel %vm2169_vm3, %v15857_v4, -inf }
 0x821   :  { %v11693_v29 = vpop.f32.mrf.mxu1  ;;  %6091 = vmax.xlane.f32.xlu0 %v6090_v9  ;;  %6094 = vmax.xlane.f32.xlu1 %v6093_v17  ;;  %v11687_v28 = vpop.f32.mrf.mxu0 }
 0x822   :  { %v6102_v28 = vsel %vm2169_vm3, %v15859_v19, -inf }
 0x823   :  { %v15865_v26 = vpop.f32.mrf.mxu1  ;;  %v15867_v57 = vpop.f32.mrf.mxu0 }
 0x824   :  { %v6111_v56 = vsel %vm2169_vm3, %v15865_v26, -inf  ;;  %v6105_v9 = vsel %vm2169_vm3, %v15867_v57, -inf }
 0x825   :  { %v11694_v40 = vpop.f32.mrf.mxu1  ;;  %6109 = vmax.xlane.f32.xlu0 %v6108_v16  ;;  %6112 = vmax.xlane.f32.xlu1 %v6111_v56  ;;  %v11688_v60 = vpop.f32.mrf.mxu0 }
 0x827   :  { %v15873_v15 = vpop.f32.mrf.mxu1  ;;  %v15875_v29 = vpop.f32.mrf.mxu0 }
 0x828   :  { %v6120_v60 = vsel %vm2169_vm3, %v15873_v15, -inf }
 0x829   :  { %v11705_v17 = vpop.f32.mrf.mxu1  ;;  %6103 = vmax.xlane.f32.xlu0 %v6102_v28  ;;  %6106 = vmax.xlane.f32.xlu1 %v6105_v9  ;;  %v11699_v49 = vpop.f32.mrf.mxu0 }
 0x82a   :  { %v6114_v49 = vsel %vm2169_vm3, %v15875_v29, -inf }
 0x82b   :  { %v15881_v21 = vpop.f32.mrf.mxu1  ;;  %v15883_v40 = vpop.f32.mrf.mxu0 }
 0x82c   :  { %v6123_v16 = vsel %vm2169_vm3, %v15881_v21, -inf  ;;  %v6117_v28 = vsel %vm2169_vm3, %v15883_v40, -inf }
 0x82d   :  { %v11706_v56 = vpop.f32.mrf.mxu1  ;;  %6121 = vmax.xlane.f32.xlu0 %v6120_v60  ;;  %6124 = vmax.xlane.f32.xlu1 %v6123_v16  ;;  %v11700_v23 = vpop.f32.mrf.mxu0 }
 0x82f   :  { %v15889_v37 = vpop.f32.mrf.mxu1  ;;  %v15891_v17 = vpop.f32.mrf.mxu0 }
 0x830   :  { %v6132_v23 = vsel %vm2169_vm3, %v15889_v37, -inf }
 0x831   :  { %v11717_v9 = vpop.f32.mrf.mxu1  ;;  %6115 = vmax.xlane.f32.xlu0 %v6114_v49  ;;  %6118 = vmax.xlane.f32.xlu1 %v6117_v28  ;;  %v11711_v32 = vpop.f32.mrf.mxu0  ;;  %v18005_v49 = vld [vmem:[#allocation24_spill] sm:$0xff] }
 0x832   :  { %v6126_v9 = vsel %vm2169_vm3, %v15891_v17, -inf  ;;  %v18006_v28 = vld [vmem:[#allocation84_spill] sm:$0xff] }
 0x833   :  { %v15897_v2 = vpop.f32.mrf.mxu1  ;;  %v15899_v56 = vpop.f32.mrf.mxu0 }
 0x834   :  { %v6135_v60 = vsel %vm2169_vm3, %v15897_v2, -inf  ;;  %v6129_v32 = vsel %vm2169_vm3, %v15899_v56, -inf }
 0x835   :  { %v11718_v16 = vpop.f32.mrf.mxu1  ;;  %6133 = vmax.xlane.f32.xlu0 %v6132_v23  ;;  %6136 = vmax.xlane.f32.xlu1 %v6135_v60  ;;  %v11712_v33 = vpop.f32.mrf.mxu0 }
 0x836   :  { %v15915_v16 = vpop.permute.xlu1 %6645  ;;  %v15917_v23 = vpop.permute.xlu0 %6504 }
 0x837   :  { %18008 = vst [vmem:[#allocation141_spill] sm:$0xff] %v15915_v16  ;;  %18009 = vst [vmem:[#allocation142_spill] sm:$0xff] %v15917_v23 }
 0x839   :  { %6127 = vmax.xlane.f32.xlu0 %v6126_v9  ;;  %6130 = vmax.xlane.f32.xlu1 %v6129_v32 }
 0x83a   :  { %v15919_v33 = vpop.permute.xlu1 %6739  ;;  %v15921_v60 = vpop.permute.xlu0 %6598 }
 0x83b   :  { %18010 = vst [vmem:[#allocation143_spill] sm:$0xff] %v15919_v33  ;;  %18011 = vst [vmem:[#allocation144_spill] sm:$0xff] %v15921_v60 }
 0x83e   :  { %v15923_v6 = vpop.permute.xlu1 %6833  ;;  %v15925_v9 = vpop.permute.xlu0 %6692 }
 0x83f   :  { %18012 = vst [vmem:[#allocation145_spill] sm:$0xff] %v15923_v6  ;;  %18013 = vst [vmem:[#allocation146_spill] sm:$0xff] %v15925_v9 }
 0x842   :  { %v15927_v32 = vpop.permute.xlu1 %6880 }
 0x843   :  { %18014 = vst [vmem:[#allocation147_spill] sm:$0xff] %v15927_v32 }
 0x846   :  { %v15931_v10 = vpop.permute.xlu1 %6927 }
 0x847   :  { %18016 = vst [vmem:[#allocation149_spill] sm:$0xff] %v15931_v10 }
 0x84a   :  { %7115 = vrot.lane.b32.xlu1 %v18005_v49, %s13111_s28  ;;  %v15929_v49 = vpop.permute.xlu0 %6786  ;;  %v15935_v16 = vpop.permute.xlu1 %7021 }
 0x84b   :  { %18015 = vst [vmem:[#allocation148_spill] sm:$0xff] %v15929_v49 }
 0x84f   :  { %7068 = vrot.lane.b32.xlu0 %v18006_v28, %s13111_s28  ;;  %v15933_v28 = vpop.permute.xlu0 %6974 }
 0x850   :  { %18017 = vst [vmem:[#allocation150_spill] sm:$0xff] %v15933_v28 }
 0x882   :  { %v6050_v38 = vpop.xlane.xlu0 %6049 }
 0x883   :  { %v6140_v23 = vsub.f32 %v15781_v20, %v6050_v38 }
 0x885   :  { %v6174_v33 = vmul.f32 1.442695, %v6140_v23 }
 0x886   :  { %v6044_v11 = vpop.xlane.xlu0 %6043  ;;  %v6047_v60 = vpop.xlane.xlu1 %6046 }
 0x887   :  { %12717 = vpow2.f32 %v6174_v33  ;;  %v6138_v6 = vsub.f32 %v15783_v22, %v6044_v11  ;;  %v6139_v9 = vsub.f32 %v15789_v43, %v6047_v60 }
 0x889   :  { %v6170_v32 = vmul.f32 1.442695, %v6138_v6  ;;  %v6172_v49 = vmul.f32 1.442695, %v6139_v9 }
 0x88a   :  { %v6053_v3 = vpop.xlane.xlu0 %6052 }
 0x88b   :  { %12719 = vpow2.f32 %v6170_v32  ;;  %v6141_v10 = vsub.f32 %v15787_v8, %v6053_v3 }
 0x88d   :  { %v6176_v28 = vmul.f32 1.442695, %v6141_v10 }
 0x88e   :  { %v6062_v45 = vpop.xlane.xlu0 %6061  ;;  %v6065_v5 = vpop.xlane.xlu1 %6064 }
 0x88f   :  { %12721 = vpow2.f32 %v6176_v28  ;;  %v6144_v38 = vsub.f32 %v15795_v62, %v6062_v45  ;;  %v6145_v20 = vsub.f32 %v15801_v53, %v6065_v5 }
 0x890   :  { %12723 = vpow2.f32 %v6172_v49 }
 0x891   :  { %v6182_v23 = vmul.f32 1.442695, %v6144_v38  ;;  %v6184_v11 = vmul.f32 1.442695, %v6145_v20 }
 0x892   :  { %v6056_v22 = vpop.xlane.xlu0 %6055  ;;  %v6059_v33 = vpop.xlane.xlu1 %6058 }
 0x893   :  { %12725 = vpow2.f32 %v6182_v23  ;;  %v6142_v6 = vsub.f32 %v15797_v13, %v6056_v22  ;;  %v6143_v43 = vsub.f32 %v15803_v52, %v6059_v33 }
 0x894   :  { %v15945_v3 = vpop.eup %12717  ;;  %12727 = vpow2.f32 %v6184_v11 }
 0x895   :  { %v6178_v10 = vmul.f32 1.442695, %v6142_v6  ;;  %v6180_v8 = vmul.f32 1.442695, %v6143_v43  ;;  %v6240_v45 = vsel %vm2169_vm3, %v15945_v3, 0.0 }
 0x896   :  { %v6074_v62 = vpop.xlane.xlu0 %6073  ;;  %v6077_v5 = vpop.xlane.xlu1 %6076  ;;  %6241 = vadd.xlane.f32.xlu0 %v6240_v45 }
 0x897   :  { %12729 = vpow2.f32 %v6178_v10  ;;  %v6148_v53 = vsub.f32 %v15809_v54, %v6074_v62  ;;  %v6149_v49 = vsub.f32 %v15817_v51, %v6077_v5 }
 0x898   :  { %v15951_v28 = vpop.eup %12719  ;;  %12731 = vpow2.f32 %v6180_v8 }
 0x899   :  { %v6190_v52 = vmul.f32 1.442695, %v6148_v53  ;;  %v6192_v13 = vmul.f32 1.442695, %v6149_v49  ;;  %v6234_v60 = vsel %vm2169_vm3, %v15951_v28, 0.0 }
 0x89a   :  { %v6068_v9 = vpop.xlane.xlu0 %6067  ;;  %v6071_v32 = vpop.xlane.xlu1 %6070  ;;  %6235 = vadd.xlane.f32.xlu0 %v6234_v60 }
 0x89b   :  { %12733 = vpow2.f32 %v6190_v52  ;;  %v6146_v38 = vsub.f32 %v15811_v46, %v6068_v9  ;;  %v6147_v20 = vsub.f32 %v15819_v48, %v6071_v32 }
 0x89c   :  { %v15957_v23 = vpop.eup %12721  ;;  %12735 = vpow2.f32 %v6192_v13 }
 0x89d   :  { %v15959_v54 = vpop.eup %12723  ;;  %v6186_v51 = vmul.f32 1.442695, %v6146_v38  ;;  %v6188_v11 = vmul.f32 1.442695, %v6147_v20  ;;  %v6243_v22 = vsel %vm2169_vm3, %v15957_v23, 0.0 }
 0x89e   :  { %v6086_v33 = vpop.xlane.xlu0 %6085  ;;  %v6089_v6 = vpop.xlane.xlu1 %6088  ;;  %6244 = vadd.xlane.f32.xlu1 %v6243_v22  ;;  %v6237_v48 = vsel %vm2169_vm3, %v15959_v54, 0.0 }
 0x89f   :  { %12737 = vpow2.f32 %v6186_v51  ;;  %v6152_v43 = vsub.f32 %v15825_v14, %v6086_v33  ;;  %v6153_v46 = vsub.f32 %v15833_v55, %v6089_v6 }
 0x8a0   :  { %v15965_v10 = vpop.eup %12725  ;;  %12739 = vpow2.f32 %v6188_v11 }
 0x8a1   :  { %v15969_v8 = vpop.eup %12727  ;;  %v6198_v45 = vmul.f32 1.442695, %v6152_v43  ;;  %v6200_v62 = vmul.f32 1.442695, %v6153_v46  ;;  %v6252_v5 = vsel %vm2169_vm3, %v15965_v10, 0.0 }
 0x8a2   :  { %v6080_v53 = vpop.xlane.xlu0 %6079  ;;  %v6083_v49 = vpop.xlane.xlu1 %6082  ;;  %6253 = vadd.xlane.f32.xlu0 %v6252_v5  ;;  %6238 = vadd.xlane.f32.xlu1 %v6237_v48  ;;  %v6255_v13 = vsel %vm2169_vm3, %v15969_v8, 0.0 }
 0x8a3   :  { %12741 = vpow2.f32 %v6198_v45  ;;  %v6150_v55 = vsub.f32 %v15827_v50, %v6080_v53  ;;  %v6151_v14 = vsub.f32 %v15835_v58, %v6083_v49 }
 0x8a4   :  { %v15975_v52 = vpop.eup %12729  ;;  %12743 = vpow2.f32 %v6200_v62 }
 0x8a5   :  { %v6194_v60 = vmul.f32 1.442695, %v6150_v55  ;;  %v6196_v9 = vmul.f32 1.442695, %v6151_v14  ;;  %v6246_v32 = vsel %vm2169_vm3, %v15975_v52, 0.0  ;;  %v15981_v38 = vpop.eup %12731 }
 0x8a6   :  { %v6098_v20 = vpop.xlane.xlu0 %6097  ;;  %v6101_v51 = vpop.xlane.xlu1 %6100  ;;  %6247 = vadd.xlane.f32.xlu0 %v6246_v32  ;;  %6256 = vadd.xlane.f32.xlu1 %v6255_v13  ;;  %v6249_v6 = vsel %vm2169_vm3, %v15981_v38, 0.0 }
 0x8a7   :  { %12745 = vpow2.f32 %v6194_v60  ;;  %v6156_v50 = vsub.f32 %v15841_v39, %v6098_v20  ;;  %v6157_v11 = vsub.f32 %v15849_v25, %v6101_v51 }
 0x8a8   :  { %v15984_v58 = vpop.eup %12733  ;;  %12747 = vpow2.f32 %v6196_v9 }
 0x8a9   :  { %v6206_v22 = vmul.f32 1.442695, %v6156_v50  ;;  %v6264_v33 = vsel %vm2169_vm3, %v15984_v58, 0.0  ;;  %v15991_v43 = vpop.eup %12735  ;;  %v6208_v62 = vmul.f32 1.442695, %v6157_v11 }
 0x8aa   :  { %v6092_v46 = vpop.xlane.xlu0 %6091  ;;  %v6095_v48 = vpop.xlane.xlu1 %6094  ;;  %6265 = vadd.xlane.f32.xlu0 %v6264_v33  ;;  %6250 = vadd.xlane.f32.xlu1 %v6249_v6  ;;  %v6267_v55 = vsel %vm2169_vm3, %v15991_v43, 0.0 }
 0x8ab   :  { %12749 = vpow2.f32 %v6206_v22  ;;  %v6154_v39 = vsub.f32 %v15843_v18, %v6092_v46  ;;  %v6155_v45 = vsub.f32 %v15851_v27, %v6095_v48 }
 0x8ac   :  { %v15995_v25 = vpop.eup %12737 }
 0x8ad   :  { %v6202_v5 = vmul.f32 1.442695, %v6154_v39  ;;  %v6204_v53 = vmul.f32 1.442695, %v6155_v45  ;;  %v6258_v49 = vsel %vm2169_vm3, %v15995_v25, 0.0  ;;  %v16001_v14 = vpop.eup %12739 }
 0x8ae   :  { %v6110_v13 = vpop.xlane.xlu0 %6109  ;;  %v6113_v60 = vpop.xlane.xlu1 %6112  ;;  %6259 = vadd.xlane.f32.xlu0 %v6258_v49  ;;  %6268 = vadd.xlane.f32.xlu1 %v6267_v55  ;;  %v6261_v51 = vsel %vm2169_vm3, %v16001_v14, 0.0 }
 0x8af   :  { %12751 = vpow2.f32 %v6202_v5  ;;  %v6160_v18 = vsub.f32 %v15857_v4, %v6110_v13  ;;  %v6161_v9 = vsub.f32 %v15865_v26, %v6113_v60 }
 0x8b0   :  { %v16004_v27 = vpop.eup %12741  ;;  %12753 = vpow2.f32 %v6204_v53 }
 0x8b1   :  { %12755 = vpow2.f32 %v6208_v62  ;;  %v6214_v32 = vmul.f32 1.442695, %v6160_v18  ;;  %v6276_v20 = vsel %vm2169_vm3, %v16004_v27, 0.0  ;;  %v16011_v50 = vpop.eup %12743  ;;  %v6216_v6 = vmul.f32 1.442695, %v6161_v9 }
 0x8b2   :  { %v6104_v11 = vpop.xlane.xlu0 %6103  ;;  %v6107_v22 = vpop.xlane.xlu1 %6106  ;;  %6277 = vadd.xlane.f32.xlu0 %v6276_v20  ;;  %6262 = vadd.xlane.f32.xlu1 %v6261_v51  ;;  %v6279_v45 = vsel %vm2169_vm3, %v16011_v50, 0.0 }
 0x8b3   :  { %12757 = vpow2.f32 %v6214_v32  ;;  %v6158_v4 = vsub.f32 %v15859_v19, %v6104_v11  ;;  %v6159_v33 = vsub.f32 %v15867_v57, %v6107_v22 }
 0x8b4   :  { %v16015_v26 = vpop.eup %12745 }
 0x8b5   :  { %v6210_v46 = vmul.f32 1.442695, %v6158_v4  ;;  %v6212_v48 = vmul.f32 1.442695, %v6159_v33  ;;  %v6270_v39 = vsel %vm2169_vm3, %v16015_v26, 0.0  ;;  %v16021_v62 = vpop.eup %12747 }
 0x8b6   :  { %v6122_v5 = vpop.xlane.xlu0 %6121  ;;  %v6125_v53 = vpop.xlane.xlu1 %6124  ;;  %6271 = vadd.xlane.f32.xlu0 %v6270_v39  ;;  %6280 = vadd.xlane.f32.xlu1 %v6279_v45  ;;  %v6273_v60 = vsel %vm2169_vm3, %v16021_v62, 0.0 }
 0x8b7   :  { %12759 = vpow2.f32 %v6210_v46  ;;  %v6164_v19 = vsub.f32 %v15873_v15, %v6122_v5  ;;  %v6165_v49 = vsub.f32 %v15881_v21, %v6125_v53 }
 0x8b8   :  { %v16024_v57 = vpop.eup %12749  ;;  %12761 = vpow2.f32 %v6212_v48 }
 0x8b9   :  { %12763 = vpow2.f32 %v6216_v6  ;;  %v6222_v55 = vmul.f32 1.442695, %v6164_v19  ;;  %v6288_v13 = vsel %vm2169_vm3, %v16024_v57, 0.0  ;;  %v6224_v21 = vmul.f32 1.442695, %v6165_v49 }
 0x8ba   :  { %v6116_v18 = vpop.xlane.xlu0 %6115  ;;  %v6119_v9 = vpop.xlane.xlu1 %6118  ;;  %6289 = vadd.xlane.f32.xlu0 %v6288_v13  ;;  %6274 = vadd.xlane.f32.xlu1 %v6273_v60 }
 0x8bb   :  { %12765 = vpow2.f32 %v6222_v55  ;;  %v6162_v15 = vsub.f32 %v15875_v29, %v6116_v18  ;;  %v6163_v32 = vsub.f32 %v15883_v40, %v6119_v9 }
 0x8bc   :  { %v16033_v20 = vpop.eup %12751 }
 0x8bd   :  { %v16035_v51 = vpop.eup %12753  ;;  %v6218_v11 = vmul.f32 1.442695, %v6162_v15  ;;  %v6220_v22 = vmul.f32 1.442695, %v6163_v32  ;;  %v6282_v4 = vsel %vm2169_vm3, %v16033_v20, 0.0 }
 0x8be   :  { %v16039_v33 = vpop.eup %12755  ;;  %v6134_v6 = vpop.xlane.xlu0 %6133  ;;  %v6285_v48 = vsel %vm2169_vm3, %v16035_v51, 0.0  ;;  %6283 = vadd.xlane.f32.xlu1 %v6282_v4 }
 0x8bf   :  { %v6137_v46 = vpop.xlane.xlu1 %6136  ;;  %12767 = vpow2.f32 %v6218_v11  ;;  %v6168_v29 = vsub.f32 %v15889_v37, %v6134_v6  ;;  %6286 = vadd.xlane.f32.xlu0 %v6285_v48  ;;  %v6291_v53 = vsel %vm2169_vm3, %v16039_v33, 0.0 }
 0x8c0   :  { %v16044_v40 = vpop.eup %12757  ;;  %12769 = vpow2.f32 %v6220_v22  ;;  %v6169_v39 = vsub.f32 %v15897_v2, %v6137_v46 }
 0x8c1   :  { %12771 = vpow2.f32 %v6224_v21  ;;  %v6230_v45 = vmul.f32 1.442695, %v6168_v29  ;;  %v6300_v5 = vsel %vm2169_vm3, %v16044_v40, 0.0 }
 0x8c2   :  { %v6128_v19 = vpop.xlane.xlu0 %6127  ;;  %6292 = vadd.xlane.f32.xlu1 %v6291_v53  ;;  %v6232_v2 = vmul.f32 1.442695, %v6169_v39 }
 0x8c3   :  { %v6131_v49 = vpop.xlane.xlu1 %6130  ;;  %12773 = vpow2.f32 %v6230_v45  ;;  %6301 = vadd.xlane.f32.xlu0 %v6300_v5  ;;  %v6166_v37 = vsub.f32 %v15891_v17, %v6128_v19 }
 0x8c4   :  { %v6167_v55 = vsub.f32 %v15899_v56, %v6131_v49  ;;  %v16053_v13 = vpop.eup %12759 }
 0x8c5   :  { %v16055_v60 = vpop.eup %12761  ;;  %v6226_v18 = vmul.f32 1.442695, %v6166_v37  ;;  %v6294_v15 = vsel %vm2169_vm3, %v16053_v13, 0.0 }
 0x8c6   :  { %v6228_v9 = vmul.f32 1.442695, %v6167_v55  ;;  %v16059_v32 = vpop.eup %12763  ;;  %v6297_v21 = vsel %vm2169_vm3, %v16055_v60, 0.0  ;;  %6295 = vadd.xlane.f32.xlu1 %v6294_v15 }
 0x8c7   :  { %12775 = vpow2.f32 %v6226_v18  ;;  %6298 = vadd.xlane.f32.xlu0 %v6297_v21  ;;  %v6303_v11 = vsel %vm2169_vm3, %v16059_v32, 0.0  ;;  %v18033_v21 = vld [vmem:[#allocation50_spill] sm:$0xff] }
 0x8c8   :  { %v16063_v17 = vpop.eup %12765  ;;  %12777 = vpow2.f32 %v6228_v9  ;;  %v18032_v9 = vld [vmem:[#allocation47_spill] sm:$0xff] }
 0x8c9   :  { %12779 = vpow2.f32 %v6232_v2  ;;  %v6312_v56 = vsel %vm2169_vm3, %v16063_v17, 0.0  ;;  %v18031_v2 = vld [vmem:[#allocation38_spill] sm:$0xff] }
 0x8ca   :  { %6304 = vadd.xlane.f32.xlu1 %v6303_v11  ;;  %v18034_v11 = vld [vmem:[#allocation53_spill] sm:$0xff] }
 0x8cb   :  { %6313 = vadd.xlane.f32.xlu0 %v6312_v56 }
 0x8cc   :  { %v16069_v22 = vpop.eup %12767 }
 0x8cd   :  { %v16071_v4 = vpop.eup %12769  ;;  %v6306_v6 = vsel %vm2169_vm3, %v16069_v22, 0.0 }
 0x8ce   :  { %v16075_v46 = vpop.eup %12771  ;;  %v6309_v48 = vsel %vm2169_vm3, %v16071_v4, 0.0  ;;  %6307 = vadd.xlane.f32.xlu1 %v6306_v6 }
 0x8cf   :  { %6310 = vadd.xlane.f32.xlu0 %v6309_v48  ;;  %v6315_v45 = vsel %vm2169_vm3, %v16075_v46, 0.0  ;;  %v18035_v48 = vld [vmem:[#allocation44_spill] sm:$0xff] }
 0x8d0   :  { %v16079_v29 = vpop.eup %12773 }
 0x8d1   :  { %v6324_v39 = vsel %vm2169_vm3, %v16079_v29, 0.0 }
 0x8d2   :  { %6316 = vadd.xlane.f32.xlu1 %v6315_v45  ;;  %v18036_v45 = vld [vmem:[#allocation56_spill] sm:$0xff] }
 0x8d3   :  { %6325 = vadd.xlane.f32.xlu0 %v6324_v39 }
 0x8d4   :  { %v16085_v5 = vpop.eup %12775 }
 0x8d5   :  { %v16087_v53 = vpop.eup %12777  ;;  %v6318_v19 = vsel %vm2169_vm3, %v16085_v5, 0.0 }
 0x8d6   :  { %v16091_v49 = vpop.eup %12779  ;;  %6319 = vadd.xlane.f32.xlu1 %v6318_v19  ;;  %v6321_v37 = vsel %vm2169_vm3, %v16087_v53, 0.0 }
 0x8d7   :  { %6322 = vadd.xlane.f32.xlu0 %v6321_v37  ;;  %v6327_v55 = vsel %vm2169_vm3, %v16091_v49, 0.0  ;;  %v18037_v37 = vld [vmem:[#allocation57_spill] sm:$0xff] }
 0x8da   :  { %6328 = vadd.xlane.f32.xlu1 %v6327_v55 }
 0x8eb   :  { %7215 = vrot.lane.b32.xlu1 %v14063_v7, %s13112_s29  ;;  %v18020_v7 = vld [vmem:[#allocation31_spill] sm:$0xff] }
 0x8ed   :  { %7164 = vrot.lane.b32.xlu0 %v14068_v30, %s13112_s29  ;;  %v18021_v30 = vld [vmem:[#allocation85_spill] sm:$0xff] }
 0x8ef   :  { %7266 = vrot.lane.b32.xlu1 %v14092_v24, %s13112_s29  ;;  %v18023_v24 = vld [vmem:[#allocation26_spill] sm:$0xff] }
 0x8f1   :  { %7162 = vrot.lane.b32.xlu0 %v14107_v35, %s13112_s29  ;;  %v18025_v35 = vld [vmem:[#allocation34_spill] sm:$0xff] }
 0x8f3   :  { %7317 = vrot.lane.b32.xlu1 %v14085_v44, %s13112_s29  ;;  %v18022_v44 = vld [vmem:[#allocation29_spill] sm:$0xff] }
 0x8f5   :  { %7213 = vrot.lane.b32.xlu0 %v14102_v47, %s13112_s29  ;;  %v18024_v47 = vld [vmem:[#allocation37_spill] sm:$0xff] }
 0x8f7   :  { %7368 = vrot.lane.b32.xlu1 %v17858_v12, %s13112_s29  ;;  %v18028_v12 = vld [vmem:[#allocation43_spill] sm:$0xff] }
 0x8f9   :  { %7264 = vrot.lane.b32.xlu0 %v14026_v63, %s13112_s29  ;;  %v18019_v63 = vld [vmem:[#allocation21_spill] sm:$0xff] }
 0x8fb   :  { %7419 = vrot.lane.b32.xlu1 %v17860_v1, %s13112_s29  ;;  %v18029_v1 = vld [vmem:[#allocation40_spill] sm:$0xff] }
 0x8fd   :  { %7315 = vrot.lane.b32.xlu0 %v14024_v42, %s13112_s29  ;;  %v18018_v42 = vld [vmem:[#allocation19_spill] sm:$0xff] }
 0x8ff   :  { %7470 = vrot.lane.b32.xlu1 %v17862_v41, %s13112_s29  ;;  %v16155_v41 = vpop.permute.xlu1 %7115 }
 0x901   :  { %7366 = vrot.lane.b32.xlu0 %v14193_v0, %s13112_s29  ;;  %v16147_v0 = vpop.permute.xlu0 %7068 }
 0x903   :  { %7521 = vrot.lane.b32.xlu1 %v17864_v59, %s13112_s29  ;;  %v18030_v59 = vld [vmem:[#allocation41_spill] sm:$0xff] }
 0x905   :  { %7417 = vrot.lane.b32.xlu0 %v14177_v31, %s13112_s29  ;;  %v18026_v31 = vld [vmem:[#allocation35_spill] sm:$0xff] }
 0x907   :  { %7572 = vrot.lane.b32.xlu1 %v17866_v34, %s13112_s29 }
 0x909   :  { %7468 = vrot.lane.b32.xlu0 %v14284_v61, %s13112_s29  ;;  %v18027_v61 = vld [vmem:[#allocation32_spill] sm:$0xff] }
 0x90b   :  { %7623 = vrot.lane.b32.xlu1 %v18018_v42, %s13112_s29 }
 0x90d   :  { %7519 = vrot.lane.b32.xlu0 %v18019_v63, %s13112_s29  ;;  %v18038_v63 = vld [vmem:[#allocation58_spill] sm:$0xff] }
 0x90f   :  { %7674 = vrot.lane.b32.xlu1 %v18020_v7, %s13112_s29 }
 0x911   :  { %7570 = vrot.lane.b32.xlu0 %v18021_v30, %s13112_s29 }
 0x913   :  { %7725 = vrot.lane.b32.xlu1 %v18022_v44, %s13112_s29  ;;  %v18039_v44 = vld [vmem:[#allocation59_spill] sm:$0xff] }
 0x915   :  { %7621 = vrot.lane.b32.xlu0 %v18023_v24, %s13112_s29 }
 0x917   :  { %7776 = vrot.lane.b32.xlu1 %v18024_v47, %s13112_s29 }
 0x919   :  { %7672 = vrot.lane.b32.xlu0 %v18025_v35, %s13112_s29 }
 0x91b   :  { %7827 = vrot.lane.b32.xlu1 %v18026_v31, %s13112_s29 }
 0x91d   :  { %7723 = vrot.lane.b32.xlu0 %v18027_v61, %s13112_s29 }
 0x91f   :  { %7878 = vrot.lane.b32.xlu1 %v18028_v12, %s13112_s29  ;;  %v6242_v34 = vpop.xlane.xlu0 %6241 }
 0x920   :  { %12781 = vrcp.f32 %v6242_v34  ;;  %v18040_v34 = vld [vmem:[#allocation61_spill] sm:$0xff] }
 0x921   :  { %7774 = vrot.lane.b32.xlu0 %v18029_v1, %s13112_s29 }
 0x923   :  { %7929 = vrot.lane.b32.xlu1 %v18030_v59, %s13112_s29  ;;  %v6236_v18 = vpop.xlane.xlu0 %6235 }
 0x925   :  { %7825 = vrot.lane.b32.xlu0 %v18031_v2, %s13112_s29 }
 0x927   :  { %7927 = vrot.lane.b32.xlu1 %v18032_v9, %s13112_s29  ;;  %v6245_v15 = vpop.xlane.xlu1 %6244 }
 0x928   :  { %12783 = vrcp.f32 %v6245_v15  ;;  %v18043_v15 = vmov 0.0  }
 0x929   :  { %7876 = vrot.lane.b32.xlu0 %v18033_v21, %s13112_s29  ;;  %12785 = vrcp.f32 %v6236_v18  ;;  %v18044_v21 = vld [vmem:[#allocation69_spill] sm:$0xff] }
 0x92b   :  { %v6254_v56 = vpop.xlane.xlu0 %6253  ;;  %8393 = vrot.lane.b32.xlu1 %v18034_v11, %s13112_s29  ;;  %v6239_v6 = vpop.xlane.xlu1 %6238 }
 0x92c   :  { %12787 = vrcp.f32 %v6239_v6 }
 0x92d   :  { %8346 = vrot.lane.b32.xlu0 %v18035_v48, %s13112_s29  ;;  %12789 = vrcp.f32 %v6254_v56  ;;  %v12782_v55 = vpop.eup %12781  ;;  %v18045_v48 = vld [vmem:[#allocation76_spill] sm:$0xff] }
 0x92e   :  { %v6364_v24 = vmul.f32 %v12782_v55, %v15945_v3 }
 0x92f   :  { %v6248_v39 = vpop.xlane.xlu0 %6247  ;;  %8487 = vrot.lane.b32.xlu1 %v18036_v45, %s13112_s29  ;;  %v6257_v19 = vpop.xlane.xlu1 %6256 }
 0x930   :  { %12791 = vrcp.f32 %v6257_v19  ;;  %v18046_v19 = vld [vmem:[#allocation142_spill] sm:$0xff] }
 0x931   :  { %8440 = vrot.lane.b32.xlu0 %v18037_v37, %s13112_s29  ;;  %12793 = vrcp.f32 %v6248_v39 }
 0x933   :  { %v6266_v42 = vpop.xlane.xlu0 %6265  ;;  %8581 = vrot.lane.b32.xlu1 %v18038_v63, %s13112_s29  ;;  %v6251_v7 = vpop.xlane.xlu1 %6250  ;;  %v18047_v63 = vld [vmem:[#allocation73_spill] sm:$0xff] }
 0x934   :  { %12795 = vrcp.f32 %v6251_v7 }
 0x935   :  { %v12784_v30 = vpop.eup %12783  ;;  %8534 = vrot.lane.b32.xlu0 %v18039_v44, %s13112_s29  ;;  %12797 = vrcp.f32 %v6266_v42  ;;  %v18048_v44 = vld [vmem:[#allocation141_spill] sm:$0xff] }
 0x936   :  { %v6365_v47 = vmul.f32 %v12784_v30, %v15957_v23  ;;  %v12786_v61 = vpop.eup %12785  ;;  %v18041_v23 = vld [vmem:[#allocation140_spill] sm:$0xff] }
 0x937   :  { %v6260_v35 = vpop.xlane.xlu0 %6259  ;;  %8675 = vrot.lane.b32.xlu1 %v17953_v36, %s13112_s29  ;;  %v6269_v31 = vpop.xlane.xlu1 %6268  ;;  %v6362_v59 = vmul.f32 %v12786_v61, %v15951_v28  ;;  %v18042_v36 = vld [vmem:[#allocation66_spill] sm:$0xff]  ;;  %v18049_v61 = vld [vmem:[#allocation144_spill] sm:$0xff] }
 0x938   :  { %v6395_v12 = vpack.c.bf16 %v6365_v47, %v6364_v24  ;;  %12799 = vrcp.f32 %v6269_v31 }
 0x939   :  { %8628 = vrot.lane.b32.xlu0 %v18040_v34, %s13112_s29  ;;  %v12788_v1 = vpop.eup %12787  ;;  %12801 = vrcp.f32 %v6260_v35 }
 0x93a   :  { %11728 = vmatmul.mubr.msk.bf16.vlgmr.msra.gmra.mxu1 %vm2169_vm3, %v6395_v12  ;;  %v6363_v3 = vmul.f32 %v12788_v1, %v15959_v54  ;;  %v12790_v9 = vpop.eup %12789 }
 0x93b   :  { %11738 = vmatpush3.bf16.msra.mxu1 %v18041_v23  ;;  %v6278_v2 = vpop.xlane.xlu0 %6277  ;;  %8769 = vrot.lane.b32.xlu1 %v18042_v36, %s13112_s29  ;;  %v6263_v18 = vpop.xlane.xlu1 %6262  ;;  %v6368_v56 = vmul.f32 %v12790_v9, %v15965_v10  ;;  %v18050_v23 = vld [vmem:[#allocation143_spill] sm:$0xff] }
 0x93c   :  { %11739 = vmatprep.mubr.msk.bf16.mxu1 %vm13109_vm1, %v18043_v15  ;;  %11749 = vmatprep.subr.bf16.mxu1 %v18043_v15  ;;  %12803 = vrcp.f32 %v6263_v18  ;;  %v6394_v28 = vpack.c.bf16 %v6363_v3, %v6362_v59 }
 0x93d   :  { %8722 = vrot.lane.b32.xlu0 %v18044_v21, %s13112_s29  ;;  %v12792_v54 = vpop.eup %12791  ;;  %12805 = vrcp.f32 %v6278_v2 }
 0x93e   :  { %v6369_v11 = vmul.f32 %v12792_v54, %v15969_v8  ;;  %11722 = vmatmul.mubr.msk.bf16.vlgmr.msra.gmra.mxu0 %vm2169_vm3, %v6394_v28  ;;  %v12794_v45 = vpop.eup %12793  ;;  %v18051_v28 = vld [vmem:[#allocation146_spill] sm:$0xff] }
 0x93f   :  { %v6272_v6 = vpop.xlane.xlu0 %6271  ;;  %8816 = vrot.lane.b32.xlu1 %v18045_v48, %s13112_s29  ;;  %v6281_v39 = vpop.xlane.xlu1 %6280  ;;  %11732 = vmatpush3.bf16.msra.mxu0 %v18046_v19  ;;  %v6366_v8 = vmul.f32 %v12794_v45, %v15975_v52  ;;  %v18052_v48 = vld [vmem:[#allocation145_spill] sm:$0xff] }
 0x940   :  { %11733 = vmatprep.mubr.msk.bf16.mxu0 %vm13109_vm1, %v18043_v15  ;;  %12807 = vrcp.f32 %v6281_v39  ;;  %v6397_v37 = vpack.c.bf16 %v6369_v11, %v6368_v56  ;;  %11743 = vmatprep.subr.bf16.mxu0 %v18043_v15 }
 0x941   :  { %v12796_v10 = vpop.eup %12795  ;;  %12809 = vrcp.f32 %v6272_v6 }
 0x942   :  { %v6367_v55 = vmul.f32 %v12796_v10, %v15981_v38  ;;  %11740 = vmatmul.mubr.msk.bf16.vlgmr.msra.gmra.mxu1 %vm2169_vm3, %v6397_v37  ;;  %v12798_v30 = vpop.eup %12797 }
 0x943   :  { %v6290_v42 = vpop.xlane.xlu0 %6289  ;;  %8863 = vrot.lane.b32.xlu1 %v18047_v63, %s13112_s29  ;;  %v6275_v7 = vpop.xlane.xlu1 %6274  ;;  %11750 = vmatpush3.bf16.msra.mxu1 %v18048_v44  ;;  %v6372_v38 = vmul.f32 %v12798_v30, %v15984_v58 }
 0x944   :  { %11751 = vmatprep.mubr.msk.bf16.mxu1 %vm13109_vm1, %v18043_v15  ;;  %12811 = vrcp.f32 %v6275_v7  ;;  %v6396_v24 = vpack.c.bf16 %v6367_v55, %v6366_v8  ;;  %11761 = vmatprep.subr.bf16.mxu1 %v18043_v15 }
 0x945   :  { %v12800_v52 = vpop.eup %12799 }
 0x946   :  { %v6373_v47 = vmul.f32 %v12800_v52, %v15991_v43  ;;  %11734 = vmatmul.mubr.msk.bf16.vlgmr.msra.gmra.mxu0 %vm2169_vm3, %v6396_v24  ;;  %v12802_v31 = vpop.eup %12801 }
 0x947   :  { %v6284_v35 = vpop.xlane.xlu1 %6283  ;;  %11744 = vmatpush3.bf16.msra.mxu0 %v18049_v61  ;;  %11745 = vmatprep.mubr.msk.bf16.mxu0 %vm13109_vm1, %v18043_v15  ;;  %v6370_v58 = vmul.f32 %v12802_v31, %v15995_v25  ;;  %v18055_v61 = vld [vmem:[#allocation147_spill] sm:$0xff] }
 0x948   :  { %v6287_v12 = vpop.xlane.xlu0 %6286  ;;  %12813 = vrcp.f32 %v6284_v35  ;;  %v6399_v34 = vpack.c.bf16 %v6373_v47, %v6372_v38  ;;  %11755 = vmatprep.subr.bf16.mxu0 %v18043_v15 }
 0x949   :  { %12815 = vrcp.f32 %v6287_v12  ;;  %v12804_v1 = vpop.eup %12803 }
 0x94a   :  { %12817 = vrcp.f32 %v6290_v42  ;;  %v6371_v43 = vmul.f32 %v12804_v1, %v16001_v14  ;;  %11752 = vmatmul.mubr.msk.bf16.vlgmr.msra.gmra.mxu1 %vm2169_vm3, %v6399_v34  ;;  %v12806_v3 = vpop.eup %12805 }
 0x94b   :  { %v6293_v59 = vpop.xlane.xlu1 %6292  ;;  %11762 = vmatpush3.bf16.msra.mxu1 %v18050_v23  ;;  %11763 = vmatprep.mubr.msk.bf16.mxu1 %vm13109_vm1, %v18043_v15  ;;  %v6376_v9 = vmul.f32 %v12806_v3, %v16004_v27 }
 0x94c   :  { %v6302_v2 = vpop.xlane.xlu0 %6301  ;;  %12819 = vrcp.f32 %v6293_v59  ;;  %v6398_v36 = vpack.c.bf16 %v6371_v43, %v6370_v58  ;;  %11773 = vmatprep.subr.bf16.mxu1 %v18043_v15 }
 0x94d   :  { %v12808_v18 = vpop.eup %12807 }
 0x94e   :  { %v6377_v25 = vmul.f32 %v12808_v18, %v16011_v50  ;;  %11746 = vmatmul.mubr.msk.bf16.vlgmr.msra.gmra.mxu0 %vm2169_vm3, %v6398_v36  ;;  %v12810_v21 = vpop.eup %12809  ;;  %v18056_v36 = vld [vmem:[#allocation150_spill] sm:$0xff] }
 0x94f   :  { %v6296_v14 = vpop.xlane.xlu1 %6295  ;;  %11756 = vmatpush3.bf16.msra.mxu0 %v18051_v28  ;;  %11757 = vmatprep.mubr.msk.bf16.mxu0 %vm13109_vm1, %v18043_v15  ;;  %v6374_v27 = vmul.f32 %v12810_v21, %v16015_v26 }
 0x950   :  { %v6299_v54 = vpop.xlane.xlu0 %6298  ;;  %12821 = vrcp.f32 %v6296_v14  ;;  %v6401_v56 = vpack.c.bf16 %v6377_v25, %v6376_v9  ;;  %11767 = vmatprep.subr.bf16.mxu0 %v18043_v15 }
 0x951   :  { %12823 = vrcp.f32 %v6299_v54  ;;  %v12812_v11 = vpop.eup %12811 }
 0x952   :  { %12825 = vrcp.f32 %v6302_v2  ;;  %v6375_v50 = vmul.f32 %v12812_v11, %v16021_v62  ;;  %11764 = vmatmul.mubr.msk.bf16.vlgmr.msra.gmra.mxu1 %vm2169_vm3, %v6401_v56  ;;  %v18053_v62 = vld [vmem:[#allocation148_spill] sm:$0xff] }
 0x953   :  { %v6305_v6 = vpop.xlane.xlu1 %6304  ;;  %11774 = vmatpush3.bf16.msra.mxu1 %v18052_v48  ;;  %11775 = vmatprep.mubr.msk.bf16.mxu1 %vm13109_vm1, %v18043_v15 }
 0x954   :  { %v6314_v39 = vpop.xlane.xlu0 %6313  ;;  %12827 = vrcp.f32 %v6305_v6  ;;  %v6400_v19 = vpack.c.bf16 %v6375_v50, %v6374_v27  ;;  %11785 = vmatprep.subr.bf16.mxu1 %v18043_v15 }
 0x955   :  { %v12814_v45 = vpop.eup %12813 }
 0x956   :  { %v12816_v37 = vpop.eup %12815  ;;  %11758 = vmatmul.mubr.msk.bf16.vlgmr.msra.gmra.mxu0 %vm2169_vm3, %v6400_v19  ;;  %v6378_v63 = vmul.f32 %v12814_v45, %v16033_v20  ;;  %v18054_v20 = vld [vmem:[#allocation149_spill] sm:$0xff] }
 0x957   :  { %v12818_v10 = vpop.eup %12817  ;;  %v6308_v26 = vpop.xlane.xlu1 %6307  ;;  %11768 = vmatpush3.bf16.msra.mxu0 %v18053_v62  ;;  %11769 = vmatprep.mubr.msk.bf16.mxu0 %vm13109_vm1, %v18043_v15  ;;  %v6379_v42 = vmul.f32 %v12816_v37, %v16035_v51 }
 0x958   :  { %v6311_v8 = vpop.xlane.xlu0 %6310  ;;  %12829 = vrcp.f32 %v6308_v26  ;;  %11779 = vmatprep.subr.bf16.mxu0 %v18043_v15  ;;  %v6380_v7 = vmul.f32 %v12818_v10, %v16024_v57 }
 0x959   :  { %v12820_v55 = vpop.eup %12819  ;;  %12831 = vrcp.f32 %v6311_v8  ;;  %v6402_v47 = vpack.c.bf16 %v6379_v42, %v6378_v63 }
 0x95a   :  { %v6381_v30 = vmul.f32 %v12820_v55, %v16039_v33  ;;  %12833 = vrcp.f32 %v6314_v39 }
 0x95b   :  { %v6317_v44 = vpop.xlane.xlu1 %6316 }
 0x95c   :  { %v6326_v24 = vpop.xlane.xlu0 %6325  ;;  %12835 = vrcp.f32 %v6317_v44  ;;  %v6403_v52 = vpack.c.bf16 %v6381_v30, %v6380_v7 }
 0x95d   :  { %v12822_v38 = vpop.eup %12821 }
 0x95e   :  { %v12824_v35 = vpop.eup %12823  ;;  %11776 = vmatmul.mubr.msk.bf16.vlgmr.msra.gmra.mxu1 %vm2169_vm3, %v6403_v52  ;;  %11770 = vmatmul.mubr.msk.bf16.vlgmr.msra.gmra.mxu0 %vm2169_vm3, %v6402_v47  ;;  %v6382_v34 = vmul.f32 %v12822_v38, %v16053_v13 }
 0x95f   :  { %v12826_v51 = vpop.eup %12825  ;;  %11786 = vmatpush3.bf16.msra.mxu1 %v18054_v20  ;;  %v6320_v31 = vpop.xlane.xlu1 %6319  ;;  %11780 = vmatpush3.bf16.msra.mxu0 %v18055_v61  ;;  %v6383_v12 = vmul.f32 %v12824_v35, %v16055_v60 }
 0x960   :  { %v6323_v57 = vpop.xlane.xlu0 %6322  ;;  %12837 = vrcp.f32 %v6320_v31  ;;  %11781 = vmatprep.mubr.msk.bf16.mxu0 %vm13109_vm1, %v18043_v15  ;;  %11787 = vmatprep.mubr.msk.bf16.mxu1 %vm13109_vm1, %v18043_v15  ;;  %v6384_v1 = vmul.f32 %v12826_v51, %v16044_v40 }
 0x961   :  { %v12828_v33 = vpop.eup %12827  ;;  %12839 = vrcp.f32 %v6323_v57  ;;  %11791 = vmatprep.subr.bf16.mxu0 %v18043_v15  ;;  %11797 = vmatprep.subr.bf16.mxu1 %v18043_v15  ;;  %v6404_v23 = vpack.c.bf16 %v6383_v12, %v6382_v34 }
 0x962   :  { %v6385_v58 = vmul.f32 %v12828_v33, %v16059_v32  ;;  %12841 = vrcp.f32 %v6326_v24 }
 0x963   :  { %v6329_v43 = vpop.xlane.xlu1 %6328 }
 0x964   :  { %v7165_v59 = vpop.permute.xlu0 %7164  ;;  %12843 = vrcp.f32 %v6329_v43  ;;  %v6405_v3 = vpack.c.bf16 %v6385_v58, %v6384_v1 }
 0x965   :  { %v12830_v60 = vpop.eup %12829 }
 0x966   :  { %v12832_v13 = vpop.eup %12831  ;;  %11788 = vmatmul.mubr.msk.bf16.vlgmr.msra.gmra.mxu1 %vm2169_vm3, %v6405_v3  ;;  %11782 = vmatmul.mubr.msk.bf16.vlgmr.msra.gmra.mxu0 %vm2169_vm3, %v6404_v23  ;;  %v6386_v25 = vmul.f32 %v12830_v60, %v16069_v22 }
 0x967   :  { %v12834_v2 = vpop.eup %12833  ;;  %11798 = vmatpush3.bf16.msra.mxu1 %v15935_v16  ;;  %v7216_v40 = vpop.permute.xlu1 %7215  ;;  %11792 = vmatpush3.bf16.msra.mxu0 %v18056_v36  ;;  %v6387_v9 = vmul.f32 %v12832_v13, %v16071_v4 }
 0x968   :  { %v7163_v32 = vpop.permute.xlu0 %7162  ;;  %11793 = vmatprep.mubr.msk.bf16.mxu0 %vm13109_vm1, %v18043_v15  ;;  %11799 = vmatprep.mubr.msk.bf16.mxu1 %vm13109_vm1, %v18043_v15  ;;  %v6388_v14 = vmul.f32 %v12834_v2, %v16063_v17  ;;  %v7221_v37 = vsel %vm1416_vm2, %v7216_v40, 0 }
 0x969   :  { %v12836_v18 = vpop.eup %12835  ;;  %11803 = vmatprep.subr.bf16.mxu0 %v18043_v15  ;;  %11809 = vmatprep.subr.bf16.mxu1 %v18043_v15  ;;  %v6406_v11 = vpack.c.bf16 %v6387_v9, %v6386_v25 }
 0x96a   :  { %v6389_v16 = vmul.f32 %v12836_v18, %v16075_v46 }
 0x96b   :  { %v7267_v21 = vpop.permute.xlu1 %7266 }
 0x96c   :  { %v7214_v28 = vpop.permute.xlu0 %7213  ;;  %v6407_v54 = vpack.c.bf16 %v6389_v16, %v6388_v14  ;;  %v7272_v62 = vsel %vm1416_vm2, %v7267_v21, 0 }
 0x96d   :  { %v12838_v56 = vpop.eup %12837 }
 0x96e   :  { %v12840_v27 = vpop.eup %12839  ;;  %11800 = vmatmul.mubr.msk.bf16.vlgmr.msra.gmra.mxu1 %vm2169_vm3, %v6407_v54  ;;  %11794 = vmatmul.mubr.msk.bf16.vlgmr.msra.gmra.mxu0 %vm2169_vm3, %v6406_v11  ;;  %v6390_v6 = vmul.f32 %v12838_v56, %v16085_v5  ;;  %v7170_v5 = vsel %vm1416_vm2, %v7165_v59, 0 }
 0x96f   :  { %v12842_v22 = vpop.eup %12841  ;;  %11810 = vmatpush3.bf16.msra.mxu1 %v16155_v41  ;;  %v7318_v4 = vpop.permute.xlu1 %7317  ;;  %11804 = vmatpush3.bf16.msra.mxu0 %v16147_v0  ;;  %v6391_v50 = vmul.f32 %v12840_v27, %v16087_v53 }
 0x970   :  { %v7265_v17 = vpop.permute.xlu0 %7264  ;;  %11805 = vmatprep.mubr.msk.bf16.mxu0 %vm13109_vm1, %v18043_v15  ;;  %11811 = vmatprep.mubr.msk.bf16.mxu1 %vm13109_vm1, %v18043_v15  ;;  %v6392_v48 = vmul.f32 %v12842_v22, %v16079_v29  ;;  %v7323_v26 = vsel %vm1416_vm2, %v7318_v4, 0 }
 0x971   :  { %v12844_v46 = vpop.eup %12843  ;;  %11815 = vmatprep.subr.bf16.mxu0 %v18043_v15  ;;  %11821 = vmatprep.subr.bf16.mxu1 %v18043_v15  ;;  %v6408_v19 = vpack.c.bf16 %v6391_v50, %v6390_v6 }
 0x972   :  { %v6393_v41 = vmul.f32 %v12844_v46, %v16091_v49 }
 0x973   :  { %v7369_v0 = vpop.permute.xlu1 %7368 }
 0x974   :  { %v7316_v39 = vpop.permute.xlu0 %7315  ;;  %v6409_v45 = vpack.c.bf16 %v6393_v41, %v6392_v48  ;;  %v7374_v7 = vsel %vm1416_vm2, %v7369_v0, 0 }
 0x976   :  { %11812 = vmatmul.mubr.msk.bf16.vlgmr.msra.gmra.mxu1 %vm2169_vm3, %v6409_v45  ;;  %11806 = vmatmul.mubr.msk.bf16.vlgmr.msra.gmra.mxu0 %vm2169_vm3, %v6408_v19 }
 0x977   :  { %11822 = vmatpush3.bf16.xpose.msra.mxu1 %v7221_v37  ;;  %v7420_v53 = vpop.permute.xlu1 %7419  ;;  %11816 = vmatpush3.bf16.xpose.msra.mxu0 %v7170_v5 }
 0x978   :  { %v7367_v29 = vpop.permute.xlu0 %7366  ;;  %11817 = vmatprep.mubr.msk.bf16.mxu0 %vm13109_vm1, %v18043_v15  ;;  %11823 = vmatprep.mubr.msk.bf16.mxu1 %vm13109_vm1, %v18043_v15  ;;  %v7425_v63 = vsel %vm1416_vm2, %v7420_v53, 0 }
 0x979   :  { %11827 = vmatprep.subr.bf16.mxu0 %v18043_v15  ;;  %11833 = vmatprep.subr.bf16.mxu1 %v18043_v15 }
 0x97b   :  { %v7471_v49 = vpop.permute.xlu1 %7470 }
 0x97c   :  { %v7418_v10 = vpop.permute.xlu0 %7417  ;;  %v7476_v47 = vsel %vm1416_vm2, %v7471_v49, 0 }
 0x97e   :  { %11824 = vmatmul.mubr.msk.bf16.vlgmr.msra.gmra.mxu1 %vm1416_vm2, %v7214_v28  ;;  %11818 = vmatmul.mubr.msk.bf16.vlgmr.msra.gmra.mxu0 %vm1416_vm2, %v7163_v32 }
 0x97f   :  { %11834 = vmatpush3.bf16.xpose.msra.mxu1 %v7323_v26  ;;  %v7522_v8 = vpop.permute.xlu1 %7521  ;;  %11828 = vmatpush3.bf16.xpose.msra.mxu0 %v7272_v62 }
 0x980   :  { %11829 = vmatprep.mubr.msk.bf16.mxu0 %vm13109_vm1, %v18043_v15  ;;  %v7469_v55 = vpop.permute.xlu0 %7468  ;;  %11835 = vmatprep.mubr.msk.bf16.mxu1 %vm13109_vm1, %v18043_v15  ;;  %v7527_v38 = vsel %vm1416_vm2, %v7522_v8, 0 }
 0x981   :  { %11839 = vmatprep.subr.bf16.mxu0 %v18043_v15  ;;  %11845 = vmatprep.subr.bf16.mxu1 %v18043_v15 }
 0x983   :  { %v7573_v42 = vpop.permute.xlu1 %7572 }
 0x984   :  { %v7520_v30 = vpop.permute.xlu0 %7519  ;;  %v7578_v31 = vsel %vm1416_vm2, %v7573_v42, 0 }
 0x986   :  { %11836 = vmatmul.mubr.msk.bf16.vlgmr.msra.gmra.mxu1 %vm1416_vm2, %v7316_v39  ;;  %11830 = vmatmul.mubr.msk.bf16.vlgmr.msra.gmra.mxu0 %vm1416_vm2, %v7265_v17 }
 0x987   :  { %11846 = vmatpush3.bf16.xpose.msra.mxu1 %v7425_v63  ;;  %v7624_v44 = vpop.permute.xlu1 %7623  ;;  %11840 = vmatpush3.bf16.xpose.msra.mxu0 %v7374_v7 }
 0x988   :  { %11841 = vmatprep.mubr.msk.bf16.mxu0 %vm13109_vm1, %v18043_v15  ;;  %11847 = vmatprep.mubr.msk.bf16.mxu1 %vm13109_vm1, %v18043_v15  ;;  %v7571_v52 = vpop.permute.xlu0 %7570  ;;  %v7629_v20 = vsel %vm1416_vm2, %v7624_v44, 0 }
 0x989   :  { %11851 = vmatprep.subr.bf16.mxu0 %v18043_v15  ;;  %11857 = vmatprep.subr.bf16.mxu1 %v18043_v15 }
 0x98b   :  { %v7675_v24 = vpop.permute.xlu1 %7674 }
 0x98c   :  { %v7622_v51 = vpop.permute.xlu0 %7621  ;;  %v7680_v34 = vsel %vm1416_vm2, %v7675_v24, 0 }
 0x98e   :  { %11848 = vmatmul.mubr.msk.bf16.vlgmr.msra.gmra.mxu1 %vm1416_vm2, %v7418_v10  ;;  %11842 = vmatmul.mubr.msk.bf16.vlgmr.msra.gmra.mxu0 %vm1416_vm2, %v7367_v29 }
 0x98f   :  { %11858 = vmatpush3.bf16.xpose.msra.mxu1 %v7527_v38  ;;  %11852 = vmatpush3.bf16.xpose.msra.mxu0 %v7476_v47  ;;  %v7726_v35 = vpop.permute.xlu1 %7725 }
 0x990   :  { %11853 = vmatprep.mubr.msk.bf16.mxu0 %vm13109_vm1, %v18043_v15  ;;  %11859 = vmatprep.mubr.msk.bf16.mxu1 %vm13109_vm1, %v18043_v15  ;;  %v7673_v57 = vpop.permute.xlu0 %7672  ;;  %v7731_v33 = vsel %vm1416_vm2, %v7726_v35, 0 }
 0x991   :  { %11863 = vmatprep.subr.bf16.mxu0 %v18043_v15  ;;  %11869 = vmatprep.subr.bf16.mxu1 %v18043_v15 }
 0x993   :  { %v7777_v61 = vpop.permute.xlu1 %7776 }
 0x994   :  { %v7724_v1 = vpop.permute.xlu0 %7723  ;;  %v7782_v3 = vsel %vm1416_vm2, %v7777_v61, 0 }
 0x996   :  { %11860 = vmatmul.mubr.msk.bf16.vlgmr.msra.gmra.mxu1 %vm1416_vm2, %v7520_v30  ;;  %11854 = vmatmul.mubr.msk.bf16.vlgmr.msra.gmra.mxu0 %vm1416_vm2, %v7469_v55 }
 0x997   :  { %11870 = vmatpush3.bf16.xpose.msra.mxu1 %v7629_v20  ;;  %11864 = vmatpush3.bf16.xpose.msra.mxu0 %v7578_v31  ;;  %v7828_v12 = vpop.permute.xlu1 %7827 }
 0x998   :  { %11865 = vmatprep.mubr.msk.bf16.mxu0 %vm13109_vm1, %v18043_v15  ;;  %11871 = vmatprep.mubr.msk.bf16.mxu1 %vm13109_vm1, %v18043_v15  ;;  %v7775_v43 = vpop.permute.xlu0 %7774  ;;  %v7833_v59 = vsel %vm1416_vm2, %v7828_v12, 0 }
 0x999   :  { %11875 = vmatprep.subr.bf16.mxu0 %v18043_v15  ;;  %11881 = vmatprep.subr.bf16.mxu1 %v18043_v15 }
 0x99b   :  { %v7879_v58 = vpop.permute.xlu1 %7878 }
 0x99c   :  { %v7826_v23 = vpop.permute.xlu0 %7825  ;;  %v7884_v2 = vsel %vm1416_vm2, %v7879_v58, 0 }
 0x99e   :  { %11872 = vmatmul.mubr.msk.bf16.vlgmr.msra.gmra.mxu1 %vm1416_vm2, %v7622_v51  ;;  %11866 = vmatmul.mubr.msk.bf16.vlgmr.msra.gmra.mxu0 %vm1416_vm2, %v7571_v52 }
 0x99f   :  { %11882 = vmatpush3.bf16.xpose.msra.mxu1 %v7731_v33  ;;  %11876 = vmatpush3.bf16.xpose.msra.mxu0 %v7680_v34  ;;  %v7930_v60 = vpop.permute.xlu1 %7929 }
 0x9a0   :  { %11877 = vmatprep.mubr.msk.bf16.mxu0 %vm13109_vm1, %v18043_v15  ;;  %11883 = vmatprep.mubr.msk.bf16.mxu1 %vm13109_vm1, %v18043_v15  ;;  %v7935_v13 = vsel %vm1416_vm2, %v7930_v60, 0  ;;  %v7877_v36 = vpop.permute.xlu0 %7876 }
 0x9a1   :  { %11887 = vmatprep.subr.bf16.mxu0 %v18043_v15  ;;  %11893 = vmatprep.subr.bf16.mxu1 %v18043_v15 }
 0x9a3   :  { %v7928_v40 = vpop.permute.xlu1 %7927 }
 0x9a4   :  { %v8347_v18 = vpop.permute.xlu0 %8346 }
 0x9a6   :  { %11884 = vmatmul.mubr.msk.bf16.vlgmr.msra.gmra.mxu1 %vm1416_vm2, %v7724_v1  ;;  %11878 = vmatmul.mubr.msk.bf16.vlgmr.msra.gmra.mxu0 %vm1416_vm2, %v7673_v57 }
 0x9a7   :  { %11894 = vmatpush3.bf16.xpose.msra.mxu1 %v7833_v59  ;;  %11888 = vmatpush3.bf16.xpose.msra.mxu0 %v7782_v3  ;;  %v8394_v32 = vpop.permute.xlu1 %8393 }
 0x9a8   :  { %11889 = vmatprep.mubr.msk.bf16.mxu0 %vm13109_vm1, %v18043_v15  ;;  %11895 = vmatprep.mubr.msk.bf16.mxu1 %vm13109_vm1, %v18043_v15 }
 0x9a9   :  { %11899 = vmatprep.subr.bf16.mxu0 %v18043_v15  ;;  %11905 = vmatprep.subr.bf16.mxu1 %v18043_v15 }
 0x9ae   :  { %11896 = vmatmul.mubr.msk.bf16.vlgmr.msra.gmra.mxu1 %vm1416_vm2, %v7826_v23  ;;  %11890 = vmatmul.mubr.msk.bf16.vlgmr.msra.gmra.mxu0 %vm1416_vm2, %v7775_v43 }
 0x9af   :  { %11906 = vmatpush3.bf16.xpose.msra.mxu1 %v7935_v13  ;;  %11900 = vmatpush3.bf16.xpose.msra.mxu0 %v7884_v2 }
 0x9b0   :  { %11901 = vmatprep.mubr.msk.bf16.mxu0 %vm13109_vm1, %v18043_v15  ;;  %11907 = vmatprep.mubr.msk.bf16.mxu1 %vm13109_vm1, %v18043_v15 }
 0x9b1   :  { %11911 = vmatprep.subr.bf16.mxu0 %v18043_v15  ;;  %11917 = vmatprep.subr.bf16.mxu1 %v18043_v15 }
 0x9b6   :  { %11908 = vmatmul.mubr.msk.bf16.vlgmr.msra.gmra.mxu1 %vm1416_vm2, %v7928_v40  ;;  %11902 = vmatmul.mubr.msk.bf16.vlgmr.msra.gmra.mxu0 %vm1416_vm2, %v7877_v36 }
 0x9b7   :  { %11918 = vmatpush3.bf16.msra.mxu1 %v8394_v32  ;;  %11912 = vmatpush3.bf16.msra.mxu0 %v8347_v18 }
 0x9b8   :  { %11919 = vmatprep.mubr.msk.bf16.mxu1 %vm13109_vm1, %v18043_v15  ;;  %11929 = vmatprep.subr.bf16.mxu1 %v18043_v15 }
 0x9b9   :  { %11913 = vmatprep.mubr.msk.bf16.mxu0 %vm13109_vm1, %v18043_v15  ;;  %11923 = vmatprep.subr.bf16.mxu0 %v18043_v15 }
 0x9fa   :  { %v16379_v9 = vpop.f32.mrf.mxu1 }
 0x9fc   :  { %v11729_v25 = vpop.f32.mrf.mxu1 }
 0x9fe   :  { %v16381_v14 = vpop.f32.mrf.mxu1  ;;  %v16383_v16 = vpop.f32.mrf.mxu0 }
 0xa00   :  { %v11730_v28 = vpop.f32.mrf.mxu1  ;;  %v11723_v54 = vpop.f32.mrf.mxu0 }
 0xa02   :  { %v16387_v56 = vpop.f32.mrf.mxu0  ;;  %v16389_v11 = vpop.f32.mrf.mxu1 }
 0xa04   :  { %v11724_v22 = vpop.f32.mrf.mxu0  ;;  %v11741_v4 = vpop.f32.mrf.mxu1 }
 0xa06   :  { %v16393_v17 = vpop.f32.mrf.mxu0  ;;  %v16395_v46 = vpop.f32.mrf.mxu1 }
 0xa08   :  { %v11735_v6 = vpop.f32.mrf.mxu0  ;;  %v11742_v48 = vpop.f32.mrf.mxu1 }
 0xa0a   :  { %v16399_v41 = vpop.f32.mrf.mxu0  ;;  %v16401_v0 = vpop.f32.mrf.mxu1 }
 0xa0c   :  { %v11736_v45 = vpop.f32.mrf.mxu0  ;;  %v11753_v19 = vpop.f32.mrf.mxu1 }
 0xa0e   :  { %v16405_v37 = vpop.f32.mrf.mxu0  ;;  %v16407_v5 = vpop.f32.mrf.mxu1 }
 0xa10   :  { %v11747_v29 = vpop.f32.mrf.mxu0  ;;  %v11754_v49 = vpop.f32.mrf.mxu1 }
 0xa12   :  { %v16411_v10 = vpop.f32.mrf.mxu0  ;;  %v16413_v26 = vpop.f32.mrf.mxu1 }
 0xa14   :  { %v11748_v8 = vpop.f32.mrf.mxu0  ;;  %v11765_v55 = vpop.f32.mrf.mxu1 }
 0xa16   :  { %v16417_v42 = vpop.f32.mrf.mxu0  ;;  %v16419_v63 = vpop.f32.mrf.mxu1 }
 0xa18   :  { %v11759_v30 = vpop.f32.mrf.mxu0  ;;  %v11766_v44 = vpop.f32.mrf.mxu1 }
 0xa1a   :  { %v16423_v24 = vpop.f32.mrf.mxu0 }
 0xa1c   :  { %v11760_v38 = vpop.f32.mrf.mxu0 }
 0xa1e   :  { %v16427_v47 = vpop.f32.mrf.mxu1  ;;  %v16429_v35 = vpop.f32.mrf.mxu0 }
 0xa1f   :  { %18057 = vst [vmem:[#allocation19_spill] sm:$0xff] %v16427_v47  ;;  %18058 = vst [vmem:[#allocation21_spill] sm:$0xff] %v16429_v35 }
 0xa20   :  { %v11777_v51 = vpop.f32.mrf.mxu1  ;;  %v11771_v20 = vpop.f32.mrf.mxu0 }
 0xa22   :  { %v16431_v31 = vpop.f32.mrf.mxu1  ;;  %v16433_v61 = vpop.f32.mrf.mxu0 }
 0xa23   :  { %18059 = vst [vmem:[#allocation31_spill] sm:$0xff] %v16431_v31  ;;  %18060 = vst [vmem:[#allocation85_spill] sm:$0xff] %v16433_v61 }
 0xa24   :  { %v11778_v12 = vpop.f32.mrf.mxu1  ;;  %v11772_v34 = vpop.f32.mrf.mxu0 }
 0xa26   :  { %v16439_v1 = vpop.f32.mrf.mxu1  ;;  %v16441_v58 = vpop.f32.mrf.mxu0 }
 0xa27   :  { %18061 = vst [vmem:[#allocation29_spill] sm:$0xff] %v16439_v1  ;;  %18062 = vst [vmem:[#allocation26_spill] sm:$0xff] %v16441_v58 }
 0xa28   :  { %v11789_v43 = vpop.f32.mrf.mxu1  ;;  %v11783_v59 = vpop.f32.mrf.mxu0 }
 0xa2a   :  { %v16443_v3 = vpop.f32.mrf.mxu1  ;;  %v16445_v60 = vpop.f32.mrf.mxu0 }
 0xa2b   :  { %18063 = vst [vmem:[#allocation37_spill] sm:$0xff] %v16443_v3  ;;  %18064 = vst [vmem:[#allocation34_spill] sm:$0xff] %v16445_v60  ;;  %v16607_v60 = vpop.permute.xlu1 %8487 }
 0xa2c   :  { %v11790_v2 = vpop.f32.mrf.mxu1  ;;  %v11784_v40 = vpop.f32.mrf.mxu0 }
 0xa2e   :  { %v16451_v36 = vpop.f32.mrf.mxu1  ;;  %v16453_v32 = vpop.f32.mrf.mxu0 }
 0xa2f   :  { %18065 = vst [vmem:[#allocation35_spill] sm:$0xff] %v16451_v36  ;;  %18066 = vst [vmem:[#allocation32_spill] sm:$0xff] %v16453_v32 }
 0xa30   :  { %v11801_v18 = vpop.f32.mrf.mxu1  ;;  %v11795_v25 = vpop.f32.mrf.mxu0 }
 0xa32   :  { %v16455_v28 = vpop.f32.mrf.mxu1  ;;  %v16457_v54 = vpop.f32.mrf.mxu0 }
 0xa33   :  { %18067 = vst [vmem:[#allocation43_spill] sm:$0xff] %v16455_v28  ;;  %18068 = vst [vmem:[#allocation40_spill] sm:$0xff] %v16457_v54 }
 0xa34   :  { %v11802_v6 = vpop.f32.mrf.mxu1  ;;  %v11796_v48 = vpop.f32.mrf.mxu0 }
 0xa36   :  { %v16463_v45 = vpop.f32.mrf.mxu1  ;;  %v16465_v19 = vpop.f32.mrf.mxu0 }
 0xa37   :  { %18069 = vst [vmem:[#allocation41_spill] sm:$0xff] %v16463_v45  ;;  %18070 = vst [vmem:[#allocation38_spill] sm:$0xff] %v16465_v19 }
 0xa38   :  { %v11813_v29 = vpop.f32.mrf.mxu1  ;;  %v11807_v49 = vpop.f32.mrf.mxu0 }
 0xa3a   :  { %v16467_v8 = vpop.f32.mrf.mxu1  ;;  %v16469_v55 = vpop.f32.mrf.mxu0 }
 0xa3b   :  { %18071 = vst [vmem:[#allocation47_spill] sm:$0xff] %v16467_v8  ;;  %18072 = vst [vmem:[#allocation50_spill] sm:$0xff] %v16469_v55 }
 0xa3c   :  { %v11814_v38 = vpop.f32.mrf.mxu1  ;;  %v11808_v51 = vpop.f32.mrf.mxu0 }
 0xa3e   :  { %v16475_v20 = vpop.f32.mrf.mxu1  ;;  %v16477_v12 = vpop.f32.mrf.mxu0 }
 0xa3f   :  { %v7984_v34 = vsel %vm2169_vm3, %v16475_v20, -inf  ;;  %v7978_v18 = vsel %vm2169_vm3, %v16477_v12, -inf }
 0xa40   :  { %7985 = vmax.xlane.f32.xlu0 %v7984_v34  ;;  %v11825_v43 = vpop.f32.mrf.mxu1  ;;  %v11819_v59 = vpop.f32.mrf.mxu0 }
 0xa42   :  { %v16481_v2 = vpop.f32.mrf.mxu1  ;;  %v16483_v40 = vpop.f32.mrf.mxu0 }
 0xa43   :  { %v7981_v6 = vsel %vm2169_vm3, %v16483_v40, -inf  ;;  %v7987_v38 = vsel %vm2169_vm3, %v16481_v2, -inf }
 0xa44   :  { %v11826_v25 = vpop.f32.mrf.mxu1  ;;  %7979 = vmax.xlane.f32.xlu0 %v7978_v18  ;;  %7982 = vmax.xlane.f32.xlu1 %v7981_v6  ;;  %v11820_v48 = vpop.f32.mrf.mxu0 }
 0xa46   :  { %v16489_v29 = vpop.f32.mrf.mxu1  ;;  %v16491_v49 = vpop.f32.mrf.mxu0 }
 0xa47   :  { %v7996_v18 = vsel %vm2169_vm3, %v16489_v29, -inf }
 0xa48   :  { %v11837_v51 = vpop.f32.mrf.mxu1  ;;  %7988 = vmax.xlane.f32.xlu0 %v7987_v38  ;;  %v11831_v34 = vpop.f32.mrf.mxu0  ;;  %v7990_v38 = vsel %vm2169_vm3, %v16491_v49, -inf }
 0xa4a   :  { %v16495_v43 = vpop.f32.mrf.mxu1  ;;  %v16497_v59 = vpop.f32.mrf.mxu0 }
 0xa4b   :  { %v7999_v25 = vsel %vm2169_vm3, %v16495_v43, -inf  ;;  %v7993_v51 = vsel %vm2169_vm3, %v16497_v59, -inf }
 0xa4c   :  { %v11838_v6 = vpop.f32.mrf.mxu1  ;;  %7997 = vmax.xlane.f32.xlu0 %v7996_v18  ;;  %8000 = vmax.xlane.f32.xlu1 %v7999_v25  ;;  %v11832_v48 = vpop.f32.mrf.mxu0 }
 0xa4e   :  { %v16503_v44 = vpop.f32.mrf.mxu1  ;;  %v16505_v30 = vpop.f32.mrf.mxu0 }
 0xa4f   :  { %v8008_v18 = vsel %vm2169_vm3, %v16503_v44, -inf }
 0xa50   :  { %v11849_v34 = vpop.f32.mrf.mxu1  ;;  %7991 = vmax.xlane.f32.xlu0 %v7990_v38  ;;  %7994 = vmax.xlane.f32.xlu1 %v7993_v51  ;;  %v11843_v4 = vpop.f32.mrf.mxu0 }
 0xa51   :  { %v8002_v4 = vsel %vm2169_vm3, %v16505_v30, -inf }
 0xa52   :  { %v16511_v22 = vpop.f32.mrf.mxu1  ;;  %v16513_v6 = vpop.f32.mrf.mxu0 }
 0xa53   :  { %v8011_v25 = vsel %vm2169_vm3, %v16511_v22, -inf  ;;  %v8005_v38 = vsel %vm2169_vm3, %v16513_v6, -inf }
 0xa54   :  { %v11850_v48 = vpop.f32.mrf.mxu1  ;;  %8009 = vmax.xlane.f32.xlu0 %v8008_v18  ;;  %8012 = vmax.xlane.f32.xlu1 %v8011_v25  ;;  %v11844_v13 = vpop.f32.mrf.mxu0 }
 0xa56   :  { %v16519_v23 = vpop.f32.mrf.mxu1  ;;  %v16521_v34 = vpop.f32.mrf.mxu0 }
 0xa57   :  { %v8020_v13 = vsel %vm2169_vm3, %v16519_v23, -inf }
 0xa58   :  { %v11861_v51 = vpop.f32.mrf.mxu1  ;;  %8003 = vmax.xlane.f32.xlu0 %v8002_v4  ;;  %8006 = vmax.xlane.f32.xlu1 %v8005_v38  ;;  %v11855_v33 = vpop.f32.mrf.mxu0 }
 0xa59   :  { %v8014_v33 = vsel %vm2169_vm3, %v16521_v34, -inf }
 0xa5a   :  { %v16527_v57 = vpop.f32.mrf.mxu1  ;;  %v16529_v48 = vpop.f32.mrf.mxu0 }
 0xa5b   :  { %v8023_v18 = vsel %vm2169_vm3, %v16527_v57, -inf  ;;  %v8017_v4 = vsel %vm2169_vm3, %v16529_v48, -inf }
 0xa5c   :  { %v11862_v25 = vpop.f32.mrf.mxu1  ;;  %8021 = vmax.xlane.f32.xlu0 %v8020_v13  ;;  %8024 = vmax.xlane.f32.xlu1 %v8023_v18  ;;  %v11856_v52 = vpop.f32.mrf.mxu0 }
 0xa5e   :  { %v16535_v7 = vpop.f32.mrf.mxu1  ;;  %v16537_v51 = vpop.f32.mrf.mxu0 }
 0xa5f   :  { %v8032_v52 = vsel %vm2169_vm3, %v16535_v7, -inf }
 0xa60   :  { %v11873_v38 = vpop.f32.mrf.mxu1  ;;  %8015 = vmax.xlane.f32.xlu0 %v8014_v33  ;;  %8018 = vmax.xlane.f32.xlu1 %v8017_v4  ;;  %v11867_v62 = vpop.f32.mrf.mxu0 }
 0xa61   :  { %v8026_v62 = vsel %vm2169_vm3, %v16537_v51, -inf }
 0xa62   :  { %v16543_v53 = vpop.f32.mrf.mxu1  ;;  %v16545_v25 = vpop.f32.mrf.mxu0 }
 0xa63   :  { %v8035_v13 = vsel %vm2169_vm3, %v16543_v53, -inf  ;;  %v8029_v33 = vsel %vm2169_vm3, %v16545_v25, -inf }
 0xa64   :  { %v11874_v18 = vpop.f32.mrf.mxu1  ;;  %8033 = vmax.xlane.f32.xlu0 %v8032_v52  ;;  %8036 = vmax.xlane.f32.xlu1 %v8035_v13  ;;  %v11868_v39 = vpop.f32.mrf.mxu0 }
 0xa66   :  { %v16551_v50 = vpop.f32.mrf.mxu1  ;;  %v16553_v38 = vpop.f32.mrf.mxu0 }
 0xa67   :  { %v8044_v39 = vsel %vm2169_vm3, %v16551_v50, -inf }
 0xa68   :  { %v11885_v4 = vpop.f32.mrf.mxu1  ;;  %8027 = vmax.xlane.f32.xlu0 %v8026_v62  ;;  %8030 = vmax.xlane.f32.xlu1 %v8029_v33  ;;  %v11879_v27 = vpop.f32.mrf.mxu0 }
 0xa69   :  { %v8038_v27 = vsel %vm2169_vm3, %v16553_v38, -inf }
 0xa6a   :  { %v16559_v21 = vpop.f32.mrf.mxu1  ;;  %v16561_v18 = vpop.f32.mrf.mxu0 }
 0xa6b   :  { %v8047_v52 = vsel %vm2169_vm3, %v16559_v21, -inf  ;;  %v8041_v62 = vsel %vm2169_vm3, %v16561_v18, -inf }
 0xa6c   :  { %v11886_v13 = vpop.f32.mrf.mxu1  ;;  %8045 = vmax.xlane.f32.xlu0 %v8044_v39  ;;  %8048 = vmax.xlane.f32.xlu1 %v8047_v52  ;;  %v11880_v19 = vpop.f32.mrf.mxu0 }
 0xa6e   :  { %v16567_v55 = vpop.f32.mrf.mxu1  ;;  %v16569_v4 = vpop.f32.mrf.mxu0 }
 0xa6f   :  { %v8056_v19 = vsel %vm2169_vm3, %v16567_v55, -inf }
 0xa70   :  { %v11897_v33 = vpop.f32.mrf.mxu1  ;;  %8039 = vmax.xlane.f32.xlu0 %v8038_v27  ;;  %8042 = vmax.xlane.f32.xlu1 %v8041_v62  ;;  %v11891_v45 = vpop.f32.mrf.mxu0 }
 0xa71   :  { %v8050_v45 = vsel %vm2169_vm3, %v16569_v4, -inf }
 0xa72   :  { %v16575_v8 = vpop.f32.mrf.mxu1  ;;  %v16577_v13 = vpop.f32.mrf.mxu0 }
 0xa73   :  { %v8059_v39 = vsel %vm2169_vm3, %v16575_v8, -inf  ;;  %v8053_v27 = vsel %vm2169_vm3, %v16577_v13, -inf }
 0xa74   :  { %v11898_v52 = vpop.f32.mrf.mxu1  ;;  %8057 = vmax.xlane.f32.xlu0 %v8056_v19  ;;  %8060 = vmax.xlane.f32.xlu1 %v8059_v39  ;;  %v11892_v32 = vpop.f32.mrf.mxu0 }
 0xa76   :  { %v16583_v54 = vpop.f32.mrf.mxu1  ;;  %v16585_v33 = vpop.f32.mrf.mxu0 }
 0xa77   :  { %v8068_v32 = vsel %vm2169_vm3, %v16583_v54, -inf }
 0xa78   :  { %v11909_v62 = vpop.f32.mrf.mxu1  ;;  %8051 = vmax.xlane.f32.xlu0 %v8050_v45  ;;  %8054 = vmax.xlane.f32.xlu1 %v8053_v27  ;;  %v11903_v36 = vpop.f32.mrf.mxu0  ;;  %v18073_v45 = vld [vmem:[#allocation80_spill] sm:$0xff]  ;;  %v18074_v27 = vld [vmem:[#allocation82_spill] sm:$0xff] }
 0xa79   :  { %v8062_v62 = vsel %vm2169_vm3, %v16585_v33, -inf }
 0xa7a   :  { %v16591_v28 = vpop.f32.mrf.mxu1  ;;  %v16593_v52 = vpop.f32.mrf.mxu0 }
 0xa7b   :  { %v8071_v19 = vsel %vm2169_vm3, %v16591_v28, -inf  ;;  %v8065_v36 = vsel %vm2169_vm3, %v16593_v52, -inf }
 0xa7c   :  { %v11910_v39 = vpop.f32.mrf.mxu1  ;;  %8069 = vmax.xlane.f32.xlu0 %v8068_v32  ;;  %8072 = vmax.xlane.f32.xlu1 %v8071_v19  ;;  %v11904_v58 = vpop.f32.mrf.mxu0 }
 0xa7d   :  { %v16609_v39 = vpop.permute.xlu1 %8581  ;;  %v16611_v32 = vpop.permute.xlu0 %8440 }
 0xa7e   :  { %18075 = vst [vmem:[#allocation53_spill] sm:$0xff] %v16609_v39  ;;  %18076 = vst [vmem:[#allocation44_spill] sm:$0xff] %v16611_v32 }
 0xa80   :  { %8063 = vmax.xlane.f32.xlu0 %v8062_v62  ;;  %8066 = vmax.xlane.f32.xlu1 %v8065_v36 }
 0xa81   :  { %v16613_v58 = vpop.permute.xlu1 %8675  ;;  %v16615_v19 = vpop.permute.xlu0 %8534 }
 0xa82   :  { %18077 = vst [vmem:[#allocation56_spill] sm:$0xff] %v16613_v58  ;;  %18078 = vst [vmem:[#allocation57_spill] sm:$0xff] %v16615_v19 }
 0xa85   :  { %v16617_v1 = vpop.permute.xlu1 %8769  ;;  %v16619_v62 = vpop.permute.xlu0 %8628 }
 0xa86   :  { %18079 = vst [vmem:[#allocation58_spill] sm:$0xff] %v16617_v1  ;;  %18080 = vst [vmem:[#allocation59_spill] sm:$0xff] %v16619_v62 }
 0xa89   :  { %v16621_v36 = vpop.permute.xlu1 %8816 }
 0xa8a   :  { %18081 = vst [vmem:[#allocation61_spill] sm:$0xff] %v16621_v36 }
 0xa91   :  { %8957 = vrot.lane.b32.xlu1 %v18073_v45, %s13112_s29  ;;  %v16623_v45 = vpop.permute.xlu0 %8722 }
 0xa92   :  { %18082 = vst [vmem:[#allocation140_spill] sm:$0xff] %v16623_v45 }
 0xa96   :  { %8910 = vrot.lane.b32.xlu0 %v18074_v27, %s13112_s29  ;;  %v16625_v27 = vpop.permute.xlu1 %8863 }
 0xac9   :  { %v7986_v3 = vpop.xlane.xlu0 %7985 }
 0xaca   :  { %v8076_v35 = vsub.f32 %v16475_v20, %v7986_v3 }
 0xacc   :  { %v8110_v61 = vmul.f32 1.442695, %v8076_v35 }
 0xacd   :  { %v7980_v47 = vpop.xlane.xlu0 %7979  ;;  %v7983_v58 = vpop.xlane.xlu1 %7982 }
 0xace   :  { %12845 = vpow2.f32 %v8110_v61  ;;  %v8074_v31 = vsub.f32 %v16477_v12, %v7980_v47  ;;  %v8075_v19 = vsub.f32 %v16483_v40, %v7983_v58 }
 0xad0   :  { %v8106_v1 = vmul.f32 1.442695, %v8074_v31  ;;  %v8108_v62 = vmul.f32 1.442695, %v8075_v19 }
 0xad1   :  { %v7989_v39 = vpop.xlane.xlu0 %7988 }
 0xad2   :  { %12847 = vpow2.f32 %v8106_v1  ;;  %v8077_v36 = vsub.f32 %v16481_v2, %v7989_v39 }
 0xad4   :  { %v8112_v45 = vmul.f32 1.442695, %v8077_v36 }
 0xad5   :  { %v7998_v32 = vpop.xlane.xlu0 %7997  ;;  %v8001_v15 = vpop.xlane.xlu1 %8000 }
 0xad6   :  { %12849 = vpow2.f32 %v8112_v45  ;;  %v8080_v3 = vsub.f32 %v16489_v29, %v7998_v32  ;;  %v8081_v35 = vsub.f32 %v16495_v43, %v8001_v15 }
 0xad7   :  { %12851 = vpow2.f32 %v8108_v62 }
 0xad8   :  { %v8118_v61 = vmul.f32 1.442695, %v8080_v3  ;;  %v8120_v47 = vmul.f32 1.442695, %v8081_v35 }
 0xad9   :  { %v7992_v20 = vpop.xlane.xlu0 %7991  ;;  %v7995_v12 = vpop.xlane.xlu1 %7994 }
 0xada   :  { %12853 = vpow2.f32 %v8118_v61  ;;  %v8078_v31 = vsub.f32 %v16491_v49, %v7992_v20  ;;  %v8079_v1 = vsub.f32 %v16497_v59, %v7995_v12 }
 0xadb   :  { %v16635_v2 = vpop.eup %12845  ;;  %12855 = vpow2.f32 %v8120_v47 }
 0xadc   :  { %v8114_v40 = vmul.f32 1.442695, %v8078_v31  ;;  %v8116_v39 = vmul.f32 1.442695, %v8079_v1  ;;  %v8176_v29 = vsel %vm2169_vm3, %v16635_v2, 0.0 }
 0xadd   :  { %v8010_v32 = vpop.xlane.xlu0 %8009  ;;  %v8013_v15 = vpop.xlane.xlu1 %8012  ;;  %8177 = vadd.xlane.f32.xlu0 %v8176_v29 }
 0xade   :  { %12857 = vpow2.f32 %v8114_v40  ;;  %v8084_v43 = vsub.f32 %v16503_v44, %v8010_v32  ;;  %v8085_v58 = vsub.f32 %v16511_v22, %v8013_v15 }
 0xadf   :  { %v16641_v19 = vpop.eup %12847  ;;  %12859 = vpow2.f32 %v8116_v39 }
 0xae0   :  { %v8126_v49 = vmul.f32 1.442695, %v8084_v43  ;;  %v8128_v59 = vmul.f32 1.442695, %v8085_v58  ;;  %v8170_v62 = vsel %vm2169_vm3, %v16641_v19, 0.0 }
 0xae1   :  { %v8004_v36 = vpop.xlane.xlu0 %8003  ;;  %v8007_v45 = vpop.xlane.xlu1 %8006  ;;  %8171 = vadd.xlane.f32.xlu0 %v8170_v62 }
 0xae2   :  { %12861 = vpow2.f32 %v8126_v49  ;;  %v8082_v3 = vsub.f32 %v16505_v30, %v8004_v36  ;;  %v8083_v35 = vsub.f32 %v16513_v6, %v8007_v45 }
 0xae3   :  { %v16647_v61 = vpop.eup %12849  ;;  %12863 = vpow2.f32 %v8128_v59 }
 0xae4   :  { %v16649_v44 = vpop.eup %12851  ;;  %v8122_v22 = vmul.f32 1.442695, %v8082_v3  ;;  %v8124_v47 = vmul.f32 1.442695, %v8083_v35  ;;  %v8179_v20 = vsel %vm2169_vm3, %v16647_v61, 0.0 }
 0xae5   :  { %v8022_v12 = vpop.xlane.xlu0 %8021  ;;  %v8025_v31 = vpop.xlane.xlu1 %8024  ;;  %8180 = vadd.xlane.f32.xlu1 %v8179_v20  ;;  %v8173_v6 = vsel %vm2169_vm3, %v16649_v44, 0.0 }
 0xae6   :  { %12865 = vpow2.f32 %v8122_v22  ;;  %v8088_v1 = vsub.f32 %v16519_v23, %v8022_v12  ;;  %v8089_v30 = vsub.f32 %v16527_v57, %v8025_v31 }
 0xae7   :  { %v16655_v40 = vpop.eup %12853  ;;  %12867 = vpow2.f32 %v8124_v47 }
 0xae8   :  { %v16659_v39 = vpop.eup %12855  ;;  %v8134_v29 = vmul.f32 1.442695, %v8088_v1  ;;  %v8136_v32 = vmul.f32 1.442695, %v8089_v30  ;;  %v8188_v15 = vsel %vm2169_vm3, %v16655_v40, 0.0 }
 0xae9   :  { %v8016_v43 = vpop.xlane.xlu0 %8015  ;;  %v8019_v58 = vpop.xlane.xlu1 %8018  ;;  %8189 = vadd.xlane.f32.xlu0 %v8188_v15  ;;  %8174 = vadd.xlane.f32.xlu1 %v8173_v6  ;;  %v8191_v59 = vsel %vm2169_vm3, %v16659_v39, 0.0 }
 0xaea   :  { %12869 = vpow2.f32 %v8134_v29  ;;  %v8086_v57 = vsub.f32 %v16521_v34, %v8016_v43  ;;  %v8087_v23 = vsub.f32 %v16529_v48, %v8019_v58 }
 0xaeb   :  { %v16665_v49 = vpop.eup %12857  ;;  %12871 = vpow2.f32 %v8136_v32 }
 0xaec   :  { %v8130_v62 = vmul.f32 1.442695, %v8086_v57  ;;  %v8132_v36 = vmul.f32 1.442695, %v8087_v23  ;;  %v8182_v45 = vsel %vm2169_vm3, %v16665_v49, 0.0  ;;  %v16671_v3 = vpop.eup %12859 }
 0xaed   :  { %v8034_v35 = vpop.xlane.xlu0 %8033  ;;  %v8037_v22 = vpop.xlane.xlu1 %8036  ;;  %8183 = vadd.xlane.f32.xlu0 %v8182_v45  ;;  %8192 = vadd.xlane.f32.xlu1 %v8191_v59  ;;  %v8185_v31 = vsel %vm2169_vm3, %v16671_v3, 0.0 }
 0xaee   :  { %12873 = vpow2.f32 %v8130_v62  ;;  %v8092_v34 = vsub.f32 %v16535_v7, %v8034_v35  ;;  %v8093_v47 = vsub.f32 %v16543_v53, %v8037_v22 }
 0xaef   :  { %v16674_v48 = vpop.eup %12861  ;;  %12875 = vpow2.f32 %v8132_v36 }
 0xaf0   :  { %v8142_v20 = vmul.f32 1.442695, %v8092_v34  ;;  %v8200_v12 = vsel %vm2169_vm3, %v16674_v48, 0.0  ;;  %v16681_v1 = vpop.eup %12863  ;;  %v8144_v32 = vmul.f32 1.442695, %v8093_v47 }
 0xaf1   :  { %v8028_v30 = vpop.xlane.xlu0 %8027  ;;  %v8031_v6 = vpop.xlane.xlu1 %8030  ;;  %8201 = vadd.xlane.f32.xlu0 %v8200_v12  ;;  %8186 = vadd.xlane.f32.xlu1 %v8185_v31  ;;  %v8203_v57 = vsel %vm2169_vm3, %v16681_v1, 0.0 }
 0xaf2   :  { %12877 = vpow2.f32 %v8142_v20  ;;  %v8090_v7 = vsub.f32 %v16537_v51, %v8028_v30  ;;  %v8091_v29 = vsub.f32 %v16545_v25, %v8031_v6 }
 0xaf3   :  { %v16685_v53 = vpop.eup %12865 }
 0xaf4   :  { %v8138_v15 = vmul.f32 1.442695, %v8090_v7  ;;  %v8140_v43 = vmul.f32 1.442695, %v8091_v29  ;;  %v8194_v58 = vsel %vm2169_vm3, %v16685_v53, 0.0  ;;  %v16691_v23 = vpop.eup %12867 }
 0xaf5   :  { %v8046_v59 = vpop.xlane.xlu0 %8045  ;;  %v8049_v62 = vpop.xlane.xlu1 %8048  ;;  %8195 = vadd.xlane.f32.xlu0 %v8194_v58  ;;  %8204 = vadd.xlane.f32.xlu1 %v8203_v57  ;;  %v8197_v22 = vsel %vm2169_vm3, %v16691_v23, 0.0 }
 0xaf6   :  { %12879 = vpow2.f32 %v8138_v15  ;;  %v8096_v51 = vsub.f32 %v16551_v50, %v8046_v59  ;;  %v8097_v36 = vsub.f32 %v16559_v21, %v8049_v62 }
 0xaf7   :  { %v16694_v25 = vpop.eup %12869  ;;  %12881 = vpow2.f32 %v8140_v43 }
 0xaf8   :  { %12883 = vpow2.f32 %v8144_v32  ;;  %v8150_v45 = vmul.f32 1.442695, %v8096_v51  ;;  %v8212_v35 = vsel %vm2169_vm3, %v16694_v25, 0.0  ;;  %v16701_v34 = vpop.eup %12871  ;;  %v8152_v31 = vmul.f32 1.442695, %v8097_v36 }
 0xaf9   :  { %v8040_v47 = vpop.xlane.xlu0 %8039  ;;  %v8043_v20 = vpop.xlane.xlu1 %8042  ;;  %8213 = vadd.xlane.f32.xlu0 %v8212_v35  ;;  %8198 = vadd.xlane.f32.xlu1 %v8197_v22  ;;  %v8215_v29 = vsel %vm2169_vm3, %v16701_v34, 0.0 }
 0xafa   :  { %12885 = vpow2.f32 %v8150_v45  ;;  %v8094_v50 = vsub.f32 %v16553_v38, %v8040_v47  ;;  %v8095_v12 = vsub.f32 %v16561_v18, %v8043_v20 }
 0xafb   :  { %v16705_v21 = vpop.eup %12873 }
 0xafc   :  { %v8146_v30 = vmul.f32 1.442695, %v8094_v50  ;;  %v8148_v6 = vmul.f32 1.442695, %v8095_v12  ;;  %v8206_v7 = vsel %vm2169_vm3, %v16705_v21, 0.0  ;;  %v16711_v32 = vpop.eup %12875 }
 0xafd   :  { %v8058_v15 = vpop.xlane.xlu0 %8057  ;;  %v8061_v43 = vpop.xlane.xlu1 %8060  ;;  %8207 = vadd.xlane.f32.xlu0 %v8206_v7  ;;  %8216 = vadd.xlane.f32.xlu1 %v8215_v29  ;;  %v8209_v62 = vsel %vm2169_vm3, %v16711_v32, 0.0 }
 0xafe   :  { %12887 = vpow2.f32 %v8146_v30  ;;  %v8100_v38 = vsub.f32 %v16567_v55, %v8058_v15  ;;  %v8101_v58 = vsub.f32 %v16575_v8, %v8061_v43 }
 0xaff   :  { %v16714_v18 = vpop.eup %12877  ;;  %12889 = vpow2.f32 %v8148_v6 }
 0xb00   :  { %12891 = vpow2.f32 %v8152_v31  ;;  %v8158_v57 = vmul.f32 1.442695, %v8100_v38  ;;  %v8224_v59 = vsel %vm2169_vm3, %v16714_v18, 0.0  ;;  %v8160_v8 = vmul.f32 1.442695, %v8101_v58 }
 0xb01   :  { %v8052_v51 = vpop.xlane.xlu0 %8051  ;;  %v8055_v36 = vpop.xlane.xlu1 %8054  ;;  %8225 = vadd.xlane.f32.xlu0 %v8224_v59  ;;  %8210 = vadd.xlane.f32.xlu1 %v8209_v62 }
 0xb02   :  { %12893 = vpow2.f32 %v8158_v57  ;;  %v8098_v55 = vsub.f32 %v16569_v4, %v8052_v51  ;;  %v8099_v45 = vsub.f32 %v16577_v13, %v8055_v36 }
 0xb03   :  { %v16723_v35 = vpop.eup %12879 }
 0xb04   :  { %v16725_v22 = vpop.eup %12881  ;;  %v8154_v47 = vmul.f32 1.442695, %v8098_v55  ;;  %v8156_v20 = vmul.f32 1.442695, %v8099_v45  ;;  %v8218_v50 = vsel %vm2169_vm3, %v16723_v35, 0.0 }
 0xb05   :  { %v16729_v12 = vpop.eup %12883  ;;  %v8070_v31 = vpop.xlane.xlu0 %8069  ;;  %v8221_v6 = vsel %vm2169_vm3, %v16725_v22, 0.0  ;;  %8219 = vadd.xlane.f32.xlu1 %v8218_v50 }
 0xb06   :  { %v8073_v30 = vpop.xlane.xlu1 %8072  ;;  %12895 = vpow2.f32 %v8154_v47  ;;  %v8104_v4 = vsub.f32 %v16583_v54, %v8070_v31  ;;  %8222 = vadd.xlane.f32.xlu0 %v8221_v6  ;;  %v8227_v43 = vsel %vm2169_vm3, %v16729_v12, 0.0 }
 0xb07   :  { %v16734_v13 = vpop.eup %12885  ;;  %12897 = vpow2.f32 %v8156_v20  ;;  %v8105_v7 = vsub.f32 %v16591_v28, %v8073_v30 }
 0xb08   :  { %12899 = vpow2.f32 %v8160_v8  ;;  %v8166_v29 = vmul.f32 1.442695, %v8104_v4  ;;  %v8236_v15 = vsel %vm2169_vm3, %v16734_v13, 0.0 }
 0xb09   :  { %v8064_v38 = vpop.xlane.xlu0 %8063  ;;  %8228 = vadd.xlane.f32.xlu1 %v8227_v43  ;;  %v8168_v28 = vmul.f32 1.442695, %v8105_v7 }
 0xb0a   :  { %v8067_v58 = vpop.xlane.xlu1 %8066  ;;  %12901 = vpow2.f32 %v8166_v29  ;;  %8237 = vadd.xlane.f32.xlu0 %v8236_v15  ;;  %v8102_v54 = vsub.f32 %v16585_v33, %v8064_v38 }
 0xb0b   :  { %v8103_v57 = vsub.f32 %v16593_v52, %v8067_v58  ;;  %v16743_v59 = vpop.eup %12887 }
 0xb0c   :  { %v16745_v62 = vpop.eup %12889  ;;  %v8162_v51 = vmul.f32 1.442695, %v8102_v54  ;;  %v8230_v55 = vsel %vm2169_vm3, %v16743_v59, 0.0 }
 0xb0d   :  { %v8164_v36 = vmul.f32 1.442695, %v8103_v57  ;;  %v16749_v45 = vpop.eup %12891  ;;  %v8233_v8 = vsel %vm2169_vm3, %v16745_v62, 0.0  ;;  %8231 = vadd.xlane.f32.xlu1 %v8230_v55  ;;  %v18086_v55 = vld [vmem:[#allocation60_spill] sm:$0xff] }
 0xb0e   :  { %12903 = vpow2.f32 %v8162_v51  ;;  %8234 = vadd.xlane.f32.xlu0 %v8233_v8  ;;  %v8239_v47 = vsel %vm2169_vm3, %v16749_v45, 0.0  ;;  %v18084_v51 = vld [vmem:[#allocation84_spill] sm:$0xff] }
 0xb0f   :  { %v16753_v33 = vpop.eup %12893  ;;  %12905 = vpow2.f32 %v8164_v36  ;;  %v18085_v36 = vld [vmem:[#allocation109_spill] sm:$0xff] }
 0xb10   :  { %12907 = vpow2.f32 %v8168_v28  ;;  %v8248_v52 = vsel %vm2169_vm3, %v16753_v33, 0.0  ;;  %v18083_v28 = vld [vmem:[#allocation24_spill] sm:$0xff]  ;;  %v18087_v8 = vpack.i.bf16 %v18085_v36, %v18086_v55  ;;  %v18104_v55 = vld [vmem:[#allocation118_spill] sm:$0xff] }
 0xb11   :  { %8240 = vadd.xlane.f32.xlu1 %v8239_v47  ;;  %v18089_v47 = vld [vmem:[#allocation110_spill] sm:$0xff] }
 0xb12   :  { %8249 = vadd.xlane.f32.xlu0 %v8248_v52  ;;  %v18088_v52 = vld [vmem:[#allocation111_spill] sm:$0xff] }
 0xb13   :  { %v16759_v20 = vpop.eup %12895 }
 0xb14   :  { %v16761_v50 = vpop.eup %12897  ;;  %v8242_v31 = vsel %vm2169_vm3, %v16759_v20, 0.0 }
 0xb15   :  { %v16765_v30 = vpop.eup %12899  ;;  %v8245_v6 = vsel %vm2169_vm3, %v16761_v50, 0.0  ;;  %8243 = vadd.xlane.f32.xlu1 %v8242_v31  ;;  %v18090_v31 = vpack.i.bf16 %v18088_v52, %v18089_v47 }
 0xb16   :  { %8246 = vadd.xlane.f32.xlu0 %v8245_v6  ;;  %v8251_v29 = vsel %vm2169_vm3, %v16765_v30, 0.0  ;;  %v18091_v6 = vpack.i.bf16 %v16381_v14, %v16379_v9  ;;  %v18099_v9 = vpack.i.bf16 %v16395_v46, %v16389_v11  ;;  %v18100_v14 = vpack.i.bf16 %v16399_v41, %v16393_v17  ;;  %v18109_v46 = vld [vmem:[#allocation122_spill] sm:$0xff]  ;;  %v18110_v41 = vld [vmem:[#allocation120_spill] sm:$0xff] }
 0xb17   :  { %v16769_v4 = vpop.eup %12901  ;;  %v18107_v11 = vpack.i.bf16 %v16407_v5, %v16401_v0  ;;  %v18108_v17 = vpack.i.bf16 %v16411_v10, %v16405_v37  ;;  %v18111_v47 = vpack.i.bf16 %v18109_v46, %v18110_v41  ;;  %v18115_v0 = vpack.i.bf16 %v16419_v63, %v16413_v26  ;;  %v18117_v5 = vld [vmem:[#allocation126_spill] sm:$0xff]  ;;  %v18118_v10 = vld [vmem:[#allocation124_spill] sm:$0xff]  ;;  %v16865_v26 = vpop.permute.xlu1 %8957 }
 0xb18   :  { %v8260_v7 = vsel %vm2169_vm3, %v16769_v4, 0.0  ;;  %v18116_v37 = vpack.i.bf16 %v16423_v24, %v16417_v42 }
 0xb19   :  { %8252 = vadd.xlane.f32.xlu1 %v8251_v29  ;;  %v18093_v29 = vld [vmem:[#allocation114_spill] sm:$0xff] }
 0xb1a   :  { %8261 = vadd.xlane.f32.xlu0 %v8260_v7  ;;  %v18092_v7 = vpack.i.bf16 %v16387_v56, %v16383_v16  ;;  %v18101_v16 = vld [vmem:[#allocation117_spill] sm:$0xff]  ;;  %v18102_v56 = vld [vmem:[#allocation116_spill] sm:$0xff] }
 0xb1b   :  { %v16775_v15 = vpop.eup %12903  ;;  %v18103_v36 = vpack.i.bf16 %v18101_v16, %v18102_v56 }
 0xb1c   :  { %v16777_v43 = vpop.eup %12905  ;;  %v8254_v38 = vsel %vm2169_vm3, %v16775_v15, 0.0 }
 0xb1d   :  { %v16781_v58 = vpop.eup %12907  ;;  %8255 = vadd.xlane.f32.xlu1 %v8254_v38  ;;  %v8257_v54 = vsel %vm2169_vm3, %v16777_v43, 0.0  ;;  %v18094_v38 = vld [vmem:[#allocation112_spill] sm:$0xff] }
 0xb1e   :  { %8258 = vadd.xlane.f32.xlu0 %v8257_v54  ;;  %v8263_v57 = vsel %vm2169_vm3, %v16781_v58, 0.0  ;;  %v18095_v54 = vpack.i.bf16 %v18093_v29, %v18094_v38  ;;  %v18119_v29 = vpack.i.bf16 %v18117_v5, %v18118_v10  ;;  %v18120_v38 = vld [vmem:[#allocation127_spill] sm:$0xff] }
 0xb21   :  { %8264 = vadd.xlane.f32.xlu1 %v8263_v57  ;;  %v18096_v57 = vld [vmem:[#allocation115_spill] sm:$0xff] }
 0xb32   :  { %9051 = vrot.lane.b32.xlu1 %v18083_v28, %s13112_s29  ;;  %v18097_v28 = vld [vmem:[#allocation113_spill] sm:$0xff] }
 0xb34   :  { %9004 = vrot.lane.b32.xlu0 %v18084_v51, %s13112_s29  ;;  %v18098_v51 = vpack.i.bf16 %v18096_v57, %v18097_v28  ;;  %v16863_v28 = vpop.permute.xlu0 %8910 }
 0xb36   :  { %12113 = vrot.lane.b32.xlu1 %v18087_v8, %s13106_s9  ;;  %v18105_v8 = vld [vmem:[#allocation119_spill] sm:$0xff] }
 0xb37   :  { %v18106_v52 = vpack.i.bf16 %v18104_v55, %v18105_v8 }
 0xb38   :  { %12108 = vrot.lane.b32.xlu0 %v18090_v31, %s13106_s9  ;;  %v18112_v31 = vld [vmem:[#allocation123_spill] sm:$0xff] }
 0xb3a   :  { %12123 = vrot.lane.b32.xlu1 %v18091_v6, %s13113_s10  ;;  %v18113_v6 = vld [vmem:[#allocation121_spill] sm:$0xff] }
 0xb3c   :  { %12118 = vrot.lane.b32.xlu0 %v18092_v7, %s13113_s10  ;;  %v18114_v7 = vpack.i.bf16 %v18112_v31, %v18113_v6 }
 0xb3e   :  { %12133 = vrot.lane.b32.xlu1 %v18095_v54, %s13106_s9  ;;  %v18121_v54 = vld [vmem:[#allocation125_spill] sm:$0xff] }
 0xb3f   :  { %v18122_v57 = vpack.i.bf16 %v18120_v38, %v18121_v54  ;;  %v18125_v38 = vld [vmem:[#allocation14_spill] sm:$0xff] }
 0xb40   :  { %12128 = vrot.lane.b32.xlu0 %v18098_v51, %s13106_s9 }
 0xb42   :  { %12143 = vrot.lane.b32.xlu1 %v18099_v9, %s13113_s10 }
 0xb44   :  { %12138 = vrot.lane.b32.xlu0 %v18100_v14, %s13113_s10 }
 0xb46   :  { %12153 = vrot.lane.b32.xlu1 %v18103_v36, %s13106_s9 }
 0xb48   :  { %12148 = vrot.lane.b32.xlu0 %v18106_v52, %s13106_s9 }
 0xb4a   :  { %12163 = vrot.lane.b32.xlu1 %v18107_v11, %s13113_s10 }
 0xb4c   :  { %12158 = vrot.lane.b32.xlu0 %v18108_v17, %s13113_s10 }
 0xb4e   :  { %12173 = vrot.lane.b32.xlu1 %v18111_v47, %s13106_s9 }
 0xb50   :  { %12168 = vrot.lane.b32.xlu0 %v18114_v7, %s13106_s9 }
 0xb52   :  { %12183 = vrot.lane.b32.xlu1 %v18115_v0, %s13113_s10 }
 0xb54   :  { %12178 = vrot.lane.b32.xlu0 %v18116_v37, %s13113_s10  ;;  %v18123_v37 = vmov 0.0  }
 0xb56   :  { %12193 = vrot.lane.b32.xlu1 %v18119_v29, %s13106_s9  ;;  %v18124_v29 = vld [vmem:[#allocation12_spill] sm:$0xff] }
 0xb57   :  { %v16878_v54 = vadd.f32 %v18125_v38, %v18124_v29  ;;  %v18130_v38 = vld [vmem:[#allocation56_spill] sm:$0xff] }
 0xb58   :  { %12188 = vrot.lane.b32.xlu0 %v18122_v57, %s13106_s9 }
 0xb66   :  { %v8178_v51 = vpop.xlane.xlu0 %8177 }
 0xb67   :  { %12909 = vrcp.f32 %v8178_v51 }
 0xb6a   :  { %v8172_v63 = vpop.xlane.xlu0 %8171 }
 0xb6e   :  { %v8181_v9 = vpop.xlane.xlu1 %8180 }
 0xb6f   :  { %12911 = vrcp.f32 %v8181_v9 }
 0xb70   :  { %12913 = vrcp.f32 %v8172_v63  ;;  %v18126_v63 = vld [vmem:[#allocation44_spill] sm:$0xff] }
 0xb72   :  { %v8190_v42 = vpop.xlane.xlu0 %8189  ;;  %v8175_v24 = vpop.xlane.xlu1 %8174 }
 0xb73   :  { %12915 = vrcp.f32 %v8175_v24 }
 0xb74   :  { %12917 = vrcp.f32 %v8190_v42  ;;  %v12910_v56 = vpop.eup %12909 }
 0xb75   :  { %v8300_v52 = vmul.f32 %v12910_v56, %v16635_v2 }
 0xb76   :  { %v8184_v14 = vpop.xlane.xlu0 %8183  ;;  %v8193_v16 = vpop.xlane.xlu1 %8192 }
 0xb77   :  { %12919 = vrcp.f32 %v8193_v16 }
 0xb78   :  { %12921 = vrcp.f32 %v8184_v14 }
 0xb7a   :  { %v8202_v36 = vpop.xlane.xlu0 %8201  ;;  %v8187_v55 = vpop.xlane.xlu1 %8186 }
 0xb7b   :  { %12923 = vrcp.f32 %v8187_v55 }
 0xb7c   :  { %v12912_v8 = vpop.eup %12911  ;;  %12925 = vrcp.f32 %v8202_v36 }
 0xb7d   :  { %v8301_v11 = vmul.f32 %v12912_v8, %v16647_v61  ;;  %v12914_v41 = vpop.eup %12913  ;;  %v18128_v8 = vld [vmem:[#allocation53_spill] sm:$0xff] }
 0xb7e   :  { %v8196_v17 = vpop.xlane.xlu0 %8195  ;;  %v8205_v46 = vpop.xlane.xlu1 %8204  ;;  %v8298_v6 = vmul.f32 %v12914_v41, %v16641_v19 }
 0xb7f   :  { %v8331_v47 = vpack.c.bf16 %v8301_v11, %v8300_v52  ;;  %12927 = vrcp.f32 %v8205_v46 }
 0xb80   :  { %v12916_v31 = vpop.eup %12915  ;;  %12929 = vrcp.f32 %v8196_v17 }
 0xb81   :  { %11920 = vmatmul.mubr.msk.bf16.vlgmr.msra.gmra.mxu1 %vm2169_vm3, %v8331_v47  ;;  %v8299_v7 = vmul.f32 %v12916_v31, %v16649_v44  ;;  %v12918_v61 = vpop.eup %12917  ;;  %v18129_v31 = vld [vmem:[#allocation57_spill] sm:$0xff] }
 0xb82   :  { %11930 = vmatpush3.bf16.msra.mxu1 %v16607_v60  ;;  %v8214_v0 = vpop.xlane.xlu0 %8213  ;;  %v8199_v2 = vpop.xlane.xlu1 %8198  ;;  %11931 = vmatprep.mubr.msk.bf16.mxu1 %vm13109_vm1, %v18123_v37  ;;  %v8304_v19 = vmul.f32 %v12918_v61, %v16655_v40  ;;  %v18127_v40 = vld [vmem:[#allocation13_spill] sm:$0xff] }
 0xb83   :  { %11941 = vmatprep.subr.bf16.mxu1 %v18123_v37  ;;  %v8330_v5 = vpack.c.bf16 %v8299_v7, %v8298_v6  ;;  %12931 = vrcp.f32 %v8199_v2  ;;  %v16889_v24 = vadd.f32 %v18127_v40, %v18124_v29 }
 0xb84   :  { %v12920_v10 = vpop.eup %12919  ;;  %12933 = vrcp.f32 %v8214_v0 }
 0xb85   :  { %v8305_v44 = vmul.f32 %v12920_v10, %v16659_v39  ;;  %11914 = vmatmul.mubr.msk.bf16.vlgmr.msra.gmra.mxu0 %vm2169_vm3, %v8330_v5  ;;  %v12922_v51 = vpop.eup %12921  ;;  %v9821_v39 = vmul.f32 %v16878_v54, %v16878_v54 }
 0xb86   :  { %v8208_v60 = vpop.xlane.xlu0 %8207  ;;  %v8217_v57 = vpop.xlane.xlu1 %8216  ;;  %11924 = vmatpush3.bf16.msra.mxu0 %v18126_v63  ;;  %11925 = vmatprep.mubr.msk.bf16.mxu0 %vm13109_vm1, %v18123_v37  ;;  %v8302_v14 = vmul.f32 %v12922_v51, %v16665_v49  ;;  %v9820_v49 = vmul.f32 %v16889_v24, %v16889_v24 }
 0xb87   :  { %v8333_v9 = vpack.c.bf16 %v8305_v44, %v8304_v19  ;;  %12935 = vrcp.f32 %v8217_v57  ;;  %11935 = vmatprep.subr.bf16.mxu0 %v18123_v37 }
 0xb88   :  { %v12924_v42 = vpop.eup %12923  ;;  %12937 = vrcp.f32 %v8208_v60 }
 0xb89   :  { %v8303_v16 = vmul.f32 %v12924_v42, %v16671_v3  ;;  %11932 = vmatmul.mubr.msk.bf16.vlgmr.msra.gmra.mxu1 %vm2169_vm3, %v8333_v9  ;;  %v12926_v55 = vpop.eup %12925  ;;  %v9853_v3 = vmul.f32 %v9821_v39, %v16878_v54  ;;  %v18131_v42 = vld [vmem:[#allocation59_spill] sm:$0xff] }
 0xb8a   :  { %v8226_v56 = vpop.xlane.xlu0 %8225  ;;  %v8211_v36 = vpop.xlane.xlu1 %8210  ;;  %11942 = vmatpush3.bf16.msra.mxu1 %v18128_v8  ;;  %11943 = vmatprep.mubr.msk.bf16.mxu1 %vm13109_vm1, %v18123_v37  ;;  %v8308_v17 = vmul.f32 %v12926_v55, %v16674_v48  ;;  %v9852_v48 = vmul.f32 %v9820_v49, %v16889_v24  ;;  %v18132_v55 = vld [vmem:[#allocation58_spill] sm:$0xff] }
 0xb8b   :  { %v8332_v52 = vpack.c.bf16 %v8303_v16, %v8302_v14  ;;  %12939 = vrcp.f32 %v8211_v36  ;;  %11953 = vmatprep.subr.bf16.mxu1 %v18123_v37 }
 0xb8c   :  { %v12928_v11 = vpop.eup %12927  ;;  %v9884_v57 = vmul.f32 0.044715, %v9852_v48 }
 0xb8d   :  { %v8309_v46 = vmul.f32 %v12928_v11, %v16681_v1  ;;  %11926 = vmatmul.mubr.msk.bf16.vlgmr.msra.gmra.mxu0 %vm2169_vm3, %v8332_v52  ;;  %v12930_v47 = vpop.eup %12929  ;;  %v9885_v1 = vmul.f32 0.044715, %v9853_v3 }
 0xb8e   :  { %v8220_v41 = vpop.xlane.xlu1 %8219  ;;  %11936 = vmatpush3.bf16.msra.mxu0 %v18129_v31  ;;  %11937 = vmatprep.mubr.msk.bf16.mxu0 %vm13109_vm1, %v18123_v37  ;;  %v8306_v2 = vmul.f32 %v12930_v47, %v16685_v53 }
 0xb8f   :  { %v8223_v6 = vpop.xlane.xlu0 %8222  ;;  %12941 = vrcp.f32 %v8220_v41  ;;  %v8335_v7 = vpack.c.bf16 %v8309_v46, %v8308_v17  ;;  %11947 = vmatprep.subr.bf16.mxu0 %v18123_v37  ;;  %v9917_v53 = vadd.f32 %v9885_v1, %v16878_v54 }
 0xb90   :  { %12943 = vrcp.f32 %v8223_v6  ;;  %v12932_v0 = vpop.eup %12931 }
 0xb91   :  { %12945 = vrcp.f32 %v8226_v56  ;;  %v8307_v61 = vmul.f32 %v12932_v0, %v16691_v23  ;;  %11944 = vmatmul.mubr.msk.bf16.vlgmr.msra.gmra.mxu1 %vm2169_vm3, %v8335_v7  ;;  %v12934_v10 = vpop.eup %12933 }
 0xb92   :  { %v8229_v5 = vpop.xlane.xlu1 %8228  ;;  %11954 = vmatpush3.bf16.msra.mxu1 %v18130_v38  ;;  %11955 = vmatprep.mubr.msk.bf16.mxu1 %vm13109_vm1, %v18123_v37  ;;  %v8312_v23 = vmul.f32 %v12934_v10, %v16694_v25  ;;  %v9916_v25 = vadd.f32 %v9884_v57, %v16889_v24  ;;  %v18135_v10 = vld [vmem:[#allocation61_spill] sm:$0xff] }
 0xb93   :  { %v8238_v19 = vpop.xlane.xlu0 %8237  ;;  %12947 = vrcp.f32 %v8229_v5  ;;  %v8334_v44 = vpack.c.bf16 %v8307_v61, %v8306_v2  ;;  %11965 = vmatprep.subr.bf16.mxu1 %v18123_v37 }
 0xb94   :  { %v12936_v60 = vpop.eup %12935  ;;  %v9948_v17 = vmul.f32 0.7978846, %v9916_v25  ;;  %v18137_v25 = vld [vmem:[#allocation18_spill] sm:$0xff] }
 0xb95   :  { %v8313_v51 = vmul.f32 %v12936_v60, %v16701_v34  ;;  %11938 = vmatmul.mubr.msk.bf16.vlgmr.msra.gmra.mxu0 %vm2169_vm3, %v8334_v44  ;;  %v12938_v9 = vpop.eup %12937  ;;  %v9949_v34 = vmul.f32 0.7978846, %v9917_v53  ;;  %v18136_v53 = vld [vmem:[#allocation15_spill] sm:$0xff] }
 0xb96   :  { %v8232_v63 = vpop.xlane.xlu1 %8231  ;;  %11948 = vmatpush3.bf16.msra.mxu0 %v18131_v42  ;;  %11949 = vmatprep.mubr.msk.bf16.mxu0 %vm13109_vm1, %v18123_v37  ;;  %v8310_v16 = vmul.f32 %v12938_v9, %v16705_v21 }
 0xb97   :  { %v8235_v40 = vpop.xlane.xlu0 %8234  ;;  %12949 = vrcp.f32 %v8232_v63  ;;  %v8337_v39 = vpack.c.bf16 %v8313_v51, %v8312_v23  ;;  %11959 = vmatprep.subr.bf16.mxu0 %v18123_v37  ;;  %v16963_v23 = vadd.f32 %v18136_v53, %v18124_v29 }
 0xb98   :  { %12951 = vrcp.f32 %v8235_v40  ;;  %v12940_v14 = vpop.eup %12939 }
 0xb99   :  { %12953 = vrcp.f32 %v8238_v19  ;;  %v8311_v56 = vmul.f32 %v12940_v14, %v16711_v32  ;;  %11956 = vmatmul.mubr.msk.bf16.vlgmr.msra.gmra.mxu1 %vm2169_vm3, %v8337_v39  ;;  %v18133_v32 = vld [vmem:[#allocation140_spill] sm:$0xff] }
 0xb9a   :  { %v8241_v36 = vpop.xlane.xlu1 %8240  ;;  %11966 = vmatpush3.bf16.msra.mxu1 %v18132_v55  ;;  %11967 = vmatprep.mubr.msk.bf16.mxu1 %vm13109_vm1, %v18123_v37 }
 0xb9b   :  { %v8250_v8 = vpop.xlane.xlu0 %8249  ;;  %12955 = vrcp.f32 %v8241_v36  ;;  %v8336_v11 = vpack.c.bf16 %v8311_v56, %v8310_v16  ;;  %11977 = vmatprep.subr.bf16.mxu1 %v18123_v37 }
 0xb9c   :  { %v12942_v52 = vpop.eup %12941  ;;  %12957 = vtanh.f32 %v9949_v34  ;;  %v16975_v34 = vadd.f32 %v18137_v25, %v18124_v29  ;;  %v12358_v25 = vld [vmem:[%s17587_s7 + $0x20] sm:$0xff]  }
 0xb9d   :  { %v12944_v49 = vpop.eup %12943  ;;  %11950 = vmatmul.mubr.msk.bf16.vlgmr.msra.gmra.mxu0 %vm2169_vm3, %v8336_v11  ;;  %v8314_v31 = vmul.f32 %v12942_v52, %v16723_v35  ;;  %v18138_v52 = vld [vmem:[#allocation17_spill] sm:$0xff] }
 0xb9e   :  { %v12946_v3 = vpop.eup %12945  ;;  %v8244_v21 = vpop.xlane.xlu1 %8243  ;;  %11960 = vmatpush3.bf16.msra.mxu0 %v18133_v32  ;;  %11961 = vmatprep.mubr.msk.bf16.mxu0 %vm13109_vm1, %v18123_v37  ;;  %v8315_v47 = vmul.f32 %v12944_v49, %v16725_v22  ;;  %v16991_v11 = vadd.f32 %v18138_v52, %v18124_v29 }
 0xb9f   :  { %v8247_v46 = vpop.xlane.xlu0 %8246  ;;  %12959 = vrcp.f32 %v8244_v21  ;;  %11971 = vmatprep.subr.bf16.mxu0 %v18123_v37  ;;  %v8316_v6 = vmul.f32 %v12946_v3, %v16714_v18  ;;  %v18134_v18 = vld [vmem:[#allocation16_spill] sm:$0xff] }
 0xba0   :  { %v12948_v41 = vpop.eup %12947  ;;  %12961 = vrcp.f32 %v8247_v46  ;;  %v8338_v61 = vpack.c.bf16 %v8315_v47, %v8314_v31  ;;  %v9828_v31 = vmul.f32 %v16991_v11, %v16991_v11 }
 0xba1   :  { %v8317_v7 = vmul.f32 %v12948_v41, %v16729_v12  ;;  %12963 = vrcp.f32 %v8250_v8  ;;  %v16948_v12 = vadd.f32 %v18134_v18, %v18124_v29 }
 0xba2   :  { %12965 = vtanh.f32 %v9948_v17  ;;  %v8253_v0 = vpop.xlane.xlu1 %8252 }
 0xba3   :  { %v8339_v48 = vpack.c.bf16 %v8317_v7, %v8316_v6  ;;  %v8262_v1 = vpop.xlane.xlu0 %8261  ;;  %12967 = vrcp.f32 %v8253_v0 }
 0xba4   :  { %v12950_v2 = vpop.eup %12949 }
 0xba5   :  { %v12952_v5 = vpop.eup %12951  ;;  %11968 = vmatmul.mubr.msk.bf16.vlgmr.msra.gmra.mxu1 %vm2169_vm3, %v8339_v48  ;;  %11962 = vmatmul.mubr.msk.bf16.vlgmr.msra.gmra.mxu0 %vm2169_vm3, %v8338_v61  ;;  %v8318_v60 = vmul.f32 %v12950_v2, %v16743_v59  ;;  %v9825_v59 = vmul.f32 %v16948_v12, %v16948_v12  ;;  %v18139_v2 = vld [vmem:[#allocation22_spill] sm:$0xff] }
 0xba6   :  { %v12954_v22 = vpop.eup %12953  ;;  %11978 = vmatpush3.bf16.msra.mxu1 %v16625_v27  ;;  %v8256_v35 = vpop.xlane.xlu1 %8255  ;;  %11972 = vmatpush3.bf16.msra.mxu0 %v18135_v10  ;;  %v8319_v44 = vmul.f32 %v12952_v5, %v16745_v62  ;;  %v17008_v61 = vadd.f32 %v18139_v2, %v18124_v29  ;;  %v18145_v2 = vld [vmem:[#allocation42_spill] sm:$0xff] }
 0xba7   :  { %v8259_v38 = vpop.xlane.xlu0 %8258  ;;  %12969 = vrcp.f32 %v8256_v35  ;;  %11973 = vmatprep.mubr.msk.bf16.mxu0 %vm13109_vm1, %v18123_v37  ;;  %11979 = vmatprep.mubr.msk.bf16.mxu1 %vm13109_vm1, %v18123_v37  ;;  %v8320_v27 = vmul.f32 %v12954_v22, %v16734_v13  ;;  %v9857_v14 = vmul.f32 %v9825_v59, %v16948_v12 }
 0xba8   :  { %v12956_v19 = vpop.eup %12955  ;;  %12971 = vrcp.f32 %v8259_v38  ;;  %11983 = vmatprep.subr.bf16.mxu0 %v18123_v37  ;;  %11989 = vmatprep.subr.bf16.mxu1 %v18123_v37  ;;  %v8340_v42 = vpack.c.bf16 %v8319_v44, %v8318_v60  ;;  %v18140_v44 = vld [vmem:[#allocation20_spill] sm:$0xff] }
 0xba9   :  { %v8321_v57 = vmul.f32 %v12956_v19, %v16749_v45  ;;  %12973 = vrcp.f32 %v8262_v1  ;;  %v12958_v51 = vpop.eup %12957  ;;  %v9824_v45 = vmul.f32 %v16963_v23, %v16963_v23  ;;  %v9860_v19 = vmul.f32 %v9828_v31, %v16991_v11 }
 0xbaa   :  { %v8265_v62 = vpop.xlane.xlu1 %8264  ;;  %v17021_v60 = vadd.f32 %v18140_v44, %v18124_v29 }
 0xbab   :  { %v8341_v63 = vpack.c.bf16 %v8321_v57, %v8320_v27  ;;  %12975 = vrcp.f32 %v8265_v62  ;;  %v9856_v8 = vmul.f32 %v9824_v45, %v16963_v23  ;;  %v9005_v6 = vpop.permute.xlu0 %9004  ;;  %v9892_v62 = vmul.f32 0.044715, %v9860_v19 }
 0xbac   :  { %v12960_v9 = vpop.eup %12959 }
 0xbad   :  { %v12962_v40 = vpop.eup %12961  ;;  %11980 = vmatmul.mubr.msk.bf16.vlgmr.msra.gmra.mxu1 %vm2169_vm3, %v8341_v63  ;;  %11974 = vmatmul.mubr.msk.bf16.vlgmr.msra.gmra.mxu0 %vm2169_vm3, %v8340_v42  ;;  %v8322_v36 = vmul.f32 %v12960_v9, %v16759_v20  ;;  %v9829_v20 = vmul.f32 %v16975_v34, %v16975_v34  ;;  %v9888_v47 = vmul.f32 0.044715, %v9856_v8  ;;  %v12357_v63 = vld [vmem:[%s17587_s7 + $0x28] sm:$0xff]   ;;  %v9924_v45 = vadd.f32 %v9892_v62, %v16991_v11  ;;  %v18143_v8 = vld [vmem:[#allocation36_spill] sm:$0xff] }
 0xbae   :  { %v12964_v13 = vpop.eup %12963  ;;  %11990 = vmatpush3.bf16.msra.mxu1 %v16865_v26  ;;  %11984 = vmatpush3.bf16.msra.mxu0 %v16863_v28  ;;  %v8323_v56 = vmul.f32 %v12962_v40, %v16761_v50  ;;  %v10013_v28 = vadd.f32 1.0, %v12958_v51  ;;  %v9889_v50 = vmul.f32 0.044715, %v9857_v14  ;;  %v9052_v32 = vpop.permute.xlu1 %9051  ;;  %v9832_v51 = vmul.f32 %v17021_v60, %v17021_v60  ;;  %v18142_v40 = vld [vmem:[#allocation25_spill] sm:$0xff] }
 0xbaf   :  { %v12966_v39 = vpop.eup %12965  ;;  %11985 = vmatprep.mubr.msk.bf16.mxu0 %vm13109_vm1, %v18123_v37  ;;  %11991 = vmatprep.mubr.msk.bf16.mxu1 %vm13109_vm1, %v18123_v37  ;;  %v8324_v26 = vmul.f32 %v12964_v13, %v16753_v33  ;;  %v12355_v33 = vld [vmem:[%s17587_s7 + $0x38] sm:$0xff]   ;;  %v9861_v0 = vmul.f32 %v9829_v20, %v16975_v34  ;;  %v9920_v38 = vadd.f32 %v9888_v47, %v16963_v23 }
 0xbb0   :  { %v12968_v16 = vpop.eup %12967  ;;  %11995 = vmatprep.subr.bf16.mxu0 %v18123_v37  ;;  %12001 = vmatprep.subr.bf16.mxu1 %v18123_v37  ;;  %v10012_v3 = vadd.f32 1.0, %v12966_v39  ;;  %v8342_v21 = vpack.c.bf16 %v8323_v56, %v8322_v36  ;;  %v10045_v46 = vmul.f32 0.5, %v10013_v28  ;;  %v9921_v7 = vadd.f32 %v9889_v50, %v16948_v12  ;;  %v12359_v50 = vld [vmem:[%s17587_s7 + $0x18] sm:$0xff]  }
 0xbb1   :  { %v8325_v55 = vmul.f32 %v12968_v16, %v16765_v30  ;;  %v9893_v27 = vmul.f32 0.044715, %v9861_v0  ;;  %v9952_v53 = vmul.f32 0.7978846, %v9920_v38  ;;  %v17044_v13 = vadd.f32 %v18142_v40, %v18124_v29 }
 0xbb2   :  { %v10044_v48 = vmul.f32 0.5, %v10012_v3  ;;  %v10077_v10 = vmul.f32 %v10045_v46, %v16878_v54  ;;  %v9864_v39 = vmul.f32 %v9832_v51, %v17021_v60  ;;  %v17058_v52 = vadd.f32 %v18143_v8, %v18124_v29  ;;  %v18144_v3 = vld [vmem:[#allocation33_spill] sm:$0xff] }
 0xbb3   :  { %v8343_v49 = vpack.c.bf16 %v8325_v55, %v8324_v26  ;;  %v9925_v9 = vadd.f32 %v9893_v27, %v16975_v34  ;;  %v9836_v36 = vmul.f32 %v17044_v13, %v17044_v13  ;;  %v9956_v26 = vmul.f32 0.7978846, %v9924_v45 }
 0xbb4   :  { %v12970_v17 = vpop.eup %12969  ;;  %v9896_v55 = vmul.f32 0.044715, %v9864_v39 }
 0xbb5   :  { %v12972_v30 = vpop.eup %12971  ;;  %11992 = vmatmul.mubr.msk.bf16.vlgmr.msra.gmra.mxu1 %vm2169_vm3, %v8343_v49  ;;  %11986 = vmatmul.mubr.msk.bf16.vlgmr.msra.gmra.mxu0 %vm2169_vm3, %v8342_v21  ;;  %v8326_v22 = vmul.f32 %v12970_v17, %v16775_v15  ;;  %v10076_v15 = vmul.f32 %v10044_v48, %v16889_v24  ;;  %v18141_v24 = vld [vmem:[#allocation30_spill] sm:$0xff]  ;;  %v9957_v16 = vmul.f32 0.7978846, %v9925_v9  ;;  %v9868_v49 = vmul.f32 %v9836_v36, %v17044_v13 }
 0xbb6   :  { %v12974_v41 = vpop.eup %12973  ;;  %12002 = vmatpush3.bf16.msra.mxu1 %v9052_v32  ;;  %11996 = vmatpush3.bf16.msra.mxu0 %v9005_v6  ;;  %v8327_v5 = vmul.f32 %v12972_v30, %v16777_v43  ;;  %v17035_v59 = vadd.f32 %v18141_v24, %v18124_v29  ;;  %v17067_v17 = vadd.f32 %v18144_v3, %v18124_v29  ;;  %v12360_v32 = vld [vmem:[%s17587_s7 + $0x10] sm:$0xff]  }
 0xbb7   :  { %11997 = vmatprep.mubr.msk.bf16.mxu0 %vm13109_vm1, %v18123_v37  ;;  %12003 = vmatprep.mubr.msk.bf16.mxu1 %vm13109_vm1, %v18123_v37  ;;  %v8328_v35 = vmul.f32 %v12974_v41, %v16769_v4  ;;  %v12356_v37 = vld [vmem:[%s17587_s7 + $0x30] sm:$0xff]   ;;  %v9953_v4 = vmul.f32 0.7978846, %v9921_v7  ;;  %v10108_v57 = vpack.c.bf16 %v10077_v10, %v10076_v15  ;;  %v9928_v21 = vadd.f32 %v9896_v55, %v17021_v60  ;;  %v18146_v10 = vld [vmem:[#allocation39_spill] sm:$0xff]  ;;  %v12362_v15 = vld [vmem:[%s17587_s7] sm:$0xff]  }
 0xbb8   :  { %v12976_v1 = vpop.eup %12975  ;;  %12043 = vmatprep.subr.bf16.mxu1 %v12355_v33  ;;  %v8344_v54 = vpack.c.bf16 %v8327_v5, %v8326_v22  ;;  %v9837_v14 = vmul.f32 %v17035_v59, %v17035_v59  ;;  %v9841_v30 = vmul.f32 %v17058_v52, %v17058_v52  ;;  %v9900_v47 = vmul.f32 0.044715, %v9868_v49  ;;  %v18150_v49 = vld [vmem:[#allocation27_spill] sm:$0xff] }
 0xbb9   :  { %v8329_v18 = vmul.f32 %v12976_v1, %v16781_v58  ;;  %v9833_v58 = vmul.f32 %v17008_v61, %v17008_v61  ;;  %12977 = vtanh.f32 %v9953_v4  ;;  %v9840_v31 = vmul.f32 %v17067_v17, %v17067_v17  ;;  %v12361_v1 = vld [vmem:[%s17587_s7 + $0x8] sm:$0xff]  }
 0xbba   :  { %12979 = vtanh.f32 %v9952_v53  ;;  %v9869_v28 = vmul.f32 %v9837_v14, %v17035_v59  ;;  %v9960_v6 = vmul.f32 0.7978846, %v9928_v21  ;;  %v9873_v48 = vmul.f32 %v9841_v30, %v17058_v52  ;;  %v18148_v14 = vld [vmem:[#allocation45_spill] sm:$0xff] }
 0xbbb   :  { %v8345_v43 = vpack.c.bf16 %v8329_v18, %v8328_v35  ;;  %v9865_v42 = vmul.f32 %v9833_v58, %v17008_v61  ;;  %12981 = vtanh.f32 %v9957_v16  ;;  %v17084_v5 = vadd.f32 %v18145_v2, %v18124_v29 }
 0xbbc   :  { %12983 = vtanh.f32 %v9956_v26  ;;  %v9932_v35 = vadd.f32 %v9900_v47, %v17044_v13  ;;  %v9872_v18 = vmul.f32 %v9840_v31, %v17067_v17  ;;  %v17090_v38 = vadd.f32 %v18146_v10, %v18124_v29 }
 0xbbd   :  { %12004 = vmatmul.mubr.msk.bf16.vlgmr.msra.gmra.mxu1 %vm2169_vm3, %v8345_v43  ;;  %11998 = vmatmul.mubr.msk.bf16.vlgmr.msra.gmra.mxu0 %vm2169_vm3, %v8344_v54  ;;  %v9897_v56 = vmul.f32 0.044715, %v9865_v42  ;;  %v9905_v43 = vmul.f32 0.044715, %v9873_v48 }
 0xbbe   :  { %12044 = vmatpush3.bf16.msra.mxu1 %v12355_v33  ;;  %12059 = vmatprep.mubr.bf16.mxu1 %v10108_v57  ;;  %v9901_v33 = vmul.f32 0.044715, %v9869_v28  ;;  %v9964_v58 = vmul.f32 0.7978846, %v9932_v35  ;;  %v9904_v54 = vmul.f32 0.044715, %v9872_v18  ;;  %v9844_v57 = vmul.f32 %v17090_v38, %v17090_v38 }
 0xbbf   :  { %12045 = vmatprep.subr.bf16.mxu1 %v12356_v37  ;;  %v9929_v20 = vadd.f32 %v9897_v56, %v17008_v61  ;;  %v9937_v51 = vadd.f32 %v9905_v43, %v17058_v52  ;;  %v18152_v35 = vld [vmem:[#allocation55_spill] sm:$0xff]  ;;  %v18153_v18 = vld [vmem:[#allocation62_spill] sm:$0xff] }
 0xbc0   :  { %v9933_v0 = vadd.f32 %v9901_v33, %v17035_v59  ;;  %v9936_v45 = vadd.f32 %v9904_v54, %v17067_v17  ;;  %v9876_v39 = vmul.f32 %v9844_v57, %v17090_v38  ;;  %v18154_v10 = vpack.c.bf16 %v18152_v35, %v18153_v18  ;;  %v18167_v35 = vld [vmem:[#allocation79_spill] sm:$0xff]  ;;  %v18168_v18 = vld [vmem:[#allocation48_spill] sm:$0xff] }
 0xbc1   :  { %v9961_v46 = vmul.f32 0.7978846, %v9929_v20  ;;  %v9969_v36 = vmul.f32 0.7978846, %v9937_v51  ;;  %v18149_v20 = vld [vmem:[#allocation28_spill] sm:$0xff]  ;;  %v18155_v51 = vld [vmem:[#allocation67_spill] sm:$0xff] }
 0xbc2   :  { %12046 = vmatpush3.bf16.msra.mxu1 %v12356_v37  ;;  %v9965_v44 = vmul.f32 0.7978846, %v9933_v0  ;;  %v9845_v37 = vmul.f32 %v17084_v5, %v17084_v5  ;;  %v18151_v3 = vpack.c.bf16 %v18149_v20, %v18150_v49  ;;  %v9908_v21 = vmul.f32 0.044715, %v9876_v39 }
 0xbc3   :  { %12047 = vmatprep.subr.bf16.mxu1 %v12357_v63  ;;  %12985 = vtanh.f32 %v9961_v46 }
 0xbc4   :  { %12987 = vtanh.f32 %v9960_v6  ;;  %v9877_v24 = vmul.f32 %v9845_v37, %v17084_v5  ;;  %v9940_v47 = vadd.f32 %v9908_v21, %v17090_v38 }
 0xbc5   :  { %12989 = vtanh.f32 %v9965_v44 }
 0xbc6   :  { %12048 = vmatpush3.bf16.msra.mxu1 %v12357_v63  ;;  %v12978_v41 = vpop.eup %12977  ;;  %v18147_v63 = vld [vmem:[#allocation49_spill] sm:$0xff]  ;;  %12991 = vtanh.f32 %v9964_v58  ;;  %v9909_v26 = vmul.f32 0.044715, %v9877_v24 }
 0xbc7   :  { %12049 = vmatprep.subr.bf16.mxu1 %v12358_v25  ;;  %v12980_v7 = vpop.eup %12979  ;;  %v10017_v22 = vadd.f32 1.0, %v12978_v41  ;;  %v17103_v9 = vadd.f32 %v18147_v63, %v18124_v29  ;;  %12993 = vtanh.f32 %v9969_v36  ;;  %v18156_v24 = vld [vmem:[#allocation65_spill] sm:$0xff] }
 0xbc8   :  { %v10016_v19 = vadd.f32 1.0, %v12980_v7  ;;  %v12982_v27 = vpop.eup %12981  ;;  %v9941_v30 = vadd.f32 %v9909_v26, %v17084_v5  ;;  %v18157_v63 = vpack.c.bf16 %v18155_v51, %v18156_v24  ;;  %v18158_v26 = vld [vmem:[#allocation68_spill] sm:$0xff]  ;;  %v18174_v51 = vld [vmem:[#allocation19_spill] sm:$0xff] }
 0xbc9   :  { %v10049_v4 = vmul.f32 0.5, %v10017_v22  ;;  %v12984_v62 = vpop.eup %12983  ;;  %v10021_v40 = vadd.f32 1.0, %v12982_v27  ;;  %v9849_v55 = vmul.f32 %v17103_v9, %v17103_v9 }
 0xbca   :  { %12050 = vmatpush3.bf16.msra.mxu1 %v12358_v25  ;;  %v10048_v53 = vmul.f32 0.5, %v10016_v19  ;;  %v17110_v25 = vadd.f32 %v18148_v14, %v18124_v29  ;;  %v10020_v56 = vadd.f32 1.0, %v12984_v62  ;;  %v9973_v48 = vmul.f32 0.7978846, %v9941_v30 }
 0xbcb   :  { %12051 = vmatprep.subr.bf16.mxu1 %v12359_v50  ;;  %v10081_v42 = vmul.f32 %v10049_v4, %v16948_v12  ;;  %v10053_v28 = vmul.f32 0.5, %v10021_v40 }
 0xbcc   :  { %v10080_v16 = vmul.f32 %v10048_v53, %v16963_v23  ;;  %v9848_v29 = vmul.f32 %v17110_v25, %v17110_v25  ;;  %v10052_v23 = vmul.f32 0.5, %v10020_v56 }
 0xbcd   :  { %v10085_v46 = vmul.f32 %v10053_v28, %v16975_v34  ;;  %v9972_v34 = vmul.f32 0.7978846, %v9940_v47 }
 0xbce   :  { %12052 = vmatpush3.bf16.msra.mxu1 %v12359_v50  ;;  %v10110_v12 = vpack.c.bf16 %v10081_v42, %v10080_v16  ;;  %v9968_v50 = vmul.f32 0.7978846, %v9936_v45  ;;  %v9880_v31 = vmul.f32 %v9848_v29, %v17110_v25  ;;  %v10084_v6 = vmul.f32 %v10052_v23, %v16991_v11  ;;  %v18161_v29 = vld [vmem:[#allocation75_spill] sm:$0xff]  ;;  %v18162_v23 = vld [vmem:[#allocation74_spill] sm:$0xff] }
 0xbcf   :  { %12053 = vmatprep.subr.bf16.mxu1 %v12360_v32 }
 0xbd0   :  { %v12986_v8 = vpop.eup %12985  ;;  %12995 = vtanh.f32 %v9968_v50  ;;  %v10112_v2 = vpack.c.bf16 %v10085_v46, %v10084_v6  ;;  %v9912_v44 = vmul.f32 0.044715, %v9880_v31 }
 0xbd1   :  { %v12988_v33 = vpop.eup %12987  ;;  %v10025_v41 = vadd.f32 1.0, %v12986_v8  ;;  %12997 = vtanh.f32 %v9973_v48 }
 0xbd2   :  { %12054 = vmatpush3.bf16.msra.mxu1 %v12360_v32  ;;  %v9881_v32 = vmul.f32 %v9849_v55, %v17103_v9  ;;  %v10024_v7 = vadd.f32 1.0, %v12988_v33  ;;  %v12990_v0 = vpop.eup %12989  ;;  %12999 = vtanh.f32 %v9972_v34  ;;  %v9944_v4 = vadd.f32 %v9912_v44, %v17110_v25  ;;  %v18159_v55 = vld [vmem:[#allocation70_spill] sm:$0xff]  ;;  %v12363_v34 = vld [vmem:[%s17586_s6 + $0x8] sm:$0xff]  }
 0xbd3   :  { %12055 = vmatprep.subr.bf16.mxu1 %v12361_v1  ;;  %v10057_v22 = vmul.f32 0.5, %v10025_v41  ;;  %v12992_v19 = vpop.eup %12991  ;;  %v10029_v37 = vadd.f32 1.0, %v12990_v0  ;;  %v18163_v33 = vpack.c.bf16 %v18161_v29, %v18162_v23  ;;  %12007 = vmatprep.subr.bf16.mxu0 %v12363_v34 }
 0xbd4   :  { %v10056_v43 = vmul.f32 0.5, %v10024_v7  ;;  %v10028_v58 = vadd.f32 1.0, %v12992_v19  ;;  %v12994_v54 = vpop.eup %12993  ;;  %v9976_v40 = vmul.f32 0.7978846, %v9944_v4  ;;  %v18165_v7 = vld [vmem:[#allocation77_spill] sm:$0xff]  ;;  %12008 = vmatpush3.bf16.msra.mxu0 %v12363_v34 }
 0xbd5   :  { %v10089_v11 = vmul.f32 %v10057_v22, %v17008_v61  ;;  %v10061_v62 = vmul.f32 0.5, %v10029_v37  ;;  %v10033_v39 = vadd.f32 1.0, %v12994_v54 }
 0xbd6   :  { %12056 = vmatpush3.bf16.msra.mxu1 %v12361_v1  ;;  %v9913_v1 = vmul.f32 0.044715, %v9881_v32  ;;  %v10088_v27 = vmul.f32 %v10056_v43, %v17021_v60  ;;  %v10060_v45 = vmul.f32 0.5, %v10028_v58 }
 0xbd7   :  { %12057 = vmatprep.subr.bf16.mxu1 %v12362_v15  ;;  %v10093_v61 = vmul.f32 %v10061_v62, %v17035_v59  ;;  %v10065_v56 = vmul.f32 0.5, %v10033_v39  ;;  %v18173_v62 = vld [vmem:[#allocation31_spill] sm:$0xff]  ;;  %v18176_v39 = vld [vmem:[#allocation85_spill] sm:$0xff] }
 0xbd8   :  { %v10114_v53 = vpack.c.bf16 %v10089_v11, %v10088_v27  ;;  %v10092_v60 = vmul.f32 %v10060_v45, %v17044_v13  ;;  %v18175_v24 = vpack.i.bf16 %v18173_v62, %v18174_v51 }
 0xbd9   :  { %v10097_v50 = vmul.f32 %v10065_v56, %v17058_v52 }
 0xbda   :  { %12058 = vmatpush3.bf16.msra.mxu1 %v12362_v15  ;;  %v9945_v15 = vadd.f32 %v9913_v1, %v17103_v9  ;;  %v10116_v16 = vpack.c.bf16 %v10093_v61, %v10092_v60  ;;  %v18177_v60 = vld [vmem:[#allocation21_spill] sm:$0xff] }
 0xbdc   :  { %v9977_v57 = vmul.f32 0.7978846, %v9945_v15 }
 0xbdd   :  { %12060 = vmatmul.mubr.bf16.vlgmr.msra.gmra.mxu1 %v18151_v3  ;;  %v12996_v42 = vpop.eup %12995 }
 0xbde   :  { %12063 = vmatprep.mubr.bf16.mxu1 %v10110_v12  ;;  %13001 = vtanh.f32 %v9977_v57  ;;  %v10032_v14 = vadd.f32 1.0, %v12996_v42  ;;  %v12998_v36 = vpop.eup %12997  ;;  %v18160_v12 = vpack.c.bf16 %v18158_v26, %v18159_v55 }
 0xbdf   :  { %13003 = vtanh.f32 %v9976_v40  ;;  %v13000_v8 = vpop.eup %12999  ;;  %v10037_v20 = vadd.f32 1.0, %v12998_v36 }
 0xbe0   :  { %v10064_v28 = vmul.f32 0.5, %v10032_v14  ;;  %v10036_v49 = vadd.f32 1.0, %v13000_v8  ;;  %v18178_v14 = vpack.i.bf16 %v18176_v39, %v18177_v60 }
 0xbe1   :  { %v10069_v21 = vmul.f32 0.5, %v10037_v20 }
 0xbe2   :  { %v10096_v59 = vmul.f32 %v10064_v28, %v17067_v17  ;;  %v10068_v30 = vmul.f32 0.5, %v10036_v49  ;;  %v18164_v17 = vld [vmem:[#allocation78_spill] sm:$0xff]  ;;  %v18180_v28 = vld [vmem:[#allocation128_spill] sm:$0xff] }
 0xbe3   :  { %v10101_v46 = vmul.f32 %v10069_v21, %v17084_v5  ;;  %v18166_v0 = vpack.c.bf16 %v18164_v17, %v18165_v7  ;;  %v18169_v5 = vpack.c.bf16 %v18167_v35, %v18168_v18  ;;  %v18182_v21 = vld [vmem:[#allocation131_spill] sm:$0xff] }
 0xbe4   :  { %v10118_v3 = vpack.c.bf16 %v10097_v50, %v10096_v59  ;;  %v10100_v47 = vmul.f32 %v10068_v30, %v17090_v38  ;;  %v18170_v38 = vld [vmem:[#allocation81_spill] sm:$0xff] }
 0xbe5   :  { %12064 = vmatmul.mubr.bf16.gmra.mxu1 %v18154_v10  ;;  %v18171_v10 = vld [vmem:[#allocation83_spill] sm:$0xff] }
 0xbe6   :  { %12067 = vmatprep.mubr.bf16.mxu1 %v10112_v2  ;;  %v10120_v31 = vpack.c.bf16 %v10101_v46, %v10100_v47  ;;  %v18172_v19 = vpack.c.bf16 %v18170_v38, %v18171_v10  ;;  %v18186_v47 = vld [vmem:[#allocation29_spill] sm:$0xff]  ;;  %v18192_v38 = vld [vmem:[#allocation132_spill] sm:$0xff] }
 0xbeb   :  { %v13002_v13 = vpop.eup %13001 }
 0xbec   :  { %v13004_v32 = vpop.eup %13003  ;;  %v10041_v41 = vadd.f32 1.0, %v13002_v13  ;;  %v18183_v13 = vld [vmem:[#allocation129_spill] sm:$0xff] }
 0xbed   :  { %12068 = vmatmul.mubr.bf16.gmra.mxu1 %v18157_v63  ;;  %v10040_v52 = vadd.f32 1.0, %v13004_v32  ;;  %v18184_v29 = vpack.i.bf16 %v18182_v21, %v18183_v13 }
 0xbee   :  { %12071 = vmatprep.mubr.bf16.mxu1 %v10114_v53  ;;  %v10073_v6 = vmul.f32 0.5, %v10041_v41  ;;  %v18185_v41 = vld [vmem:[#allocation37_spill] sm:$0xff] }
 0xbef   :  { %v10072_v48 = vmul.f32 0.5, %v10040_v52  ;;  %v18187_v52 = vpack.i.bf16 %v18185_v41, %v18186_v47 }
 0xbf0   :  { %v10105_v1 = vmul.f32 %v10073_v6, %v17103_v9 }
 0xbf1   :  { %v10104_v2 = vmul.f32 %v10072_v48, %v17110_v25  ;;  %v12364_v25 = vld [vmem:[%s17586_s6] sm:$0xff]   ;;  %s13115_s6 = smov [#allocation7]  }
 0xbf2   :  { %12009 = vmatprep.subr.bf16.mxu0 %v12364_v25  ;;  %v18188_v48 = vld [vmem:[#allocation34_spill] sm:$0xff]  ;;  %s10486_s5 = sshll.u32 %s13115_s6, 4  ;;  %s10487_s5 = int_to_ptr.vmem [resolvable:$true] %s10486_s5 }
 0xbf3   :  { %v10122_v22 = vpack.c.bf16 %v10105_v1, %v10104_v2  ;;  %12010 = vmatpush3.bf16.msra.mxu0 %v12364_v25  ;;  %v18189_v1 = vld [vmem:[#allocation26_spill] sm:$0xff]  ;;  %v18194_v25 = vld [vmem:[#allocation135_spill] sm:$0xff]  ;;  %s13078_s27 = scalar_lea.vmem %s10487_s5, 4096  ;;  %p13083_p11 = scmp.lt.s32.totalorder %s10487_s5, %s10487_s5 }
 0xbf4   :  { %v18190_v2 = vpack.i.bf16 %v18188_v48, %v18189_v1  ;;  %p13079_p10 = scmp.ne.s32.totalorder %s10487_s5, %s13078_s27  ;;  %p13084_p12 = scmp.lt.s32.totalorder %s13078_s27, %s13078_s27 }
 0xbf5   :  { %12072 = vmatmul.mubr.bf16.gmra.mxu1 %v18160_v12  ;;  %v18179_v12 = vld [vmem:[#allocation130_spill] sm:$0xff] }
 0xbf6   :  { %12075 = vmatprep.mubr.bf16.mxu1 %v10116_v16  ;;  %v18181_v8 = vpack.i.bf16 %v18179_v12, %v18180_v28  ;;  %p13085_p13 = por %p13084_p12, %p13083_p11 }
 0xbf8   :  { %p13086_p0 = pnand %p13085_p13, %p13079_p10 }
 0xbfd   :  { %12076 = vmatmul.mubr.bf16.gmra.mxu1 %v18163_v33 }
 0xbfe   :  { %12079 = vmatprep.mubr.bf16.mxu1 %v10118_v3 }
 0xc05   :  { %12080 = vmatmul.mubr.bf16.gmra.mxu1 %v18166_v0 }
 0xc06   :  { %12083 = vmatprep.mubr.bf16.mxu1 %v10120_v31 }
 0xc0d   :  { %12084 = vmatmul.mubr.bf16.gmra.mxu1 %v18169_v5  ;;  %v18191_v5 = vld [vmem:[#allocation134_spill] sm:$0xff] }
 0xc0e   :  { %12087 = vmatprep.mubr.bf16.mxu1 %v10122_v22  ;;  %v18193_v10 = vpack.i.bf16 %v18191_v5, %v18192_v38  ;;  %v12114_v5 = vpop.permute.xlu1 %12113  ;;  %v12109_v38 = vpop.permute.xlu0 %12108 }
 0xc15   :  { %12088 = vmatmul.mubr.bf16.gmra.mxu1 %v18172_v19 }
 0xc41   :  { %v8433_v44 = vpop.f32.mrf.mxu1 }
 0xc43   :  { %v11921_v9 = vpop.f32.mrf.mxu1 }
 0xc45   :  { %v8436_v43 = vpop.f32.mrf.mxu1  ;;  %v8386_v15 = vpop.f32.mrf.mxu0 }
 0xc46   :  { %v12197_v11 = vpack.i.bf16 %v8436_v43, %v8433_v44  ;;  %v18195_v43 = vld [vmem:[#allocation133_spill] sm:$0xff] }
 0xc47   :  { %v11922_v37 = vpop.f32.mrf.mxu1  ;;  %v11915_v4 = vpop.f32.mrf.mxu0 }
 0xc48   :  { %12198 = vrot.lane.b32.xlu1 %v12197_v11, %s13114_s26 }
 0xc49   :  { %v8389_v27 = vpop.f32.mrf.mxu0  ;;  %v8527_v58 = vpop.f32.mrf.mxu1 }
 0xc4a   :  { %v12202_v54 = vpack.i.bf16 %v8389_v27, %v8386_v15  ;;  %v18196_v15 = vpack.i.bf16 %v18194_v25, %v18195_v43 }
 0xc4b   :  { %v11916_v57 = vpop.f32.mrf.mxu0  ;;  %v11933_v53 = vpop.f32.mrf.mxu1 }
 0xc4c   :  { %12213 = vrot.lane.b32.xlu1 %v18175_v24, %s13113_s10  ;;  %12203 = vrot.lane.b32.xlu0 %v12202_v54, %s13114_s26  ;;  %v18197_v24 = vld [vmem:[#allocation43_spill] sm:$0xff] }
 0xc4d   :  { %v8480_v63 = vpop.f32.mrf.mxu0  ;;  %v8530_v42 = vpop.f32.mrf.mxu1 }
 0xc4e   :  { %v12217_v40 = vpack.i.bf16 %v8530_v42, %v8527_v58 }
 0xc4f   :  { %v11927_v45 = vpop.f32.mrf.mxu0  ;;  %v11934_v61 = vpop.f32.mrf.mxu1 }
 0xc50   :  { %12218 = vrot.lane.b32.xlu1 %v12217_v40, %s13114_s26  ;;  %12208 = vrot.lane.b32.xlu0 %v18178_v14, %s13113_s10  ;;  %v18200_v40 = vld [vmem:[#allocation40_spill] sm:$0xff] }
 0xc51   :  { %v8483_v16 = vpop.f32.mrf.mxu0  ;;  %v8621_v56 = vpop.f32.mrf.mxu1  ;;  %v18201_v45 = vld [vmem:[#allocation32_spill] sm:$0xff] }
 0xc52   :  { %v12222_v36 = vpack.i.bf16 %v8483_v16, %v8480_v63  ;;  %v18198_v63 = vld [vmem:[#allocation35_spill] sm:$0xff]  ;;  %v18202_v61 = vpack.i.bf16 %v18200_v40, %v18201_v45 }
 0xc53   :  { %v11928_v26 = vpop.f32.mrf.mxu0  ;;  %v11945_v55 = vpop.f32.mrf.mxu1  ;;  %v18199_v42 = vpack.i.bf16 %v18197_v24, %v18198_v63  ;;  %v12116_v24 = vunpack.i.h.bf16 %v12114_v5  ;;  %v12115_v63 = vunpack.i.l.bf16 %v12114_v5  ;;  %v18219_v5 = vld [vmem:[#allocation71_spill] sm:$0xff] }
 0xc54   :  { %12233 = vrot.lane.b32.xlu1 %v18181_v8, %s13106_s9  ;;  %12223 = vrot.lane.b32.xlu0 %v12222_v36, %s13114_s26  ;;  %v18203_v8 = vld [vmem:[#allocation138_spill] sm:$0xff] }
 0xc55   :  { %v8574_v50 = vpop.f32.mrf.mxu0  ;;  %v8624_v20 = vpop.f32.mrf.mxu1 }
 0xc56   :  { %v12237_v59 = vpack.i.bf16 %v8624_v20, %v8621_v56 }
 0xc57   :  { %v11939_v49 = vpop.f32.mrf.mxu0  ;;  %v11946_v3 = vpop.f32.mrf.mxu1 }
 0xc58   :  { %12238 = vrot.lane.b32.xlu1 %v12237_v59, %s13114_s26  ;;  %12228 = vrot.lane.b32.xlu0 %v18184_v29, %s13106_s9  ;;  %v18206_v59 = vld [vmem:[#allocation139_spill] sm:$0xff]  ;;  %v18207_v49 = vld [vmem:[#allocation137_spill] sm:$0xff] }
 0xc59   :  { %v8577_v23 = vpop.f32.mrf.mxu0  ;;  %v8715_v33 = vpop.f32.mrf.mxu1  ;;  %v18208_v3 = vpack.i.bf16 %v18206_v59, %v18207_v49 }
 0xc5a   :  { %v12242_v30 = vpack.i.bf16 %v8577_v23, %v8574_v50  ;;  %v18204_v50 = vld [vmem:[#allocation136_spill] sm:$0xff] }
 0xc5b   :  { %v11940_v32 = vpop.f32.mrf.mxu0  ;;  %v11957_v46 = vpop.f32.mrf.mxu1  ;;  %v18205_v20 = vpack.i.bf16 %v18203_v8, %v18204_v50  ;;  %v18218_v8 = vld [vmem:[#allocation54_spill] sm:$0xff] }
 0xc5c   :  { %12253 = vrot.lane.b32.xlu1 %v18187_v52, %s13113_s10  ;;  %12243 = vrot.lane.b32.xlu0 %v12242_v30, %s13114_s26  ;;  %v18209_v52 = vld [vmem:[#allocation47_spill] sm:$0xff]  ;;  %v9484_v50 = vsel %vm1416_vm2, %v18218_v8, %v12115_v63 }
 0xc5d   :  { %v8668_v31 = vpop.f32.mrf.mxu0  ;;  %v8718_v6 = vpop.f32.mrf.mxu1 }
 0xc5e   :  { %v12257_v17 = vpack.i.bf16 %v8718_v6, %v8715_v33 }
 0xc5f   :  { %v11951_v7 = vpop.f32.mrf.mxu0  ;;  %v11958_v0 = vpop.f32.mrf.mxu1 }
 0xc60   :  { %12258 = vrot.lane.b32.xlu1 %v12257_v17, %s13114_s26  ;;  %12248 = vrot.lane.b32.xlu0 %v18190_v2, %s13113_s10  ;;  %v18212_v17 = vld [vmem:[#allocation50_spill] sm:$0xff] }
 0xc61   :  { %v8671_v22 = vpop.f32.mrf.mxu0  ;;  %v18213_v7 = vld [vmem:[#allocation38_spill] sm:$0xff] }
 0xc62   :  { %v12262_v35 = vpack.i.bf16 %v8671_v22, %v8668_v31  ;;  %v18210_v31 = vld [vmem:[#allocation41_spill] sm:$0xff]  ;;  %v18214_v0 = vpack.i.bf16 %v18212_v17, %v18213_v7 }
 0xc63   :  { %v11952_v18 = vpop.f32.mrf.mxu0  ;;  %v18211_v6 = vpack.i.bf16 %v18209_v52, %v18210_v31 }
 0xc64   :  { %12273 = vrot.lane.b32.xlu1 %v18193_v10, %s13106_s9  ;;  %12263 = vrot.lane.b32.xlu0 %v12262_v35, %s13114_s26  ;;  %v12124_v10 = vpop.permute.xlu1 %12123 }
 0xc65   :  { %v8809_v19 = vpop.f32.mrf.mxu1  ;;  %v8762_v34 = vpop.f32.mrf.mxu0  ;;  %v12126_v40 = vunpack.i.h.bf16 %v12124_v10  ;;  %v12125_v45 = vunpack.i.l.bf16 %v12124_v10  ;;  %v18220_v10 = vld [vmem:[#allocation63_spill] sm:$0xff] }
 0xc67   :  { %v11969_v44 = vpop.f32.mrf.mxu1  ;;  %v11963_v9 = vpop.f32.mrf.mxu0  ;;  %v9516_v59 = vsel %vm2169_vm3, %v9484_v50, %v12125_v45 }
 0xc68   :  { %12268 = vrot.lane.b32.xlu0 %v18196_v15, %s13106_s9 }
 0xc69   :  { %v8812_v11 = vpop.f32.mrf.mxu1  ;;  %v8765_v37 = vpop.f32.mrf.mxu0 }
 0xc6a   :  { %v12277_v4 = vpack.i.bf16 %v8812_v11, %v8809_v19  ;;  %v12282_v27 = vpack.i.bf16 %v8765_v37, %v8762_v34  ;;  %v12119_v19 = vpop.permute.xlu0 %12118  ;;  %v17237_v34 = vpop.permute.xlu1 %12133 }
 0xc6b   :  { %v11970_v58 = vpop.f32.mrf.mxu1  ;;  %v11964_v54 = vpop.f32.mrf.mxu0  ;;  %v12136_v31 = vunpack.i.h.bf16 %v17237_v34 }
 0xc6c   :  { %12278 = vrot.lane.b32.xlu1 %v12277_v4, %s13114_s26  ;;  %12283 = vrot.lane.b32.xlu0 %v12282_v27, %s13114_s26 }
 0xc6d   :  { %v8903_v57 = vpop.f32.mrf.mxu1  ;;  %v8856_v53 = vpop.f32.mrf.mxu0 }
 0xc6e   :  { %v12129_v44 = vpop.permute.xlu0 %12128  ;;  %v17239_v9 = vpop.permute.xlu1 %12143 }
 0xc6f   :  { %v11981_v62 = vpop.f32.mrf.mxu1  ;;  %v11975_v51 = vpop.f32.mrf.mxu0  ;;  %v12130_v52 = vunpack.i.l.bf16 %v12129_v44 }
 0xc70   :  { %12293 = vrot.lane.b32.xlu1 %v18199_v42, %s13113_s10  ;;  %12288 = vrot.lane.b32.xlu0 %v18202_v61, %s13113_s10  ;;  %v12111_v62 = vunpack.i.h.bf16 %v12109_v38  ;;  %v12110_v51 = vunpack.i.l.bf16 %v12109_v38  ;;  %v12121_v61 = vunpack.i.h.bf16 %v12119_v19 }
 0xc71   :  { %v8906_v39 = vpop.f32.mrf.mxu1  ;;  %v8859_v60 = vpop.f32.mrf.mxu0 }
 0xc72   :  { %v12297_v14 = vpack.i.bf16 %v8906_v39, %v8903_v57  ;;  %v12302_v16 = vpack.i.bf16 %v8859_v60, %v8856_v53  ;;  %v17241_v25 = vpop.permute.xlu0 %12138  ;;  %v17243_v43 = vpop.permute.xlu1 %12153  ;;  %v12120_v39 = vunpack.i.l.bf16 %v12119_v19  ;;  %v9486_v19 = vsel %vm1416_vm2, %v18220_v10, %v12130_v52 }
 0xc73   :  { %v11982_v56 = vpop.f32.mrf.mxu1  ;;  %v11976_v36 = vpop.f32.mrf.mxu0 }
 0xc74   :  { %12298 = vrot.lane.b32.xlu1 %v12297_v14, %s13114_s26  ;;  %12303 = vrot.lane.b32.xlu0 %v12302_v16, %s13114_s26  ;;  %v18215_v56 = vld [vmem:[#allocation52_spill] sm:$0xff] }
 0xc75   :  { %v8997_v26 = vpop.f32.mrf.mxu1  ;;  %v8950_v55 = vpop.f32.mrf.mxu0  ;;  %v9483_v36 = vsel %vm1416_vm2, %v18215_v56, %v12111_v62 }
 0xc76   :  { %v17245_v15 = vpop.permute.xlu0 %12148  ;;  %v17247_v11 = vpop.permute.xlu1 %12163 }
 0xc77   :  { %v11993_v12 = vpop.f32.mrf.mxu1  ;;  %v11987_v28 = vpop.f32.mrf.mxu0  ;;  %v12166_v50 = vunpack.i.h.bf16 %v17247_v11 }
 0xc78   :  { %12313 = vrot.lane.b32.xlu1 %v18205_v20, %s13106_s9  ;;  %12308 = vrot.lane.b32.xlu0 %v18208_v3, %s13106_s9  ;;  %v18217_v12 = vld [vmem:[#allocation51_spill] sm:$0xff] }
 0xc79   :  { %v9000_v21 = vpop.f32.mrf.mxu1  ;;  %v8953_v13 = vpop.f32.mrf.mxu0  ;;  %v9485_v28 = vsel %vm1416_vm2, %v18217_v12, %v12116_v24  ;;  %v12155_v12 = vunpack.i.l.bf16 %v17243_v43 }
 0xc7a   :  { %v12317_v29 = vpack.i.bf16 %v9000_v21, %v8997_v26  ;;  %v12322_v23 = vpack.i.bf16 %v8953_v13, %v8950_v55  ;;  %v17249_v37 = vpop.permute.xlu0 %12158  ;;  %v17251_v4 = vpop.permute.xlu1 %12173  ;;  %v18216_v26 = vld [vmem:[#allocation46_spill] sm:$0xff]  ;;  %v9517_v49 = vsel %vm2169_vm3, %v9485_v28, %v12126_v40 }
 0xc7b   :  { %v11994_v33 = vpop.f32.mrf.mxu1  ;;  %v11988_v30 = vpop.f32.mrf.mxu0  ;;  %v9482_v55 = vsel %vm1416_vm2, %v18216_v26, %v12110_v51  ;;  %v12150_v26 = vunpack.i.l.bf16 %v17245_v15  ;;  %v12176_v10 = vunpack.i.h.bf16 %v17251_v4 }
 0xc7c   :  { %12318 = vrot.lane.b32.xlu1 %v12317_v29, %s13114_s26  ;;  %12323 = vrot.lane.b32.xlu0 %v12322_v23, %s13114_s26  ;;  %v9514_v13 = vsel %vm2169_vm3, %v9482_v55, %v12120_v39  ;;  %v9515_v29 = vsel %vm2169_vm3, %v9483_v36, %v12121_v61  ;;  %v12156_v55 = vunpack.i.h.bf16 %v17243_v43  ;;  %v18223_v43 = vld [vmem:[#allocation88_spill] sm:$0xff] }
 0xc7d   :  { %v9091_v32 = vpop.f32.mrf.mxu1  ;;  %v9044_v46 = vpop.f32.mrf.mxu0 }
 0xc7e   :  { %v17253_v27 = vpop.permute.xlu0 %12168  ;;  %v17255_v58 = vpop.permute.xlu1 %12183 }
 0xc7f   :  { %v12005_v41 = vpop.f32.mrf.mxu1  ;;  %v11999_v47 = vpop.f32.mrf.mxu0 }
 0xc80   :  { %12333 = vrot.lane.b32.xlu1 %v18211_v6, %s13113_s10  ;;  %12328 = vrot.lane.b32.xlu0 %v18214_v0, %s13113_s10  ;;  %v12135_v6 = vunpack.i.l.bf16 %v17237_v34  ;;  %v12146_v0 = vunpack.i.h.bf16 %v17239_v9  ;;  %v18221_v34 = vld [vmem:[#allocation72_spill] sm:$0xff] }
 0xc81   :  { %v9094_v48 = vpop.f32.mrf.mxu1  ;;  %v9047_v1 = vpop.f32.mrf.mxu0 }
 0xc82   :  { %v12342_v2 = vpack.i.bf16 %v9094_v48, %v9091_v32  ;;  %v12337_v22 = vpack.i.bf16 %v9047_v1, %v9044_v46  ;;  %v17257_v54 = vpop.permute.xlu0 %12178  ;;  %v17259_v57 = vpop.permute.xlu1 %12193  ;;  %v12131_v46 = vunpack.i.h.bf16 %v12129_v44  ;;  %v12145_v48 = vunpack.i.l.bf16 %v17239_v9  ;;  %v18222_v9 = vld [vmem:[#allocation64_spill] sm:$0xff] }
 0xc83   :  { %v12006_v35 = vpop.f32.mrf.mxu1  ;;  %v12000_v18 = vpop.f32.mrf.mxu0  ;;  %v12141_v1 = vunpack.i.h.bf16 %v17241_v25  ;;  %v9489_v44 = vsel %vm1416_vm2, %v18221_v34, %v12136_v31 }
 0xc84   :  { %12343 = vrot.lane.b32.xlu1 %v12342_v2, %s13114_s26  ;;  %12338 = vrot.lane.b32.xlu0 %v12337_v22, %s13114_s26  ;;  %v12140_v2 = vunpack.i.l.bf16 %v17241_v25  ;;  %v9487_v38 = vsel %vm1416_vm2, %v18219_v5, %v12131_v46  ;;  %v9521_v51 = vsel %vm2169_vm3, %v9489_v44, %v12146_v0 }
 0xc85   :  { %v9519_v45 = vsel %vm2169_vm3, %v9487_v38, %v12141_v1  ;;  %v12171_v1 = vunpack.i.h.bf16 %v17253_v27  ;;  %v12180_v38 = vunpack.i.l.bf16 %v17257_v54 }
 0xc86   :  { %v17261_v42 = vpop.permute.xlu0 %12188  ;;  %v9518_v40 = vsel %vm2169_vm3, %v9486_v19, %v12140_v2  ;;  %v12170_v2 = vunpack.i.l.bf16 %v17253_v27  ;;  %v12175_v19 = vunpack.i.l.bf16 %v17251_v4  ;;  %v12181_v27 = vunpack.i.h.bf16 %v17257_v54  ;;  %v18228_v4 = vld [vmem:[#allocation92_spill] sm:$0xff] }
 0xcba   :  { %v12199_v53 = vpop.permute.xlu1 %12198 }
 0xcbb   :  { %v12201_v60 = vunpack.i.h.bf16 %v12199_v53  ;;  %v12200_v14 = vunpack.i.l.bf16 %v12199_v53  ;;  %v9488_v53 = vsel %vm1416_vm2, %v18222_v9, %v12135_v6  ;;  %v12186_v9 = vunpack.i.h.bf16 %v17255_v58 }
 0xcbc   :  { %v9520_v25 = vsel %vm2169_vm3, %v9488_v53, %v12145_v48  ;;  %v12185_v53 = vunpack.i.l.bf16 %v17255_v58 }
 0xcbd   :  { %v9549_v23 = vsel %vm9546_vm4, %v9516_v59, %v12200_v14  ;;  %v9550_v33 = vsel %vm9546_vm4, %v9517_v49, %v12201_v60  ;;  %v12151_v60 = vunpack.i.h.bf16 %v17245_v15  ;;  %v12161_v49 = vunpack.i.h.bf16 %v17249_v37 }
 0xcbe   :  { %v17263_v16 = vpop.permute.xlu1 %12213  ;;  %v12204_v20 = vpop.permute.xlu0 %12203  ;;  %v9580_v17 = vpack.c.bf16 %v9550_v33, %v9549_v23  ;;  %v18224_v23 = vld [vmem:[#allocation86_spill] sm:$0xff] }
 0xcbf   :  { %v12206_v3 = vunpack.i.h.bf16 %v12204_v20  ;;  %v12205_v21 = vunpack.i.l.bf16 %v12204_v20  ;;  %v12165_v20 = vunpack.i.l.bf16 %v17247_v11  ;;  %v9490_v33 = vsel %vm1416_vm2, %v18224_v23, %v12150_v26  ;;  %v18225_v11 = vld [vmem:[#allocation87_spill] sm:$0xff] }
 0xcc1   :  { %v9548_v30 = vsel %vm9546_vm4, %v9515_v29, %v12206_v3  ;;  %v9547_v32 = vsel %vm9546_vm4, %v9514_v13, %v12205_v21  ;;  %v12160_v3 = vunpack.i.l.bf16 %v17249_v37  ;;  %v9491_v29 = vsel %vm1416_vm2, %v18223_v43, %v12151_v60 }
 0xcc2   :  { %v9579_v41 = vpack.c.bf16 %v9548_v30, %v9547_v32  ;;  %v12219_v47 = vpop.permute.xlu1 %12218  ;;  %v17283_v7 = vpop.permute.xlu0 %12208  ;;  %v9493_v30 = vsel %vm1416_vm2, %v18225_v11, %v12156_v55  ;;  %v18226_v32 = vld [vmem:[#allocation23_spill] sm:$0xff]  ;;  %v12216_v43 = vunpack.i.h.bf16 %v17263_v16 }
 0xcc3   :  { %v12221_v22 = vunpack.i.h.bf16 %v12219_v47  ;;  %v12220_v35 = vunpack.i.l.bf16 %v12219_v47  ;;  %v9492_v37 = vsel %vm1416_vm2, %v18226_v32, %v12155_v12  ;;  %v9525_v47 = vsel %vm2169_vm3, %v9493_v30, %v12166_v50 }
 0xcc4   :  { %12011 = vmatprep.mubr.msk.bf16.mxu0 %vm90_vm0, %v9579_v41  ;;  %v9524_v41 = vsel %vm2169_vm3, %v9492_v37, %v12165_v20  ;;  %v9522_v6 = vsel %vm2169_vm3, %v9490_v33, %v12160_v3  ;;  %v12191_v12 = vunpack.i.h.bf16 %v17261_v42  ;;  %v12211_v30 = vunpack.i.h.bf16 %v17283_v7  ;;  %v18231_v37 = vld [vmem:[#allocation95_spill] sm:$0xff] }
 0xcc5   :  { %12012 = vmatmul.mubr.msk.bf16.vlgmr.msra.gmra.mxu0 %vm90_vm0, %v9580_v17  ;;  %v9553_v61 = vsel %vm9546_vm4, %v9520_v25, %v12220_v35  ;;  %v9554_v39 = vsel %vm9546_vm4, %v9521_v51, %v12221_v22  ;;  %v9523_v17 = vsel %vm2169_vm3, %v9491_v29, %v12161_v49  ;;  %v12195_v49 = vunpack.i.l.bf16 %v17259_v57 }
 0xcc6   :  { %v17291_v18 = vpop.permute.xlu1 %12233  ;;  %v12224_v62 = vpop.permute.xlu0 %12223  ;;  %v9582_v59 = vpack.c.bf16 %v9554_v39, %v9553_v61  ;;  %v18229_v61 = vld [vmem:[#allocation91_spill] sm:$0xff]  ;;  %v18230_v39 = vld [vmem:[#allocation89_spill] sm:$0xff]  ;;  %v12215_v29 = vunpack.i.l.bf16 %v17263_v16  ;;  %v12210_v32 = vunpack.i.l.bf16 %v17283_v7 }
 0xcc7   :  { %v12226_v24 = vunpack.i.h.bf16 %v12224_v62  ;;  %v12225_v63 = vunpack.i.l.bf16 %v12224_v62  ;;  %v9497_v58 = vsel %vm1416_vm2, %v18229_v61, %v12176_v10  ;;  %v9496_v54 = vsel %vm1416_vm2, %v18230_v39, %v12175_v19  ;;  %v18235_v61 = vld [vmem:[#allocation99_spill] sm:$0xff]  ;;  %v18236_v39 = vld [vmem:[#allocation97_spill] sm:$0xff] }
 0xcc8   :  { %v12236_v10 = vunpack.i.h.bf16 %v17291_v18  ;;  %v12235_v19 = vunpack.i.l.bf16 %v17291_v18 }
 0xcc9   :  { %v9552_v14 = vsel %vm9546_vm4, %v9519_v45, %v12226_v24  ;;  %v9551_v56 = vsel %vm9546_vm4, %v9518_v40, %v12225_v63  ;;  %v18227_v24 = vld [vmem:[#allocation90_spill] sm:$0xff]  ;;  %v9495_v40 = vsel %vm1416_vm2, %v18228_v4, %v12171_v1 }
 0xcca   :  { %v12239_v36 = vpop.permute.xlu1 %12238  ;;  %v9581_v28 = vpack.c.bf16 %v9552_v14, %v9551_v56  ;;  %v17313_v8 = vpop.permute.xlu0 %12228  ;;  %v9494_v63 = vsel %vm1416_vm2, %v18227_v24, %v12170_v2  ;;  %v9528_v14 = vsel %vm2169_vm3, %v9496_v54, %v12185_v53  ;;  %v9529_v56 = vsel %vm2169_vm3, %v9497_v58, %v12186_v9 }
 0xccb   :  { %v12241_v21 = vunpack.i.h.bf16 %v12239_v36  ;;  %v12240_v13 = vunpack.i.l.bf16 %v12239_v36  ;;  %v9526_v45 = vsel %vm2169_vm3, %v9494_v63, %v12180_v38  ;;  %v9527_v55 = vsel %vm2169_vm3, %v9495_v40, %v12181_v27 }
 0xccc   :  { %12015 = vmatprep.mubr.msk.bf16.mxu0 %vm90_vm0, %v9581_v28  ;;  %v12231_v9 = vunpack.i.h.bf16 %v17313_v8  ;;  %v9505_v58 = vsel %vm1416_vm2, %v18235_v61, %v12236_v10  ;;  %v9504_v54 = vsel %vm1416_vm2, %v18236_v39, %v12235_v19 }
 0xccd   :  { %12016 = vmatmul.mubr.msk.bf16.gmra.mxu0 %vm90_vm0, %v9582_v59  ;;  %v9557_v0 = vsel %vm9546_vm4, %v9524_v41, %v12240_v13  ;;  %v9558_v48 = vsel %vm9546_vm4, %v9525_v47, %v12241_v21  ;;  %v12196_v59 = vunpack.i.h.bf16 %v17259_v57  ;;  %v12190_v13 = vunpack.i.l.bf16 %v17261_v42  ;;  %v18232_v41 = vld [vmem:[#allocation93_spill] sm:$0xff] }
 0xcce   :  { %v17321_v15 = vpop.permute.xlu1 %12253  ;;  %v12244_v46 = vpop.permute.xlu0 %12243  ;;  %v9584_v62 = vpack.c.bf16 %v9558_v48, %v9557_v0  ;;  %v9500_v42 = vsel %vm1416_vm2, %v18232_v41, %v12195_v49 }
 0xccf   :  { %v12246_v52 = vunpack.i.h.bf16 %v12244_v46  ;;  %v12245_v31 = vunpack.i.l.bf16 %v12244_v46  ;;  %v9501_v46 = vsel %vm1416_vm2, %v18231_v37, %v12196_v59  ;;  %v9532_v7 = vsel %vm2169_vm3, %v9500_v42, %v12215_v29 }
 0xcd0   :  { %v9533_v0 = vsel %vm2169_vm3, %v9501_v46, %v12216_v43  ;;  %v12255_v24 = vunpack.i.l.bf16 %v17321_v15 }
 0xcd1   :  { %v9556_v22 = vsel %vm9546_vm4, %v9523_v17, %v12246_v52  ;;  %v9555_v35 = vsel %vm9546_vm4, %v9522_v6, %v12245_v31  ;;  %v18233_v52 = vld [vmem:[#allocation96_spill] sm:$0xff]  ;;  %v18234_v6 = vld [vmem:[#allocation94_spill] sm:$0xff] }
 0xcd2   :  { %v12259_v5 = vpop.permute.xlu1 %12258  ;;  %v9583_v34 = vpack.c.bf16 %v9556_v22, %v9555_v35  ;;  %v17344_v44 = vpop.permute.xlu0 %12248  ;;  %v9499_v31 = vsel %vm1416_vm2, %v18233_v52, %v12191_v12  ;;  %v9498_v17 = vsel %vm1416_vm2, %v18234_v6, %v12190_v13 }
 0xcd3   :  { %v12261_v25 = vunpack.i.h.bf16 %v12259_v5  ;;  %v12260_v51 = vunpack.i.l.bf16 %v12259_v5  ;;  %v9531_v5 = vsel %vm2169_vm3, %v9499_v31, %v12211_v30  ;;  %v9530_v38 = vsel %vm2169_vm3, %v9498_v17, %v12210_v32  ;;  %v18240_v31 = vld [vmem:[#allocation101_spill] sm:$0xff] }
 0xcd4   :  { %12019 = vmatprep.mubr.msk.bf16.mxu0 %vm90_vm0, %v9583_v34  ;;  %v12251_v40 = vunpack.i.h.bf16 %v17344_v44  ;;  %v12250_v18 = vunpack.i.l.bf16 %v17344_v44  ;;  %v9536_v44 = vsel %vm2169_vm3, %v9504_v54, %v12255_v24 }
 0xcd5   :  { %12020 = vmatmul.mubr.msk.bf16.gmra.mxu0 %vm90_vm0, %v9584_v62  ;;  %v9561_v28 = vsel %vm9546_vm4, %v9528_v14, %v12260_v51  ;;  %v9562_v50 = vsel %vm9546_vm4, %v9529_v56, %v12261_v25  ;;  %v12230_v25 = vunpack.i.l.bf16 %v17313_v8  ;;  %v12256_v51 = vunpack.i.h.bf16 %v17321_v15  ;;  %v18237_v15 = vld [vmem:[#allocation100_spill] sm:$0xff]  ;;  %v18238_v56 = vld [vmem:[#allocation98_spill] sm:$0xff] }
 0xcd6   :  { %v12264_v60 = vpop.permute.xlu0 %12263  ;;  %v17366_v20 = vpop.permute.xlu1 %12273  ;;  %v9586_v11 = vpack.c.bf16 %v9562_v50, %v9561_v28  ;;  %v9503_v14 = vsel %vm1416_vm2, %v18237_v15, %v12231_v9  ;;  %v18244_v15 = vld [vmem:[#allocation105_spill] sm:$0xff] }
 0xcd7   :  { %v12266_v36 = vunpack.i.h.bf16 %v12264_v60  ;;  %v12265_v26 = vunpack.i.l.bf16 %v12264_v60  ;;  %v9535_v49 = vsel %vm2169_vm3, %v9503_v14, %v12251_v40  ;;  %v12275_v13 = vunpack.i.l.bf16 %v17366_v20 }
 0xcd9   :  { %v9560_v3 = vsel %vm9546_vm4, %v9527_v55, %v12266_v36  ;;  %v9559_v21 = vsel %vm9546_vm4, %v9526_v45, %v12265_v26  ;;  %v9502_v36 = vsel %vm1416_vm2, %v18238_v56, %v12230_v25  ;;  %v9537_v26 = vsel %vm2169_vm3, %v9505_v58, %v12256_v51 }
 0xcda   :  { %v9585_v23 = vpack.c.bf16 %v9560_v3, %v9559_v21  ;;  %v17375_v33 = vpop.permute.xlu0 %12268  ;;  %v9534_v3 = vsel %vm2169_vm3, %v9502_v36, %v12250_v18  ;;  %v12276_v21 = vunpack.i.h.bf16 %v17366_v20  ;;  %v18239_v20 = vld [vmem:[#allocation103_spill] sm:$0xff]  ;;  %v9508_v6 = vsel %vm1416_vm2, %v18240_v31, %v12275_v13 }
 0xcdb   :  { %v12271_v29 = vunpack.i.h.bf16 %v17375_v33  ;;  %v12270_v32 = vunpack.i.l.bf16 %v17375_v33  ;;  %v18241_v33 = vld [vmem:[#allocation104_spill] sm:$0xff] }
 0xcdc   :  { %12023 = vmatprep.mubr.msk.bf16.mxu0 %vm90_vm0, %v9585_v23  ;;  %v9509_v52 = vsel %vm1416_vm2, %v18239_v20, %v12276_v21 }
 0xcdd   :  { %12024 = vmatmul.mubr.msk.bf16.gmra.mxu0 %vm90_vm0, %v9586_v11 }
 0xcde   :  { %v12279_v57 = vpop.permute.xlu1 %12278  ;;  %v12284_v48 = vpop.permute.xlu0 %12283 }
 0xcdf   :  { %v12281_v16 = vunpack.i.h.bf16 %v12279_v57  ;;  %v12280_v47 = vunpack.i.l.bf16 %v12279_v57  ;;  %v12286_v22 = vunpack.i.h.bf16 %v12284_v48  ;;  %v12285_v35 = vunpack.i.l.bf16 %v12284_v48  ;;  %v18242_v48 = vld [vmem:[#allocation102_spill] sm:$0xff] }
 0xce1   :  { %v9565_v1 = vsel %vm9546_vm4, %v9532_v7, %v12280_v47  ;;  %v9566_v2 = vsel %vm9546_vm4, %v9533_v0, %v12281_v16  ;;  %v9564_v62 = vsel %vm9546_vm4, %v9531_v5, %v12286_v22  ;;  %v9563_v27 = vsel %vm9546_vm4, %v9530_v38, %v12285_v35 }
 0xce2   :  { %v12294_v34 = vpop.permute.xlu1 %12293  ;;  %v9588_v53 = vpack.c.bf16 %v9566_v2, %v9565_v1  ;;  %v9587_v63 = vpack.c.bf16 %v9564_v62, %v9563_v27  ;;  %v12289_v4 = vpop.permute.xlu0 %12288  ;;  %v9507_v0 = vsel %vm1416_vm2, %v18241_v33, %v12271_v29  ;;  %v9506_v1 = vsel %vm1416_vm2, %v18242_v48, %v12270_v32 }
 0xce3   :  { %v12296_v57 = vunpack.i.h.bf16 %v12294_v34  ;;  %v12295_v37 = vunpack.i.l.bf16 %v12294_v34  ;;  %v12291_v42 = vunpack.i.h.bf16 %v12289_v4  ;;  %v12290_v16 = vunpack.i.l.bf16 %v12289_v4 }
 0xce4   :  { %12027 = vmatprep.mubr.msk.bf16.mxu0 %vm90_vm0, %v9587_v63 }
 0xce5   :  { %12028 = vmatmul.mubr.msk.bf16.gmra.mxu0 %vm90_vm0, %v9588_v53  ;;  %v9540_v2 = vsel %vm2169_vm3, %v9508_v6, %v12295_v37  ;;  %v9541_v22 = vsel %vm2169_vm3, %v9509_v52, %v12296_v57  ;;  %v9539_v34 = vsel %vm2169_vm3, %v9507_v0, %v12291_v42  ;;  %v9538_v9 = vsel %vm2169_vm3, %v9506_v1, %v12290_v16  ;;  %v12061_v57 = vpop.f32.mrf.mxu1  ;;  %v18247_v0 = vld [vmem:[#allocation11_spill] sm:$0xff] }
 0xce6   :  { %v12299_v45 = vpop.permute.xlu1 %12298  ;;  %v12304_v55 = vpop.permute.xlu0 %12303  ;;  %v10415_v48 = vsub.s32 2, %v18247_v0 }
 0xce7   :  { %v12301_v8 = vunpack.i.h.bf16 %v12299_v45  ;;  %v12300_v60 = vunpack.i.l.bf16 %v12299_v45  ;;  %v12306_v50 = vunpack.i.h.bf16 %v12304_v55  ;;  %v12305_v59 = vunpack.i.l.bf16 %v12304_v55  ;;  %v18246_v55 = vld [vmem:[#allocation106_spill] sm:$0xff]  ;;  %v10222_v37 = vpop.f32.mrf.mxu1 }
 0xce9   :  { %v9569_v12 = vsel %vm9546_vm4, %v9536_v44, %v12300_v60  ;;  %v9570_v28 = vsel %vm9546_vm4, %v9537_v26, %v12301_v8  ;;  %v9568_v11 = vsel %vm9546_vm4, %v9535_v49, %v12306_v50  ;;  %v9567_v30 = vsel %vm9546_vm4, %v9534_v3, %v12305_v59  ;;  %v18243_v8 = vld [vmem:[#allocation107_spill] sm:$0xff]  ;;  %v18245_v44 = vld [vmem:[#allocation108_spill] sm:$0xff] }
 0xcea   :  { %v12314_v43 = vpop.permute.xlu1 %12313  ;;  %v9590_v23 = vpack.c.bf16 %v9570_v28, %v9569_v12  ;;  %v9589_v46 = vpack.c.bf16 %v9568_v11, %v9567_v30  ;;  %v12309_v41 = vpop.permute.xlu0 %12308 }
 0xceb   :  { %v12316_v53 = vunpack.i.h.bf16 %v12314_v43  ;;  %v12315_v62 = vunpack.i.l.bf16 %v12314_v43  ;;  %v12311_v25 = vunpack.i.h.bf16 %v12309_v41  ;;  %v12310_v4 = vunpack.i.l.bf16 %v12309_v41 }
 0xcec   :  { %12031 = vmatprep.mubr.msk.bf16.mxu0 %vm90_vm0, %v9589_v46  ;;  %v12062_v46 = vpop.f32.mrf.mxu1 }
 0xced   :  { %12032 = vmatmul.mubr.msk.bf16.gmra.mxu0 %vm90_vm0, %v9590_v23  ;;  %v9513_v60 = vsel %vm1416_vm2, %v18243_v8, %v12316_v53  ;;  %v9512_v14 = vsel %vm1416_vm2, %v18244_v15, %v12315_v62  ;;  %v9511_v26 = vsel %vm1416_vm2, %v18245_v44, %v12311_v25  ;;  %v9510_v12 = vsel %vm1416_vm2, %v18246_v55, %v12310_v4  ;;  %v13011_v44 = vld [vmem:[#allocation2 + $0x20] sm:$0xff] }
 0xcee   :  { %v12319_v47 = vpop.permute.xlu1 %12318  ;;  %v12324_v35 = vpop.permute.xlu0 %12323 }
 0xcef   :  { %v12321_v17 = vunpack.i.h.bf16 %v12319_v47  ;;  %v12320_v7 = vunpack.i.l.bf16 %v12319_v47  ;;  %v12326_v10 = vunpack.i.h.bf16 %v12324_v35  ;;  %v12325_v19 = vunpack.i.l.bf16 %v12324_v35  ;;  %v10225_v41 = vpop.f32.mrf.mxu1  ;;  %v13005_v35 = vld [vmem:[#allocation2 + $0x10] sm:$0xff] }
 0xcf1   :  { %v9573_v5 = vsel %vm9546_vm4, %v9540_v2, %v12320_v7  ;;  %v9574_v38 = vsel %vm9546_vm4, %v9541_v22, %v12321_v17  ;;  %v9572_v24 = vsel %vm9546_vm4, %v9539_v34, %v12326_v10  ;;  %v9571_v63 = vsel %vm9546_vm4, %v9538_v9, %v12325_v19  ;;  %v12065_v42 = vpop.f32.mrf.mxu1  ;;  %v13007_v9 = vld [vmem:[#allocation2] sm:$0xff] }
 0xcf2   :  { %v12334_v27 = vpop.permute.xlu1 %12333  ;;  %v9592_v51 = vpack.c.bf16 %v9574_v38, %v9573_v5  ;;  %v9591_v40 = vpack.c.bf16 %v9572_v24, %v9571_v63  ;;  %v12329_v61 = vpop.permute.xlu0 %12328  ;;  %v13006_v38 = vld [vmem:[#allocation5] sm:$0xff]  ;;  %v13008_v24 = vld [vmem:[#allocation2 + $0x18] sm:$0xff] }
 0xcf3   :  { %v12336_v18 = vunpack.i.h.bf16 %v12334_v27  ;;  %v12335_v45 = vunpack.i.l.bf16 %v12334_v27  ;;  %v12331_v58 = vunpack.i.h.bf16 %v12329_v61  ;;  %v12330_v39 = vunpack.i.l.bf16 %v12329_v61  ;;  %v10238_v16 = vpop.f32.mrf.mxu1 }
 0xcf4   :  { %12035 = vmatprep.mubr.msk.bf16.mxu0 %vm90_vm0, %v9591_v40  ;;  %v17482_v10 = vrot.slane %v13006_v38, %v10415_v48 }
 0xcf5   :  { %12036 = vmatmul.mubr.msk.bf16.gmra.mxu0 %vm90_vm0, %v9592_v51  ;;  %v9544_v28 = vsel %vm2169_vm3, %v9512_v14, %v12335_v45  ;;  %v9545_v50 = vsel %vm2169_vm3, %v9513_v60, %v12336_v18  ;;  %v9543_v43 = vsel %vm2169_vm3, %v9511_v26, %v12331_v58  ;;  %v9542_v29 = vsel %vm2169_vm3, %v9510_v12, %v12330_v39  ;;  %v12066_v47 = vpop.f32.mrf.mxu1  ;;  %v13009_v45 = vld [vmem:[#allocation2 + $0x8] sm:$0xff]  ;;  %v13010_v60 = vld [vmem:[#allocation2 + $0x30] sm:$0xff] }
 0xcf6   :  { %v12344_v54 = vpop.permute.xlu1 %12343  ;;  %v12339_v59 = vpop.permute.xlu0 %12338 }
 0xcf7   :  { %v12346_v56 = vunpack.i.h.bf16 %v12344_v54  ;;  %v12345_v36 = vunpack.i.l.bf16 %v12344_v54  ;;  %v12341_v21 = vunpack.i.h.bf16 %v12339_v59  ;;  %v12340_v13 = vunpack.i.l.bf16 %v12339_v59  ;;  %v10241_v20 = vpop.f32.mrf.mxu1  ;;  %v13012_v59 = vld [vmem:[#allocation2 + $0x38] sm:$0xff] }
 0xcf9   :  { %v9577_v49 = vsel %vm9546_vm4, %v9544_v28, %v12345_v36  ;;  %v9578_v3 = vsel %vm9546_vm4, %v9545_v50, %v12346_v56  ;;  %v9576_v11 = vsel %vm9546_vm4, %v9543_v43, %v12341_v21  ;;  %v9575_v30 = vsel %vm9546_vm4, %v9542_v29, %v12340_v13  ;;  %v17465_v52 = vpop.f32.mrf.mxu1  ;;  %v13013_v43 = vld [vmem:[#allocation2 + $0x28] sm:$0xff] }
 0xcfa   :  { %v9594_v23 = vpack.c.bf16 %v9578_v3, %v9577_v49  ;;  %v9593_v32 = vpack.c.bf16 %v9576_v11, %v9575_v30 }
 0xcfb   :  { %v17467_v31 = vpop.f32.mrf.mxu1 }
 0xcfc   :  { %12039 = vmatprep.mubr.msk.bf16.mxu0 %vm90_vm0, %v9593_v32 }
 0xcfd   :  { %12040 = vmatmul.mubr.msk.bf16.gmra.mxu0 %vm90_vm0, %v9594_v23  ;;  %v17469_v6 = vpop.f32.mrf.mxu1 }
 0xcff   :  { %v17471_v17 = vpop.f32.mrf.mxu1 }
 0xd01   :  { %v17473_v7 = vpop.f32.mrf.mxu1 }
 0xd03   :  { %v17475_v33 = vpop.f32.mrf.mxu1 }
 0xd05   :  { %v17478_v1 = vpop.f32.mrf.mxu1 }
 0xd07   :  { %v17480_v22 = vpop.f32.mrf.mxu1 }
 0xd09   :  { %v17484_v27 = vpop.f32.mrf.mxu1 }
 0xd0b   :  { %v17489_v58 = vpop.f32.mrf.mxu1 }
 0xd0d   :  { %v17495_v55 = vpop.f32.mrf.mxu1 }
 0xd0f   :  { %v17501_v23 = vpop.f32.mrf.mxu1 }
 0xd11   :  { %v17508_v0 = vpop.f32.mrf.mxu1 }
 0xd85   :  { %v12013_v2 = vpop.f32.mrf.mxu0 }
 0xd86   :  { %v10351_v5 = vadd.f32 %v13005_v35, %v12013_v2  ;;  %v13016_v35 = vld [vmem:[#allocation2 + $0x58] sm:$0xff] }
 0xd87   :  { %v9693_v19 = vpop.f32.mrf.mxu0 }
 0xd88   :  { %v10383_v34 = vadd.f32 %v12061_v57, %v10351_v5  ;;  %v10349_v53 = vadd.f32 %v13007_v9, %v9693_v19  ;;  %v13014_v57 = vld [vmem:[#allocation2 + $0x50] sm:$0xff] }
 0xd89   :  { %v12014_v62 = vpop.f32.mrf.mxu0 }
 0xd8a   :  { %v10419_v25 = vadd.f32 %v17482_v10, %v10383_v34  ;;  %v10381_v51 = vadd.f32 %v10349_v53, %v10222_v37  ;;  %v10352_v63 = vadd.f32 %v13008_v24, %v12014_v62  ;;  %v13017_v34 = vld [vmem:[#allocation2 + $0x48] sm:$0xff]  ;;  %v17516_v53 = vpop.f32.mrf.mxu1 }
 0xd8b   :  { %v9696_v4 = vpop.f32.mrf.mxu0 }
 0xd8c   :  { %10451 = vst.msk [vmem:[#allocation7 + $0x10] sm:$0xff] %vm90_vm0, %v10419_v25  ;;  %v10417_v40 = vadd.f32 %v17482_v10, %v10381_v51  ;;  %v10384_v18 = vadd.f32 %v12062_v46, %v10352_v63  ;;  %v10350_v61 = vadd.f32 %v13009_v45, %v9696_v4  ;;  %v13018_v51 = vld [vmem:[#allocation2 + $0x70] sm:$0xff]  ;;  %v12082_v45 = vpop.f32.mrf.mxu1 }
 0xd8d   :  { %v12017_v8 = vpop.f32.mrf.mxu0 }
 0xd8e   :  { %10449 = vst.msk [vmem:[#allocation7] sm:$0xff] %vm90_vm0, %v10417_v40  ;;  %v10420_v39 = vadd.f32 %v17482_v10, %v10384_v18  ;;  %v10382_v54 = vadd.f32 %v10350_v61, %v10225_v41  ;;  %v10355_v15 = vadd.f32 %v13010_v60, %v12017_v8  ;;  %v13019_v40 = vld [vmem:[#allocation2 + $0x60] sm:$0xff] }
 0xd8f   :  { %v9709_v56 = vpop.f32.mrf.mxu0 }
 0xd90   :  { %10452 = vst.msk [vmem:[#allocation7 + $0x18] sm:$0xff] %vm90_vm0, %v10420_v39  ;;  %v10418_v14 = vadd.f32 %v17482_v10, %v10382_v54  ;;  %v10387_v36 = vadd.f32 %v12065_v42, %v10355_v15  ;;  %v10353_v26 = vadd.f32 %v13011_v44, %v9709_v56 }
 0xd91   :  { %v12018_v12 = vpop.f32.mrf.mxu0 }
 0xd92   :  { %10450 = vst.msk [vmem:[#allocation7 + $0x8] sm:$0xff] %vm90_vm0, %v10418_v14  ;;  %v10423_v28 = vadd.f32 %v17482_v10, %v10387_v36  ;;  %v10385_v50 = vadd.f32 %v10353_v26, %v10238_v16  ;;  %v10356_v49 = vadd.f32 %v13012_v59, %v12018_v12  ;;  %v13015_v16 = vld [vmem:[#allocation2 + $0x40] sm:$0xff]  ;;  %v10305_v36 = vpop.f32.mrf.mxu1 }
 0xd93   :  { %v9712_v3 = vpop.f32.mrf.mxu0 }
 0xd94   :  { %10455 = vst.msk [vmem:[#allocation7 + $0x30] sm:$0xff] %vm90_vm0, %v10423_v28  ;;  %v10421_v21 = vadd.f32 %v17482_v10, %v10385_v50  ;;  %v10388_v13 = vadd.f32 %v12066_v47, %v10356_v49  ;;  %v10354_v29 = vadd.f32 %v13013_v43, %v9712_v3 }
 0xd95   :  { %v12021_v11 = vpop.f32.mrf.mxu0 }
 0xd96   :  { %10453 = vst.msk [vmem:[#allocation7 + $0x20] sm:$0xff] %vm90_vm0, %v10421_v21  ;;  %v10424_v30 = vadd.f32 %v17482_v10, %v10388_v13  ;;  %v10386_v32 = vadd.f32 %v10354_v29, %v10241_v20  ;;  %v10359_v37 = vadd.f32 %v13014_v57, %v12021_v11  ;;  %v12085_v21 = vpop.f32.mrf.mxu1 }
 0xd97   :  { %v9725_v46 = vpop.f32.mrf.mxu0 }
 0xd98   :  { %10456 = vst.msk [vmem:[#allocation7 + $0x38] sm:$0xff] %vm90_vm0, %v10424_v30  ;;  %v10422_v41 = vadd.f32 %v17482_v10, %v10386_v32  ;;  %v10391_v42 = vadd.f32 %v17465_v52, %v10359_v37  ;;  %v10357_v47 = vadd.f32 %v13015_v16, %v9725_v46  ;;  %v10318_v46 = vpop.f32.mrf.mxu1 }
 0xd99   :  { %v12022_v48 = vpop.f32.mrf.mxu0 }
 0xd9a   :  { %10454 = vst.msk [vmem:[#allocation7 + $0x28] sm:$0xff] %vm90_vm0, %v10422_v41  ;;  %v10427_v2 = vadd.f32 %v17482_v10, %v10391_v42  ;;  %v10389_v20 = vadd.f32 %v10357_v47, %v17467_v31  ;;  %v10360_v5 = vadd.f32 %v13016_v35, %v12022_v48 }
 0xd9b   :  { %v9728_v38 = vpop.f32.mrf.mxu0 }
 0xd9c   :  { %10459 = vst.msk [vmem:[#allocation7 + $0x50] sm:$0xff] %vm90_vm0, %v10427_v2  ;;  %v10425_v19 = vadd.f32 %v17482_v10, %v10389_v20  ;;  %v10392_v52 = vadd.f32 %v17469_v6, %v10360_v5  ;;  %v10358_v9 = vadd.f32 %v13017_v34, %v9728_v38  ;;  %v12086_v5 = vpop.f32.mrf.mxu1 }
 0xd9d   :  { %v12025_v62 = vpop.f32.mrf.mxu0 }
 0xd9e   :  { %10457 = vst.msk [vmem:[#allocation7 + $0x40] sm:$0xff] %vm90_vm0, %v10425_v19  ;;  %v10428_v25 = vadd.f32 %v17482_v10, %v10392_v52  ;;  %v10390_v31 = vadd.f32 %v10358_v9, %v17471_v17  ;;  %v10363_v24 = vadd.f32 %v13018_v51, %v12025_v62  ;;  %v13020_v17 = vld [vmem:[#allocation2 + $0x78] sm:$0xff]  ;;  %v10321_v51 = vpop.f32.mrf.mxu1 }
 0xd9f   :  { %v9741_v63 = vpop.f32.mrf.mxu0 }
 0xda0   :  { %10460 = vst.msk [vmem:[#allocation7 + $0x58] sm:$0xff] %vm90_vm0, %v10428_v25  ;;  %v10426_v4 = vadd.f32 %v17482_v10, %v10390_v31  ;;  %v10395_v6 = vadd.f32 %v17473_v7, %v10363_v24  ;;  %v10361_v18 = vadd.f32 %v13019_v40, %v9741_v63  ;;  %v13021_v7 = vld [vmem:[#allocation2 + $0x68] sm:$0xff] }
 0xda1   :  { %v12026_v61 = vpop.f32.mrf.mxu0  ;;  %v13029_v31 = vld [vmem:[#allocation2 + $0xa8] sm:$0xff] }
 0xda2   :  { %10458 = vst.msk [vmem:[#allocation7 + $0x48] sm:$0xff] %vm90_vm0, %v10426_v4  ;;  %v10431_v39 = vadd.f32 %v17482_v10, %v10395_v6  ;;  %v10393_v54 = vadd.f32 %v10361_v18, %v17475_v33  ;;  %v10364_v8 = vadd.f32 %v13020_v17, %v12026_v61  ;;  %v13022_v33 = vld [vmem:[#allocation2 + $0x90] sm:$0xff] }
 0xda3   :  { %v9744_v60 = vpop.f32.mrf.mxu0  ;;  %v13030_v6 = vld [vmem:[#allocation2 + $0xd0] sm:$0xff] }
 0xda4   :  { %10463 = vst.msk [vmem:[#allocation7 + $0x70] sm:$0xff] %vm90_vm0, %v10431_v39  ;;  %v10429_v15 = vadd.f32 %v17482_v10, %v10393_v54  ;;  %v10396_v14 = vadd.f32 %v17478_v1, %v10364_v8  ;;  %v10362_v56 = vadd.f32 %v13021_v7, %v9744_v60  ;;  %v13023_v1 = vld [vmem:[#allocation2 + $0x80] sm:$0xff] }
 0xda5   :  { %v12029_v44 = vpop.f32.mrf.mxu0  ;;  %v13031_v39 = vld [vmem:[#allocation2 + $0xc0] sm:$0xff] }
 0xda6   :  { %10461 = vst.msk [vmem:[#allocation7 + $0x60] sm:$0xff] %vm90_vm0, %v10429_v15  ;;  %v10432_v26 = vadd.f32 %v17482_v10, %v10396_v14  ;;  %v10394_v12 = vadd.f32 %v10362_v56, %v17480_v22  ;;  %v10367_v28 = vadd.f32 %v13022_v33, %v12029_v44  ;;  %v13024_v22 = vld [vmem:[#allocation2 + $0x98] sm:$0xff]  ;;  %v13033_v44 = vld [vmem:[#allocation2 + $0xc8] sm:$0xff] }
 0xda7   :  { %v9757_v50 = vpop.f32.mrf.mxu0  ;;  %v13032_v15 = vld [vmem:[#allocation2 + $0xd8] sm:$0xff] }
 0xda8   :  { %10464 = vst.msk [vmem:[#allocation7 + $0x78] sm:$0xff] %vm90_vm0, %v10432_v26  ;;  %v10430_v59 = vadd.f32 %v17482_v10, %v10394_v12  ;;  %v10399_v49 = vadd.f32 %v17484_v27, %v10367_v28  ;;  %v10365_v3 = vadd.f32 %v13023_v1, %v9757_v50  ;;  %v13025_v27 = vld [vmem:[#allocation2 + $0x88] sm:$0xff] }
 0xda9   :  { %v12030_v13 = vpop.f32.mrf.mxu0 }
 0xdaa   :  { %10462 = vst.msk [vmem:[#allocation7 + $0x68] sm:$0xff] %vm90_vm0, %v10430_v59  ;;  %v10435_v43 = vadd.f32 %v17482_v10, %v10399_v49  ;;  %v10397_v29 = vadd.f32 %v10365_v3, %v17489_v58  ;;  %v10368_v11 = vadd.f32 %v13024_v22, %v12030_v13  ;;  %v13026_v58 = vld [vmem:[#allocation2 + $0xb0] sm:$0xff]  ;;  %v13035_v13 = vld [vmem:[#allocation2 + $0xe0] sm:$0xff] }
 0xdab   :  { %v9760_v30 = vpop.f32.mrf.mxu0  ;;  %v13034_v59 = vld [vmem:[#allocation2 + $0xf0] sm:$0xff] }
 0xdac   :  { %10467 = vst.msk [vmem:[#allocation7 + $0x90] sm:$0xff] %vm90_vm0, %v10435_v43  ;;  %v10433_v32 = vadd.f32 %v17482_v10, %v10397_v29  ;;  %v10400_v57 = vadd.f32 %v17495_v55, %v10368_v11  ;;  %v10366_v37 = vadd.f32 %v13025_v27, %v9760_v30  ;;  %v13027_v55 = vld [vmem:[#allocation2 + $0xa0] sm:$0xff] }
 0xdad   :  { %v12033_v41 = vpop.f32.mrf.mxu0 }
 0xdae   :  { %10465 = vst.msk [vmem:[#allocation7 + $0x80] sm:$0xff] %vm90_vm0, %v10433_v32  ;;  %v10436_v42 = vadd.f32 %v17482_v10, %v10400_v57  ;;  %v10398_v16 = vadd.f32 %v10366_v37, %v17501_v23  ;;  %v10371_v47 = vadd.f32 %v13026_v58, %v12033_v41  ;;  %v13028_v23 = vld [vmem:[#allocation2 + $0xb8] sm:$0xff]  ;;  %v13037_v41 = vld [vmem:[#allocation2 + $0xe8] sm:$0xff] }
 0xdaf   :  { %v9773_v48 = vpop.f32.mrf.mxu0  ;;  %v13036_v32 = vld [vmem:[#allocation2 + $0xf8] sm:$0xff] }
 0xdb0   :  { %10468 = vst.msk [vmem:[#allocation7 + $0x98] sm:$0xff] %vm90_vm0, %v10436_v42  ;;  %v10434_v2 = vadd.f32 %v17482_v10, %v10398_v16  ;;  %v10403_v20 = vadd.f32 %v17508_v0, %v10371_v47  ;;  %v10369_v35 = vadd.f32 %v13027_v55, %v9773_v48 }
 0xdb1   :  { %v12034_v38 = vpop.f32.mrf.mxu0 }
 0xdb2   :  { %10466 = vst.msk [vmem:[#allocation7 + $0x88] sm:$0xff] %vm90_vm0, %v10434_v2  ;;  %v10439_v19 = vadd.f32 %v17482_v10, %v10403_v20  ;;  %v10401_v52 = vadd.f32 %v10369_v35, %v17516_v53  ;;  %v10372_v34 = vadd.f32 %v13028_v23, %v12034_v38 }
 0xdb3   :  { %v9776_v9 = vpop.f32.mrf.mxu0 }
 0xdb4   :  { %10471 = vst.msk [vmem:[#allocation7 + $0xb0] sm:$0xff] %vm90_vm0, %v10439_v19  ;;  %v10437_v62 = vadd.f32 %v17482_v10, %v10401_v52  ;;  %v10404_v25 = vadd.f32 %v12082_v45, %v10372_v34  ;;  %v10370_v0 = vadd.f32 %v13029_v31, %v9776_v9  ;;  %v12089_v45 = vpop.f32.mrf.mxu1 }
 0xdb5   :  { %v12037_v24 = vpop.f32.mrf.mxu0 }
 0xdb6   :  { %10469 = vst.msk [vmem:[#allocation7 + $0xa0] sm:$0xff] %vm90_vm0, %v10437_v62  ;;  %v10440_v63 = vadd.f32 %v17482_v10, %v10404_v25  ;;  %v10402_v4 = vadd.f32 %v10370_v0, %v10305_v36  ;;  %v10375_v40 = vadd.f32 %v13030_v6, %v12037_v24  ;;  %v10334_v12 = vpop.f32.mrf.mxu1 }
 0xdb7   :  { %v9789_v53 = vpop.f32.mrf.mxu0 }
 0xdb8   :  { %10472 = vst.msk [vmem:[#allocation7 + $0xb8] sm:$0xff] %vm90_vm0, %v10440_v63  ;;  %v10438_v18 = vadd.f32 %v17482_v10, %v10402_v4  ;;  %v10407_v61 = vadd.f32 %v12085_v21, %v10375_v40  ;;  %v10373_v54 = vadd.f32 %v13031_v39, %v9789_v53  ;;  %v12090_v29 = vpop.f32.mrf.mxu1 }
 0xdb9   :  { %v12038_v17 = vpop.f32.mrf.mxu0 }
 0xdba   :  { %10470 = vst.msk [vmem:[#allocation7 + $0xa8] sm:$0xff] %vm90_vm0, %v10438_v18  ;;  %v10443_v8 = vadd.f32 %v17482_v10, %v10407_v61  ;;  %v10405_v60 = vadd.f32 %v10373_v54, %v10318_v46  ;;  %v10376_v14 = vadd.f32 %v13032_v15, %v12038_v17  ;;  %v10337_v16 = vpop.f32.mrf.mxu1 }
 0xdbb   :  { %v9792_v7 = vpop.f32.mrf.mxu0 }
 0xdbc   :  { %10475 = vst.msk [vmem:[#allocation7 + $0xd0] sm:$0xff] %vm90_vm0, %v10443_v8  ;;  %v10441_v56 = vadd.f32 %v17482_v10, %v10405_v60  ;;  %v10408_v36 = vadd.f32 %v12086_v5, %v10376_v14  ;;  %v10374_v26 = vadd.f32 %v13033_v44, %v9792_v7 }
 0xdbd   :  { %v12041_v33 = vpop.f32.mrf.mxu0 }
 0xdbe   :  { %10473 = vst.msk [vmem:[#allocation7 + $0xc0] sm:$0xff] %vm90_vm0, %v10441_v56  ;;  %v10444_v28 = vadd.f32 %v17482_v10, %v10408_v36  ;;  %v10406_v50 = vadd.f32 %v10374_v26, %v10321_v51  ;;  %v10379_v49 = vadd.f32 %v13034_v59, %v12041_v33 }
 0xdbf   :  { %v9805_v1 = vpop.f32.mrf.mxu0 }
 0xdc0   :  { %10476 = vst.msk [vmem:[#allocation7 + $0xd8] sm:$0xff] %vm90_vm0, %v10444_v28  ;;  %v10442_v3 = vadd.f32 %v17482_v10, %v10406_v50  ;;  %v10411_v21 = vadd.f32 %v12089_v45, %v10379_v49  ;;  %v10377_v43 = vadd.f32 %v13035_v13, %v9805_v1 }
 0xdc1   :  { %v12042_v22 = vpop.f32.mrf.mxu0 }
 0xdc2   :  { %10474 = vst.msk [vmem:[#allocation7 + $0xc8] sm:$0xff] %vm90_vm0, %v10442_v3  ;;  %v10447_v11 = vadd.f32 %v17482_v10, %v10411_v21  ;;  %v10409_v30 = vadd.f32 %v10377_v43, %v10334_v12  ;;  %v10380_v57 = vadd.f32 %v13036_v32, %v12042_v22 }
 0xdc3   :  { %v9808_v27 = vpop.f32.mrf.mxu0 }
 0xdc4   :  { %10479 = vst.msk [vmem:[#allocation7 + $0xf0] sm:$0xff] %vm90_vm0, %v10447_v11  ;;  %v10445_v37 = vadd.f32 %v17482_v10, %v10409_v30  ;;  %v10412_v46 = vadd.f32 %v12090_v29, %v10380_v57  ;;  %v10378_v42 = vadd.f32 %v13037_v41, %v9808_v27 }
 0xdc6   :  { %10477 = vst.msk [vmem:[#allocation7 + $0xe0] sm:$0xff] %vm90_vm0, %v10445_v37  ;;  %v10448_v58 = vadd.f32 %v17482_v10, %v10412_v46  ;;  %v10410_v47 = vadd.f32 %v10378_v42, %v10337_v16 }
 0xdc8   :  { %10480 = vst.msk [vmem:[#allocation7 + $0xf8] sm:$0xff] %vm90_vm0, %v10448_v58  ;;  %v10446_v48 = vadd.f32 %v17482_v10, %v10410_v47 }
 0xdca   :  { %10478 = vst.msk [vmem:[#allocation7 + $0xe8] sm:$0xff] %vm90_vm0, %v10446_v48 }
 0xdcb   :  { %13089 = shalt.err (!%p13086_p0)
}
 0xdcc   :  { %10492 = dma.vmem_to_hbm [thread:$0]  %s10487_s5, 4096, %s17588_s8, [#allocation4], %s13105_s30, %s13105_s30, %s13106_s9  }
 0xdcd   :  { %13102 = dma.done.wait [#allocation4], 4096  }
 0xdce   :  { %13103 = vsyncadd [#allocation4], 4294963200 }
 0xdcf   :  { %10496 = vsyncpa [#allocation3], 1 }
 0xdd0   :  { %10497 = vsyncpa [#allocation6], 1 }
 0xdd1   :  { %10498 = vsyncpa [#allocation4], 1 }

</bundles_post_ra>
